<compile_context>
chip_gen: v5e
topology: v5e:2x2
jax: 0.10.0
libtpu: 0.0.40
codegen_flags: <defaults>
</compile_context>

<pallas_src>
import functools

import jax
import jax.numpy as jnp
import numpy as np
from jax.experimental import pallas as pl
from jax.experimental.pallas import tpu as pltpu


def _elu(v):
    return jnp.where(v > 0, v, jnp.exp(jnp.minimum(v, 0.0)) - 1.0)


def decoder_block_kernel(x_ref, xen_ref, wskip_ref, bskip_ref,
                         w1_ref, b1_ref, w2_ref, b2_ref, w3_ref, b3_ref,
                         wd_ref, bd_ref, sf_ref, bf_ref, o_ref,
                         hp_ref, zp_ref, *, is_last):
    B, T, F, Cin = x_ref.shape
    Cc = xen_ref.shape[-1]
    C2 = w1_ref.shape[1]          # 2 * in_channels
    Cout2 = wd_ref.shape[-1]      # 2 * out_channels
    M = B * T * F
    bf16 = jnp.bfloat16

    x = x_ref[...].reshape(M, Cin)
    xen = xen_ref[...].reshape(M, Cc)

    # ---- y = x + skip_conv(x_en)   (1x1 conv == channel matmul)
    skip = jnp.dot(xen.astype(bf16), wskip_ref[...],
                   preferred_element_type=jnp.float32) + bskip_ref[...]
    y = x + skip                                             # (M, Cin) f32

    # ---- InvertedResidualBlock --------------------------------------------
    # 1x1 expansion (no bias) + folded BN
    h1 = jnp.dot(y.astype(bf16), w1_ref[...],
                 preferred_element_type=jnp.float32) + b1_ref[...]  # (M, C2)

    # ZeroPad2d([1,1,3,0]) written into a pre-zeroed VMEM scratch, then a
    # single im2col matmul replaces the 12 shifted matmuls of the (4,3) conv.
    hp_ref[...] = jnp.zeros_like(hp_ref)
    hp_ref[:, 3:, 1:F + 1, :] = h1.reshape(B, T, F, C2)
    patches = jnp.concatenate(
        [hp_ref[:, kt:kt + T, kf:kf + F, :].astype(bf16)
         for kt in range(4) for kf in range(3)], axis=-1)     # (B,T,F,12*C2)
    patches = patches.reshape(M, 12 * C2)
    h2 = _elu(jnp.dot(patches, w2_ref[...],
                      preferred_element_type=jnp.float32) + b2_ref[...])

    # 1x1 projection (no bias) + folded BN, residual add
    h3 = jnp.dot(h2.astype(bf16), w3_ref[...],
                 preferred_element_type=jnp.float32) + b3_ref[...]
    z = y + h3                                               # (M, Cin) f32

    # ---- SubpixelConv2d: pad + (4,3) conv -> 2*out_channels -----------------
    zp_ref[...] = jnp.zeros_like(zp_ref)
    zp_ref[:, 3:, 1:F + 1, :] = z.reshape(B, T, F, Cin)
    patches2 = jnp.concatenate(
        [zp_ref[:, kt:kt + T, kf:kf + F, :].astype(bf16)
         for kt in range(4) for kf in range(3)], axis=-1)     # (B,T,F,12*Cin)
    patches2 = patches2.reshape(M, 12 * Cin)
    d = jnp.dot(patches2, wd_ref[...],
                preferred_element_type=jnp.float32)           # (M, Cout2) f32

    # Lane-dense output slab: slab[b, t, 0, f*Cout2 + j] = d[(b,t,f), j].
    d4 = d.reshape(B, T, F, Cout2)
    slab = jnp.concatenate([d4[:, :, f:f + 1, :] for f in range(F)],
                           axis=-1)                           # (B, T, 1, F*Cout2)
    slab = slab + bd_ref[...]                                 # deconv bias (tiled)
    if not is_last:
        # folded eval-mode BatchNorm2d(out_channels) + ELU (tiled per lane)
        slab = _elu(slab * sf_ref[...] + bf_ref[...])
    o_ref[...] = slab.astype(o_ref.dtype)


def decoder_block_pallas(x, x_en, params, *, is_last=False):
    """x: (B,T,F,Cin), x_en: (B,T,F,Ccache), channels-last -> (B,T,2F,Cout)."""
    B, T, F, Cin = x.shape
    (wskip, bskip, w1, b1, w2p, b2, w3, b3, wdp,
     bd_slab, sf_slab, bf_slab) = params
    Cc = x_en.shape[-1]
    C2 = w1.shape[1]
    Cout2 = wdp.shape[-1]
    Cout = Cout2 // 2
    L = F * Cout2
    M = B * T * F

    all_inputs = (x, x_en) + tuple(params)

    def full_spec(a):
        n = a.ndim
        return pl.BlockSpec(a.shape, lambda i, _n=n: (0,) * _n)

    in_specs = [full_spec(a) for a in all_inputs]
    out_specs = pl.BlockSpec((B, T, 1, L), lambda i: (0, 0, 0, 0))
    out_shape = jax.ShapeDtypeStruct((B, T, 1, L), jnp.float32)

    flops = 2 * M * (Cc * Cin + Cin * C2 + 12 * C2 * C2 + C2 * Cin
                     + 12 * Cin * Cout2)
    transcendentals = M * C2 + B * T * L
    bytes_accessed = (sum(int(a.size) * a.dtype.itemsize for a in all_inputs)
                      + B * T * L * 4)

    kernel = functools.partial(decoder_block_kernel, is_last=is_last)
    slab = pl.pallas_call(
        kernel,
        grid=(1,),
        in_specs=in_specs,
        out_specs=out_specs,
        out_shape=out_shape,
        scratch_shapes=[
            pltpu.VMEM((B, T + 3, F + 2, C2), jnp.float32),   # padded h1
            pltpu.VMEM((B, T + 3, F + 2, Cin), jnp.float32),  # padded z
        ],
        compiler_params=pltpu.CompilerParams(
            dimension_semantics=("arbitrary",)),
        cost_estimate=pl.CostEstimate(flops=flops,
                                      transcendentals=transcendentals,
                                      bytes_accessed=bytes_accessed),
    )(*all_inputs)

    # pixel shuffle 'b (r c) t f -> b c t (r f)' (channels-last), done in XLA
    # on the lane-dense HBM slab.
    d = slab.reshape(B, T, F, 2, Cout)
    return jnp.transpose(d, (0, 1, 3, 2, 4)).reshape(B, T, 2 * F, Cout)


def init_params(key, Cin, Cout, Cc, F):
    """Deterministic synthetic parameters; BN folded, conv weights im2col-packed."""
    eps = 1e-5
    ks = iter(jax.random.split(key, 32))

    def normal(shape, scale=0.2):
        return scale * jax.random.normal(next(ks), shape, dtype=jnp.float32)

    def bn_params(C):
        gamma = 1.0 + 0.1 * jax.random.normal(next(ks), (C,), dtype=jnp.float32)
        beta = 0.1 * jax.random.normal(next(ks), (C,), dtype=jnp.float32)
        mean = 0.1 * jax.random.normal(next(ks), (C,), dtype=jnp.float32)
        var = 0.5 + jax.random.uniform(next(ks), (C,), dtype=jnp.float32)
        return gamma, beta, mean, var

    def fold(w_io, b_o, bn):          # output channels LAST in w_io
        gamma, beta, mean, var = bn
        s = gamma / jnp.sqrt(var + eps)
        return w_io * s, (b_o - mean) * s + beta

    C2 = 2 * Cin
    Cout2 = 2 * Cout

    # skip_conv: Conv2d(Cc, Cin, 1) with bias; PyTorch weight (Cin, Cc, 1, 1)
    wskip_pt = normal((Cin, Cc, 1, 1))
    bskip = normal((Cin,))
    wskip = wskip_pt[:, :, 0, 0].T                              # (Cc, Cin)

    # InvertedResidualBlock
    w1_pt = normal((C2, Cin, 1, 1))                             # no bias
    w1, b1 = fold(w1_pt[:, :, 0, 0].T, jnp.zeros((C2,), jnp.float32),
                  bn_params(C2))

    w2_pt = normal((C2, C2, 4, 3))                              # with bias
    b2_pt = normal((C2,))
    w2, b2 = fold(jnp.transpose(w2_pt, (2, 3, 1, 0)), b2_pt, bn_params(C2))
    w2p = w2.reshape(12 * C2, C2)                               # im2col-packed

    w3_pt = normal((Cin, C2, 1, 1))                             # no bias
    w3, b3 = fold(w3_pt[:, :, 0, 0].T, jnp.zeros((Cin,), jnp.float32),
                  bn_params(Cin))

    # SubpixelConv2d conv: Conv2d(Cin, 2*Cout, (4,3)) with bias
    wd_pt = normal((Cout2, Cin, 4, 3))
    bd = normal((Cout2,))
    wdp = jnp.transpose(wd_pt, (2, 3, 1, 0)).reshape(12 * Cin, Cout2)

    # final BatchNorm2d(Cout), folded (only applied when not is_last)
    gamma, beta, mean, var = bn_params(Cout)
    sf = gamma / jnp.sqrt(var + eps)
    bf = beta - mean * sf

    # lane-dense slab epilogue vectors: slab lane index = f*Cout2 + r*Cout + c
    L = F * Cout2
    bd_slab = jnp.tile(bd, F).reshape(1, L)
    sf_slab = jnp.tile(sf, 2 * F).reshape(1, L)
    bf_slab = jnp.tile(bf, 2 * F).reshape(1, L)

    bmat = lambda w: w.astype(jnp.bfloat16)                     # MXU operands
    rvec = lambda v: v.reshape(1, -1)                           # f32 biases
    return (bmat(wskip), rvec(bskip), bmat(w1), rvec(b1), bmat(w2p), rvec(b2),
            bmat(w3), rvec(b3), bmat(wdp), bd_slab, sf_slab, bf_slab)


def reference(x, x_en, params, *, is_last=False):
    """Pure-JAX reference computing the same (folded, bf16-matmul) math."""
    (wskip, bskip, w1, b1, w2p, b2, w3, b3, wdp,
     bd_slab, sf_slab, bf_slab) = params
    B, T, F, Cin = x.shape
    Cc = x_en.shape[-1]
    C2 = w1.shape[1]
    Cout2 = wdp.shape[-1]
    Cout = Cout2 // 2
    M = B * T * F
    L = F * Cout2
    bf16 = jnp.bfloat16

    def mm(a, w):
        return jnp.dot(a.astype(bf16), w, preferred_element_type=jnp.float32)

    def im2col(h):                      # (B,T,F,C) -> (M, 12*C)
        hp = jnp.pad(h, ((0, 0), (3, 0), (1, 1), (0, 0)))
        pats = jnp.concatenate(
            [hp[:, kt:kt + T, kf:kf + F, :]
             for kt in range(4) for kf in range(3)], axis=-1)
        return pats.reshape(M, 12 * h.shape[-1])

    y = x.reshape(M, Cin) + (mm(x_en.reshape(M, Cc), wskip) + bskip)
    h1 = mm(y, w1) + b1
    h2 = _elu(mm(im2col(h1.reshape(B, T, F, C2)), w2p) + b2)
    z = y + (mm(h2, w3) + b3)
    d = mm(im2col(z.reshape(B, T, F, Cin)), wdp)
    slab = d.reshape(B, T, L) + bd_slab
    if not is_last:
        slab = _elu(slab * sf_slab + bf_slab)
    out = slab.reshape(B, T, F, 2, Cout)
    return jnp.transpose(out, (0, 1, 3, 2, 4)).reshape(B, T, 2 * F, Cout)


if __name__ == "__main__":
    B, T, F = 2, 8, 16
    Cin, Cout, Cc = 8, 4, 6          # in_channels, out_channels, cache_channels

    key = jax.random.PRNGKey(0)
    kx, ke, kp = jax.random.split(key, 3)

    # PyTorch NCHW inputs: x (B, Cin, T, F), x_en (B, Ccache, T, F)
    x_nchw = jax.random.normal(kx, (B, Cin, T, F), dtype=jnp.float32)
    xen_nchw = jax.random.normal(ke, (B, Cc, T, F), dtype=jnp.float32)
    # transpose to kernel layout (B, T, F, C)
    x = jnp.transpose(x_nchw, (0, 2, 3, 1))
    x_en = jnp.transpose(xen_nchw, (0, 2, 3, 1))

    params = init_params(kp, Cin, Cout, Cc, F)

    for is_last in (False, True):
        out = decoder_block_pallas(x, x_en, params, is_last=is_last)
        out = jax.block_until_ready(out)
        assert out.shape == (B, T, 2 * F, Cout)
        ref = reference(x, x_en, params, is_last=is_last)
        np.testing.assert_allclose(np.asarray(out), np.asarray(ref),
                                   rtol=2e-3, atol=2e-3)
    print("KERNEL_OK")
</pallas_src>

<mosaic_0001>
module attributes {stable_mosaic.version = 11 : i64} {
  func.func @decoder_block_kernel(%arg0: i32, %arg1: memref<2x8x16x8xf32, #tpu.memory_space<vmem>>, %arg2: memref<2x8x16x6xf32, #tpu.memory_space<vmem>>, %arg3: memref<6x8xbf16, #tpu.memory_space<vmem>>, %arg4: memref<1x8xf32, #tpu.memory_space<vmem>>, %arg5: memref<8x16xbf16, #tpu.memory_space<vmem>>, %arg6: memref<1x16xf32, #tpu.memory_space<vmem>>, %arg7: memref<192x16xbf16, #tpu.memory_space<vmem>>, %arg8: memref<1x16xf32, #tpu.memory_space<vmem>>, %arg9: memref<16x8xbf16, #tpu.memory_space<vmem>>, %arg10: memref<1x8xf32, #tpu.memory_space<vmem>>, %arg11: memref<96x8xbf16, #tpu.memory_space<vmem>>, %arg12: memref<1x128xf32, #tpu.memory_space<vmem>>, %arg13: memref<1x128xf32, #tpu.memory_space<vmem>>, %arg14: memref<1x128xf32, #tpu.memory_space<vmem>>, %arg15: memref<2x8x1x128xf32, #tpu.memory_space<vmem>>, %arg16: memref<2x11x18x16xf32, #tpu.memory_space<vmem>>, %arg17: memref<2x11x18x8xf32, #tpu.memory_space<vmem>>) attributes {dimension_semantics = [#tpu.dimension_semantics<arbitrary>], iteration_bounds = array<i64: 1>, scalar_prefetch = 0 : i64, scratch_operands = 2 : i64, tpu.core_type = #tpu.core_type<tc>, window_params = [{pipeline_mode = #tpu.pipeline_mode<synchronous>, transform_indices = @transform_0, window_bounds = array<i64: 2, 8, 16, 8>}, {pipeline_mode = #tpu.pipeline_mode<synchronous>, transform_indices = @transform_1, window_bounds = array<i64: 2, 8, 16, 6>}, {pipeline_mode = #tpu.pipeline_mode<synchronous>, transform_indices = @transform_2, window_bounds = array<i64: 6, 8>}, {pipeline_mode = #tpu.pipeline_mode<synchronous>, transform_indices = @transform_3, window_bounds = array<i64: 1, 8>}, {pipeline_mode = #tpu.pipeline_mode<synchronous>, transform_indices = @transform_4, window_bounds = array<i64: 8, 16>}, {pipeline_mode = #tpu.pipeline_mode<synchronous>, transform_indices = @transform_5, window_bounds = array<i64: 1, 16>}, {pipeline_mode = #tpu.pipeline_mode<synchronous>, transform_indices = @transform_6, window_bounds = array<i64: 192, 16>}, {pipeline_mode = #tpu.pipeline_mode<synchronous>, transform_indices = @transform_7, window_bounds = array<i64: 1, 16>}, {pipeline_mode = #tpu.pipeline_mode<synchronous>, transform_indices = @transform_8, window_bounds = array<i64: 16, 8>}, {pipeline_mode = #tpu.pipeline_mode<synchronous>, transform_indices = @transform_9, window_bounds = array<i64: 1, 8>}, {pipeline_mode = #tpu.pipeline_mode<synchronous>, transform_indices = @transform_10, window_bounds = array<i64: 96, 8>}, {pipeline_mode = #tpu.pipeline_mode<synchronous>, transform_indices = @transform_11, window_bounds = array<i64: 1, 128>}, {pipeline_mode = #tpu.pipeline_mode<synchronous>, transform_indices = @transform_12, window_bounds = array<i64: 1, 128>}, {pipeline_mode = #tpu.pipeline_mode<synchronous>, transform_indices = @transform_13, window_bounds = array<i64: 1, 128>}, {pipeline_mode = #tpu.pipeline_mode<synchronous>, transform_indices = @transform_14, window_bounds = array<i64: 2, 8, 1, 128>}]} {
    %c0 = arith.constant 0 : index
    %c0_0 = arith.constant 0 : index
    %c0_1 = arith.constant 0 : index
    %c0_2 = arith.constant 0 : index
    %0 = vector.load %arg1[%c0, %c0_0, %c0_1, %c0_2] : memref<2x8x16x8xf32, #tpu.memory_space<vmem>>, vector<2x8x16x8xf32>
    %1 = vector.shape_cast %0 : vector<2x8x16x8xf32> to vector<256x8xf32>
    %c0_3 = arith.constant 0 : index
    %c0_4 = arith.constant 0 : index
    %c0_5 = arith.constant 0 : index
    %c0_6 = arith.constant 0 : index
    %2 = vector.load %arg2[%c0_3, %c0_4, %c0_5, %c0_6] : memref<2x8x16x6xf32, #tpu.memory_space<vmem>>, vector<2x8x16x6xf32>
    %3 = vector.shape_cast %2 : vector<2x8x16x6xf32> to vector<256x6xf32>
    %4 = arith.truncf %3 : vector<256x6xf32> to vector<256x6xbf16>
    %c0_7 = arith.constant 0 : index
    %c0_8 = arith.constant 0 : index
    %5 = vector.load %arg3[%c0_7, %c0_8] : memref<6x8xbf16, #tpu.memory_space<vmem>>, vector<6x8xbf16>
    %cst = arith.constant dense<0.000000e+00> : vector<256x8xf32>
    %6 = tpu.matmul %4, %5, %cst {dimension_numbers = #tpu.dot_dimension_numbers<[1], [0], [0], [1], [0, 0, 1, 1], [], []>} : vector<256x6xbf16>, vector<6x8xbf16>, vector<256x8xf32> -> vector<256x8xf32>
    %c0_9 = arith.constant 0 : index
    %c0_10 = arith.constant 0 : index
    %7 = vector.load %arg4[%c0_9, %c0_10] : memref<1x8xf32, #tpu.memory_space<vmem>>, vector<1x8xf32>
    %8 = vector.broadcast %7 : vector<1x8xf32> to vector<256x8xf32>
    %9 = arith.addf %6, %8 : vector<256x8xf32>
    %10 = arith.addf %1, %9 : vector<256x8xf32>
    %11 = arith.truncf %10 : vector<256x8xf32> to vector<256x8xbf16>
    %c0_11 = arith.constant 0 : index
    %c0_12 = arith.constant 0 : index
    %12 = vector.load %arg5[%c0_11, %c0_12] : memref<8x16xbf16, #tpu.memory_space<vmem>>, vector<8x16xbf16>
    %cst_13 = arith.constant dense<0.000000e+00> : vector<256x16xf32>
    %13 = tpu.matmul %11, %12, %cst_13 {dimension_numbers = #tpu.dot_dimension_numbers<[1], [0], [0], [1], [0, 0, 1, 1], [], []>} : vector<256x8xbf16>, vector<8x16xbf16>, vector<256x16xf32> -> vector<256x16xf32>
    %c0_14 = arith.constant 0 : index
    %c0_15 = arith.constant 0 : index
    %14 = vector.load %arg6[%c0_14, %c0_15] : memref<1x16xf32, #tpu.memory_space<vmem>>, vector<1x16xf32>
    %15 = vector.broadcast %14 : vector<1x16xf32> to vector<256x16xf32>
    %16 = arith.addf %13, %15 : vector<256x16xf32>
    %cst_16 = arith.constant 0.000000e+00 : f32
    %17 = vector.broadcast %cst_16 : f32 to vector<2x11x18x16xf32>
    %c0_17 = arith.constant 0 : index
    %c0_18 = arith.constant 0 : index
    %c0_19 = arith.constant 0 : index
    %c0_20 = arith.constant 0 : index
    %18 = vector.load %arg16[%c0_17, %c0_18, %c0_19, %c0_20] : memref<2x11x18x16xf32, #tpu.memory_space<vmem>>, vector<2x11x18x16xf32>
    tpu.vector_store %arg16[%c0_17, %c0_18, %c0_19, %c0_20], %17 {strides = array<i32>} : memref<2x11x18x16xf32, #tpu.memory_space<vmem>>, vector<2x11x18x16xf32>,
    %19 = vector.shape_cast %16 : vector<256x16xf32> to vector<2x8x16x16xf32>
    %c0_21 = arith.constant 0 : index
    %c3 = arith.constant 3 : index
    %c1 = arith.constant 1 : index
    %c0_22 = arith.constant 0 : index
    %20 = vector.load %arg16[%c0_21, %c3, %c1, %c0_22] : memref<2x11x18x16xf32, #tpu.memory_space<vmem>>, vector<2x8x16x16xf32>
    tpu.vector_store %arg16[%c0_21, %c3, %c1, %c0_22], %19 {strides = array<i32>} : memref<2x11x18x16xf32, #tpu.memory_space<vmem>>, vector<2x8x16x16xf32>,
    %c0_23 = arith.constant 0 : index
    %c0_24 = arith.constant 0 : index
    %c0_25 = arith.constant 0 : index
    %c0_26 = arith.constant 0 : index
    %21 = vector.load %arg16[%c0_23, %c0_24, %c0_25, %c0_26] : memref<2x11x18x16xf32, #tpu.memory_space<vmem>>, vector<2x8x16x16xf32>
    %22 = arith.truncf %21 : vector<2x8x16x16xf32> to vector<2x8x16x16xbf16>
    %c0_27 = arith.constant 0 : index
    %c0_28 = arith.constant 0 : index
    %c1_29 = arith.constant 1 : index
    %c0_30 = arith.constant 0 : index
    %23 = vector.load %arg16[%c0_27, %c0_28, %c1_29, %c0_30] : memref<2x11x18x16xf32, #tpu.memory_space<vmem>>, vector<2x8x16x16xf32>
    %24 = arith.truncf %23 : vector<2x8x16x16xf32> to vector<2x8x16x16xbf16>
    %c0_31 = arith.constant 0 : index
    %c0_32 = arith.constant 0 : index
    %c2 = arith.constant 2 : index
    %c0_33 = arith.constant 0 : index
    %25 = vector.load %arg16[%c0_31, %c0_32, %c2, %c0_33] : memref<2x11x18x16xf32, #tpu.memory_space<vmem>>, vector<2x8x16x16xf32>
    %26 = arith.truncf %25 : vector<2x8x16x16xf32> to vector<2x8x16x16xbf16>
    %c0_34 = arith.constant 0 : index
    %c1_35 = arith.constant 1 : index
    %c0_36 = arith.constant 0 : index
    %c0_37 = arith.constant 0 : index
    %27 = vector.load %arg16[%c0_34, %c1_35, %c0_36, %c0_37] : memref<2x11x18x16xf32, #tpu.memory_space<vmem>>, vector<2x8x16x16xf32>
    %28 = arith.truncf %27 : vector<2x8x16x16xf32> to vector<2x8x16x16xbf16>
    %c0_38 = arith.constant 0 : index
    %c1_39 = arith.constant 1 : index
    %c1_40 = arith.constant 1 : index
    %c0_41 = arith.constant 0 : index
    %29 = vector.load %arg16[%c0_38, %c1_39, %c1_40, %c0_41] : memref<2x11x18x16xf32, #tpu.memory_space<vmem>>, vector<2x8x16x16xf32>
    %30 = arith.truncf %29 : vector<2x8x16x16xf32> to vector<2x8x16x16xbf16>
    %c0_42 = arith.constant 0 : index
    %c1_43 = arith.constant 1 : index
    %c2_44 = arith.constant 2 : index
    %c0_45 = arith.constant 0 : index
    %31 = vector.load %arg16[%c0_42, %c1_43, %c2_44, %c0_45] : memref<2x11x18x16xf32, #tpu.memory_space<vmem>>, vector<2x8x16x16xf32>
    %32 = arith.truncf %31 : vector<2x8x16x16xf32> to vector<2x8x16x16xbf16>
    %c0_46 = arith.constant 0 : index
    %c2_47 = arith.constant 2 : index
    %c0_48 = arith.constant 0 : index
    %c0_49 = arith.constant 0 : index
    %33 = vector.load %arg16[%c0_46, %c2_47, %c0_48, %c0_49] : memref<2x11x18x16xf32, #tpu.memory_space<vmem>>, vector<2x8x16x16xf32>
    %34 = arith.truncf %33 : vector<2x8x16x16xf32> to vector<2x8x16x16xbf16>
    %c0_50 = arith.constant 0 : index
    %c2_51 = arith.constant 2 : index
    %c1_52 = arith.constant 1 : index
    %c0_53 = arith.constant 0 : index
    %35 = vector.load %arg16[%c0_50, %c2_51, %c1_52, %c0_53] : memref<2x11x18x16xf32, #tpu.memory_space<vmem>>, vector<2x8x16x16xf32>
    %36 = arith.truncf %35 : vector<2x8x16x16xf32> to vector<2x8x16x16xbf16>
    %c0_54 = arith.constant 0 : index
    %c2_55 = arith.constant 2 : index
    %c2_56 = arith.constant 2 : index
    %c0_57 = arith.constant 0 : index
    %37 = vector.load %arg16[%c0_54, %c2_55, %c2_56, %c0_57] : memref<2x11x18x16xf32, #tpu.memory_space<vmem>>, vector<2x8x16x16xf32>
    %38 = arith.truncf %37 : vector<2x8x16x16xf32> to vector<2x8x16x16xbf16>
    %c0_58 = arith.constant 0 : index
    %c3_59 = arith.constant 3 : index
    %c0_60 = arith.constant 0 : index
    %c0_61 = arith.constant 0 : index
    %39 = vector.load %arg16[%c0_58, %c3_59, %c0_60, %c0_61] : memref<2x11x18x16xf32, #tpu.memory_space<vmem>>, vector<2x8x16x16xf32>
    %40 = arith.truncf %39 : vector<2x8x16x16xf32> to vector<2x8x16x16xbf16>
    %c0_62 = arith.constant 0 : index
    %c3_63 = arith.constant 3 : index
    %c1_64 = arith.constant 1 : index
    %c0_65 = arith.constant 0 : index
    %41 = vector.load %arg16[%c0_62, %c3_63, %c1_64, %c0_65] : memref<2x11x18x16xf32, #tpu.memory_space<vmem>>, vector<2x8x16x16xf32>
    %42 = arith.truncf %41 : vector<2x8x16x16xf32> to vector<2x8x16x16xbf16>
    %c0_66 = arith.constant 0 : index
    %c3_67 = arith.constant 3 : index
    %c2_68 = arith.constant 2 : index
    %c0_69 = arith.constant 0 : index
    %43 = vector.load %arg16[%c0_66, %c3_67, %c2_68, %c0_69] : memref<2x11x18x16xf32, #tpu.memory_space<vmem>>, vector<2x8x16x16xf32>
    %44 = arith.truncf %43 : vector<2x8x16x16xf32> to vector<2x8x16x16xbf16>
    %45 = tpu.concatenate %22, %24, %26, %28, %30, %32, %34, %36, %38, %40, %42, %44 in 3 : vector<2x8x16x16xbf16>, vector<2x8x16x16xbf16>, vector<2x8x16x16xbf16>, vector<2x8x16x16xbf16>, vector<2x8x16x16xbf16>, vector<2x8x16x16xbf16>, vector<2x8x16x16xbf16>, vector<2x8x16x16xbf16>, vector<2x8x16x16xbf16>, vector<2x8x16x16xbf16>, vector<2x8x16x16xbf16>, vector<2x8x16x16xbf16> -> vector<2x8x16x192xbf16>
    %46 = vector.shape_cast %45 : vector<2x8x16x192xbf16> to vector<256x192xbf16>
    %c0_70 = arith.constant 0 : index
    %c0_71 = arith.constant 0 : index
    %47 = vector.load %arg7[%c0_70, %c0_71] : memref<192x16xbf16, #tpu.memory_space<vmem>>, vector<192x16xbf16>
    %cst_72 = arith.constant dense<0.000000e+00> : vector<256x16xf32>
    %48 = tpu.matmul %46, %47, %cst_72 {dimension_numbers = #tpu.dot_dimension_numbers<[1], [0], [0], [1], [0, 0, 1, 1], [], []>} : vector<256x192xbf16>, vector<192x16xbf16>, vector<256x16xf32> -> vector<256x16xf32>
    %c0_73 = arith.constant 0 : index
    %c0_74 = arith.constant 0 : index
    %49 = vector.load %arg8[%c0_73, %c0_74] : memref<1x16xf32, #tpu.memory_space<vmem>>, vector<1x16xf32>
    %50 = vector.broadcast %49 : vector<1x16xf32> to vector<256x16xf32>
    %51 = arith.addf %48, %50 : vector<256x16xf32>
    %cst_75 = arith.constant 0.000000e+00 : f32
    %52 = vector.broadcast %cst_75 : f32 to vector<256x16xf32>
    %53 = arith.cmpf ogt, %51, %52 : vector<256x16xf32>
    %cst_76 = arith.constant 0.000000e+00 : f32
    %54 = vector.broadcast %cst_76 : f32 to vector<256x16xf32>
    %55 = arith.minimumf %51, %54 : vector<256x16xf32>
    %56 = math.exp %55 : vector<256x16xf32>
    %cst_77 = arith.constant 1.000000e+00 : f32
    %57 = vector.broadcast %cst_77 : f32 to vector<256x16xf32>
    %58 = arith.subf %56, %57 : vector<256x16xf32>
    %59 = arith.select %53, %51, %58 : vector<256x16xi1>, vector<256x16xf32>
    %60 = arith.truncf %59 : vector<256x16xf32> to vector<256x16xbf16>
    %c0_78 = arith.constant 0 : index
    %c0_79 = arith.constant 0 : index
    %61 = vector.load %arg9[%c0_78, %c0_79] : memref<16x8xbf16, #tpu.memory_space<vmem>>, vector<16x8xbf16>
    %cst_80 = arith.constant dense<0.000000e+00> : vector<256x8xf32>
    %62 = tpu.matmul %60, %61, %cst_80 {dimension_numbers = #tpu.dot_dimension_numbers<[1], [0], [0], [1], [0, 0, 1, 1], [], []>} : vector<256x16xbf16>, vector<16x8xbf16>, vector<256x8xf32> -> vector<256x8xf32>
    %c0_81 = arith.constant 0 : index
    %c0_82 = arith.constant 0 : index
    %63 = vector.load %arg10[%c0_81, %c0_82] : memref<1x8xf32, #tpu.memory_space<vmem>>, vector<1x8xf32>
    %64 = vector.broadcast %63 : vector<1x8xf32> to vector<256x8xf32>
    %65 = arith.addf %62, %64 : vector<256x8xf32>
    %66 = arith.addf %10, %65 : vector<256x8xf32>
    %cst_83 = arith.constant 0.000000e+00 : f32
    %67 = vector.broadcast %cst_83 : f32 to vector<2x11x18x8xf32>
    %c0_84 = arith.constant 0 : index
    %c0_85 = arith.constant 0 : index
    %c0_86 = arith.constant 0 : index
    %c0_87 = arith.constant 0 : index
    %68 = vector.load %arg17[%c0_84, %c0_85, %c0_86, %c0_87] : memref<2x11x18x8xf32, #tpu.memory_space<vmem>>, vector<2x11x18x8xf32>
    tpu.vector_store %arg17[%c0_84, %c0_85, %c0_86, %c0_87], %67 {strides = array<i32>} : memref<2x11x18x8xf32, #tpu.memory_space<vmem>>, vector<2x11x18x8xf32>,
    %69 = vector.shape_cast %66 : vector<256x8xf32> to vector<2x8x16x8xf32>
    %c0_88 = arith.constant 0 : index
    %c3_89 = arith.constant 3 : index
    %c1_90 = arith.constant 1 : index
    %c0_91 = arith.constant 0 : index
    %70 = vector.load %arg17[%c0_88, %c3_89, %c1_90, %c0_91] : memref<2x11x18x8xf32, #tpu.memory_space<vmem>>, vector<2x8x16x8xf32>
    tpu.vector_store %arg17[%c0_88, %c3_89, %c1_90, %c0_91], %69 {strides = array<i32>} : memref<2x11x18x8xf32, #tpu.memory_space<vmem>>, vector<2x8x16x8xf32>,
    %c0_92 = arith.constant 0 : index
    %c0_93 = arith.constant 0 : index
    %c0_94 = arith.constant 0 : index
    %c0_95 = arith.constant 0 : index
    %71 = vector.load %arg17[%c0_92, %c0_93, %c0_94, %c0_95] : memref<2x11x18x8xf32, #tpu.memory_space<vmem>>, vector<2x8x16x8xf32>
    %72 = arith.truncf %71 : vector<2x8x16x8xf32> to vector<2x8x16x8xbf16>
    %c0_96 = arith.constant 0 : index
    %c0_97 = arith.constant 0 : index
    %c1_98 = arith.constant 1 : index
    %c0_99 = arith.constant 0 : index
    %73 = vector.load %arg17[%c0_96, %c0_97, %c1_98, %c0_99] : memref<2x11x18x8xf32, #tpu.memory_space<vmem>>, vector<2x8x16x8xf32>
    %74 = arith.truncf %73 : vector<2x8x16x8xf32> to vector<2x8x16x8xbf16>
    %c0_100 = arith.constant 0 : index
    %c0_101 = arith.constant 0 : index
    %c2_102 = arith.constant 2 : index
    %c0_103 = arith.constant 0 : index
    %75 = vector.load %arg17[%c0_100, %c0_101, %c2_102, %c0_103] : memref<2x11x18x8xf32, #tpu.memory_space<vmem>>, vector<2x8x16x8xf32>
    %76 = arith.truncf %75 : vector<2x8x16x8xf32> to vector<2x8x16x8xbf16>
    %c0_104 = arith.constant 0 : index
    %c1_105 = arith.constant 1 : index
    %c0_106 = arith.constant 0 : index
    %c0_107 = arith.constant 0 : index
    %77 = vector.load %arg17[%c0_104, %c1_105, %c0_106, %c0_107] : memref<2x11x18x8xf32, #tpu.memory_space<vmem>>, vector<2x8x16x8xf32>
    %78 = arith.truncf %77 : vector<2x8x16x8xf32> to vector<2x8x16x8xbf16>
    %c0_108 = arith.constant 0 : index
    %c1_109 = arith.constant 1 : index
    %c1_110 = arith.constant 1 : index
    %c0_111 = arith.constant 0 : index
    %79 = vector.load %arg17[%c0_108, %c1_109, %c1_110, %c0_111] : memref<2x11x18x8xf32, #tpu.memory_space<vmem>>, vector<2x8x16x8xf32>
    %80 = arith.truncf %79 : vector<2x8x16x8xf32> to vector<2x8x16x8xbf16>
    %c0_112 = arith.constant 0 : index
    %c1_113 = arith.constant 1 : index
    %c2_114 = arith.constant 2 : index
    %c0_115 = arith.constant 0 : index
    %81 = vector.load %arg17[%c0_112, %c1_113, %c2_114, %c0_115] : memref<2x11x18x8xf32, #tpu.memory_space<vmem>>, vector<2x8x16x8xf32>
    %82 = arith.truncf %81 : vector<2x8x16x8xf32> to vector<2x8x16x8xbf16>
    %c0_116 = arith.constant 0 : index
    %c2_117 = arith.constant 2 : index
    %c0_118 = arith.constant 0 : index
    %c0_119 = arith.constant 0 : index
    %83 = vector.load %arg17[%c0_116, %c2_117, %c0_118, %c0_119] : memref<2x11x18x8xf32, #tpu.memory_space<vmem>>, vector<2x8x16x8xf32>
    %84 = arith.truncf %83 : vector<2x8x16x8xf32> to vector<2x8x16x8xbf16>
    %c0_120 = arith.constant 0 : index
    %c2_121 = arith.constant 2 : index
    %c1_122 = arith.constant 1 : index
    %c0_123 = arith.constant 0 : index
    %85 = vector.load %arg17[%c0_120, %c2_121, %c1_122, %c0_123] : memref<2x11x18x8xf32, #tpu.memory_space<vmem>>, vector<2x8x16x8xf32>
    %86 = arith.truncf %85 : vector<2x8x16x8xf32> to vector<2x8x16x8xbf16>
    %c0_124 = arith.constant 0 : index
    %c2_125 = arith.constant 2 : index
    %c2_126 = arith.constant 2 : index
    %c0_127 = arith.constant 0 : index
    %87 = vector.load %arg17[%c0_124, %c2_125, %c2_126, %c0_127] : memref<2x11x18x8xf32, #tpu.memory_space<vmem>>, vector<2x8x16x8xf32>
    %88 = arith.truncf %87 : vector<2x8x16x8xf32> to vector<2x8x16x8xbf16>
    %c0_128 = arith.constant 0 : index
    %c3_129 = arith.constant 3 : index
    %c0_130 = arith.constant 0 : index
    %c0_131 = arith.constant 0 : index
    %89 = vector.load %arg17[%c0_128, %c3_129, %c0_130, %c0_131] : memref<2x11x18x8xf32, #tpu.memory_space<vmem>>, vector<2x8x16x8xf32>
    %90 = arith.truncf %89 : vector<2x8x16x8xf32> to vector<2x8x16x8xbf16>
    %c0_132 = arith.constant 0 : index
    %c3_133 = arith.constant 3 : index
    %c1_134 = arith.constant 1 : index
    %c0_135 = arith.constant 0 : index
    %91 = vector.load %arg17[%c0_132, %c3_133, %c1_134, %c0_135] : memref<2x11x18x8xf32, #tpu.memory_space<vmem>>, vector<2x8x16x8xf32>
    %92 = arith.truncf %91 : vector<2x8x16x8xf32> to vector<2x8x16x8xbf16>
    %c0_136 = arith.constant 0 : index
    %c3_137 = arith.constant 3 : index
    %c2_138 = arith.constant 2 : index
    %c0_139 = arith.constant 0 : index
    %93 = vector.load %arg17[%c0_136, %c3_137, %c2_138, %c0_139] : memref<2x11x18x8xf32, #tpu.memory_space<vmem>>, vector<2x8x16x8xf32>
    %94 = arith.truncf %93 : vector<2x8x16x8xf32> to vector<2x8x16x8xbf16>
    %95 = tpu.concatenate %72, %74, %76, %78, %80, %82, %84, %86, %88, %90, %92, %94 in 3 : vector<2x8x16x8xbf16>, vector<2x8x16x8xbf16>, vector<2x8x16x8xbf16>, vector<2x8x16x8xbf16>, vector<2x8x16x8xbf16>, vector<2x8x16x8xbf16>, vector<2x8x16x8xbf16>, vector<2x8x16x8xbf16>, vector<2x8x16x8xbf16>, vector<2x8x16x8xbf16>, vector<2x8x16x8xbf16>, vector<2x8x16x8xbf16> -> vector<2x8x16x96xbf16>
    %96 = vector.shape_cast %95 : vector<2x8x16x96xbf16> to vector<256x96xbf16>
    %c0_140 = arith.constant 0 : index
    %c0_141 = arith.constant 0 : index
    %97 = vector.load %arg11[%c0_140, %c0_141] : memref<96x8xbf16, #tpu.memory_space<vmem>>, vector<96x8xbf16>
    %cst_142 = arith.constant dense<0.000000e+00> : vector<256x8xf32>
    %98 = tpu.matmul %96, %97, %cst_142 {dimension_numbers = #tpu.dot_dimension_numbers<[1], [0], [0], [1], [0, 0, 1, 1], [], []>} : vector<256x96xbf16>, vector<96x8xbf16>, vector<256x8xf32> -> vector<256x8xf32>
    %99 = vector.shape_cast %98 : vector<256x8xf32> to vector<2x8x16x8xf32>
    %100 = vector.extract_strided_slice %99 {offsets = [0, 0, 0, 0], sizes = [2, 8, 1, 8], strides = [1, 1, 1, 1]} : vector<2x8x16x8xf32> to vector<2x8x1x8xf32>
    %101 = vector.extract_strided_slice %99 {offsets = [0, 0, 1, 0], sizes = [2, 8, 1, 8], strides = [1, 1, 1, 1]} : vector<2x8x16x8xf32> to vector<2x8x1x8xf32>
    %102 = vector.extract_strided_slice %99 {offsets = [0, 0, 2, 0], sizes = [2, 8, 1, 8], strides = [1, 1, 1, 1]} : vector<2x8x16x8xf32> to vector<2x8x1x8xf32>
    %103 = vector.extract_strided_slice %99 {offsets = [0, 0, 3, 0], sizes = [2, 8, 1, 8], strides = [1, 1, 1, 1]} : vector<2x8x16x8xf32> to vector<2x8x1x8xf32>
    %104 = vector.extract_strided_slice %99 {offsets = [0, 0, 4, 0], sizes = [2, 8, 1, 8], strides = [1, 1, 1, 1]} : vector<2x8x16x8xf32> to vector<2x8x1x8xf32>
    %105 = vector.extract_strided_slice %99 {offsets = [0, 0, 5, 0], sizes = [2, 8, 1, 8], strides = [1, 1, 1, 1]} : vector<2x8x16x8xf32> to vector<2x8x1x8xf32>
    %106 = vector.extract_strided_slice %99 {offsets = [0, 0, 6, 0], sizes = [2, 8, 1, 8], strides = [1, 1, 1, 1]} : vector<2x8x16x8xf32> to vector<2x8x1x8xf32>
    %107 = vector.extract_strided_slice %99 {offsets = [0, 0, 7, 0], sizes = [2, 8, 1, 8], strides = [1, 1, 1, 1]} : vector<2x8x16x8xf32> to vector<2x8x1x8xf32>
    %108 = vector.extract_strided_slice %99 {offsets = [0, 0, 8, 0], sizes = [2, 8, 1, 8], strides = [1, 1, 1, 1]} : vector<2x8x16x8xf32> to vector<2x8x1x8xf32>
    %109 = vector.extract_strided_slice %99 {offsets = [0, 0, 9, 0], sizes = [2, 8, 1, 8], strides = [1, 1, 1, 1]} : vector<2x8x16x8xf32> to vector<2x8x1x8xf32>
    %110 = vector.extract_strided_slice %99 {offsets = [0, 0, 10, 0], sizes = [2, 8, 1, 8], strides = [1, 1, 1, 1]} : vector<2x8x16x8xf32> to vector<2x8x1x8xf32>
    %111 = vector.extract_strided_slice %99 {offsets = [0, 0, 11, 0], sizes = [2, 8, 1, 8], strides = [1, 1, 1, 1]} : vector<2x8x16x8xf32> to vector<2x8x1x8xf32>
    %112 = vector.extract_strided_slice %99 {offsets = [0, 0, 12, 0], sizes = [2, 8, 1, 8], strides = [1, 1, 1, 1]} : vector<2x8x16x8xf32> to vector<2x8x1x8xf32>
    %113 = vector.extract_strided_slice %99 {offsets = [0, 0, 13, 0], sizes = [2, 8, 1, 8], strides = [1, 1, 1, 1]} : vector<2x8x16x8xf32> to vector<2x8x1x8xf32>
    %114 = vector.extract_strided_slice %99 {offsets = [0, 0, 14, 0], sizes = [2, 8, 1, 8], strides = [1, 1, 1, 1]} : vector<2x8x16x8xf32> to vector<2x8x1x8xf32>
    %115 = vector.extract_strided_slice %99 {offsets = [0, 0, 15, 0], sizes = [2, 8, 1, 8], strides = [1, 1, 1, 1]} : vector<2x8x16x8xf32> to vector<2x8x1x8xf32>
    %116 = tpu.concatenate %100, %101, %102, %103, %104, %105, %106, %107, %108, %109, %110, %111, %112, %113, %114, %115 in 3 : vector<2x8x1x8xf32>, vector<2x8x1x8xf32>, vector<2x8x1x8xf32>, vector<2x8x1x8xf32>, vector<2x8x1x8xf32>, vector<2x8x1x8xf32>, vector<2x8x1x8xf32>, vector<2x8x1x8xf32>, vector<2x8x1x8xf32>, vector<2x8x1x8xf32>, vector<2x8x1x8xf32>, vector<2x8x1x8xf32>, vector<2x8x1x8xf32>, vector<2x8x1x8xf32>, vector<2x8x1x8xf32>, vector<2x8x1x8xf32> -> vector<2x8x1x128xf32>
    %c0_143 = arith.constant 0 : index
    %c0_144 = arith.constant 0 : index
    %117 = vector.load %arg12[%c0_143, %c0_144] : memref<1x128xf32, #tpu.memory_space<vmem>>, vector<1x128xf32>
    %118 = vector.shape_cast %117 : vector<1x128xf32> to vector<1x1x1x128xf32>
    %119 = vector.broadcast %118 : vector<1x1x1x128xf32> to vector<2x8x1x128xf32>
    %120 = arith.addf %116, %119 : vector<2x8x1x128xf32>
    %c0_145 = arith.constant 0 : index
    %c0_146 = arith.constant 0 : index
    %121 = vector.load %arg13[%c0_145, %c0_146] : memref<1x128xf32, #tpu.memory_space<vmem>>, vector<1x128xf32>
    %122 = vector.shape_cast %121 : vector<1x128xf32> to vector<1x1x1x128xf32>
    %123 = vector.broadcast %122 : vector<1x1x1x128xf32> to vector<2x8x1x128xf32>
    %124 = arith.mulf %120, %123 : vector<2x8x1x128xf32>
    %c0_147 = arith.constant 0 : index
    %c0_148 = arith.constant 0 : index
    %125 = vector.load %arg14[%c0_147, %c0_148] : memref<1x128xf32, #tpu.memory_space<vmem>>, vector<1x128xf32>
    %126 = vector.shape_cast %125 : vector<1x128xf32> to vector<1x1x1x128xf32>
    %127 = vector.broadcast %126 : vector<1x1x1x128xf32> to vector<2x8x1x128xf32>
    %128 = arith.addf %124, %127 : vector<2x8x1x128xf32>
    %cst_149 = arith.constant 0.000000e+00 : f32
    %129 = vector.broadcast %cst_149 : f32 to vector<2x8x1x128xf32>
    %130 = arith.cmpf ogt, %128, %129 : vector<2x8x1x128xf32>
    %cst_150 = arith.constant 0.000000e+00 : f32
    %131 = vector.broadcast %cst_150 : f32 to vector<2x8x1x128xf32>
    %132 = arith.minimumf %128, %131 : vector<2x8x1x128xf32>
    %133 = math.exp %132 : vector<2x8x1x128xf32>
    %cst_151 = arith.constant 1.000000e+00 : f32
    %134 = vector.broadcast %cst_151 : f32 to vector<2x8x1x128xf32>
    %135 = arith.subf %133, %134 : vector<2x8x1x128xf32>
    %136 = arith.select %130, %128, %135 : vector<2x8x1x128xi1>, vector<2x8x1x128xf32>
    %c0_152 = arith.constant 0 : index
    %c0_153 = arith.constant 0 : index
    %c0_154 = arith.constant 0 : index
    %c0_155 = arith.constant 0 : index
    %137 = vector.load %arg15[%c0_152, %c0_153, %c0_154, %c0_155] : memref<2x8x1x128xf32, #tpu.memory_space<vmem>>, vector<2x8x1x128xf32>
    tpu.vector_store %arg15[%c0_152, %c0_153, %c0_154, %c0_155], %136 {strides = array<i32>} : memref<2x8x1x128xf32, #tpu.memory_space<vmem>>, vector<2x8x1x128xf32>,
    return
  }
  func.func @transform_0(%arg0: i32) -> (i32, i32, i32, i32) {
    %c0_i32 = arith.constant 0 : i32
    %c0_i32_0 = arith.constant 0 : i32
    %c0_i32_1 = arith.constant 0 : i32
    %c0_i32_2 = arith.constant 0 : i32
    %c0_i32_3 = arith.constant 0 : i32
    return %c0_i32, %c0_i32_0, %c0_i32_1, %c0_i32_2 : i32, i32, i32, i32
  }
  func.func @transform_1(%arg0: i32) -> (i32, i32, i32, i32) {
    %c0_i32 = arith.constant 0 : i32
    %c0_i32_0 = arith.constant 0 : i32
    %c0_i32_1 = arith.constant 0 : i32
    %c0_i32_2 = arith.constant 0 : i32
    %c0_i32_3 = arith.constant 0 : i32
    return %c0_i32, %c0_i32_0, %c0_i32_1, %c0_i32_2 : i32, i32, i32, i32
  }
  func.func @transform_2(%arg0: i32) -> (i32, i32) {
    %c0_i32 = arith.constant 0 : i32
    %c0_i32_0 = arith.constant 0 : i32
    %c0_i32_1 = arith.constant 0 : i32
    return %c0_i32, %c0_i32_0 : i32, i32
  }
  func.func @transform_3(%arg0: i32) -> (i32, i32) {
    %c0_i32 = arith.constant 0 : i32
    %c0_i32_0 = arith.constant 0 : i32
    %c0_i32_1 = arith.constant 0 : i32
    return %c0_i32, %c0_i32_0 : i32, i32
  }
  func.func @transform_4(%arg0: i32) -> (i32, i32) {
    %c0_i32 = arith.constant 0 : i32
    %c0_i32_0 = arith.constant 0 : i32
    %c0_i32_1 = arith.constant 0 : i32
    return %c0_i32, %c0_i32_0 : i32, i32
  }
  func.func @transform_5(%arg0: i32) -> (i32, i32) {
    %c0_i32 = arith.constant 0 : i32
    %c0_i32_0 = arith.constant 0 : i32
    %c0_i32_1 = arith.constant 0 : i32
    return %c0_i32, %c0_i32_0 : i32, i32
  }
  func.func @transform_6(%arg0: i32) -> (i32, i32) {
    %c0_i32 = arith.constant 0 : i32
    %c0_i32_0 = arith.constant 0 : i32
    %c0_i32_1 = arith.constant 0 : i32
    return %c0_i32, %c0_i32_0 : i32, i32
  }
  func.func @transform_7(%arg0: i32) -> (i32, i32) {
    %c0_i32 = arith.constant 0 : i32
    %c0_i32_0 = arith.constant 0 : i32
    %c0_i32_1 = arith.constant 0 : i32
    return %c0_i32, %c0_i32_0 : i32, i32
  }
  func.func @transform_8(%arg0: i32) -> (i32, i32) {
    %c0_i32 = arith.constant 0 : i32
    %c0_i32_0 = arith.constant 0 : i32
    %c0_i32_1 = arith.constant 0 : i32
    return %c0_i32, %c0_i32_0 : i32, i32
  }
  func.func @transform_9(%arg0: i32) -> (i32, i32) {
    %c0_i32 = arith.constant 0 : i32
    %c0_i32_0 = arith.constant 0 : i32
    %c0_i32_1 = arith.constant 0 : i32
    return %c0_i32, %c0_i32_0 : i32, i32
  }
  func.func @transform_10(%arg0: i32) -> (i32, i32) {
    %c0_i32 = arith.constant 0 : i32
    %c0_i32_0 = arith.constant 0 : i32
    %c0_i32_1 = arith.constant 0 : i32
    return %c0_i32, %c0_i32_0 : i32, i32
  }
  func.func @transform_11(%arg0: i32) -> (i32, i32) {
    %c0_i32 = arith.constant 0 : i32
    %c0_i32_0 = arith.constant 0 : i32
    %c0_i32_1 = arith.constant 0 : i32
    return %c0_i32, %c0_i32_0 : i32, i32
  }
  func.func @transform_12(%arg0: i32) -> (i32, i32) {
    %c0_i32 = arith.constant 0 : i32
    %c0_i32_0 = arith.constant 0 : i32
    %c0_i32_1 = arith.constant 0 : i32
    return %c0_i32, %c0_i32_0 : i32, i32
  }
  func.func @transform_13(%arg0: i32) -> (i32, i32) {
    %c0_i32 = arith.constant 0 : i32
    %c0_i32_0 = arith.constant 0 : i32
    %c0_i32_1 = arith.constant 0 : i32
    return %c0_i32, %c0_i32_0 : i32, i32
  }
  func.func @transform_14(%arg0: i32) -> (i32, i32, i32, i32) {
    %c0_i32 = arith.constant 0 : i32
    %c0_i32_0 = arith.constant 0 : i32
    %c0_i32_1 = arith.constant 0 : i32
    %c0_i32_2 = arith.constant 0 : i32
    %c0_i32_3 = arith.constant 0 : i32
    return %c0_i32, %c0_i32_0, %c0_i32_1, %c0_i32_2 : i32, i32, i32, i32
  }
}

</mosaic_0001>

<bundles_post_ra>
// kernel: tpu_custom_call.1
= control target key start
LH: loop header
LB: loop body
LE: loop exit
PB: predicated region body
PF: predicated region fallthrough
CT: control target
= control target key end

     0   :  { %vm183_vm0 = vcmask 1042432   ;;  %vm134_vm1 = vcmask 48128   ;;  %s12427_s0 = inlined_call_operand.vmem [shape: f32[2,8,16,8], index: 0, kind: input, shape index: {}]   ;;  %s12428_s1 = inlined_call_operand.vmem [shape: f32[2,8,16,6], index: 1, kind: input, shape index: {}]   ;;  %s12429_s2 = inlined_call_operand.vmem [shape: bf16[6,8], index: 2, kind: input, shape index: {}]   ;;  %s12430_s3 = inlined_call_operand.vmem [shape: f32[1,8], index: 3, kind: input, shape index: {}]   ;;  %s12431_s4 = inlined_call_operand.vmem [shape: bf16[8,16], index: 4, kind: input, shape index: {}]   ;;  %s12432_s5 = inlined_call_operand.vmem [shape: f32[1,16], index: 5, kind: input, shape index: {}]   ;;  %s12433_s6 = inlined_call_operand.vmem [shape: bf16[192,16], index: 6, kind: input, shape index: {}]   ;;  %s12434_s7 = inlined_call_operand.vmem [shape: f32[1,16], index: 7, kind: input, shape index: {}]   ;;  %s12435_s8 = inlined_call_operand.vmem [shape: bf16[16,8], index: 8, kind: input, shape index: {}]   ;;  %s12436_s9 = inlined_call_operand.vmem [shape: f32[1,8], index: 9, kind: input, shape index: {}]   ;;  %s12437_s10 = inlined_call_operand.vmem [shape: bf16[96,8], index: 10, kind: input, shape index: {}]   ;;  %s12438_s11 = inlined_call_operand.vmem [shape: f32[1,128], index: 11, kind: input, shape index: {}]   ;;  %s12439_s12 = inlined_call_operand.vmem [shape: f32[1,128], index: 12, kind: input, shape index: {}]   ;;  %s12440_s13 = inlined_call_operand.vmem [shape: f32[1,128], index: 13, kind: input, shape index: {}]   ;;  %s12441_s14 = inlined_call_operand.hbm [shape: f32[2,8,1,128], index: 14, kind: output, shape index: {}]  }
   0x1   :  { %v129_v0 = vld [vmem:[%s12429_s2] sm:$0x7]  ;;  %v82_v2 = vld [vmem:[%s12428_s1 + $0x8] sm:$0xff] }
   0x2   :  { %v81_v1 = vld [vmem:[%s12428_s1] sm:$0xff]  ;;  %v185_v3 = vsel %vm183_vm0, %v129_v0, 0  ;;  %v98_v6 = vld [vmem:[%s12428_s1 + $0x88] sm:$0xff] }
   0x3   :  { %v113_v4 = vpack.c.bf16 %v82_v2, %v81_v1  ;;  %v97_v5 = vld [vmem:[%s12428_s1 + $0x80] sm:$0xff]  ;;  %194 = vmatpush.bf16.msra.mxu0 %v185_v3  ;;  %8041 = vmatpush.bf16.msra.mxu3 %v185_v3 }
   0x4   :  { %v121_v7 = vpack.c.bf16 %v98_v6, %v97_v5 }
   0x6   :  { %7818 = vmatmul.msk.bf16.vlgmr.msra.gmra.mxu0 %vm134_vm1, %v113_v4  ;;  %7826 = vmatmul.msk.bf16.vlgmr.msra.gmra.mxu3 %vm134_vm1, %v121_v7 }
   0x7   :  { %19 = vsyncpa [#allocation5], 0  ;;  %v83_v8 = vld [vmem:[%s12428_s1 + $0x10] sm:$0xff]  ;;  %v84_v9 = vld [vmem:[%s12428_s1 + $0x18] sm:$0xff]  ;;  %vm471_vm2 = vcmask 130048   ;;  %vm474_vm3 = vcmask 123904  }
   0x8   :  { %v99_v10 = vld [vmem:[%s12428_s1 + $0x90] sm:$0xff]  ;;  %v100_v11 = vld [vmem:[%s12428_s1 + $0x98] sm:$0xff]  ;;  %v114_v12 = vpack.c.bf16 %v84_v9, %v83_v8  ;;  %v85_v14 = vld [vmem:[%s12428_s1 + $0x20] sm:$0xff]  ;;  %v12442_v26 = vmov 0.0   ;;  %vm378_vm4 = vcmask 1043456   ;;  %vm329_vm5 = vcmask 64512  }
   0x9   :  { %v122_v13 = vpack.c.bf16 %v100_v11, %v99_v10  ;;  %v86_v15 = vld [vmem:[%s12428_s1 + $0x28] sm:$0xff]  ;;  %v101_v16 = vld [vmem:[%s12428_s1 + $0xa0] sm:$0xff]  ;;  %v103_v20 = vld [vmem:[%s12428_s1 + $0xb0] sm:$0xff]  ;;  %472 = vst.msk [vmem:[#allocation2] sm:$0xff] %vm471_vm2, %v12442_v26  ;;  %s8195_s15 = smov 32   ;;  %s8196_s20 = smov 48  }
   0xa   :  { %v102_v17 = vld [vmem:[%s12428_s1 + $0xa8] sm:$0xff]  ;;  %v115_v18 = vpack.c.bf16 %v86_v15, %v85_v14  ;;  %v104_v21 = vld [vmem:[%s12428_s1 + $0xb8] sm:$0xff]  ;;  %v105_v23 = vld [vmem:[%s12428_s1 + $0xc0] sm:$0xff]  ;;  %473 = vst.msk [vmem:[#allocation2 + $0x8] sm:$0xff] %vm471_vm2, %v12442_v26  ;;  %s8197_s28 = smov 64   ;;  %s8198_s18 = smov 80  }
   0xb   :  { %v123_v19 = vpack.c.bf16 %v102_v17, %v101_v16  ;;  %v124_v22 = vpack.c.bf16 %v104_v21, %v103_v20  ;;  %v106_v24 = vld [vmem:[%s12428_s1 + $0xc8] sm:$0xff]  ;;  %475 = vst.msk [vmem:[#allocation2 + $0x10] sm:$0x3] %vm474_vm3, %v12442_v26  ;;  %v87_v27 = vld [vmem:[%s12428_s1 + $0x30] sm:$0xff]  ;;  %v88_v28 = vld [vmem:[%s12428_s1 + $0x38] sm:$0xff]  ;;  %s8199_s23 = smov 112  }
   0xc   :  { %v125_v25 = vpack.c.bf16 %v106_v24, %v105_v23  ;;  %476 = vst.msk [vmem:[#allocation2 + $0x18] sm:$0xff] %vm471_vm2, %v12442_v26  ;;  %v116_v29 = vpack.c.bf16 %v88_v28, %v87_v27  ;;  %v107_v30 = vld [vmem:[%s12428_s1 + $0xd0] sm:$0xff]  ;;  %v108_v31 = vld [vmem:[%s12428_s1 + $0xd8] sm:$0xff]  ;;  %v324_v33 = vld [vmem:[%s12431_s4] sm:$0xf]  ;;  %s8194_s4 = smov 16  }
   0xd   :  { %477 = vst.msk [vmem:[#allocation2 + $0x20] sm:$0xff] %vm471_vm2, %v12442_v26  ;;  %v126_v32 = vpack.c.bf16 %v108_v31, %v107_v30  ;;  %v380_v34 = vsel %vm378_vm4, %v324_v33, 0  ;;  %v109_v49 = vld [vmem:[%s12428_s1 + $0xe0] sm:$0xff]  ;;  %v110_v50 = vld [vmem:[%s12428_s1 + $0xe8] sm:$0xff]  ;;  %v111_v3 = vld [vmem:[%s12428_s1 + $0xf0] sm:$0xff]  ;;  %s8200_s24 = smov 96  }
   0xe   :  { %478 = vst.msk [vmem:[#allocation2 + $0x28] sm:$0x3] %vm474_vm3, %v12442_v26  ;;  %389 = vmatpush.bf16.msra.mxu1 %v380_v34  ;;  %8042 = vmatpush.bf16.msra.mxu2 %v380_v34  ;;  %v127_v51 = vpack.c.bf16 %v110_v50, %v109_v49  ;;  %v8439_v57 = vld [vmem:[%s12430_s3] ss:$0 sm:$0xff]  ;;  %v50_v0 = vld [vmem:[%s12427_s0 + $0x8] sm:$0xff]  ;;  %v112_v4 = vld [vmem:[%s12428_s1 + $0xf8] sm:$0xff] }
   0xf   :  { %479 = vst.msk [vmem:[#allocation2 + $0x30] sm:$0xff] %vm471_vm2, %v12442_v26  ;;  %v49_v63 = vld [vmem:[%s12427_s0] sm:$0xff]  ;;  %v128_v5 = vpack.c.bf16 %v112_v4, %v111_v3  ;;  %v66_v11 = vld [vmem:[%s12427_s0 + $0x88] sm:$0xff]  ;;  %vm2670_vm6 = vcmask 261120   ;;  %vm2703_vm7 = vcmask 392192   ;;  %vm2736_vm8 = vcmask 523264  }
  0x10   :  { %480 = vst.msk [vmem:[#allocation2 + $0x38] sm:$0xff] %vm471_vm2, %v12442_v26  ;;  %v65_v9 = vld [vmem:[%s12427_s0 + $0x80] sm:$0xff]  ;;  %vm2769_vm9 = vcmask 654336   ;;  %vm2802_vm10 = vcmask 785408   ;;  %vm2835_vm11 = vcmask 916480   ;;  %vm3697_vm14 = vcmask 58368  }
  0x11   :  { %v636_v35 = vld [vmem:[#allocation2 + $0x1] sm:$0xff]  ;;  %481 = vst.msk [vmem:[#allocation2 + $0x40] sm:$0x3] %vm474_vm3, %v12442_v26  ;;  %s8202_s30 = smov 24   ;;  %s8204_s16 = smov 56  }
  0x12   :  { %v637_v36 = vld [vmem:[#allocation2 + $0x9] sm:$0xff]  ;;  %v668_v37 = vpack.c.bf16 %v636_v35, %v636_v35  ;;  %482 = vst.msk [vmem:[#allocation2 + $0x48] sm:$0xff] %vm471_vm2, %v12442_v26  ;;  %s8205_s22 = smov 72  }
  0x13   :  { %v669_v38 = vpack.c.bf16 %v637_v36, %v637_v36  ;;  %483 = vst.msk [vmem:[#allocation2 + $0x50] sm:$0xff] %vm471_vm2, %v12442_v26  ;;  %v701_v36 = vld [vmem:[#allocation2 + $0xa] sm:$0xff] }
  0x14   :  { %v1454_v39 = vunpack.c.l.b16 %v668_v37  ;;  %484 = vst.msk [vmem:[#allocation2 + $0x58] sm:$0x3] %vm474_vm3, %v12442_v26  ;;  %v638_v42 = vld [vmem:[#allocation2 + $0x19] sm:$0xff] }
  0x15   :  { %v1455_v40 = vunpack.c.l.b16 %v669_v38  ;;  %485 = vst.msk [vmem:[#allocation2 + $0x60] sm:$0xff] %vm471_vm2, %v12442_v26  ;;  %v639_v43 = vld [vmem:[#allocation2 + $0x21] sm:$0xff]  ;;  %v670_v44 = vpack.c.bf16 %v638_v42, %v638_v42 }
  0x16   :  { %7819 = vmatmul.msk.bf16.gmra.mxu0 %vm134_vm1, %v114_v12  ;;  %7827 = vmatmul.msk.bf16.gmra.mxu3 %vm134_vm1, %v122_v13  ;;  %486 = vst.msk [vmem:[#allocation2 + $0x68] sm:$0xff] %vm471_vm2, %v12442_v26  ;;  %v671_v45 = vpack.c.bf16 %v639_v43, %v639_v43  ;;  %v702_v3 = vld [vmem:[#allocation2 + $0x1a] sm:$0xff]  ;;  %v703_v4 = vld [vmem:[#allocation2 + $0x22] sm:$0xff] }
  0x17   :  { %v1486_v41 = vpack.c.b16 %v1455_v40, %v1454_v39  ;;  %487 = vst.msk [vmem:[#allocation2 + $0x70] sm:$0x3] %vm474_vm3, %v12442_v26  ;;  %v1456_v46 = vunpack.c.l.b16 %v670_v44  ;;  %v640_v53 = vld [vmem:[#allocation2 + $0x31] sm:$0xff] }
  0x18   :  { %488 = vst.msk [vmem:[#allocation2 + $0x78] sm:$0xff] %vm471_vm2, %v12442_v26  ;;  %v1457_v47 = vunpack.c.l.b16 %v671_v45  ;;  %v641_v54 = vld [vmem:[#allocation2 + $0x39] sm:$0xff]  ;;  %v672_v55 = vpack.c.bf16 %v640_v53, %v640_v53 }
  0x19   :  { %1502 = vrot.lane.b32.xlu0 %v1486_v41, %s8194_s4  ;;  %489 = vst.msk [vmem:[#allocation2 + $0x80] sm:$0xff] %vm471_vm2, %v12442_v26  ;;  %v673_v56 = vpack.c.bf16 %v641_v54, %v641_v54  ;;  %v704_v17 = vld [vmem:[#allocation2 + $0x32] sm:$0xff]  ;;  %v705_v21 = vld [vmem:[#allocation2 + $0x3a] sm:$0xff] }
  0x1a   :  { %490 = vst.msk [vmem:[#allocation2 + $0x88] sm:$0x3] %vm474_vm3, %v12442_v26  ;;  %v8405_v48 = vpack.c.b16 %v1457_v47, %v1456_v46  ;;  %v1458_v58 = vunpack.c.l.b16 %v672_v55  ;;  %v736_v27 = vpack.c.bf16 %v704_v17, %v704_v17  ;;  %v737_v33 = vpack.c.bf16 %v705_v21, %v705_v21  ;;  %v51_v41 = vld [vmem:[%s12427_s0 + $0x10] sm:$0xff]  ;;  %v52_v53 = vld [vmem:[%s12427_s0 + $0x18] sm:$0xff]  ;;  %v89_v55 = vld [vmem:[%s12428_s1 + $0x40] sm:$0xff] }
  0x1b   :  { %491 = vst.msk [vmem:[#allocation2 + $0x90] sm:$0xff] %vm471_vm2, %v12442_v26  ;;  %v1459_v59 = vunpack.c.l.b16 %v673_v56  ;;  %v733_v47 = vpack.c.bf16 %v701_v36, %v701_v36  ;;  %v90_v56 = vld [vmem:[%s12428_s1 + $0x48] sm:$0xff] }
  0x1c   :  { %492 = vst.msk [vmem:[#allocation2 + $0x98] sm:$0xff] %vm471_vm2, %v12442_v26 }
  0x1d   :  { %493 = vst.msk [vmem:[#allocation2 + $0xa0] sm:$0x3] %vm474_vm3, %v12442_v26  ;;  %v8449_v61 = vpack.c.b16 %v1459_v59, %v1458_v58 }
  0x1e   :  { %494 = vst.msk [vmem:[#allocation2 + $0xa8] sm:$0xff] %vm471_vm2, %v12442_v26 }
  0x1f   :  { %495 = vst.msk [vmem:[#allocation2 + $0xb0] sm:$0xff] %vm471_vm2, %v12442_v26  ;;  %1506 = vrot.lane.b32.xlu1 %v8449_v61, %s8194_s4 }
  0x20   :  { %496 = vst.msk [vmem:[#allocation2 + $0xb8] sm:$0x3] %vm474_vm3, %v12442_v26 }
  0x21   :  { %497 = vst.msk [vmem:[#allocation2 + $0xc0] sm:$0xff] %vm471_vm2, %v12442_v26  ;;  %1504 = vrot.lane.b32.xlu0 %v8405_v48, %s8194_s4 }
  0x22   :  { %498 = vst.msk [vmem:[#allocation2 + $0xc8] sm:$0xff] %vm471_vm2, %v12442_v26 }
  0x23   :  { %499 = vst.msk [vmem:[#allocation2 + $0xd0] sm:$0x3] %vm474_vm3, %v12442_v26 }
  0x24   :  { %500 = vst.msk [vmem:[#allocation2 + $0xd8] sm:$0xff] %vm471_vm2, %v12442_v26 }
  0x25   :  { %501 = vst.msk [vmem:[#allocation2 + $0xe0] sm:$0xff] %vm471_vm2, %v12442_v26 }
  0x26   :  { %7820 = vmatmul.msk.bf16.gmra.mxu0 %vm134_vm1, %v115_v18  ;;  %7828 = vmatmul.msk.bf16.gmra.mxu3 %vm134_vm1, %v123_v19  ;;  %502 = vst.msk [vmem:[#allocation2 + $0xe8] sm:$0x3] %vm474_vm3, %v12442_v26 }
  0x27   :  { %503 = vst.msk [vmem:[#allocation2 + $0xf0] sm:$0xff] %vm471_vm2, %v12442_v26 }
  0x28   :  { %504 = vst.msk [vmem:[#allocation2 + $0xf8] sm:$0xff] %vm471_vm2, %v12442_v26 }
  0x29   :  { %505 = vst.msk [vmem:[#allocation2 + $0x100] sm:$0x3] %vm474_vm3, %v12442_v26 }
  0x2a   :  { %506 = vst.msk [vmem:[#allocation2 + $0x108] sm:$0xff] %vm471_vm2, %v12442_v26 }
  0x2b   :  { %507 = vst.msk [vmem:[#allocation2 + $0x110] sm:$0xff] %vm471_vm2, %v12442_v26 }
  0x2c   :  { %508 = vst.msk [vmem:[#allocation2 + $0x118] sm:$0x3] %vm474_vm3, %v12442_v26 }
  0x2d   :  { %509 = vst.msk [vmem:[#allocation2 + $0x120] sm:$0xff] %vm471_vm2, %v12442_v26 }
  0x2e   :  { %510 = vst.msk [vmem:[#allocation2 + $0x128] sm:$0xff] %vm471_vm2, %v12442_v26 }
  0x2f   :  { %511 = vst.msk [vmem:[#allocation2 + $0x130] sm:$0x3] %vm474_vm3, %v12442_v26 }
  0x30   :  { %512 = vst.msk [vmem:[#allocation2 + $0x138] sm:$0xff] %vm471_vm2, %v12442_v26 }
  0x31   :  { %513 = vst.msk [vmem:[#allocation2 + $0x140] sm:$0xff] %vm471_vm2, %v12442_v26 }
  0x32   :  { %514 = vst.msk [vmem:[#allocation2 + $0x148] sm:$0x3] %vm474_vm3, %v12442_v26  ;;  %v652_v23 = vld [vmem:[#allocation2 + $0x109] sm:$0xff] }
  0x33   :  { %515 = vst.msk [vmem:[#allocation2 + $0x150] sm:$0xff] %vm471_vm2, %v12442_v26  ;;  %v653_v30 = vld [vmem:[#allocation2 + $0x111] sm:$0xff]  ;;  %v684_v38 = vpack.c.bf16 %v652_v23, %v652_v23 }
  0x34   :  { %516 = vst.msk [vmem:[#allocation2 + $0x158] sm:$0xff] %vm471_vm2, %v12442_v26  ;;  %v685_v39 = vpack.c.bf16 %v653_v30, %v653_v30  ;;  %v716_v45 = vld [vmem:[#allocation2 + $0x10a] sm:$0xff]  ;;  %v717_v46 = vld [vmem:[#allocation2 + $0x112] sm:$0xff] }
  0x35   :  { %517 = vst.msk [vmem:[#allocation2 + $0x160] sm:$0x3] %vm474_vm3, %v12442_v26  ;;  %v654_v15 = vld [vmem:[#allocation2 + $0x121] sm:$0xff]  ;;  %v1470_v49 = vunpack.c.l.b16 %v684_v38  ;;  %v68_v38 = vld [vmem:[%s12427_s0 + $0x98] sm:$0xff] }
  0x36   :  { %7829 = vmatmul.msk.bf16.gmra.mxu3 %vm134_vm1, %v124_v22  ;;  %7821 = vmatmul.msk.bf16.gmra.mxu0 %vm134_vm1, %v116_v29  ;;  %518 = vst.msk [vmem:[#allocation2 + $0x168] sm:$0xff] %vm471_vm2, %v12442_v26  ;;  %v655_v19 = vld [vmem:[#allocation2 + $0x129] sm:$0xff]  ;;  %v686_v20 = vpack.c.bf16 %v654_v15, %v654_v15  ;;  %v1471_v50 = vunpack.c.l.b16 %v685_v39  ;;  %v735_v15 = vpack.c.bf16 %v703_v4, %v703_v4 }
  0x37   :  { %519 = vst.msk [vmem:[#allocation2 + $0x170] sm:$0xff] %vm471_vm2, %v12442_v26  ;;  %v687_v22 = vpack.c.bf16 %v655_v19, %v655_v19  ;;  %v700_v29 = vld [vmem:[#allocation2 + $0x2] sm:$0xff] }
  0x38   :  { %520 = vst.msk [vmem:[#allocation2 + $0x178] sm:$0x3] %vm474_vm3, %v12442_v26  ;;  %v656_v28 = vld [vmem:[#allocation2 + $0x139] sm:$0xff]  ;;  %v732_v43 = vpack.c.bf16 %v700_v29, %v700_v29  ;;  %v1569_v21 = vunpack.c.l.b16 %v735_v15 }
  0x39   :  { %521 = vst.msk [vmem:[#allocation2 + $0x180] sm:$0xff] %vm471_vm2, %v12442_v26  ;;  %v1473_v31 = vunpack.c.l.b16 %v687_v22  ;;  %v657_v34 = vld [vmem:[#allocation2 + $0x141] sm:$0xff]  ;;  %v688_v35 = vpack.c.bf16 %v656_v28, %v656_v28  ;;  %v768_v28 = vld [vmem:[#allocation2 + $0x38] sm:$0xff] }
  0x3a   :  { %522 = vst.msk [vmem:[#allocation2 + $0x188] sm:$0xff] %vm471_vm2, %v12442_v26  ;;  %v689_v37 = vpack.c.bf16 %v657_v34, %v657_v34  ;;  %v721_v34 = vld [vmem:[#allocation2 + $0x142] sm:$0xff]  ;;  %v783_v15 = vld [vmem:[#allocation2 + $0x138] sm:$0xff] }
  0x3b   :  { %523 = vst.msk [vmem:[#allocation2 + $0x190] sm:$0x3] %vm474_vm3, %v12442_v26  ;;  %v1474_v42 = vunpack.c.l.b16 %v688_v35  ;;  %v67_v35 = vld [vmem:[%s12427_s0 + $0x90] sm:$0xff] }
  0x3c   :  { %524 = vst.msk [vmem:[#allocation2 + $0x198] sm:$0xff] %vm471_vm2, %v12442_v26  ;;  %v1475_v44 = vunpack.c.l.b16 %v689_v37 }
  0x3d   :  { %525 = vst.msk [vmem:[#allocation2 + $0x1a0] sm:$0xff] %vm471_vm2, %v12442_v26 }
  0x3e   :  { %526 = vst.msk [vmem:[#allocation2 + $0x1a8] sm:$0x3] %vm474_vm3, %v12442_v26  ;;  %v8547_v59 = vpack.c.b16 %v1475_v44, %v1474_v42  ;;  %v800_v44 = vpack.c.bf16 %v768_v28, %v768_v28 }
  0x3f   :  { %527 = vst.msk [vmem:[#allocation2 + $0x1b0] sm:$0xff] %vm471_vm2, %v12442_v26 }
  0x40   :  { %528 = vst.msk [vmem:[#allocation2 + $0x1b8] sm:$0xff] %vm471_vm2, %v12442_v26  ;;  %1522 = vrot.lane.b32.xlu1 %v8547_v59, %s8194_s4 }
  0x41   :  { %529 = vst.msk [vmem:[#allocation2 + $0x1c0] sm:$0x3] %vm474_vm3, %v12442_v26 }
  0x42   :  { %530 = vst.msk [vmem:[#allocation2 + $0x1c8] sm:$0xff] %vm471_vm2, %v12442_v26 }
  0x43   :  { %531 = vst.msk [vmem:[#allocation2 + $0x1d0] sm:$0xff] %vm471_vm2, %v12442_v26 }
  0x44   :  { %532 = vst.msk [vmem:[#allocation2 + $0x1d8] sm:$0x3] %vm474_vm3, %v12442_v26 }
  0x45   :  { %533 = vst.msk [vmem:[#allocation2 + $0x1e0] sm:$0xff] %vm471_vm2, %v12442_v26 }
  0x46   :  { %7830 = vmatmul.msk.bf16.gmra.mxu3 %vm134_vm1, %v125_v25  ;;  %v1472_v25 = vunpack.c.l.b16 %v686_v20  ;;  %534 = vst.msk [vmem:[#allocation2 + $0x1e8] sm:$0xff] %vm471_vm2, %v12442_v26 }
  0x47   :  { %535 = vst.msk [vmem:[#allocation2 + $0x1f0] sm:$0x3] %vm474_vm3, %v12442_v26 }
  0x48   :  { %v8523_v40 = vpack.c.b16 %v1473_v31, %v1472_v25  ;;  %536 = vst.msk [vmem:[#allocation2 + $0x1f8] sm:$0xff] %vm471_vm2, %v12442_v26 }
  0x49   :  { %537 = vst.msk [vmem:[#allocation2 + $0x200] sm:$0xff] %vm471_vm2, %v12442_v26 }
  0x4a   :  { %1520 = vrot.lane.b32.xlu0 %v8523_v40, %s8194_s4  ;;  %538 = vst.msk [vmem:[#allocation2 + $0x208] sm:$0x3] %vm474_vm3, %v12442_v26 }
  0x4b   :  { %3695 = vst.msk [vmem:[#allocation3] sm:$0xff] %vm329_vm5, %v12442_v26 }
  0x4c   :  { %3696 = vst.msk [vmem:[#allocation3 + $0x8] sm:$0xff] %vm329_vm5, %v12442_v26 }
  0x4d   :  { %3699 = vst.msk [vmem:[#allocation3 + $0x18] sm:$0xff] %vm329_vm5, %v12442_v26 }
  0x4e   :  { %3700 = vst.msk [vmem:[#allocation3 + $0x20] sm:$0xff] %vm329_vm5, %v12442_v26 }
  0x4f   :  { %3702 = vst.msk [vmem:[#allocation3 + $0x30] sm:$0xff] %vm329_vm5, %v12442_v26 }
  0x50   :  { %3703 = vst.msk [vmem:[#allocation3 + $0x38] sm:$0xff] %vm329_vm5, %v12442_v26 }
  0x51   :  { %3705 = vst.msk [vmem:[#allocation3 + $0x48] sm:$0xff] %vm329_vm5, %v12442_v26 }
  0x52   :  { %3706 = vst.msk [vmem:[#allocation3 + $0x50] sm:$0xff] %vm329_vm5, %v12442_v26 }
  0x53   :  { %3708 = vst.msk [vmem:[#allocation3 + $0x60] sm:$0xff] %vm329_vm5, %v12442_v26 }
  0x54   :  { %3709 = vst.msk [vmem:[#allocation3 + $0x68] sm:$0xff] %vm329_vm5, %v12442_v26 }
  0x55   :  { %3711 = vst.msk [vmem:[#allocation3 + $0x78] sm:$0xff] %vm329_vm5, %v12442_v26 }
  0x56   :  { %7831 = vmatmul.msk.bf16.gmra.mxu3 %vm134_vm1, %v126_v32  ;;  %3712 = vst.msk [vmem:[#allocation3 + $0x80] sm:$0xff] %vm329_vm5, %v12442_v26 }
  0x57   :  { %3714 = vst.msk [vmem:[#allocation3 + $0x90] sm:$0xff] %vm329_vm5, %v12442_v26 }
  0x58   :  { %3715 = vst.msk [vmem:[#allocation3 + $0x98] sm:$0xff] %vm329_vm5, %v12442_v26 }
  0x59   :  { %3717 = vst.msk [vmem:[#allocation3 + $0xa8] sm:$0xff] %vm329_vm5, %v12442_v26 }
  0x5a   :  { %3718 = vst.msk [vmem:[#allocation3 + $0xb0] sm:$0xff] %vm329_vm5, %v12442_v26 }
  0x5b   :  { %3720 = vst.msk [vmem:[#allocation3 + $0xc0] sm:$0xff] %vm329_vm5, %v12442_v26 }
  0x5c   :  { %3721 = vst.msk [vmem:[#allocation3 + $0xc8] sm:$0xff] %vm329_vm5, %v12442_v26 }
  0x5d   :  { %3723 = vst.msk [vmem:[#allocation3 + $0xd8] sm:$0xff] %vm329_vm5, %v12442_v26 }
  0x5e   :  { %3724 = vst.msk [vmem:[#allocation3 + $0xe0] sm:$0xff] %vm329_vm5, %v12442_v26 }
  0x5f   :  { %3726 = vst.msk [vmem:[#allocation3 + $0xf0] sm:$0xff] %vm329_vm5, %v12442_v26 }
  0x60   :  { %3727 = vst.msk [vmem:[#allocation3 + $0xf8] sm:$0xff] %vm329_vm5, %v12442_v26 }
  0x61   :  { %3729 = vst.msk [vmem:[#allocation3 + $0x108] sm:$0xff] %vm329_vm5, %v12442_v26 }
  0x62   :  { %3730 = vst.msk [vmem:[#allocation3 + $0x110] sm:$0xff] %vm329_vm5, %v12442_v26 }
  0x63   :  { %3732 = vst.msk [vmem:[#allocation3 + $0x120] sm:$0xff] %vm329_vm5, %v12442_v26 }
  0x64   :  { %3733 = vst.msk [vmem:[#allocation3 + $0x128] sm:$0xff] %vm329_vm5, %v12442_v26 }
  0x65   :  { %3735 = vst.msk [vmem:[#allocation3 + $0x138] sm:$0xff] %vm329_vm5, %v12442_v26 }
  0x66   :  { %7832 = vmatmul.msk.bf16.gmra.mxu3 %vm134_vm1, %v127_v51  ;;  %v1570_v51 = vunpack.c.l.b16 %v736_v27  ;;  %v767_v27 = vld [vmem:[#allocation2 + $0x30] sm:$0xff]  ;;  %3736 = vst.msk [vmem:[#allocation3 + $0x140] sm:$0xff] %vm329_vm5, %v12442_v26 }
  0x67   :  { %3738 = vst.msk [vmem:[#allocation3 + $0x150] sm:$0xff] %vm329_vm5, %v12442_v26 }
  0x68   :  { %3739 = vst.msk [vmem:[#allocation3 + $0x158] sm:$0xff] %vm329_vm5, %v12442_v26 }
  0x69   :  { %3741 = vst.msk [vmem:[#allocation3 + $0x168] sm:$0xff] %vm329_vm5, %v12442_v26 }
  0x6a   :  { %3742 = vst.msk [vmem:[#allocation3 + $0x170] sm:$0xff] %vm329_vm5, %v12442_v26 }
  0x6b   :  { %3744 = vst.msk [vmem:[#allocation3 + $0x180] sm:$0xff] %vm329_vm5, %v12442_v26 }
  0x6c   :  { %3745 = vst.msk [vmem:[#allocation3 + $0x188] sm:$0xff] %vm329_vm5, %v12442_v26 }
  0x6d   :  { %3747 = vst.msk [vmem:[#allocation3 + $0x198] sm:$0xff] %vm329_vm5, %v12442_v26 }
  0x6e   :  { %3748 = vst.msk [vmem:[#allocation3 + $0x1a0] sm:$0xff] %vm329_vm5, %v12442_v26 }
  0x6f   :  { %3750 = vst.msk [vmem:[#allocation3 + $0x1b0] sm:$0xff] %vm329_vm5, %v12442_v26 }
  0x70   :  { %3751 = vst.msk [vmem:[#allocation3 + $0x1b8] sm:$0xff] %vm329_vm5, %v12442_v26 }
  0x71   :  { %3753 = vst.msk [vmem:[#allocation3 + $0x1c8] sm:$0xff] %vm329_vm5, %v12442_v26 }
  0x72   :  { %3754 = vst.msk [vmem:[#allocation3 + $0x1d0] sm:$0xff] %vm329_vm5, %v12442_v26 }
  0x73   :  { %3756 = vst.msk [vmem:[#allocation3 + $0x1e0] sm:$0xff] %vm329_vm5, %v12442_v26 }
  0x74   :  { %3757 = vst.msk [vmem:[#allocation3 + $0x1e8] sm:$0xff] %vm329_vm5, %v12442_v26 }
  0x75   :  { %3759 = vst.msk [vmem:[#allocation3 + $0x1f8] sm:$0xff] %vm329_vm5, %v12442_v26 }
  0x76   :  { %7833 = vmatmul.msk.bf16.gmra.mxu3 %vm134_vm1, %v128_v5  ;;  %3760 = vst.msk [vmem:[#allocation3 + $0x200] sm:$0xff] %vm329_vm5, %v12442_v26 }
  0x83   :  { %v196_v52 = vpop.f32.mrf.mxu0 }
  0x84   :  { %v197_v62 = vadd.f32 %v8439_v57, %v196_v52  ;;  %v1571_v52 = vunpack.c.l.b16 %v737_v33  ;;  %v720_v33 = vld [vmem:[#allocation2 + $0x13a] sm:$0xff] }
  0x85   :  { %v752_v39 = vpack.c.bf16 %v720_v33, %v720_v33  ;;  %v54_v33 = vld [vmem:[%s12427_s0 + $0x28] sm:$0xff] }
  0x86   :  { %v8475_v6 = vadd.f32 %v197_v62, %v49_v63  ;;  %v1494_v62 = vpack.c.b16 %v1471_v50, %v1470_v49 }
  0x87   :  { %v1586_v49 = vunpack.c.l.b16 %v752_v39 }
  0x88   :  { %1518 = vrot.lane.b32.xlu2 %v1494_v62, %s8194_s4  ;;  %v765_v62 = vld [vmem:[#allocation2 + $0x18] sm:$0xff] }
  0x89   :  { %v236_v60 = vpop.f32.mrf.mxu3 }
  0x8a   :  { %v237_v8 = vadd.f32 %v8439_v57, %v236_v60 }
  0x8b   :  { %v198_v1 = vpop.f32.mrf.mxu0 }
  0x8c   :  { %v199_v2 = vadd.f32 %v8439_v57, %v198_v1  ;;  %v8497_v13 = vadd.f32 %v237_v8, %v65_v9  ;;  %v749_v1 = vpack.c.bf16 %v717_v46, %v717_v46  ;;  %v1566_v8 = vunpack.c.l.b16 %v732_v43  ;;  %v781_v46 = vld [vmem:[#allocation2 + $0x120] sm:$0xff] }
  0x8d   :  { %v1567_v9 = vunpack.c.l.b16 %v733_v47  ;;  %v799_v43 = vpack.c.bf16 %v767_v27, %v767_v27  ;;  %v782_v47 = vld [vmem:[#allocation2 + $0x128] sm:$0xff] }
  0x8e   :  { %v8477_v7 = vadd.f32 %v199_v2, %v50_v0  ;;  %12490 = vst [vmem:[#allocation7_spill] sm:$0xff] %v8497_v13  ;;  %v748_v0 = vpack.c.bf16 %v716_v45, %v716_v45  ;;  %v117_v2 = vpack.c.bf16 %v90_v56, %v89_v55  ;;  %v1583_v20 = vunpack.c.l.b16 %v749_v1 }
  0x8f   :  { %v1598_v22 = vpack.c.b16 %v1567_v9, %v1566_v8  ;;  %v1680_v56 = vunpack.c.l.b16 %v799_v43 }
  0x90   :  { %v308_v10 = vpack.c.bf16 %v8477_v7, %v8475_v6  ;;  %7822 = vmatmul.msk.bf16.gmra.mxu0 %vm134_vm1, %v117_v2  ;;  %v1582_v19 = vunpack.c.l.b16 %v748_v0  ;;  %v797_v2 = vpack.c.bf16 %v765_v62, %v765_v62  ;;  %v74_v62 = vld [vmem:[%s12427_s0 + $0xc8] sm:$0xff] }
  0x91   :  { %v238_v12 = vpop.f32.mrf.mxu3  ;;  %1614 = vrot.lane.b32.xlu1 %v1598_v22, %s8195_s15 }
  0x92   :  { %7834 = vmatmul.msk.bf16.vlgmr.msra.gmra.mxu1 %vm329_vm5, %v308_v10  ;;  %v239_v14 = vadd.f32 %v8439_v57, %v238_v12  ;;  %v734_v10 = vpack.c.bf16 %v702_v3, %v702_v3  ;;  %v718_v12 = vld [vmem:[#allocation2 + $0x122] sm:$0xff]  ;;  %v1606_v30 = vpack.c.b16 %v1583_v20, %v1582_v19  ;;  %v1678_v8 = vunpack.c.l.b16 %v797_v2 }
  0x93   :  { %v201_v16 = vpop.f32.mrf.mxu0  ;;  %v750_v23 = vpack.c.bf16 %v718_v12, %v718_v12  ;;  %v815_v19 = vpack.c.bf16 %v783_v15, %v783_v15 }
  0x94   :  { %v8505_v18 = vadd.f32 %v239_v14, %v66_v11  ;;  %v202_v32 = vadd.f32 %v8439_v57, %v201_v16  ;;  %v8561_v11 = vpack.c.b16 %v1571_v52, %v1570_v51  ;;  %v719_v14 = vld [vmem:[#allocation2 + $0x12a] sm:$0xff]  ;;  %v1568_v17 = vunpack.c.l.b16 %v734_v10 }
  0x95   :  { %v1584_v36 = vunpack.c.l.b16 %v750_v23  ;;  %v1696_v22 = vunpack.c.l.b16 %v815_v19 }
  0x96   :  { %12491 = vst [vmem:[#allocation8_spill] sm:$0xff] %v8505_v18  ;;  %v316_v24 = vpack.c.bf16 %v8505_v18, %v8497_v13  ;;  %v8545_v58 = vadd.f32 %v202_v32, %v51_v41  ;;  %1618 = vrot.lane.b32.xlu0 %v8561_v11, %s8195_s15  ;;  %v8577_v25 = vpack.c.b16 %v1569_v21, %v1568_v17  ;;  %v91_v21 = vld [vmem:[%s12428_s1 + $0x50] sm:$0xff] }
  0x97   :  { %v753_v41 = vpack.c.bf16 %v721_v34, %v721_v34 }
  0x98   :  { %7842 = vmatmul.msk.bf16.vlgmr.msra.gmra.mxu2 %vm329_vm5, %v316_v24  ;;  %12492 = vst [vmem:[#allocation9_spill] sm:$0xff] %v8545_v58  ;;  %v751_v24 = vpack.c.bf16 %v719_v14, %v719_v14  ;;  %1616 = vrot.lane.b32.xlu2 %v8577_v25, %s8195_s15 }
  0x99   :  { %v241_v63 = vpop.f32.mrf.mxu3  ;;  %v1587_v50 = vunpack.c.l.b16 %v753_v41 }
  0x9a   :  { %v242_v31 = vadd.f32 %v8439_v57, %v241_v63  ;;  %v1585_v37 = vunpack.c.l.b16 %v751_v24  ;;  %v766_v63 = vld [vmem:[#allocation2 + $0x20] sm:$0xff]  ;;  %v92_v24 = vld [vmem:[%s12428_s1 + $0x58] sm:$0xff] }
  0x9b   :  { %v203_v54 = vpop.f32.mrf.mxu0  ;;  %v8612_v55 = vpack.c.b16 %v1587_v50, %v1586_v49  ;;  %v798_v3 = vpack.c.bf16 %v766_v63, %v766_v63  ;;  %v118_v27 = vpack.c.bf16 %v92_v24, %v91_v21  ;;  %v75_v21 = vld [vmem:[%s12427_s0 + $0xd0] sm:$0xff]  ;;  %v76_v24 = vld [vmem:[%s12427_s0 + $0xd8] sm:$0xff] }
  0x9c   :  { %v204_v60 = vadd.f32 %v8439_v57, %v203_v54  ;;  %v8598_v42 = vadd.f32 %v242_v31, %v67_v35  ;;  %v8610_v52 = vpack.c.b16 %v1585_v37, %v1584_v36  ;;  %v814_v54 = vpack.c.bf16 %v782_v47, %v782_v47  ;;  %v70_v35 = vld [vmem:[%s12427_s0 + $0xa8] sm:$0xff] }
  0x9d   :  { %v1679_v9 = vunpack.c.l.b16 %v798_v3  ;;  %v55_v3 = vld [vmem:[%s12427_s0 + $0x30] sm:$0xff] }
  0x9e   :  { %v8556_v5 = vadd.f32 %v204_v60, %v52_v53  ;;  %12494 = vst [vmem:[#allocation11_spill] sm:$0xff] %v8598_v42  ;;  %v813_v53 = vpack.c.bf16 %v781_v46, %v781_v46  ;;  %1630 = vrot.lane.b32.xlu0 %v1606_v30, %s8195_s15  ;;  %v1681_v60 = vunpack.c.l.b16 %v800_v44  ;;  %1632 = vrot.lane.b32.xlu1 %v8610_v52, %s8195_s15  ;;  %v1695_v1 = vunpack.c.l.b16 %v814_v54  ;;  %v53_v30 = vld [vmem:[%s12427_s0 + $0x20] sm:$0xff] }
  0x9f   :  { %v8640_v12 = vpack.c.b16 %v1679_v9, %v1678_v8  ;;  %v56_v8 = vld [vmem:[%s12427_s0 + $0x38] sm:$0xff] }
  0xa0   :  { %12493 = vst [vmem:[#allocation10_spill] sm:$0xff] %v8556_v5  ;;  %v309_v16 = vpack.c.bf16 %v8556_v5, %v8545_v58  ;;  %v1694_v0 = vunpack.c.l.b16 %v813_v53  ;;  %1634 = vrot.lane.b32.xlu2 %v8612_v55, %s8195_s15  ;;  %v8630_v4 = vpack.c.b16 %v1681_v60, %v1680_v56  ;;  %7823 = vmatmul.msk.bf16.gmra.mxu0 %vm134_vm1, %v118_v27  ;;  %v73_v60 = vld [vmem:[%s12427_s0 + $0xc0] sm:$0xff] }
  0xa1   :  { %v243_v29 = vpop.f32.mrf.mxu3 }
  0xa2   :  { %7835 = vmatmul.msk.bf16.gmra.mxu1 %vm329_vm5, %v309_v16  ;;  %v244_v32 = vadd.f32 %v8439_v57, %v243_v29  ;;  %v8638_v10 = vpack.c.b16 %v1695_v1, %v1694_v0  ;;  %v784_v16 = vld [vmem:[#allocation2 + $0x140] sm:$0xff] }
  0xa3   :  { %v206_v14 = vpop.f32.mrf.mxu0  ;;  %v816_v20 = vpack.c.bf16 %v784_v16, %v784_v16 }
  0xa4   :  { %v8600_v45 = vadd.f32 %v244_v32, %v68_v38  ;;  %v207_v28 = vadd.f32 %v8439_v57, %v206_v14  ;;  %v69_v32 = vld [vmem:[%s12427_s0 + $0xa0] sm:$0xff] }
  0xa5   :  { %v1697_v23 = vunpack.c.l.b16 %v816_v20 }
  0xa6   :  { %12495 = vst [vmem:[#allocation12_spill] sm:$0xff] %v8600_v45  ;;  %v317_v51 = vpack.c.bf16 %v8600_v45, %v8598_v42  ;;  %1728 = vrot.lane.b32.xlu0 %v8630_v4, %s8196_s20  ;;  %1742 = vrot.lane.b32.xlu1 %v8638_v10, %s8196_s20  ;;  %v8695_v37 = vadd.f32 %v207_v28, %v53_v30  ;;  %v93_v28 = vld [vmem:[%s12428_s1 + $0x60] sm:$0xff] }
  0xa7   :  { %v8675_v31 = vpack.c.b16 %v1697_v23, %v1696_v22  ;;  %v8829_v22 = vpop.permute.xlu0 %1502 }
  0xa8   :  { %7843 = vmatmul.msk.bf16.gmra.mxu2 %vm329_vm5, %v317_v51  ;;  %1726 = vrot.lane.b32.xlu2 %v8640_v12, %s8196_s20  ;;  %12496 = vst [vmem:[#allocation13_spill] sm:$0xff] %v8695_v37 }
  0xa9   :  { %v246_v17 = vpop.f32.mrf.mxu3 }
  0xaa   :  { %v247_v29 = vadd.f32 %v8439_v57, %v246_v17 }
  0xab   :  { %v208_v34 = vpop.f32.mrf.mxu0 }
  0xac   :  { %v8698_v38 = vadd.f32 %v247_v29, %v69_v32  ;;  %v94_v29 = vld [vmem:[%s12428_s1 + $0x68] sm:$0xff] }
  0xae   :  { %1838 = vrot.lane.b32.xlu0 %v8405_v48, %s8197_s28  ;;  %v209_v48 = vadd.f32 %v8439_v57, %v208_v34  ;;  %12497 = vst [vmem:[#allocation14_spill] sm:$0xff] %v8698_v38  ;;  %1840 = vrot.lane.b32.xlu1 %v8449_v61, %s8197_s28 }
  0xb0   :  { %1744 = vrot.lane.b32.xlu2 %v8675_v31, %s8196_s20  ;;  %v8709_v41 = vadd.f32 %v209_v48, %v54_v33  ;;  %v119_v33 = vpack.c.bf16 %v94_v29, %v93_v28  ;;  %v8852_v48 = vpop.permute.xlu0 %1504  ;;  %v95_v28 = vld [vmem:[%s12428_s1 + $0x70] sm:$0xff] }
  0xb1   :  { %v248_v36 = vpop.f32.mrf.mxu3 }
  0xb2   :  { %v249_v39 = vadd.f32 %v8439_v57, %v248_v36  ;;  %12498 = vst [vmem:[#allocation15_spill] sm:$0xff] %v8709_v41  ;;  %v310_v44 = vpack.c.bf16 %v8709_v41, %v8695_v37  ;;  %7824 = vmatmul.msk.bf16.gmra.mxu0 %vm134_vm1, %v119_v33  ;;  %v96_v33 = vld [vmem:[%s12428_s1 + $0x78] sm:$0xff]  ;;  %s8203_s1 = smov 40  }
  0xb3   :  { %v211_v63 = vpop.f32.mrf.mxu0 }
  0xb4   :  { %v8711_v43 = vadd.f32 %v249_v39, %v70_v35  ;;  %7836 = vmatmul.msk.bf16.gmra.mxu1 %vm329_vm5, %v310_v44  ;;  %v8856_v44 = vpop.permute.xlu1 %1506 }
  0xb6   :  { %12499 = vst [vmem:[#allocation16_spill] sm:$0xff] %v8711_v43  ;;  %v318_v46 = vpack.c.bf16 %v8711_v43, %v8698_v38  ;;  %1856 = vrot.lane.b32.xlu0 %v8547_v59, %s8197_s28  ;;  %1950 = vrot.lane.b32.xlu1 %v8577_v25, %s8198_s18  ;;  %v71_v25 = vld [vmem:[%s12427_s0 + $0xb0] sm:$0xff] }
  0xb8   :  { %7844 = vmatmul.msk.bf16.gmra.mxu2 %vm329_vm5, %v318_v46  ;;  %1854 = vrot.lane.b32.xlu2 %v8523_v40, %s8197_s28  ;;  %v72_v40 = vld [vmem:[%s12427_s0 + $0xb8] sm:$0xff] }
  0xb9   :  { %v251_v47 = vpop.f32.mrf.mxu3 }
  0xba   :  { %v252_v49 = vadd.f32 %v8439_v57, %v251_v47  ;;  %v77_v47 = vld [vmem:[%s12427_s0 + $0xe0] sm:$0xff] }
  0xbb   :  { %v213_v9 = vpop.f32.mrf.mxu0 }
  0xbc   :  { %v8762_v51 = vadd.f32 %v252_v49, %v71_v25  ;;  %v214_v16 = vadd.f32 %v8439_v57, %v213_v9  ;;  %v78_v49 = vld [vmem:[%s12427_s0 + $0xe8] sm:$0xff] }
  0xbe   :  { %1966 = vrot.lane.b32.xlu0 %v8610_v52, %s8198_s18  ;;  %12500 = vst [vmem:[#allocation17_spill] sm:$0xff] %v8762_v51  ;;  %1968 = vrot.lane.b32.xlu1 %v8612_v55, %s8198_s18  ;;  %v8821_v17 = vadd.f32 %v214_v16, %v56_v8 }
  0xc0   :  { %1952 = vrot.lane.b32.xlu2 %v8561_v11, %s8198_s18  ;;  %12505 = vst [vmem:[#allocation22_spill] sm:$0xff] %v8821_v17 }
  0xc1   :  { %v253_v50 = vpop.f32.mrf.mxu3 }
  0xc2   :  { %v254_v53 = vadd.f32 %v8439_v57, %v253_v50  ;;  %v8869_v50 = vld [vmem:[%s12432_s5] ss:$0 sm:$0xff] }
  0xc4   :  { %v8773_v52 = vadd.f32 %v254_v53, %v72_v40 }
  0xc6   :  { %12501 = vst [vmem:[#allocation18_spill] sm:$0xff] %v8773_v52  ;;  %v319_v54 = vpack.c.bf16 %v8773_v52, %v8762_v51  ;;  %2174 = vrot.lane.b32.xlu0 %v8449_v61, %s8199_s23  ;;  %2078 = vrot.lane.b32.xlu1 %v8675_v31, %s8200_s24 }
  0xc8   :  { %7845 = vmatmul.msk.bf16.gmra.mxu2 %vm329_vm5, %v319_v54  ;;  %2062 = vrot.lane.b32.xlu2 %v8630_v4, %s8200_s24  ;;  %v8873_v54 = vpop.permute.xlu0 %1520 }
  0xc9   :  { %v256_v11 = vpop.f32.mrf.mxu3 }
  0xca   :  { %v257_v56 = vadd.f32 %v8439_v57, %v256_v11 }
  0xcc   :  { %v8804_v0 = vadd.f32 %v257_v56, %v73_v60  ;;  %v8880_v60 = vpop.permute.xlu1 %1522 }
  0xce   :  { %12502 = vst [vmem:[#allocation19_spill] sm:$0xff] %v8804_v0 }
  0xd0   :  { %2190 = vrot.lane.b32.xlu2 %v8547_v59, %s8199_s23  ;;  %v212_v59 = vadd.f32 %v8439_v57, %v211_v63  ;;  %v8029_v63 = vld [vmem:[%s12433_s6 + $0x38] sm:$0xff] }
  0xd1   :  { %v258_v55 = vpop.f32.mrf.mxu3  ;;  %3128 = vmatpush.bf16.msrb.mxu2 %v8029_v63 }
  0xd2   :  { %v259_v61 = vadd.f32 %v8439_v57, %v258_v55  ;;  %v8818_v15 = vadd.f32 %v212_v59, %v55_v3 }
  0xd4   :  { %v8806_v1 = vadd.f32 %v259_v61, %v74_v62  ;;  %12504 = vst [vmem:[#allocation21_spill] sm:$0xff] %v8818_v15  ;;  %v311_v20 = vpack.c.bf16 %v8821_v17, %v8818_v15 }
  0xd6   :  { %12503 = vst [vmem:[#allocation20_spill] sm:$0xff] %v8806_v1  ;;  %v320_v2 = vpack.c.bf16 %v8806_v1, %v8804_v0  ;;  %7837 = vmatmul.msk.bf16.gmra.mxu1 %vm329_vm5, %v311_v20  ;;  %v79_v20 = vld [vmem:[%s12427_s0 + $0xf0] sm:$0xff] }
  0xd8   :  { %7846 = vmatmul.msk.bf16.gmra.mxu2 %vm329_vm5, %v320_v2  ;;  %v8028_v2 = vld [vmem:[%s12433_s6 + $0x30] sm:$0xff] }
  0xd9   :  { %v261_v14 = vpop.f32.mrf.mxu3  ;;  %3129 = vmatpush.bf16.msrb.mxu2 %v8028_v2 }
  0xda   :  { %v262_v19 = vadd.f32 %v8439_v57, %v261_v14 }
  0xdc   :  { %v8843_v30 = vadd.f32 %v262_v19, %v75_v21  ;;  %v80_v21 = vld [vmem:[%s12427_s0 + $0xf8] sm:$0xff] }
  0xde   :  { %12506 = vst [vmem:[#allocation23_spill] sm:$0xff] %v8843_v30 }
  0xe1   :  { %v263_v27 = vpop.f32.mrf.mxu3 }
  0xe2   :  { %v8832_v23 = vpop.permute.xlu2 %1518  ;;  %v264_v32 = vadd.f32 %v8439_v57, %v263_v27  ;;  %v8027_v27 = vld [vmem:[%s12433_s6 + $0x28] sm:$0xff] }
  0xe3   :  { %3130 = vmatpush.bf16.msrb.mxu2 %v8027_v27 }
  0xe4   :  { %v8846_v34 = vadd.f32 %v264_v32, %v76_v24 }
  0xe6   :  { %12507 = vst [vmem:[#allocation24_spill] sm:$0xff] %v8846_v34  ;;  %v321_v35 = vpack.c.bf16 %v8846_v34, %v8843_v30 }
  0xe8   :  { %7847 = vmatmul.msk.bf16.gmra.mxu2 %vm329_vm5, %v321_v35 }
  0xe9   :  { %v266_v36 = vpop.f32.mrf.mxu3 }
  0xea   :  { %v267_v46 = vadd.f32 %v8439_v57, %v266_v36 }
  0xec   :  { %v8871_v53 = vadd.f32 %v267_v46, %v77_v47 }
  0xee   :  { %12508 = vst [vmem:[#allocation25_spill] sm:$0xff] %v8871_v53 }
  0xf1   :  { %v268_v25 = vpop.f32.mrf.mxu3 }
  0xf2   :  { %v8854_v39 = vpop.permute.xlu2 %1616  ;;  %v269_v40 = vadd.f32 %v8439_v57, %v268_v25  ;;  %v8026_v25 = vld [vmem:[%s12433_s6 + $0x20] sm:$0xff] }
  0xf3   :  { %3131 = vmatpush.bf16.msrb.mxu2 %v8026_v25 }
  0xf4   :  { %v8875_v11 = vadd.f32 %v269_v40, %v78_v49  ;;  %v120_v49 = vpack.c.bf16 %v96_v33, %v95_v28 }
  0xf6   :  { %12509 = vst [vmem:[#allocation26_spill] sm:$0xff] %v8875_v11  ;;  %v322_v62 = vpack.c.bf16 %v8875_v11, %v8871_v53  ;;  %7825 = vmatmul.msk.bf16.gmra.mxu0 %vm134_vm1, %v120_v49 }
  0xf8   :  { %7848 = vmatmul.msk.bf16.gmra.mxu2 %vm329_vm5, %v322_v62 }
  0xf9   :  { %v271_v59 = vpop.f32.mrf.mxu3 }
  0xfa   :  { %v8877_v55 = vpop.permute.xlu2 %1634  ;;  %v272_v19 = vadd.f32 %v8439_v57, %v271_v59 }
  0xfb   :  { %12510 = vst [vmem:[#allocation27_spill] sm:$0xff] %v8877_v55 }
  0xfc   :  { %v8918_v46 = vadd.f32 %v272_v19, %v79_v20 }
  0xfe   :  { %12511 = vst [vmem:[#allocation28_spill] sm:$0xff] %v8918_v46 }
 0x101   :  { %v273_v24 = vpop.f32.mrf.mxu3 }
 0x102   :  { %v8897_v16 = vpop.permute.xlu2 %1726  ;;  %v274_v32 = vadd.f32 %v8439_v57, %v273_v24 }
 0x103   :  { %v8895_v14 = vpop.permute.xlu1 %1614 }
 0x108   :  { %v8892_v3 = vpop.permute.xlu0 %1618 }
 0x10a   :  { %v8935_v28 = vpop.permute.xlu2 %1744 }
 0x10d   :  { %v216_v47 = vpop.f32.mrf.mxu0 }
 0x10e   :  { %v217_v20 = vadd.f32 %v8439_v57, %v216_v47  ;;  %v573_v47 = vld [vmem:[#allocation2 + $0x8] sm:$0xff] }
 0x10f   :  { %v391_v56 = vpop.f32.mrf.mxu1 }
 0x110   :  { %v392_v61 = vadd.f32 %v8869_v50, %v391_v56  ;;  %v8923_v40 = vpop.permute.xlu0 %1630  ;;  %v8925_v56 = vadd.f32 %v274_v32, %v80_v21  ;;  %v8929_v63 = vpop.permute.xlu1 %1632  ;;  %v8025_v32 = vld [vmem:[%s12433_s6 + $0x18] sm:$0xff] }
 0x111   :  { %3132 = vmatpush.bf16.msrb.mxu2 %v8025_v32 }
 0x112   :  { %540 = vst.msk [vmem:[#allocation2 + $0x49] sm:$0xff] %vm471_vm2, %v392_v61  ;;  %v323_v2 = vpack.c.bf16 %v8925_v56, %v8918_v46 }
 0x113   :  { %12512 = vst [vmem:[#allocation29_spill] sm:$0xff] %v8925_v56 }
 0x114   :  { %7849 = vmatmul.msk.bf16.gmra.mxu2 %vm329_vm5, %v323_v2 }
 0x117   :  { %v393_v8 = vpop.f32.mrf.mxu1 }
 0x118   :  { %v394_v9 = vadd.f32 %v8869_v50, %v393_v8  ;;  %v8949_v26 = vpop.permute.xlu0 %1728 }
 0x119   :  { %v833_v36 = vld [vmem:[#allocation2 + $0x49] sm:$0xff] }
 0x11a   :  { %541 = vst.msk [vmem:[#allocation2 + $0x51] sm:$0xff] %vm471_vm2, %v394_v9  ;;  %v865_v61 = vpack.c.bf16 %v833_v36, %v833_v36  ;;  %v960_v56 = vld [vmem:[#allocation2 + $0x48] sm:$0xff] }
 0x11b   :  { %v431_v29 = vpop.f32.mrf.mxu2 }
 0x11c   :  { %v432_v35 = vadd.f32 %v8869_v50, %v431_v29  ;;  %v57_v29 = vld [vmem:[%s12427_s0 + $0x40] sm:$0xff] }
 0x11e   :  { %556 = vst.msk [vmem:[#allocation2 + $0x151] sm:$0xff] %vm471_vm2, %v432_v35  ;;  %v1794_v35 = vunpack.c.l.b16 %v865_v61  ;;  %v8951_v61 = vadd.f32 %v217_v20, %v57_v29 }
 0x11f   :  { %v396_v62 = vpop.f32.mrf.mxu1 }
 0x120   :  { %v397_v59 = vadd.f32 %v8869_v50, %v396_v62  ;;  %12513 = vst [vmem:[#allocation30_spill] sm:$0xff] %v8951_v61 }
 0x121   :  { %v897_v8 = vld [vmem:[#allocation2 + $0x4a] sm:$0xff]  ;;  %v898_v9 = vld [vmem:[#allocation2 + $0x52] sm:$0xff] }
 0x122   :  { %v834_v19 = vld [vmem:[#allocation2 + $0x51] sm:$0xff]  ;;  %v929_v21 = vpack.c.bf16 %v897_v8, %v897_v8  ;;  %v930_v24 = vpack.c.bf16 %v898_v9, %v898_v9  ;;  %542 = vst.msk [vmem:[#allocation2 + $0x61] sm:$0xff] %vm471_vm2, %v397_v59  ;;  %v58_v59 = vld [vmem:[%s12427_s0 + $0x48] sm:$0xff]  ;;  %v218_v9 = vpop.f32.mrf.mxu0 }
 0x123   :  { %v866_v27 = vpack.c.bf16 %v834_v19, %v834_v19  ;;  %v433_v33 = vpop.f32.mrf.mxu2  ;;  %v961_v36 = vld [vmem:[#allocation2 + $0x50] sm:$0xff]  ;;  %v572_v19 = vld [vmem:[#allocation2] sm:$0xff]  ;;  %v219_v2 = vadd.f32 %v8439_v57, %v218_v9  ;;  %v992_v57 = vpack.c.bf16 %v960_v56, %v960_v56 }
 0x124   :  { %v434_v49 = vadd.f32 %v8869_v50, %v433_v33  ;;  %v1906_v25 = vunpack.c.l.b16 %v929_v21  ;;  %v1907_v62 = vunpack.c.l.b16 %v930_v24  ;;  %v8024_v21 = vld [vmem:[%s12433_s6 + $0x10] sm:$0xff]  ;;  %v993_v32 = vpack.c.bf16 %v961_v36, %v961_v36 }
 0x125   :  { %v1795_v8 = vunpack.c.l.b16 %v866_v27  ;;  %v605_v33 = vpack.c.bf16 %v573_v47, %v573_v47  ;;  %v8960_v11 = vadd.f32 %v219_v2, %v58_v59  ;;  %v604_v53 = vpack.c.bf16 %v572_v19, %v572_v19  ;;  %v658_v29 = vld [vmem:[#allocation2 + $0x151] sm:$0xff]  ;;  %3133 = vmatpush.bf16.msrb.mxu2 %v8024_v21  ;;  %v8023_v47 = vld [vmem:[%s12433_s6 + $0x8] sm:$0xff]  ;;  %v1839_v59 = vpop.permute.xlu0 %1838  ;;  %v8022_v19 = vld [vmem:[%s12433_s6] sm:$0xff] }
 0x126   :  { %557 = vst.msk [vmem:[#allocation2 + $0x159] sm:$0xff] %vm471_vm2, %v434_v49  ;;  %v1936_v24 = vpack.c.b16 %v1907_v62, %v1906_v25  ;;  %v2017_v49 = vunpack.c.l.b16 %v993_v32  ;;  %v2016_v25 = vunpack.c.l.b16 %v992_v57  ;;  %v690_v62 = vpack.c.bf16 %v658_v29, %v658_v29 }
 0x127   :  { %v8958_v27 = vpack.c.b16 %v1795_v8, %v1794_v35  ;;  %v398_v46 = vpop.f32.mrf.mxu1  ;;  %12514 = vst [vmem:[#allocation31_spill] sm:$0xff] %v8960_v11  ;;  %v8968_v35 = vpop.permute.xlu1 %1742  ;;  %v312_v36 = vpack.c.bf16 %v8960_v11, %v8951_v61  ;;  %v1374_v56 = vunpack.c.l.b16 %v604_v53 }
 0x128   :  { %1954 = vrot.lane.b32.xlu0 %v1936_v24, %s8198_s18  ;;  %v399_v20 = vadd.f32 %v8869_v50, %v398_v46  ;;  %v1375_v46 = vunpack.c.l.b16 %v605_v33  ;;  %v8977_v8 = vpop.permute.xlu2 %1854  ;;  %v8982_v2 = vpack.c.b16 %v2017_v49, %v2016_v25  ;;  %v1476_v53 = vunpack.c.l.b16 %v690_v62 }
 0x129   :  { %1842 = vrot.lane.b32.xlu2 %v8958_v27, %s8197_s28  ;;  %1508 = vrot.lane.b32.xlu1 %v8958_v27, %s8194_s4 }
 0x12a   :  { %543 = vst.msk [vmem:[#allocation2 + $0x69] sm:$0xff] %vm471_vm2, %v399_v20  ;;  %7838 = vmatmul.msk.bf16.gmra.mxu1 %vm329_vm5, %v312_v36  ;;  %3134 = vmatpush.bf16.msrb.mxu2 %v8023_v47  ;;  %v1406_v36 = vpack.c.b16 %v1375_v46, %v1374_v56 }
 0x12b   :  { %v436_v32 = vpop.f32.mrf.mxu2 }
 0x12c   :  { %v437_v20 = vadd.f32 %v8869_v50, %v436_v32  ;;  %v2624_v49 = vsel %vm471_vm2, %v1406_v36, %v8829_v22 }
 0x12d   :  { %v659_v9 = vld [vmem:[#allocation2 + $0x159] sm:$0xff]  ;;  %v8997_v56 = vpop.permute.xlu0 %1856 }
 0x12e   :  { %v691_v21 = vpack.c.bf16 %v659_v9, %v659_v9  ;;  %558 = vst.msk [vmem:[#allocation2 + $0x169] sm:$0xff] %vm471_vm2, %v437_v20  ;;  %3135 = vmatpush.bf16.msrb.mxu2 %v8022_v19  ;;  %v722_v57 = vld [vmem:[#allocation2 + $0x152] sm:$0xff]  ;;  %v723_v29 = vld [vmem:[#allocation2 + $0x15a] sm:$0xff]  ;;  %v2672_v19 = vsel %vm2670_vm6, %v2624_v49, %v8895_v14 }
 0x12f   :  { %v8991_v47 = vpop.permute.xlu1 %1840  ;;  %v754_v25 = vpack.c.bf16 %v722_v57, %v722_v57  ;;  %v755_v62 = vpack.c.bf16 %v723_v29, %v723_v29  ;;  %v2705_v22 = vsel %vm2703_vm7, %v2672_v19, %v8897_v16  ;;  %v785_v14 = vld [vmem:[#allocation2 + $0x150] sm:$0xff] }
 0x130   :  { %2064 = vrot.lane.b32.xlu0 %v8982_v2, %s8200_s24  ;;  %v1477_v33 = vunpack.c.l.b16 %v691_v21  ;;  %v8999_v9 = vpop.permute.xlu2 %1952  ;;  %v817_v49 = vpack.c.bf16 %v785_v14, %v785_v14 }
 0x131   :  { %2478 = vrot.lane.b32.xlu2 %v8958_v27, %s8195_s15  ;;  %1620 = vrot.lane.b32.xlu1 %v1936_v24, %s8195_s15  ;;  %v1588_v20 = vunpack.c.l.b16 %v754_v25  ;;  %v1589_v36 = vunpack.c.l.b16 %v755_v62  ;;  %v401_v62 = vpop.f32.mrf.mxu1 }
 0x132   :  { %v8995_v46 = vpack.c.b16 %v1477_v33, %v1476_v53  ;;  %v786_v53 = vld [vmem:[#allocation2 + $0x158] sm:$0xff]  ;;  %v2738_v33 = vsel %vm2736_vm8, %v2705_v22, %v1839_v59  ;;  %v1698_v59 = vunpack.c.l.b16 %v817_v49 }
 0x133   :  { %v438_v21 = vpop.f32.mrf.mxu2  ;;  %v1609_v29 = vpack.c.b16 %v1589_v36, %v1588_v20 }
 0x134   :  { %v439_v32 = vadd.f32 %v8869_v50, %v438_v21  ;;  %v818_v21 = vpack.c.bf16 %v786_v53, %v786_v53 }
 0x136   :  { %559 = vst.msk [vmem:[#allocation2 + $0x171] sm:$0xff] %vm471_vm2, %v439_v32  ;;  %v1699_v19 = vunpack.c.l.b16 %v818_v21  ;;  %v402_v32 = vadd.f32 %v8869_v50, %v401_v62 }
 0x137   :  { %v1951_v57 = vpop.permute.xlu1 %1950 }
 0x138   :  { %2590 = vrot.lane.b32.xlu0 %v1936_v24, %s8196_s20  ;;  %v9013_v24 = vpop.permute.xlu0 %1966  ;;  %v2771_v16 = vsel %vm2769_vm9, %v2738_v33, %v1951_v57  ;;  %v2063_v25 = vpop.permute.xlu2 %2062  ;;  %544 = vst.msk [vmem:[#allocation2 + $0x79] sm:$0xff] %vm471_vm2, %v402_v32  ;;  %v9023_v36 = vpack.c.b16 %v1699_v19, %v1698_v59  ;;  %v644_v33 = vld [vmem:[#allocation2 + $0x61] sm:$0xff]  ;;  %v645_v57 = vld [vmem:[#allocation2 + $0x69] sm:$0xff] }
 0x139   :  { %1524 = vrot.lane.b32.xlu2 %v8995_v46, %s8194_s4  ;;  %1730 = vrot.lane.b32.xlu1 %v8982_v2, %s8196_s20  ;;  %v2804_v22 = vsel %vm2802_vm10, %v2771_v16, %v2063_v25  ;;  %v676_v49 = vpack.c.bf16 %v644_v33, %v644_v33  ;;  %v677_v21 = vpack.c.bf16 %v645_v57, %v645_v57  ;;  %v221_v16 = vpop.f32.mrf.mxu0  ;;  %v708_v32 = vld [vmem:[#allocation2 + $0x62] sm:$0xff]  ;;  %v59_v33 = vld [vmem:[%s12427_s0 + $0x50] sm:$0xff]  ;;  %v60_v57 = vld [vmem:[%s12427_s0 + $0x58] sm:$0xff] }
 0x13a   :  { %12515 = vst [vmem:[#allocation32_spill] sm:$0xff] %v9023_v36 }
 0x13b   :  { %v441_v25 = vpop.f32.mrf.mxu2  ;;  %v1462_v62 = vunpack.c.l.b16 %v676_v49  ;;  %v1463_v59 = vunpack.c.l.b16 %v677_v21 }
 0x13c   :  { %v442_v19 = vadd.f32 %v8869_v50, %v441_v25 }
 0x13e   :  { %560 = vst.msk [vmem:[#allocation2 + $0x181] sm:$0xff] %vm471_vm2, %v442_v19 }
 0x140   :  { %1636 = vrot.lane.b32.xlu0 %v1609_v29, %s8195_s15  ;;  %v2175_v20 = vpop.permute.xlu0 %2174 }
 0x141   :  { %1970 = vrot.lane.b32.xlu2 %v1609_v29, %s8198_s18  ;;  %2176 = vrot.lane.b32.xlu1 %v8958_v27, %s8199_s23  ;;  %v2837_v14 = vsel %vm2835_vm11, %v2804_v22, %v2175_v20  ;;  %v403_v27 = vpop.f32.mrf.mxu1  ;;  %v709_v22 = vld [vmem:[#allocation2 + $0x6a] sm:$0xff]  ;;  %v1490_v20 = vpack.c.b16 %v1463_v59, %v1462_v62  ;;  %v223_v49 = vpop.f32.mrf.mxu0 }
 0x142   :  { %3136 = vmatmul.bf16.vlgmr.msrb.gmra.mxu2 %v2837_v14  ;;  %v404_v53 = vadd.f32 %v8869_v50, %v403_v27  ;;  %v740_v14 = vpack.c.bf16 %v708_v32, %v708_v32  ;;  %v741_v27 = vpack.c.bf16 %v709_v22, %v709_v22  ;;  %v772_v32 = vld [vmem:[#allocation2 + $0x68] sm:$0xff] }
 0x143   :  { %v443_v21 = vpop.f32.mrf.mxu2  ;;  %v804_v1 = vpack.c.bf16 %v772_v32, %v772_v32  ;;  %v916_v32 = vld [vmem:[#allocation2 + $0x172] sm:$0xff] }
 0x144   :  { %545 = vst.msk [vmem:[#allocation2 + $0x81] sm:$0xff] %vm471_vm2, %v404_v53  ;;  %v1574_v25 = vunpack.c.l.b16 %v740_v14  ;;  %v1575_v62 = vunpack.c.l.b16 %v741_v27  ;;  %v444_v19 = vadd.f32 %v8869_v50, %v443_v21 }
 0x146   :  { %561 = vst.msk [vmem:[#allocation2 + $0x189] sm:$0xff] %vm471_vm2, %v444_v19  ;;  %v1602_v34 = vpack.c.b16 %v1575_v62, %v1574_v25 }
 0x148   :  { %1746 = vrot.lane.b32.xlu0 %v9023_v36, %s8196_s20 }
 0x149   :  { %2080 = vrot.lane.b32.xlu2 %v9023_v36, %s8200_s24  ;;  %2366 = vrot.lane.b32.xlu1 %v8982_v2, %s8194_s4 }
 0x150   :  { %2192 = vrot.lane.b32.xlu0 %v8995_v46, %s8199_s23 }
 0x151   :  { %2606 = vrot.lane.b32.xlu2 %v1609_v29, %s8196_s20  ;;  %1858 = vrot.lane.b32.xlu1 %v8995_v46, %s8197_s28  ;;  %v9047_v29 = vld [vmem:[%s12430_s3] ss:$0 sm:$0xff]  ;;  %s8206_s3 = smov 88  }
 0x152   :  { %v222_v53 = vadd.f32 %v9047_v29, %v221_v16  ;;  %v224_v59 = vadd.f32 %v9047_v29, %v223_v49  ;;  %v771_v16 = vld [vmem:[#allocation2 + $0x60] sm:$0xff]  ;;  %v1685_v49 = vunpack.c.l.b16 %v804_v1 }
 0x153   :  { %v803_v30 = vpack.c.bf16 %v771_v16, %v771_v16  ;;  %v915_v16 = vld [vmem:[#allocation2 + $0x16a] sm:$0xff] }
 0x154   :  { %v9060_v22 = vadd.f32 %v222_v53, %v59_v33  ;;  %v446_v53 = vpop.f32.mrf.mxu2  ;;  %v660_v33 = vld [vmem:[#allocation2 + $0x169] sm:$0xff] }
 0x155   :  { %v1684_v27 = vunpack.c.l.b16 %v803_v30  ;;  %v447_v21 = vadd.f32 %v8869_v50, %v446_v53  ;;  %v692_v62 = vpack.c.bf16 %v660_v33, %v660_v33  ;;  %v948_v53 = vpack.c.bf16 %v916_v32, %v916_v32 }
 0x156   :  { %12516 = vst [vmem:[#allocation33_spill] sm:$0xff] %v9060_v22 }
 0x157   :  { %562 = vst.msk [vmem:[#allocation2 + $0x199] sm:$0xff] %vm471_vm2, %v447_v21  ;;  %v9073_v25 = vpack.c.b16 %v1685_v49, %v1684_v27  ;;  %v1478_v1 = vunpack.c.l.b16 %v692_v62  ;;  %v947_v49 = vpack.c.bf16 %v915_v16, %v915_v16  ;;  %v978_v21 = vld [vmem:[#allocation2 + $0x168] sm:$0xff]  ;;  %v979_v62 = vld [vmem:[#allocation2 + $0x170] sm:$0xff] }
 0x158   :  { %2382 = vrot.lane.b32.xlu0 %v9023_v36, %s8194_s4 }
 0x159   :  { %1510 = vrot.lane.b32.xlu2 %v1490_v20, %s8194_s4  ;;  %2494 = vrot.lane.b32.xlu1 %v8995_v46, %s8195_s15  ;;  %v9062_v46 = vadd.f32 %v224_v59, %v60_v57  ;;  %v661_v57 = vld [vmem:[#allocation2 + $0x171] sm:$0xff]  ;;  %v1924_v33 = vunpack.c.l.b16 %v947_v49  ;;  %v226_v49 = vpop.f32.mrf.mxu0 }
 0x15a   :  { %v693_v59 = vpack.c.bf16 %v661_v57, %v661_v57  ;;  %v1925_v57 = vunpack.c.l.b16 %v948_v53  ;;  %v710_v53 = vld [vmem:[#allocation2 + $0x7a] sm:$0xff] }
 0x15b   :  { %12517 = vst [vmem:[#allocation34_spill] sm:$0xff] %v9062_v46  ;;  %v313_v14 = vpack.c.bf16 %v9062_v46, %v9060_v22  ;;  %v727_v46 = vld [vmem:[#allocation2 + $0x18a] sm:$0xff] }
 0x15c   :  { %v1479_v30 = vunpack.c.l.b16 %v693_v59  ;;  %v448_v19 = vpop.f32.mrf.mxu2  ;;  %v1945_v0 = vpack.c.b16 %v1925_v57, %v1924_v33  ;;  %v711_v33 = vld [vmem:[#allocation2 + $0x82] sm:$0xff] }
 0x15d   :  { %7839 = vmatmul.msk.bf16.gmra.mxu1 %vm329_vm5, %v313_v14  ;;  %v449_v14 = vadd.f32 %v8869_v50, %v448_v19 }
 0x15e   :  { %v9082_v27 = vpack.c.b16 %v1479_v30, %v1478_v1  ;;  %v1011_v1 = vpack.c.bf16 %v979_v62, %v979_v62  ;;  %v406_v30 = vpop.f32.mrf.mxu1 }
 0x15f   :  { %563 = vst.msk [vmem:[#allocation2 + $0x1a1] sm:$0xff] %vm471_vm2, %v449_v14  ;;  %v1010_v14 = vpack.c.bf16 %v978_v21, %v978_v21  ;;  %v407_v16 = vadd.f32 %v8869_v50, %v406_v30 }
 0x160   :  { %1844 = vrot.lane.b32.xlu0 %v1490_v20, %s8197_s28  ;;  %v2035_v32 = vunpack.c.l.b16 %v1011_v1  ;;  %v61_v1 = vld [vmem:[%s12427_s0 + $0x60] sm:$0xff] }
 0x161   :  { %1622 = vrot.lane.b32.xlu2 %v1602_v34, %s8195_s15  ;;  %1956 = vrot.lane.b32.xlu1 %v1602_v34, %s8198_s18  ;;  %546 = vst.msk [vmem:[#allocation2 + $0x91] sm:$0xff] %vm471_vm2, %v407_v16 }
 0x164   :  { %v451_v59 = vpop.f32.mrf.mxu2 }
 0x165   :  { %v452_v19 = vadd.f32 %v8869_v50, %v451_v59  ;;  %v742_v59 = vpack.c.bf16 %v710_v53, %v710_v53  ;;  %v773_v53 = vld [vmem:[#allocation2 + $0x78] sm:$0xff] }
 0x166   :  { %v408_v30 = vpop.f32.mrf.mxu1  ;;  %v805_v38 = vpack.c.bf16 %v773_v53, %v773_v53 }
 0x167   :  { %564 = vst.msk [vmem:[#allocation2 + $0x1b1] sm:$0xff] %vm471_vm2, %v452_v19  ;;  %v743_v19 = vpack.c.bf16 %v711_v33, %v711_v33  ;;  %v62_v33 = vld [vmem:[%s12427_s0 + $0x68] sm:$0xff] }
 0x168   :  { %2480 = vrot.lane.b32.xlu0 %v1490_v20, %s8195_s15 }
 0x169   :  { %1732 = vrot.lane.b32.xlu2 %v9073_v25, %s8196_s20  ;;  %2066 = vrot.lane.b32.xlu1 %v9073_v25, %s8200_s24 }
 0x16c   :  { %v453_v57 = vpop.f32.mrf.mxu2 }
 0x16d   :  { %v454_v21 = vadd.f32 %v8869_v50, %v453_v57  ;;  %v228_v57 = vpop.f32.mrf.mxu0 }
 0x16e   :  { %v229_v52 = vadd.f32 %v9047_v29, %v228_v57  ;;  %v8033_v57 = vld [vmem:[%s12433_s6 + $0x58] sm:$0xff] }
 0x16f   :  { %565 = vst.msk [vmem:[#allocation2 + $0x1b9] sm:$0xff] %vm471_vm2, %v454_v21  ;;  %v646_v21 = vld [vmem:[#allocation2 + $0x79] sm:$0xff]  ;;  %3221 = vmatpush.bf16.msrb.mxu3 %v8033_v57 }
 0x170   :  { %1526 = vrot.lane.b32.xlu0 %v9082_v27, %s8194_s4  ;;  %v678_v42 = vpack.c.bf16 %v646_v21, %v646_v21 }
 0x171   :  { %2178 = vrot.lane.b32.xlu2 %v1490_v20, %s8199_s23  ;;  %2592 = vrot.lane.b32.xlu1 %v1602_v34, %s8196_s20  ;;  %v9096_v34 = vpop.permute.xlu2 %2190  ;;  %v2034_v20 = vunpack.c.l.b16 %v1010_v14  ;;  %v227_v14 = vadd.f32 %v9047_v29, %v226_v49  ;;  %v774_v49 = vld [vmem:[#allocation2 + $0x80] sm:$0xff] }
 0x172   :  { %v806_v45 = vpack.c.bf16 %v774_v49, %v774_v49 }
 0x173   :  { %v9099_v62 = vpack.c.b16 %v2035_v32, %v2034_v20  ;;  %v1576_v20 = vunpack.c.l.b16 %v742_v59  ;;  %v1577_v32 = vunpack.c.l.b16 %v743_v19  ;;  %v9120_v51 = vadd.f32 %v227_v14, %v61_v1 }
 0x174   :  { %v456_v43 = vpop.f32.mrf.mxu2  ;;  %v1686_v1 = vunpack.c.l.b16 %v805_v38 }
 0x175   :  { %12518 = vst [vmem:[#allocation35_spill] sm:$0xff] %v9099_v62  ;;  %v457_v59 = vadd.f32 %v8869_v50, %v456_v43  ;;  %v9125_v19 = vpack.c.b16 %v1577_v32, %v1576_v20  ;;  %v1687_v20 = vunpack.c.l.b16 %v806_v45  ;;  %v1464_v32 = vunpack.c.l.b16 %v678_v42  ;;  %v8032_v42 = vld [vmem:[%s12433_s6 + $0x50] sm:$0xff]  ;;  %v231_v57 = vpop.f32.mrf.mxu0 }
 0x176   :  { %12519 = vst [vmem:[#allocation36_spill] sm:$0xff] %v9120_v51  ;;  %3222 = vmatpush.bf16.msrb.mxu3 %v8032_v42 }
 0x177   :  { %566 = vst.msk [vmem:[#allocation2 + $0x1c9] sm:$0xff] %vm471_vm2, %v457_v59  ;;  %v9144_v49 = vpack.c.b16 %v1687_v20, %v1686_v1  ;;  %v8030_v20 = vld [vmem:[%s12433_s6 + $0x40] sm:$0xff] }
 0x178   :  { %1972 = vrot.lane.b32.xlu0 %v1945_v0, %s8198_s18 }
 0x179   :  { %2368 = vrot.lane.b32.xlu2 %v9073_v25, %s8194_s4  ;;  %1638 = vrot.lane.b32.xlu1 %v1945_v0, %s8195_s15  ;;  %v409_v0 = vadd.f32 %v8869_v50, %v408_v30  ;;  %v647_v30 = vld [vmem:[#allocation2 + $0x81] sm:$0xff] }
 0x17a   :  { %v679_v18 = vpack.c.bf16 %v647_v30, %v647_v30 }
 0x17b   :  { %547 = vst.msk [vmem:[#allocation2 + $0x99] sm:$0xff] %vm471_vm2, %v409_v0  ;;  %v9122_v0 = vadd.f32 %v229_v52, %v62_v33  ;;  %v9134_v52 = vpop.permute.xlu1 %1968 }
 0x17c   :  { %v1465_v53 = vunpack.c.l.b16 %v679_v18  ;;  %v458_v33 = vpop.f32.mrf.mxu2 }
 0x17d   :  { %12520 = vst [vmem:[#allocation37_spill] sm:$0xff] %v9122_v0  ;;  %v314_v14 = vpack.c.bf16 %v9122_v0, %v9120_v51  ;;  %v459_v30 = vadd.f32 %v8869_v50, %v458_v33  ;;  %v854_v33 = vld [vmem:[#allocation2 + $0x189] sm:$0xff] }
 0x17e   :  { %v1491_v21 = vpack.c.b16 %v1465_v53, %v1464_v32  ;;  %v853_v53 = vld [vmem:[#allocation2 + $0x181] sm:$0xff] }
 0x17f   :  { %7840 = vmatmul.msk.bf16.gmra.mxu1 %vm329_vm5, %v314_v14  ;;  %567 = vst.msk [vmem:[#allocation2 + $0x1d1] sm:$0xff] %vm471_vm2, %v459_v30  ;;  %v885_v42 = vpack.c.bf16 %v853_v53, %v853_v53  ;;  %v726_v51 = vld [vmem:[#allocation2 + $0x182] sm:$0xff] }
 0x180   :  { %2082 = vrot.lane.b32.xlu0 %v9099_v62, %s8200_s24 }
 0x181   :  { %1860 = vrot.lane.b32.xlu2 %v9082_v27, %s8197_s28  ;;  %1748 = vrot.lane.b32.xlu1 %v9099_v62, %s8196_s20 }
 0x183   :  { %v9114_v16 = vpop.permute.xlu2 %1842  ;;  %v9158_v45 = vpop.permute.xlu1 %2078 }
 0x184   :  { %v461_v38 = vpop.f32.mrf.mxu2 }
 0x185   :  { %v462_v59 = vadd.f32 %v8869_v50, %v461_v38  ;;  %v886_v38 = vpack.c.bf16 %v854_v33, %v854_v33 }
 0x187   :  { %568 = vst.msk [vmem:[#allocation2 + $0x1e1] sm:$0xff] %vm471_vm2, %v462_v59  ;;  %v1815_v13 = vunpack.c.l.b16 %v886_v38  ;;  %v759_v38 = vpack.c.bf16 %v727_v46, %v727_v46  ;;  %v789_v46 = vld [vmem:[#allocation2 + $0x180] sm:$0xff] }
 0x188   :  { %1624 = vrot.lane.b32.xlu0 %v9125_v19, %s8195_s15 }
 0x189   :  { %2496 = vrot.lane.b32.xlu2 %v9082_v27, %s8195_s15  ;;  %2194 = vrot.lane.b32.xlu1 %v9082_v27, %s8199_s23  ;;  %v8031_v27 = vld [vmem:[%s12433_s6 + $0x48] sm:$0xff] }
 0x18a   :  { %3223 = vmatpush.bf16.msrb.mxu3 %v8031_v27  ;;  %v232_v27 = vadd.f32 %v9047_v29, %v231_v57  ;;  %v64_v57 = vld [vmem:[%s12427_s0 + $0x78] sm:$0xff] }
 0x18b   :  { %v9138_v43 = vpop.permute.xlu2 %2478 }
 0x18c   :  { %v463_v30 = vpop.f32.mrf.mxu2 }
 0x18d   :  { %v464_v59 = vadd.f32 %v8869_v50, %v463_v30  ;;  %v1814_v30 = vunpack.c.l.b16 %v885_v42  ;;  %v758_v42 = vpack.c.bf16 %v726_v51, %v726_v51 }
 0x18e   :  { %3224 = vmatpush.bf16.msrb.mxu3 %v8030_v20  ;;  %v63_v20 = vld [vmem:[%s12427_s0 + $0x70] sm:$0xff] }
 0x18f   :  { %569 = vst.msk [vmem:[#allocation2 + $0x1e9] sm:$0xff] %vm471_vm2, %v464_v59  ;;  %v233_v59 = vpop.f32.mrf.mxu0  ;;  %v9201_v22 = vadd.f32 %v232_v27, %v63_v20  ;;  %v9204_v61 = vpack.c.b16 %v1815_v13, %v1814_v30  ;;  %v648_v27 = vld [vmem:[#allocation2 + $0x91] sm:$0xff]  ;;  %v649_v20 = vld [vmem:[#allocation2 + $0x99] sm:$0xff]  ;;  %v790_v30 = vld [vmem:[#allocation2 + $0x188] sm:$0xff] }
 0x190   :  { %1734 = vrot.lane.b32.xlu0 %v9144_v49, %s8196_s20  ;;  %v234_v11 = vadd.f32 %v9047_v29, %v233_v59  ;;  %v1593_v29 = vunpack.c.l.b16 %v759_v38  ;;  %v822_v38 = vpack.c.bf16 %v790_v30, %v790_v30 }
 0x191   :  { %1512 = vrot.lane.b32.xlu2 %v1491_v21, %s8194_s4  ;;  %2384 = vrot.lane.b32.xlu1 %v9099_v62, %s8194_s4  ;;  %12523 = vst [vmem:[#allocation40_spill] sm:$0xff] %v9201_v22 }
 0x192   :  { %v9206_v17 = vadd.f32 %v234_v11, %v64_v57  ;;  %v1592_v11 = vunpack.c.l.b16 %v758_v42  ;;  %v1087_v57 = vld [vmem:[#allocation2 + $0x3a] sm:$0xff]  ;;  %v681_v42 = vpack.c.bf16 %v649_v20, %v649_v20  ;;  %v1703_v30 = vunpack.c.l.b16 %v822_v38 }
 0x193   :  { %v9153_v18 = vpop.permute.xlu2 %1524 }
 0x194   :  { %12521 = vst [vmem:[#allocation38_spill] sm:$0xff] %v9153_v18  ;;  %v315_v13 = vpack.c.bf16 %v9206_v17, %v9201_v22  ;;  %v1611_v59 = vpack.c.b16 %v1593_v29, %v1592_v11 }
 0x195   :  { %12524 = vst [vmem:[#allocation41_spill] sm:$0xff] %v9206_v17 }
 0x196   :  { %7841 = vmatmul.msk.bf16.gmra.mxu1 %vm329_vm5, %v315_v13 }
 0x197   :  { %v466_v15 = vpop.f32.mrf.mxu2 }
 0x198   :  { %2180 = vrot.lane.b32.xlu0 %v1491_v21, %s8199_s23  ;;  %v467_v37 = vadd.f32 %v8869_v50, %v466_v15 }
 0x199   :  { %1958 = vrot.lane.b32.xlu2 %v9125_v19, %s8198_s18  ;;  %1846 = vrot.lane.b32.xlu1 %v1491_v21, %s8197_s28 }
 0x19a   :  { %v9169_v14 = vpop.permute.xlu0 %1954  ;;  %570 = vst.msk [vmem:[#allocation2 + $0x1f9] sm:$0xff] %vm471_vm2, %v467_v37 }
 0x19b   :  { %v9171_v1 = vpop.permute.xlu2 %1970  ;;  %v9176_v32 = vpop.permute.xlu1 %1508 }
 0x19c   :  { %12522 = vst [vmem:[#allocation39_spill] sm:$0xff] %v9171_v1 }
 0x1a0   :  { %2370 = vrot.lane.b32.xlu0 %v9144_v49, %s8194_s4 }
 0x1a1   :  { %2068 = vrot.lane.b32.xlu2 %v9144_v49, %s8200_s24  ;;  %2482 = vrot.lane.b32.xlu1 %v1491_v21, %s8195_s15  ;;  %v2627_v21 = vsel %vm471_vm2, %v8640_v12, %v8852_v48 }
 0x1a2   :  { %v9189_v53 = vpop.permute.xlu0 %2064  ;;  %v2674_v41 = vsel %vm2670_vm6, %v2627_v21, %v8854_v39  ;;  %v680_v21 = vpack.c.bf16 %v648_v27, %v648_v27  ;;  %v1467_v27 = vunpack.c.l.b16 %v681_v42 }
 0x1a3   :  { %v9191_v33 = vpop.permute.xlu2 %2080  ;;  %v9193_v0 = vpop.permute.xlu1 %1620  ;;  %v2707_v15 = vsel %vm2703_vm7, %v2674_v41, %v8949_v26  ;;  %v821_v26 = vpack.c.bf16 %v789_v46, %v789_v46  ;;  %v1086_v41 = vld [vmem:[#allocation2 + $0x32] sm:$0xff] }
 0x1a4   :  { %v2740_v37 = vsel %vm2736_vm8, %v2707_v15, %v8991_v47  ;;  %v1118_v17 = vpack.c.bf16 %v1086_v41, %v1086_v41  ;;  %v1466_v46 = vunpack.c.l.b16 %v680_v21 }
 0x1a5   :  { %v2773_v47 = vsel %vm2769_vm9, %v2740_v37, %v8999_v9  ;;  %v1702_v20 = vunpack.c.l.b16 %v821_v26  ;;  %v904_v9 = vld [vmem:[#allocation2 + $0x9a] sm:$0xff] }
 0x1a6   :  { %v2806_v41 = vsel %vm2802_vm10, %v2773_v47, %v9189_v53  ;;  %v936_v26 = vpack.c.bf16 %v904_v9, %v904_v9 }
 0x1a7   :  { %v411_v12 = vpop.f32.mrf.mxu1  ;;  %v9252_v62 = vpack.c.b16 %v1703_v30, %v1702_v20 }
 0x1a8   :  { %1862 = vrot.lane.b32.xlu0 %v9204_v61, %s8197_s28  ;;  %v412_v51 = vadd.f32 %v8869_v50, %v411_v12  ;;  %v468_v12 = vpop.f32.mrf.mxu2 }
 0x1a9   :  { %2594 = vrot.lane.b32.xlu2 %v9125_v19, %s8196_s20  ;;  %1528 = vrot.lane.b32.xlu1 %v9204_v61, %s8194_s4  ;;  %v469_v13 = vadd.f32 %v8869_v50, %v468_v12  ;;  %v903_v12 = vld [vmem:[#allocation2 + $0x92] sm:$0xff]  ;;  %12527 = vst [vmem:[#allocation44_spill] sm:$0xff] %v9252_v62 }
 0x1aa   :  { %v9223_v48 = vpop.permute.xlu0 %2590  ;;  %548 = vst.msk [vmem:[#allocation2 + $0xa9] sm:$0xff] %vm471_vm2, %v412_v51  ;;  %v1119_v51 = vpack.c.bf16 %v1087_v57, %v1087_v57  ;;  %v935_v21 = vpack.c.bf16 %v903_v12, %v903_v12 }
 0x1ab   :  { %v9225_v39 = vpop.permute.xlu2 %2606  ;;  %v9228_v19 = vpop.permute.xlu1 %1730  ;;  %571 = vst.msk [vmem:[#allocation2 + $0x201] sm:$0xff] %vm471_vm2, %v469_v13  ;;  %v9250_v13 = vpack.c.b16 %v1467_v27, %v1466_v46  ;;  %v967_v46 = vld [vmem:[#allocation2 + $0x98] sm:$0xff] }
 0x1ac   :  { %12525 = vst [vmem:[#allocation42_spill] sm:$0xff] %v9225_v39  ;;  %v1912_v38 = vunpack.c.l.b16 %v935_v21  ;;  %v999_v12 = vpack.c.bf16 %v967_v46, %v967_v46 }
 0x1af   :  { %v413_v22 = vpop.f32.mrf.mxu1 }
 0x1b0   :  { %2498 = vrot.lane.b32.xlu0 %v9204_v61, %s8195_s15  ;;  %v414_v15 = vadd.f32 %v8869_v50, %v413_v22  ;;  %v2239_v22 = vunpack.c.l.b16 %v1119_v51  ;;  %v1913_v51 = vunpack.c.l.b16 %v936_v26 }
 0x1b1   :  { %1640 = vrot.lane.b32.xlu2 %v1611_v59, %s8195_s15  ;;  %1974 = vrot.lane.b32.xlu1 %v1611_v59, %s8198_s18  ;;  %v2238_v59 = vunpack.c.l.b16 %v1118_v17 }
 0x1b2   :  { %v9242_v11 = vpop.permute.xlu0 %1636  ;;  %549 = vst.msk [vmem:[#allocation2 + $0xb1] sm:$0xff] %vm471_vm2, %v414_v15  ;;  %v966_v15 = vld [vmem:[#allocation2 + $0x90] sm:$0xff] }
 0x1b3   :  { %12526 = vst [vmem:[#allocation43_spill] sm:$0xff] %v9242_v11  ;;  %v9244_v29 = vpop.permute.xlu2 %1510  ;;  %v2177_v57 = vpop.permute.xlu1 %2176  ;;  %v2270_v53 = vpack.c.b16 %v2239_v22, %v2238_v59  ;;  %v2023_v59 = vunpack.c.l.b16 %v999_v12 }
 0x1b4   :  { %v2840_v37 = vsel %vm2835_vm11, %v2806_v41, %v2177_v57  ;;  %v1939_v41 = vpack.c.b16 %v1913_v51, %v1912_v38  ;;  %v998_v57 = vpack.c.bf16 %v966_v15, %v966_v15  ;;  %v729_v38 = vld [vmem:[#allocation2 + $0x1a2] sm:$0xff]  ;;  %v2630_v15 = vsel %vm471_vm2, %v8630_v4, %v8856_v44  ;;  %v1088_v44 = vld [vmem:[#allocation2 + $0x4a] sm:$0xff] }
 0x1b5   :  { %3141 = vmatmul.bf16.gmra.mxu2 %v2840_v37  ;;  %v1120_v36 = vpack.c.bf16 %v1088_v44, %v1088_v44 }
 0x1b8   :  { %1514 = vrot.lane.b32.xlu0 %v9250_v13, %s8194_s4 }
 0x1b9   :  { %1750 = vrot.lane.b32.xlu2 %v9252_v62, %s8196_s20  ;;  %2084 = vrot.lane.b32.xlu1 %v9252_v62, %s8200_s24 }
 0x1ba   :  { %v9260_v42 = vpop.permute.xlu0 %1746 }
 0x1bb   :  { %12528 = vst [vmem:[#allocation45_spill] sm:$0xff] %v9260_v42  ;;  %v9262_v17 = vpop.permute.xlu2 %1622  ;;  %v2367_v47 = vpop.permute.xlu1 %2366 }
 0x1bc   :  { %v2886_v27 = vsel %vm471_vm2, %v2270_v53, %v2367_v47  ;;  %v728_v53 = vld [vmem:[#allocation2 + $0x19a] sm:$0xff]  ;;  %v761_v47 = vpack.c.bf16 %v729_v38, %v729_v38  ;;  %v1089_v38 = vld [vmem:[#allocation2 + $0x52] sm:$0xff] }
 0x1bd   :  { %v2933_v20 = vsel %vm2670_vm6, %v2886_v27, %v9138_v43  ;;  %v2022_v43 = vunpack.c.l.b16 %v998_v57  ;;  %v760_v51 = vpack.c.bf16 %v728_v53, %v728_v53  ;;  %v791_v57 = vld [vmem:[#allocation2 + $0x198] sm:$0xff]  ;;  %v2676_v53 = vsel %vm2670_vm6, %v2630_v15, %v8892_v3 }
 0x1be   :  { %v2965_v30 = vsel %vm2703_vm7, %v2933_v20, %v9223_v48  ;;  %v2709_v4 = vsel %vm2703_vm7, %v2676_v53, %v9228_v19  ;;  %v1121_v18 = vpack.c.bf16 %v1089_v38, %v1089_v38 }
 0x1bf   :  { %7898 = vmatmul.msk.bf16.vlgmr.msrb.gmra.mxu3 %vm2736_vm8, %v2965_v30  ;;  %v9280_v48 = vpack.c.b16 %v2023_v59, %v2022_v43  ;;  %v1594_v20 = vunpack.c.l.b16 %v760_v51  ;;  %v1595_v30 = vunpack.c.l.b16 %v761_v47  ;;  %v792_v43 = vld [vmem:[#allocation2 + $0x1a0] sm:$0xff]  ;;  %v2742_v47 = vsel %vm2736_vm8, %v2709_v4, %v9114_v16 }
 0x1c0   :  { %1960 = vrot.lane.b32.xlu0 %v1939_v41, %s8198_s18  ;;  %v665_v59 = vld [vmem:[#allocation2 + $0x1a1] sm:$0xff]  ;;  %v824_v58 = vpack.c.bf16 %v792_v43, %v792_v43  ;;  %v2775_v16 = vsel %vm2769_vm9, %v2742_v47, %v9169_v14  ;;  %v651_v47 = vld [vmem:[#allocation2 + $0xb1] sm:$0xff] }
 0x1c1   :  { %2196 = vrot.lane.b32.xlu2 %v9204_v61, %s8199_s23  ;;  %1626 = vrot.lane.b32.xlu1 %v1939_v41, %s8195_s15  ;;  %v1612_v5 = vpack.c.b16 %v1595_v30, %v1594_v20  ;;  %v697_v51 = vpack.c.bf16 %v665_v59, %v665_v59  ;;  %v2241_v59 = vunpack.c.l.b16 %v1121_v18 }
 0x1c2   :  { %v9274_v9 = vpop.permute.xlu0 %2192  ;;  %v1705_v20 = vunpack.c.l.b16 %v824_v58 }
 0x1c3   :  { %v9276_v37 = vpop.permute.xlu2 %1732  ;;  %v9278_v22 = vpop.permute.xlu1 %1858 }
 0x1c4   :  { %12529 = vst [vmem:[#allocation46_spill] sm:$0xff] %v9278_v22 }
 0x1c8   :  { %2070 = vrot.lane.b32.xlu0 %v9280_v48, %s8200_s24 }
 0x1c9   :  { %2386 = vrot.lane.b32.xlu2 %v9252_v62, %s8194_s4  ;;  %1736 = vrot.lane.b32.xlu1 %v9280_v48, %s8196_s20  ;;  %v823_v62 = vpack.c.bf16 %v791_v57, %v791_v57  ;;  %v1483_v57 = vunpack.c.l.b16 %v697_v51  ;;  %v650_v51 = vld [vmem:[#allocation2 + $0xa9] sm:$0xff] }
 0x1ca   :  { %v9288_v61 = vpop.permute.xlu0 %2382 }
 0x1cb   :  { %12530 = vst [vmem:[#allocation47_spill] sm:$0xff] %v9288_v61  ;;  %v2179_v21 = vpop.permute.xlu2 %2178  ;;  %v9290_v26 = vpop.permute.xlu1 %2494  ;;  %v1704_v15 = vunpack.c.l.b16 %v823_v62 }
 0x1cc   :  { %12531 = vst [vmem:[#allocation48_spill] sm:$0xff] %v9290_v26 }
 0x1cd   :  { %v9321_v4 = vpack.c.b16 %v1705_v20, %v1704_v15  ;;  %v683_v15 = vpack.c.bf16 %v651_v47, %v651_v47 }
 0x1cf   :  { %12533 = vst [vmem:[#allocation50_spill] sm:$0xff] %v9321_v4 }
 0x1d0   :  { %2596 = vrot.lane.b32.xlu0 %v1939_v41, %s8196_s20  ;;  %v664_v41 = vld [vmem:[#allocation2 + $0x199] sm:$0xff] }
 0x1d1   :  { %1848 = vrot.lane.b32.xlu2 %v9250_v13, %s8197_s28  ;;  %2182 = vrot.lane.b32.xlu1 %v9250_v13, %s8199_s23  ;;  %v696_v11 = vpack.c.bf16 %v664_v41, %v664_v41  ;;  %v2240_v41 = vunpack.c.l.b16 %v1120_v36 }
 0x1d2   :  { %v9300_v46 = vpop.permute.xlu0 %1844 }
 0x1d3   :  { %v2369_v27 = vpop.permute.xlu2 %2368  ;;  %v9302_v12 = vpop.permute.xlu1 %1956  ;;  %v1482_v30 = vunpack.c.l.b16 %v696_v11 }
 0x1d5   :  { %v1500_v44 = vpack.c.b16 %v1483_v57, %v1482_v30 }
 0x1d8   :  { %1642 = vrot.lane.b32.xlu0 %v1612_v5, %s8195_s15 }
 0x1d9   :  { %2484 = vrot.lane.b32.xlu2 %v9250_v13, %s8195_s15  ;;  %2372 = vrot.lane.b32.xlu1 %v9280_v48, %s8194_s4 }
 0x1da   :  { %v2481_v3 = vpop.permute.xlu0 %2480  ;;  %v416_v38 = vpop.f32.mrf.mxu1 }
 0x1db   :  { %v9315_v19 = vpop.permute.xlu2 %1860  ;;  %v2067_v43 = vpop.permute.xlu1 %2066  ;;  %v417_v58 = vadd.f32 %v8869_v50, %v416_v38  ;;  %v682_v50 = vpack.c.bf16 %v650_v51, %v650_v51 }
 0x1dc   :  { %12532 = vst [vmem:[#allocation49_spill] sm:$0xff] %v9315_v19  ;;  %v2808_v53 = vsel %vm2802_vm10, %v2775_v16, %v2067_v43  ;;  %v2271_v19 = vpack.c.b16 %v2241_v59, %v2240_v41  ;;  %v1469_v43 = vunpack.c.l.b16 %v683_v15  ;;  %v715_v41 = vld [vmem:[#allocation2 + $0xb2] sm:$0xff] }
 0x1dd   :  { %v2843_v13 = vsel %vm2835_vm11, %v2808_v53, %v2179_v21  ;;  %550 = vst.msk [vmem:[#allocation2 + $0xc1] sm:$0xff] %vm471_vm2, %v417_v58  ;;  %v1468_v16 = vunpack.c.l.b16 %v682_v50  ;;  %v747_v53 = vpack.c.bf16 %v715_v41, %v715_v41  ;;  %v667_v41 = vld [vmem:[#allocation2 + $0x1b9] sm:$0xff] }
 0x1de   :  { %3146 = vmatmul.bf16.gmra.mxu2 %v2843_v13  ;;  %v2889_v36 = vsel %vm471_vm2, %v2271_v19, %v2369_v27  ;;  %v9342_v27 = vld [vmem:[%s12432_s5] ss:$0 sm:$0xff] }
 0x1df   :  { %v2935_v14 = vsel %vm2670_vm6, %v2889_v36, %v2481_v3  ;;  %v1493_v13 = vpack.c.b16 %v1469_v43, %v1468_v16  ;;  %v1581_v36 = vunpack.c.l.b16 %v747_v53 }
 0x1e0   :  { %1752 = vrot.lane.b32.xlu0 %v9321_v4, %s8196_s20 }
 0x1e1   :  { %1530 = vrot.lane.b32.xlu2 %v1500_v44, %s8194_s4  ;;  %1864 = vrot.lane.b32.xlu1 %v1500_v44, %s8197_s28 }
 0x1e2   :  { %v9329_v62 = vpop.permute.xlu0 %1526  ;;  %v418_v20 = vpop.f32.mrf.mxu1 }
 0x1e3   :  { %12534 = vst [vmem:[#allocation51_spill] sm:$0xff] %v9329_v62  ;;  %v9331_v18 = vpop.permute.xlu2 %2496  ;;  %v2593_v11 = vpop.permute.xlu1 %2592  ;;  %v419_v3 = vadd.f32 %v9342_v27, %v418_v20 }
 0x1e4   :  { %12535 = vst [vmem:[#allocation52_spill] sm:$0xff] %v9331_v18  ;;  %v2967_v21 = vsel %vm2703_vm7, %v2935_v14, %v2593_v11  ;;  %v777_v11 = vld [vmem:[#allocation2 + $0xa8] sm:$0xff] }
 0x1e5   :  { %7899 = vmatmul.msk.bf16.gmra.mxu3 %vm2736_vm8, %v2967_v21  ;;  %551 = vst.msk [vmem:[#allocation2 + $0xc9] sm:$0xff] %vm471_vm2, %v419_v3  ;;  %v778_v21 = vld [vmem:[#allocation2 + $0xb0] sm:$0xff]  ;;  %v809_v47 = vpack.c.bf16 %v777_v11, %v777_v11  ;;  %v1090_v18 = vld [vmem:[#allocation2 + $0x62] sm:$0xff] }
 0x1e6   :  { %v810_v50 = vpack.c.bf16 %v778_v21, %v778_v21 }
 0x1e7   :  { %v1690_v3 = vunpack.c.l.b16 %v809_v47 }
 0x1e8   :  { %2198 = vrot.lane.b32.xlu0 %v1500_v44, %s8199_s23  ;;  %v1691_v16 = vunpack.c.l.b16 %v810_v50  ;;  %v2633_v50 = vsel %vm471_vm2, %v8982_v2, %v9176_v32 }
 0x1e9   :  { %1976 = vrot.lane.b32.xlu2 %v1612_v5, %s8198_s18  ;;  %2500 = vrot.lane.b32.xlu1 %v1500_v44, %s8195_s15  ;;  %v714_v5 = vld [vmem:[#allocation2 + $0xaa] sm:$0xff] }
 0x1ea   :  { %v9346_v19 = vpop.permute.xlu0 %1972  ;;  %v746_v59 = vpack.c.bf16 %v714_v5, %v714_v5  ;;  %v666_v5 = vld [vmem:[#allocation2 + $0x1b1] sm:$0xff] }
 0x1eb   :  { %12536 = vst [vmem:[#allocation53_spill] sm:$0xff] %v9346_v19  ;;  %v9348_v30 = vpop.permute.xlu2 %1512  ;;  %v9351_v57 = vpop.permute.xlu1 %1638  ;;  %v698_v53 = vpack.c.bf16 %v666_v5, %v666_v5  ;;  %v922_v5 = vld [vmem:[#allocation2 + $0x1ba] sm:$0xff]  ;;  %v1091_v19 = vld [vmem:[#allocation2 + $0x6a] sm:$0xff] }
 0x1ec   :  { %12537 = vst [vmem:[#allocation54_spill] sm:$0xff] %v9351_v57  ;;  %v1580_v58 = vunpack.c.l.b16 %v746_v59  ;;  %v9371_v59 = vpack.c.b16 %v1691_v16, %v1690_v3  ;;  %v921_v16 = vld [vmem:[#allocation2 + $0x1b2] sm:$0xff] }
 0x1ed   :  { %v1484_v21 = vunpack.c.l.b16 %v698_v53  ;;  %v953_v53 = vpack.c.bf16 %v921_v16, %v921_v16 }
 0x1ee   :  { %v1605_v51 = vpack.c.b16 %v1581_v36, %v1580_v58  ;;  %v699_v58 = vpack.c.bf16 %v667_v41, %v667_v41  ;;  %v2678_v41 = vsel %vm2670_vm6, %v2633_v50, %v9193_v0 }
 0x1ef   :  { %v1930_v50 = vunpack.c.l.b16 %v953_v53 }
 0x1f0   :  { %2388 = vrot.lane.b32.xlu0 %v9321_v4, %s8194_s4  ;;  %v1485_v47 = vunpack.c.l.b16 %v699_v58  ;;  %v954_v58 = vpack.c.bf16 %v922_v5, %v922_v5 }
 0x1f1   :  { %2086 = vrot.lane.b32.xlu2 %v9321_v4, %s8200_s24  ;;  %1516 = vrot.lane.b32.xlu1 %v1493_v13, %s8194_s4  ;;  %v2711_v4 = vsel %vm2703_vm7, %v2678_v41, %v9276_v37  ;;  %v1122_v37 = vpack.c.bf16 %v1090_v18, %v1090_v18  ;;  %v984_v41 = vld [vmem:[#allocation2 + $0x1b0] sm:$0xff] }
 0x1f2   :  { %v9358_v44 = vpop.permute.xlu0 %2082  ;;  %v2744_v57 = vsel %vm2736_vm8, %v2711_v4, %v9300_v46  ;;  %v9391_v62 = vpack.c.b16 %v1485_v47, %v1484_v21  ;;  %v1123_v46 = vpack.c.bf16 %v1091_v19, %v1091_v19  ;;  %v1931_v16 = vunpack.c.l.b16 %v954_v58 }
 0x1f3   :  { %12538 = vst [vmem:[#allocation55_spill] sm:$0xff] %v9358_v44  ;;  %v9360_v38 = vpop.permute.xlu2 %1958  ;;  %v9362_v14 = vpop.permute.xlu1 %1748  ;;  %v2777_v32 = vsel %vm2769_vm9, %v2744_v57, %v9302_v12  ;;  %v2242_v12 = vunpack.c.l.b16 %v1122_v37  ;;  %v1016_v19 = vpack.c.bf16 %v984_v41, %v984_v41 }
 0x1f4   :  { %12539 = vst [vmem:[#allocation56_spill] sm:$0xff] %v9362_v14  ;;  %v2243_v57 = vunpack.c.l.b16 %v1123_v46  ;;  %v9407_v18 = vpack.c.b16 %v1931_v16, %v1930_v50  ;;  %v779_v50 = vld [vmem:[#allocation2 + $0xc0] sm:$0xff]  ;;  %v780_v16 = vld [vmem:[#allocation2 + $0xc8] sm:$0xff] }
 0x1f5   :  { %v2040_v37 = vunpack.c.l.b16 %v1016_v19 }
 0x1f6   :  { %v2272_v58 = vpack.c.b16 %v2243_v57, %v2242_v12  ;;  %v811_v12 = vpack.c.bf16 %v779_v50, %v779_v50  ;;  %v812_v57 = vpack.c.bf16 %v780_v16, %v780_v16 }
 0x1f8   :  { %1850 = vrot.lane.b32.xlu0 %v1493_v13, %s8197_s28 }
 0x1f9   :  { %1628 = vrot.lane.b32.xlu2 %v1605_v51, %s8195_s15  ;;  %1962 = vrot.lane.b32.xlu1 %v1605_v51, %s8198_s18 }
 0x1fa   :  { %v9367_v15 = vpop.permute.xlu0 %1624 }
 0x1fb   :  { %v2069_v20 = vpop.permute.xlu2 %2068  ;;  %v9369_v43 = vpop.permute.xlu1 %2194 }
 0x1fc   :  { %12540 = vst [vmem:[#allocation57_spill] sm:$0xff] %v9369_v43  ;;  %v421_v2 = vpop.f32.mrf.mxu1  ;;  %v2810_v4 = vsel %vm2802_vm10, %v2777_v32, %v2069_v20 }
 0x1fd   :  { %v422_v0 = vadd.f32 %v9342_v27, %v421_v2  ;;  %v985_v2 = vld [vmem:[#allocation2 + $0x1b8] sm:$0xff] }
 0x1ff   :  { %552 = vst.msk [vmem:[#allocation2 + $0xd9] sm:$0xff] %vm471_vm2, %v422_v0 }
 0x200   :  { %2486 = vrot.lane.b32.xlu0 %v1493_v13, %s8195_s15 }
 0x201   :  { %1738 = vrot.lane.b32.xlu2 %v9371_v59, %s8196_s20  ;;  %2072 = vrot.lane.b32.xlu1 %v9371_v59, %s8200_s24 }
 0x202   :  { %v9378_v36 = vpop.permute.xlu0 %1734 }
 0x203   :  { %v2595_v11 = vpop.permute.xlu2 %2594  ;;  %v9383_v3 = vpop.permute.xlu1 %2384 }
 0x204   :  { %12541 = vst [vmem:[#allocation58_spill] sm:$0xff] %v9383_v3  ;;  %v423_v20 = vpop.f32.mrf.mxu1 }
 0x205   :  { %v424_v53 = vadd.f32 %v9342_v27, %v423_v20  ;;  %v1693_v20 = vunpack.c.l.b16 %v812_v57 }
 0x207   :  { %553 = vst.msk [vmem:[#allocation2 + $0xe1] sm:$0xff] %vm471_vm2, %v424_v53  ;;  %v1034_v53 = vld [vmem:[#allocation2 + $0xc1] sm:$0xff] }
 0x208   :  { %1532 = vrot.lane.b32.xlu0 %v9391_v62, %s8194_s4 }
 0x209   :  { %2184 = vrot.lane.b32.xlu2 %v1493_v13, %s8199_s23  ;;  %2598 = vrot.lane.b32.xlu1 %v1605_v51, %s8196_s20  ;;  %v1017_v51 = vpack.c.bf16 %v985_v2, %v985_v2 }
 0x20a   :  { %v2181_v21 = vpop.permute.xlu0 %2180 }
 0x20b   :  { %v9401_v47 = vpop.permute.xlu2 %1640  ;;  %v9404_v5 = vpop.permute.xlu1 %1846  ;;  %v2846_v13 = vsel %vm2835_vm11, %v2810_v4, %v2181_v21  ;;  %v2041_v46 = vunpack.c.l.b16 %v1017_v51 }
 0x20c   :  { %12542 = vst [vmem:[#allocation59_spill] sm:$0xff] %v9401_v47  ;;  %3151 = vmatmul.bf16.gmra.mxu2 %v2846_v13 }
 0x20d   :  { %v9423_v2 = vpack.c.b16 %v2041_v46, %v2040_v37  ;;  %v907_v37 = vld [vmem:[#allocation2 + $0xc2] sm:$0xff]  ;;  %v908_v46 = vld [vmem:[#allocation2 + $0xca] sm:$0xff] }
 0x20e   :  { %v939_v16 = vpack.c.bf16 %v907_v37, %v907_v37  ;;  %v1037_v44 = vld [vmem:[#allocation2 + $0xe1] sm:$0xff] }
 0x20f   :  { %12544 = vst [vmem:[#allocation61_spill] sm:$0xff] %v9423_v2 }
 0x210   :  { %1978 = vrot.lane.b32.xlu0 %v9407_v18, %s8198_s18 }
 0x211   :  { %2374 = vrot.lane.b32.xlu2 %v9371_v59, %s8194_s4  ;;  %1644 = vrot.lane.b32.xlu1 %v9407_v18, %s8195_s15 }
 0x212   :  { %v2371_v0 = vpop.permute.xlu0 %2370 }
 0x213   :  { %v9416_v32 = vpop.permute.xlu2 %1750  ;;  %v2892_v4 = vsel %vm471_vm2, %v2272_v58, %v2371_v0  ;;  %v2483_v21 = vpop.permute.xlu1 %2482  ;;  %v1035_v0 = vld [vmem:[#allocation2 + $0xc9] sm:$0xff] }
 0x214   :  { %12543 = vst [vmem:[#allocation60_spill] sm:$0xff] %v9416_v32  ;;  %v2937_v13 = vsel %vm2670_vm6, %v2892_v4, %v2483_v21  ;;  %v1066_v4 = vpack.c.bf16 %v1034_v53, %v1034_v53  ;;  %v1067_v50 = vpack.c.bf16 %v1035_v0, %v1035_v0  ;;  %v924_v32 = vld [vmem:[#allocation2 + $0x1d2] sm:$0xff] }
 0x215   :  { %v2969_v41 = vsel %vm2703_vm7, %v2937_v13, %v2595_v11  ;;  %v1692_v11 = vunpack.c.l.b16 %v811_v12  ;;  %v940_v13 = vpack.c.bf16 %v908_v46, %v908_v46 }
 0x216   :  { %7900 = vmatmul.msk.bf16.gmra.mxu3 %vm2736_vm8, %v2969_v41  ;;  %v2138_v57 = vunpack.c.l.b16 %v1066_v4  ;;  %v2139_v47 = vunpack.c.l.b16 %v1067_v50  ;;  %v859_v4 = vld [vmem:[#allocation2 + $0x1c9] sm:$0xff]  ;;  %v860_v50 = vld [vmem:[#allocation2 + $0x1d1] sm:$0xff] }
 0x217   :  { %v1717_v21 = vpack.c.b16 %v1693_v20, %v1692_v11  ;;  %v1917_v53 = vunpack.c.l.b16 %v940_v13  ;;  %v891_v13 = vpack.c.bf16 %v859_v4, %v859_v4 }
 0x218   :  { %2088 = vrot.lane.b32.xlu0 %v9423_v2, %s8200_s24  ;;  %v2164_v20 = vpack.c.b16 %v2139_v47, %v2138_v57 }
 0x219   :  { %1866 = vrot.lane.b32.xlu2 %v9391_v62, %s8197_s28  ;;  %1754 = vrot.lane.b32.xlu1 %v9423_v2, %s8196_s20  ;;  %v1820_v57 = vunpack.c.l.b16 %v891_v13 }
 0x21a   :  { %v9431_v19 = vpop.permute.xlu0 %1862 }
 0x21b   :  { %12545 = vst [vmem:[#allocation62_spill] sm:$0xff] %v9431_v19  ;;  %v9433_v51 = vpop.permute.xlu2 %2196  ;;  %v9435_v58 = vpop.permute.xlu1 %1528  ;;  %v795_v19 = vld [vmem:[#allocation2 + $0x1c8] sm:$0xff] }
 0x21c   :  { %12546 = vst [vmem:[#allocation63_spill] sm:$0xff] %v9433_v51 }
 0x21d   :  { %12547 = vst [vmem:[#allocation64_spill] sm:$0xff] %v9435_v58  ;;  %v1916_v58 = vunpack.c.l.b16 %v939_v16  ;;  %v426_v16 = vpop.f32.mrf.mxu1 }
 0x21f   :  { %v1941_v0 = vpack.c.b16 %v1917_v53, %v1916_v58 }
 0x220   :  { %1740 = vrot.lane.b32.xlu0 %v1717_v21, %s8196_s20 }
 0x221   :  { %2502 = vrot.lane.b32.xlu2 %v9391_v62, %s8195_s15  ;;  %2200 = vrot.lane.b32.xlu1 %v9391_v62, %s8199_s23 }
 0x222   :  { %v9442_v41 = vpop.permute.xlu0 %2498 }
 0x223   :  { %12548 = vst [vmem:[#allocation65_spill] sm:$0xff] %v9442_v41  ;;  %v9444_v12 = vpop.permute.xlu2 %2386  ;;  %v9446_v11 = vpop.permute.xlu1 %1974  ;;  %v892_v41 = vpack.c.bf16 %v860_v50, %v860_v50  ;;  %v923_v50 = vld [vmem:[#allocation2 + $0x1ca] sm:$0xff] }
 0x224   :  { %12549 = vst [vmem:[#allocation66_spill] sm:$0xff] %v9444_v12  ;;  %v796_v12 = vld [vmem:[#allocation2 + $0x1d0] sm:$0xff]  ;;  %v955_v13 = vpack.c.bf16 %v923_v50, %v923_v50 }
 0x225   :  { %12550 = vst [vmem:[#allocation67_spill] sm:$0xff] %v9446_v11  ;;  %v1821_v53 = vunpack.c.l.b16 %v892_v41  ;;  %v428_v4 = vpop.f32.mrf.mxu1  ;;  %v828_v3 = vpack.c.bf16 %v796_v12, %v796_v12  ;;  %v956_v41 = vpack.c.bf16 %v924_v32, %v924_v32  ;;  %v972_v12 = vld [vmem:[#allocation2 + $0xd8] sm:$0xff]  ;;  %v8034_v32 = vld [vmem:[%s12435_s8] sm:$0xff]  ;;  %s8201_s8 = smov 8  }
 0x226   :  { %3581 = vmatpush.bf16.msrb.mxu0 %v8034_v32  ;;  %v1004_v50 = vpack.c.bf16 %v972_v12, %v972_v12 }
 0x227   :  { %v1837_v51 = vpack.c.b16 %v1821_v53, %v1820_v57  ;;  %v973_v57 = vld [vmem:[#allocation2 + $0xe0] sm:$0xff] }
 0x228   :  { %2186 = vrot.lane.b32.xlu0 %v2164_v20, %s8199_s23 }
 0x229   :  { %1964 = vrot.lane.b32.xlu2 %v1941_v0, %s8198_s18  ;;  %2390 = vrot.lane.b32.xlu1 %v9423_v2, %s8194_s4  ;;  %v427_v2 = vadd.f32 %v9342_v27, %v426_v16 }
 0x22a   :  { %v9452_v62 = vpop.permute.xlu0 %1514 }
 0x22b   :  { %v9454_v37 = vpop.permute.xlu2 %1848  ;;  %v9456_v46 = vpop.permute.xlu1 %2084  ;;  %554 = vst.msk [vmem:[#allocation2 + $0xf1] sm:$0xff] %vm471_vm2, %v427_v2  ;;  %v1709_v2 = vunpack.c.l.b16 %v828_v3  ;;  %v9489_v3 = vld [vmem:[%s12434_s7] ss:$0 sm:$0xff] }
 0x22c   :  { %12551 = vst [vmem:[#allocation68_spill] sm:$0xff] %v9456_v46  ;;  %v827_v46 = vpack.c.bf16 %v795_v19, %v795_v19  ;;  %v1933_v19 = vunpack.c.l.b16 %v956_v41 }
 0x22e   :  { %v1708_v39 = vunpack.c.l.b16 %v827_v46 }
 0x230   :  { %2376 = vrot.lane.b32.xlu0 %v1717_v21, %s8194_s4 }
 0x231   :  { %2074 = vrot.lane.b32.xlu2 %v1717_v21, %s8200_s24  ;;  %1852 = vrot.lane.b32.xlu1 %v2164_v20, %s8197_s28  ;;  %v429_v21 = vadd.f32 %v9342_v27, %v428_v4  ;;  %v1932_v27 = vunpack.c.l.b16 %v955_v13  ;;  %v9493_v4 = vpack.c.b16 %v1709_v2, %v1708_v39  ;;  %v1092_v13 = vld [vmem:[#allocation2 + $0x7a] sm:$0xff] }
 0x232   :  { %v9461_v47 = vpop.permute.xlu0 %1960  ;;  %v1124_v39 = vpack.c.bf16 %v1092_v13, %v1092_v13  ;;  %v1036_v13 = vld [vmem:[#allocation2 + $0xd9] sm:$0xff] }
 0x233   :  { %v9463_v58 = vpop.permute.xlu2 %2484  ;;  %v9466_v11 = vpop.permute.xlu1 %1626  ;;  %555 = vst.msk [vmem:[#allocation2 + $0xf9] sm:$0xff] %vm471_vm2, %v429_v21  ;;  %v1005_v21 = vpack.c.bf16 %v973_v57, %v973_v57 }
 0x238   :  { %1868 = vrot.lane.b32.xlu0 %v1837_v51, %s8197_s28 }
 0x239   :  { %2600 = vrot.lane.b32.xlu2 %v1941_v0, %s8196_s20  ;;  %2488 = vrot.lane.b32.xlu1 %v2164_v20, %s8195_s15  ;;  %v2636_v0 = vsel %vm471_vm2, %v9073_v25, %v9244_v29  ;;  %v3137_v20 = vpop.f32.mrf.mxu2  ;;  %v9497_v29 = vpack.c.b16 %v1933_v19, %v1932_v27  ;;  %v2029_v27 = vunpack.c.l.b16 %v1005_v21 }
 0x23a   :  { %v2071_v16 = vpop.permute.xlu0 %2070  ;;  %v2680_v53 = vsel %vm2670_vm6, %v2636_v0, %v9262_v17  ;;  %v1093_v17 = vld [vmem:[#allocation2 + $0x82] sm:$0xff]  ;;  %v3138_v41 = vadd.f32 %v9489_v3, %v3137_v20  ;;  %v1290_v20 = vld [vmem:[#allocation2 + $0xda] sm:$0xff] }
 0x23b   :  { %v9474_v14 = vpop.permute.xlu2 %1530  ;;  %v9476_v43 = vpop.permute.xlu1 %1736  ;;  %v2713_v46 = vsel %vm2703_vm7, %v2680_v53, %v9378_v36  ;;  %v1125_v19 = vpack.c.bf16 %v1093_v17, %v1093_v17  ;;  %v1322_v26 = vpack.c.bf16 %v1290_v20, %v1290_v20 }
 0x23c   :  { %12552 = vst [vmem:[#allocation69_spill] sm:$0xff] %v9474_v14  ;;  %v2746_v25 = vsel %vm2736_vm8, %v2713_v46, %v9404_v5  ;;  %v2028_v5 = vunpack.c.l.b16 %v1004_v50  ;;  %v1291_v46 = vld [vmem:[#allocation2 + $0xe2] sm:$0xff] }
 0x23d   :  { %v2779_v36 = vsel %vm2769_vm9, %v2746_v25, %v9360_v38  ;;  %v2244_v25 = vunpack.c.l.b16 %v1124_v39  ;;  %v2245_v17 = vunpack.c.l.b16 %v1125_v19 }
 0x23e   :  { %v2812_v57 = vsel %vm2802_vm10, %v2779_v36, %v2071_v16  ;;  %v2053_v21 = vpack.c.b16 %v2029_v27, %v2028_v5  ;;  %v1323_v16 = vpack.c.bf16 %v1291_v46, %v1291_v46  ;;  %v1069_v36 = vpack.c.bf16 %v1037_v44, %v1037_v44 }
 0x23f   :  { %v2273_v39 = vpack.c.b16 %v2245_v17, %v2244_v25  ;;  %v2554_v5 = vunpack.c.l.b16 %v1322_v26 }
 0x240   :  { %2504 = vrot.lane.b32.xlu0 %v1837_v51, %s8195_s15  ;;  %v2555_v27 = vunpack.c.l.b16 %v1323_v16 }
 0x241   :  { %1756 = vrot.lane.b32.xlu2 %v9493_v4, %s8196_s20  ;;  %1980 = vrot.lane.b32.xlu1 %v9497_v29, %s8198_s18  ;;  %v3139_v50 = vpop.f32.mrf.mxu2 }
 0x242   :  { %v3226_v2 = vpop.f32.mrf.mxu3  ;;  %v2597_v12 = vpop.permute.xlu0 %2596  ;;  %v9527_v25 = vpack.c.b16 %v2555_v27, %v2554_v5 }
 0x243   :  { %v9508_v32 = vadd.f32 %v3226_v2, %v3138_v41  ;;  %v9510_v0 = vpop.permute.xlu2 %1976  ;;  %v2183_v53 = vpop.permute.xlu1 %2182  ;;  %v1068_v41 = vpack.c.bf16 %v1036_v13, %v1036_v13  ;;  %v3140_v2 = vadd.f32 %v9489_v3, %v3139_v50  ;;  %v2141_v13 = vunpack.c.l.b16 %v1069_v36  ;;  %v1178_v36 = vld [vmem:[#allocation2 + $0x1e0] sm:$0xff] }
 0x244   :  { %12553 = vst [vmem:[#allocation70_spill] sm:$0xff] %v9510_v0  ;;  %v2849_v14 = vsel %vm2835_vm11, %v2812_v57, %v2183_v53  ;;  %v1052_v0 = vld [vmem:[#allocation2 + $0x1e1] sm:$0xff] }
 0x245   :  { %v3338_v38 = vmin.f32 %v9508_v32, 0.0  ;;  %3156 = vmatmul.bf16.gmra.mxu2 %v2849_v14  ;;  %v2140_v46 = vunpack.c.l.b16 %v1068_v41  ;;  %v1084_v26 = vpack.c.bf16 %v1052_v0, %v1052_v0  ;;  %v1179_v0 = vld [vmem:[#allocation2 + $0x1e8] sm:$0xff]  ;;  %vm3306_vm12 = vcmp.gt.f32.partialorder %v9508_v32, 0.0 }
 0x247   :  { %v3370_v57 = vmul.f32 1.442695, %v3338_v38  ;;  %v2165_v41 = vpack.c.b16 %v2141_v13, %v2140_v46 }
 0x248   :  { %2076 = vrot.lane.b32.xlu0 %v2053_v21, %s8200_s24 }
 0x249   :  { %2202 = vrot.lane.b32.xlu2 %v1837_v51, %s8199_s23  ;;  %2090 = vrot.lane.b32.xlu1 %v9493_v4, %s8200_s24  ;;  %v1053_v51 = vld [vmem:[#allocation2 + $0x1e9] sm:$0xff]  ;;  %8065 = vpow2.f32 %v3370_v57 }
 0x24a   :  { %v3228_v53 = vpop.f32.mrf.mxu3  ;;  %v9519_v14 = vpop.permute.xlu0 %1642  ;;  %v1085_v17 = vpack.c.bf16 %v1053_v51, %v1053_v51 }
 0x24b   :  { %12554 = vst [vmem:[#allocation71_spill] sm:$0xff] %v9519_v14  ;;  %v3229_v19 = vadd.f32 %v3228_v53, %v3140_v2  ;;  %v9521_v20 = vpop.permute.xlu2 %2086  ;;  %v2373_v44 = vpop.permute.xlu1 %2372 }
 0x24c   :  { %12555 = vst [vmem:[#allocation72_spill] sm:$0xff] %v9521_v20  ;;  %v2895_v50 = vsel %vm471_vm2, %v2273_v39, %v2373_v44  ;;  %v1211_v39 = vpack.c.bf16 %v1179_v0, %v1179_v0  ;;  %v1108_v0 = vld [vmem:[#allocation2 + $0x182] sm:$0xff] }
 0x24d   :  { %v3339_v38 = vmin.f32 %v3229_v19, 0.0  ;;  %v2939_v1 = vsel %vm2670_vm6, %v2895_v50, %v9463_v58  ;;  %vm3307_vm13 = vcmp.gt.f32.partialorder %v3229_v19, 0.0 }
 0x24e   :  { %v2971_v14 = vsel %vm2703_vm7, %v2939_v1, %v2597_v12  ;;  %v2156_v1 = vunpack.c.l.b16 %v1084_v26  ;;  %v2157_v12 = vunpack.c.l.b16 %v1085_v17  ;;  %v2347_v13 = vunpack.c.l.b16 %v1211_v39  ;;  %v1228_v26 = vld [vmem:[#allocation2 + $0xf1] sm:$0xff] }
 0x24f   :  { %v3372_v16 = vmul.f32 1.442695, %v3339_v38  ;;  %7901 = vmatmul.msk.bf16.gmra.mxu3 %vm2736_vm8, %v2971_v14  ;;  %v8066_v2 = vpop.eup %8065  ;;  %v1210_v14 = vpack.c.bf16 %v1178_v36, %v1178_v36  ;;  %v1165_v36 = vld [vmem:[#allocation2 + $0xf8] sm:$0xff] }
 0x250   :  { %2602 = vrot.lane.b32.xlu0 %v9527_v25, %s8196_s20  ;;  %v7914_v5 = vadd.f32 -1.0, %v8066_v2  ;;  %v2173_v27 = vpack.c.b16 %v2157_v12, %v2156_v1  ;;  %v1229_v12 = vld [vmem:[#allocation2 + $0xf9] sm:$0xff]  ;;  %v1109_v2 = vld [vmem:[#allocation2 + $0x18a] sm:$0xff] }
 0x251   :  { %2392 = vrot.lane.b32.xlu2 %v9493_v4, %s8194_s4  ;;  %8067 = vpow2.f32 %v3372_v16  ;;  %2188 = vrot.lane.b32.xlu1 %v2165_v41, %s8199_s23  ;;  %v2346_v46 = vunpack.c.l.b16 %v1210_v14  ;;  %v1260_v14 = vpack.c.bf16 %v1228_v26, %v1228_v26  ;;  %v1261_v39 = vpack.c.bf16 %v1229_v12, %v1229_v12 }
 0x252   :  { %v9535_v58 = vpop.permute.xlu0 %1752  ;;  %v3466_v51 = vsel %vm3306_vm12, %v9508_v32, %v7914_v5  ;;  %v1140_v5 = vpack.c.bf16 %v1108_v0, %v1108_v0  ;;  %v1300_v0 = vld [vmem:[#allocation2 + $0x19a] sm:$0xff] }
 0x253   :  { %12556 = vst [vmem:[#allocation73_spill] sm:$0xff] %v9535_v58  ;;  %v9537_v57 = vpop.permute.xlu2 %1628  ;;  %v9539_v53 = vpop.permute.xlu1 %1864  ;;  %v1293_v58 = vld [vmem:[#allocation2 + $0xfa] sm:$0xff]  ;;  %v1332_v22 = vpack.c.bf16 %v1300_v0, %v1300_v0 }
 0x254   :  { %12557 = vst [vmem:[#allocation74_spill] sm:$0xff] %v9539_v53  ;;  %v2444_v53 = vunpack.c.l.b16 %v1260_v14  ;;  %v2260_v26 = vunpack.c.l.b16 %v1140_v5 }
 0x257   :  { %v8068_v44 = vpop.eup %8067 }
 0x258   :  { %v7915_v4 = vadd.f32 -1.0, %v8068_v44  ;;  %2204 = vrot.lane.b32.xlu0 %v2173_v27, %s8199_s23  ;;  %v1141_v44 = vpack.c.bf16 %v1109_v2, %v1109_v2  ;;  %v1301_v2 = vld [vmem:[#allocation2 + $0x1a2] sm:$0xff] }
 0x259   :  { %2490 = vrot.lane.b32.xlu2 %v2165_v41, %s8195_s15  ;;  %2378 = vrot.lane.b32.xlu1 %v2053_v21, %s8194_s4  ;;  %v1164_v41 = vld [vmem:[#allocation2 + $0xf0] sm:$0xff]  ;;  %v2364_v21 = vpack.c.b16 %v2347_v13, %v2346_v46 }
 0x25a   :  { %v3467_v50 = vsel %vm3307_vm13, %v3229_v19, %v7915_v4  ;;  %v9546_v38 = vpop.permute.xlu0 %2198  ;;  %v1196_v32 = vpack.c.bf16 %v1164_v41, %v1164_v41  ;;  %v1197_v19 = vpack.c.bf16 %v1165_v36, %v1165_v36  ;;  %v1106_v4 = vld [vmem:[#allocation2 + $0x16a] sm:$0xff]  ;;  %v2261_v12 = vunpack.c.l.b16 %v1141_v44 }
 0x25b   :  { %12558 = vst [vmem:[#allocation75_spill] sm:$0xff] %v9546_v38  ;;  %v3498_v17 = vpack.c.bf16 %v3467_v50, %v3466_v51  ;;  %v9548_v16 = vpop.permute.xlu2 %1738  ;;  %v9550_v1 = vpop.permute.xlu1 %2500  ;;  %v1107_v51 = vld [vmem:[#allocation2 + $0x172] sm:$0xff] }
 0x25c   :  { %12559 = vst [vmem:[#allocation76_spill] sm:$0xff] %v9550_v1  ;;  %v3142_v50 = vpop.f32.mrf.mxu2  ;;  %v2332_v46 = vunpack.c.l.b16 %v1196_v32  ;;  %v2333_v13 = vunpack.c.l.b16 %v1197_v19  ;;  %v1139_v38 = vpack.c.bf16 %v1107_v51, %v1107_v51  ;;  %v1325_v19 = vpack.c.bf16 %v1293_v58, %v1293_v58 }
 0x25d   :  { %7950 = vmatmul.msk.bf16.vlgmr.msrb.gmra.mxu0 %vm471_vm2, %v3498_v17  ;;  %v2445_v17 = vunpack.c.l.b16 %v1261_v39  ;;  %v3143_v14 = vadd.f32 %v9489_v3, %v3142_v50  ;;  %v9563_v39 = vpack.c.b16 %v2261_v12, %v2260_v26  ;;  %v2639_v58 = vsel %vm471_vm2, %v9144_v49, %v9348_v30  ;;  %v1307_v26 = vld [vmem:[#allocation2 + $0x1ea] sm:$0xff] }
 0x25e   :  { %v2357_v61 = vpack.c.b16 %v2333_v13, %v2332_v46  ;;  %v2259_v42 = vunpack.c.l.b16 %v1139_v38  ;;  %v2557_v46 = vunpack.c.l.b16 %v1325_v19  ;;  %v1306_v13 = vld [vmem:[#allocation2 + $0x1e2] sm:$0xff]  ;;  %v2682_v12 = vsel %vm2670_vm6, %v2639_v58, %v9367_v15 }
 0x25f   :  { %v2469_v20 = vpack.c.b16 %v2445_v17, %v2444_v53  ;;  %12561 = vst [vmem:[#allocation78_spill] sm:$0xff] %v9563_v39  ;;  %v2715_v49 = vsel %vm2703_vm7, %v2682_v12, %v9476_v43  ;;  %v1180_v43 = vld [vmem:[#allocation2 + $0x1f8] sm:$0xff] }
 0x260   :  { %2394 = vrot.lane.b32.xlu0 %v2364_v21, %s8194_s4  ;;  %v2748_v15 = vsel %vm2736_vm8, %v2715_v49, %v9454_v37  ;;  %v1212_v49 = vpack.c.bf16 %v1180_v43, %v1180_v43 }
 0x261   :  { %2092 = vrot.lane.b32.xlu2 %v2364_v21, %s8200_s24  ;;  %2506 = vrot.lane.b32.xlu1 %v2173_v27, %s8195_s15  ;;  %v1292_v21 = vld [vmem:[#allocation2 + $0xf2] sm:$0xff]  ;;  %v1138_v27 = vpack.c.bf16 %v1106_v4, %v1106_v4  ;;  %v2564_v4 = vunpack.c.l.b16 %v1332_v22 }
 0x262   :  { %v9556_v1 = vpop.permute.xlu0 %2388  ;;  %v1324_v32 = vpack.c.bf16 %v1292_v21, %v1292_v21  ;;  %v1338_v21 = vpack.c.bf16 %v1306_v13, %v1306_v13  ;;  %v2348_v43 = vunpack.c.l.b16 %v1212_v49 }
 0x263   :  { %12560 = vst [vmem:[#allocation77_spill] sm:$0xff] %v9556_v1  ;;  %v9558_v41 = vpop.permute.xlu2 %2184  ;;  %v9560_v36 = vpop.permute.xlu1 %1516  ;;  %v1333_v1 = vpack.c.bf16 %v1301_v2, %v1301_v2  ;;  %v2258_v44 = vunpack.c.l.b16 %v1138_v27  ;;  %v1339_v27 = vpack.c.bf16 %v1307_v26, %v1307_v26  ;;  %v2781_v26 = vsel %vm2769_vm9, %v2748_v15, %v9461_v47 }
 0x264   :  { %v2556_v38 = vunpack.c.l.b16 %v1324_v32  ;;  %v3144_v22 = vpop.f32.mrf.mxu2 }
 0x265   :  { %v2565_v51 = vunpack.c.l.b16 %v1333_v1  ;;  %v1095_v1 = vld [vmem:[#allocation2 + $0x9a] sm:$0xff]  ;;  %v9583_v0 = vpack.c.b16 %v2259_v42, %v2258_v44 }
 0x266   :  { %v1127_v19 = vpack.c.bf16 %v1095_v1, %v1095_v1  ;;  %v1308_v44 = vld [vmem:[#allocation2 + $0x1fa] sm:$0xff] }
 0x267   :  { %v9587_v2 = vpack.c.b16 %v2565_v51, %v2564_v4  ;;  %v1309_v4 = vld [vmem:[#allocation2 + $0x202] sm:$0xff] }
 0x268   :  { %v3231_v5 = vpop.f32.mrf.mxu3  ;;  %2492 = vrot.lane.b32.xlu0 %v2469_v20, %s8195_s15  ;;  %v1094_v20 = vld [vmem:[#allocation2 + $0x92] sm:$0xff]  ;;  %v2247_v37 = vunpack.c.l.b16 %v1127_v19 }
 0x269   :  { %2380 = vrot.lane.b32.xlu2 %v2357_v61, %s8194_s4  ;;  %v9567_v55 = vadd.f32 %v3231_v5, %v3143_v14  ;;  %2610 = vrot.lane.b32.xlu1 %v9563_v39, %s8196_s20  ;;  %v1126_v30 = vpack.c.bf16 %v1094_v20, %v1094_v20  ;;  %12562 = vst [vmem:[#allocation79_spill] sm:$0xff] %v9587_v2  ;;  %v2570_v20 = vunpack.c.l.b16 %v1338_v21  ;;  %v1244_v19 = vld [vmem:[#allocation2 + $0x1f9] sm:$0xff] }
 0x26a   :  { %v9571_v53 = vpop.permute.xlu0 %1850  ;;  %v3145_v14 = vadd.f32 %v9489_v3, %v3144_v22  ;;  %v2581_v5 = vpack.c.b16 %v2557_v46, %v2556_v38  ;;  %v2571_v38 = vunpack.c.l.b16 %v1339_v27  ;;  %v1181_v46 = vld [vmem:[#allocation2 + $0x200] sm:$0xff]  ;;  %v1276_v47 = vpack.c.bf16 %v1244_v19, %v1244_v19 }
 0x26b   :  { %v3340_v50 = vmin.f32 %v9567_v55, 0.0  ;;  %v9577_v17 = vpop.permute.xlu2 %2374  ;;  %v9579_v61 = vpop.permute.xlu1 %1962  ;;  %v2246_v51 = vunpack.c.l.b16 %v1126_v30  ;;  %v1213_v27 = vpack.c.bf16 %v1181_v46, %v1181_v46  ;;  %vm3308_vm15 = vcmp.gt.f32.partialorder %v9567_v55, 0.0 }
 0x26d   :  { %v3374_v32 = vmul.f32 1.442695, %v3340_v50 }
 0x26f   :  { %8069 = vpow2.f32 %v3374_v32  ;;  %v9607_v32 = vpack.c.b16 %v2571_v38, %v2570_v20  ;;  %v2349_v20 = vunpack.c.l.b16 %v1213_v27  ;;  %v2460_v38 = vunpack.c.l.b16 %v1276_v47  ;;  %v3863_v27 = vld [vmem:[#allocation3 + $0x31] sm:$0xff] }
 0x270   :  { %v3233_v58 = vpop.f32.mrf.mxu3  ;;  %2608 = vrot.lane.b32.xlu0 %v9583_v0, %s8196_s20 }
 0x271   :  { %2612 = vrot.lane.b32.xlu2 %v9587_v2, %s8196_s20  ;;  %v9596_v42 = vadd.f32 %v3233_v58, %v3145_v14  ;;  %2604 = vrot.lane.b32.xlu1 %v2581_v5, %s8196_s20  ;;  %v1340_v14 = vpack.c.bf16 %v1308_v44, %v1308_v44  ;;  %v1341_v5 = vpack.c.bf16 %v1309_v4, %v1309_v4  ;;  %v1245_v58 = vld [vmem:[#allocation2 + $0x201] sm:$0xff] }
 0x272   :  { %v2487_v50 = vpop.permute.xlu0 %2486  ;;  %12564 = vst [vmem:[#allocation81_spill] sm:$0xff] %v9607_v32  ;;  %v1277_v15 = vpack.c.bf16 %v1245_v58, %v1245_v58  ;;  %v2274_v2 = vpack.c.b16 %v2247_v37, %v2246_v51  ;;  %v3861_v58 = vld [vmem:[#allocation3 + $0x19] sm:$0xff] }
 0x273   :  { %v3341_v13 = vmin.f32 %v9596_v42, 0.0  ;;  %v2073_v12 = vpop.permute.xlu1 %2072  ;;  %v9602_v22 = vpop.permute.xlu2 %1866  ;;  %v2572_v44 = vunpack.c.l.b16 %v1340_v14  ;;  %v2573_v4 = vunpack.c.l.b16 %v1341_v5  ;;  %vm3309_vm0 = vcmp.gt.f32.partialorder %v9596_v42, 0.0 }
 0x274   :  { %12563 = vst [vmem:[#allocation80_spill] sm:$0xff] %v9602_v22  ;;  %v2814_v1 = vsel %vm2802_vm10, %v2781_v26, %v2073_v12  ;;  %v2461_v46 = vunpack.c.l.b16 %v1277_v15  ;;  %v2898_v51 = vsel %vm471_vm2, %v2274_v2, %v9577_v17  ;;  %v2365_v2 = vpack.c.b16 %v2349_v20, %v2348_v43  ;;  %v3859_v43 = vld [vmem:[#allocation3 + $0x1] sm:$0xff] }
 0x275   :  { %v3376_v30 = vmul.f32 1.442695, %v3341_v13  ;;  %v2852_v21 = vsel %vm2835_vm11, %v2814_v1, %v9558_v41  ;;  %v8070_v41 = vpop.eup %8069  ;;  %v2941_v13 = vsel %vm2670_vm6, %v2898_v51, %v2487_v50  ;;  %v2589_v1 = vpack.c.b16 %v2573_v4, %v2572_v44 }
 0x276   :  { %3161 = vmatmul.bf16.gmra.mxu2 %v2852_v21  ;;  %v7916_v12 = vadd.f32 -1.0, %v8070_v41  ;;  %v2477_v49 = vpack.c.b16 %v2461_v46, %v2460_v38  ;;  %v3895_v15 = vpack.c.bf16 %v3863_v27, %v3863_v27  ;;  %v3891_v20 = vpack.c.bf16 %v3859_v43, %v3859_v43 }
 0x277   :  { %8071 = vpow2.f32 %v3376_v30 }
 0x278   :  { %2614 = vrot.lane.b32.xlu0 %v9407_v18, %s8196_s20  ;;  %v12566_v18 = vmov 0.0   ;;  %v3468_v5 = vsel %vm3308_vm15, %v9567_v55, %v7916_v12  ;;  %v4681_v46 = vunpack.c.l.b16 %v3895_v15  ;;  %v4677_v12 = vunpack.c.l.b16 %v3891_v20 }
 0x279   :  { %2618 = vrot.lane.b32.xlu2 %v9607_v32, %s8196_s20  ;;  %2616 = vrot.lane.b32.xlu1 %v9497_v29, %s8196_s20  ;;  %3704 = vst.msk [vmem:[#allocation3 + $0x40] sm:$0x3] %vm3697_vm14, %v12566_v18 }
 0x27a   :  { %v9617_v37 = vpop.permute.xlu0 %1532  ;;  %3698 = vst.msk [vmem:[#allocation3 + $0x10] sm:$0x3] %vm3697_vm14, %v12566_v18 }
 0x27b   :  { %12565 = vst [vmem:[#allocation82_spill] sm:$0xff] %v9617_v37  ;;  %v2599_v26 = vpop.permute.xlu1 %2598  ;;  %v9630_v14 = vpop.permute.xlu2 %2502 }
 0x27c   :  { %v2973_v29 = vsel %vm2703_vm7, %v2941_v13, %v2599_v26  ;;  %3701 = vst.msk [vmem:[#allocation3 + $0x28] sm:$0x3] %vm3697_vm14, %v12566_v18 }
 0x27d   :  { %v8072_v17 = vpop.eup %8071  ;;  %7902 = vmatmul.msk.bf16.gmra.mxu3 %vm2736_vm8, %v2973_v29  ;;  %3707 = vst.msk [vmem:[#allocation3 + $0x58] sm:$0x3] %vm3697_vm14, %v12566_v18 }
 0x27e   :  { %v7917_v50 = vadd.f32 -1.0, %v8072_v17  ;;  %12567 = vst [vmem:[#allocation83_spill] sm:$0xff] %v9630_v14 }
 0x27f   :  { %3710 = vst.msk [vmem:[#allocation3 + $0x70] sm:$0x3] %vm3697_vm14, %v12566_v18 }
 0x280   :  { %3713 = vst.msk [vmem:[#allocation3 + $0x88] sm:$0x3] %vm3697_vm14, %v12566_v18  ;;  %2620 = vrot.lane.b32.xlu0 %v2589_v1, %s8196_s20  ;;  %v3469_v30 = vsel %vm3309_vm0, %v9596_v42, %v7917_v50  ;;  %v3864_v19 = vld [vmem:[#allocation3 + $0x39] sm:$0xff]  ;;  %v3893_v42 = vpack.c.bf16 %v3861_v58, %v3861_v58 }
 0x281   :  { %2508 = vrot.lane.b32.xlu2 %v2477_v49, %s8195_s15  ;;  %3716 = vst.msk [vmem:[#allocation3 + $0xa0] sm:$0x3] %vm3697_vm14, %v12566_v18  ;;  %2396 = vrot.lane.b32.xlu1 %v2365_v2, %s8194_s4  ;;  %v3499_v21 = vpack.c.bf16 %v3469_v30, %v3468_v5  ;;  %v3896_v55 = vpack.c.bf16 %v3864_v19, %v3864_v19  ;;  %v3860_v44 = vld [vmem:[#allocation3 + $0x9] sm:$0xff]  ;;  %v3879_v30 = vld [vmem:[#allocation3 + $0x139] sm:$0xff] }
 0x282   :  { %3719 = vst.msk [vmem:[#allocation3 + $0xb8] sm:$0x3] %vm3697_vm14, %v12566_v18  ;;  %v9647_v47 = vpop.permute.xlu0 %1978  ;;  %v3892_v38 = vpack.c.bf16 %v3860_v44, %v3860_v44  ;;  %v4679_v26 = vunpack.c.l.b16 %v3893_v42  ;;  %v3875_v5 = vld [vmem:[#allocation3 + $0x109] sm:$0xff] }
 0x283   :  { %12568 = vst [vmem:[#allocation84_spill] sm:$0xff] %v9647_v47  ;;  %7951 = vmatmul.msk.bf16.gmra.mxu0 %vm471_vm2, %v3499_v21  ;;  %v9652_v4 = vpop.permute.xlu1 %1644  ;;  %v3862_v41 = vld [vmem:[#allocation3 + $0x21] sm:$0xff]  ;;  %v4682_v51 = vunpack.c.l.b16 %v3896_v55  ;;  %v9666_v2 = vpop.permute.xlu2 %1964  ;;  %v3907_v19 = vpack.c.bf16 %v3875_v5, %v3875_v5  ;;  %v3911_v55 = vpack.c.bf16 %v3879_v30, %v3879_v30 }
 0x284   :  { %3722 = vst.msk [vmem:[#allocation3 + $0xd0] sm:$0x3] %vm3697_vm14, %v12566_v18  ;;  %v3894_v13 = vpack.c.bf16 %v3862_v41, %v3862_v41  ;;  %v4678_v29 = vunpack.c.l.b16 %v3892_v38  ;;  %v3877_v21 = vld [vmem:[#allocation3 + $0x121] sm:$0xff] }
 0x285   :  { %12569 = vst [vmem:[#allocation85_spill] sm:$0xff] %v9652_v4  ;;  %v9660_v1 = vpack.c.b16 %v4682_v51, %v4681_v46  ;;  %v3909_v58 = vpack.c.bf16 %v3877_v21, %v3877_v21  ;;  %v4693_v44 = vunpack.c.l.b16 %v3907_v19  ;;  %v3925_v5 = vld [vmem:[#allocation3 + $0x1a] sm:$0xff]  ;;  %v3926_v30 = vld [vmem:[#allocation3 + $0x22] sm:$0xff] }
 0x286   :  { %3725 = vst.msk [vmem:[#allocation3 + $0xe8] sm:$0x3] %vm3697_vm14, %v12566_v18  ;;  %v4680_v49 = vunpack.c.l.b16 %v3894_v13  ;;  %v4709_v17 = vpack.c.b16 %v4678_v29, %v4677_v12  ;;  %v2642_v29 = vsel %vm471_vm2, %v9280_v48, %v9452_v62  ;;  %v3923_v21 = vld [vmem:[#allocation3 + $0x2] sm:$0xff]  ;;  %v3147_v48 = vpop.f32.mrf.mxu2 }
 0x287   :  { %3728 = vst.msk [vmem:[#allocation3 + $0x100] sm:$0x3] %vm3697_vm14, %v12566_v18  ;;  %v4695_v46 = vunpack.c.l.b16 %v3909_v58  ;;  %v2684_v32 = vsel %vm2670_vm6, %v2642_v29, %v9466_v11 }
 0x288   :  { %3731 = vst.msk [vmem:[#allocation3 + $0x118] sm:$0x3] %vm3697_vm14, %v12566_v18  ;;  %4729 = vrot.lane.b32.xlu0 %v9660_v1, %s8201_s8  ;;  %v9672_v50 = vpack.c.b16 %v4680_v49, %v4679_v26  ;;  %v4697_v26 = vunpack.c.l.b16 %v3911_v55  ;;  %v3927_v55 = vld [vmem:[#allocation3 + $0x32] sm:$0xff] }
 0x289   :  { %3734 = vst.msk [vmem:[#allocation3 + $0x130] sm:$0x3] %vm3697_vm14, %v12566_v18  ;;  %4725 = vrot.lane.b32.xlu1 %v4709_v17, %s8201_s8 }
 0x28a   :  { %3737 = vst.msk [vmem:[#allocation3 + $0x148] sm:$0x3] %vm3697_vm14, %v12566_v18  ;;  %v9677_v27 = vpop.permute.xlu0 %2088  ;;  %4727 = vrot.lane.b32.xlu2 %v9672_v50, %s8201_s8 }
 0x28b   :  { %3740 = vst.msk [vmem:[#allocation3 + $0x160] sm:$0x3] %vm3697_vm14, %v12566_v18  ;;  %v9683_v15 = vpop.permute.xlu1 %1754  ;;  %v2075_v19 = vpop.permute.xlu2 %2074 }
 0x28c   :  { %3743 = vst.msk [vmem:[#allocation3 + $0x178] sm:$0x3] %vm3697_vm14, %v12566_v18 }
 0x28d   :  { %12570 = vst [vmem:[#allocation86_spill] sm:$0xff] %v9677_v27 }
 0x28e   :  { %3746 = vst.msk [vmem:[#allocation3 + $0x190] sm:$0x3] %vm3697_vm14, %v12566_v18 }
 0x28f   :  { %12571 = vst [vmem:[#allocation87_spill] sm:$0xff] %v9683_v15  ;;  %v3876_v42 = vld [vmem:[#allocation3 + $0x111] sm:$0xff] }
 0x290   :  { %3749 = vst.msk [vmem:[#allocation3 + $0x1a8] sm:$0x3] %vm3697_vm14, %v12566_v18  ;;  %v3908_v43 = vpack.c.bf16 %v3876_v42, %v3876_v42  ;;  %v3878_v41 = vld [vmem:[#allocation3 + $0x129] sm:$0xff]  ;;  %v3940_v4 = vld [vmem:[#allocation3 + $0x112] sm:$0xff] }
 0x291   :  { %3752 = vst.msk [vmem:[#allocation3 + $0x1c0] sm:$0x3] %vm3697_vm14, %v12566_v18  ;;  %v3880_v20 = vld [vmem:[#allocation3 + $0x141] sm:$0xff]  ;;  %v3910_v38 = vpack.c.bf16 %v3878_v41, %v3878_v41  ;;  %v3957_v41 = vpack.c.bf16 %v3925_v5, %v3925_v5  ;;  %v3988_v15 = vld [vmem:[#allocation3 + $0x18] sm:$0xff] }
 0x292   :  { %3755 = vst.msk [vmem:[#allocation3 + $0x1d8] sm:$0x3] %vm3697_vm14, %v12566_v18  ;;  %v4694_v51 = vunpack.c.l.b16 %v3908_v43  ;;  %v3912_v13 = vpack.c.bf16 %v3880_v20, %v3880_v20  ;;  %v9698_v42 = vpop.permute.xlu0 %1740  ;;  %v3924_v43 = vld [vmem:[#allocation3 + $0xa] sm:$0xff]  ;;  %v3955_v20 = vpack.c.bf16 %v3923_v21, %v3923_v21 }
 0x293   :  { %3758 = vst.msk [vmem:[#allocation3 + $0x1f0] sm:$0x3] %vm3697_vm14, %v12566_v18  ;;  %v4696_v12 = vunpack.c.l.b16 %v3910_v38  ;;  %v3928_v38 = vld [vmem:[#allocation3 + $0x3a] sm:$0xff]  ;;  %v9704_v62 = vpop.permute.xlu1 %2200 }
 0x294   :  { %3761 = vst.msk [vmem:[#allocation3 + $0x208] sm:$0x3] %vm3697_vm14, %v12566_v18  ;;  %v4717_v49 = vpack.c.b16 %v4694_v51, %v4693_v44  ;;  %v4698_v17 = vunpack.c.l.b16 %v3912_v13  ;;  %v3958_v18 = vpack.c.bf16 %v3926_v30, %v3926_v30  ;;  %v3956_v51 = vpack.c.bf16 %v3924_v43, %v3924_v43 }
 0x295   :  { %v9700_v58 = vpack.c.b16 %v4696_v12, %v4695_v46  ;;  %12572 = vst [vmem:[#allocation88_spill] sm:$0xff] %v9704_v62  ;;  %v3959_v13 = vpack.c.bf16 %v3927_v55, %v3927_v55  ;;  %v2717_v46 = vsel %vm2703_vm7, %v2684_v32, %v9548_v16  ;;  %v4791_v12 = vunpack.c.l.b16 %v3957_v41  ;;  %v3943_v55 = vld [vmem:[#allocation3 + $0x13a] sm:$0xff] }
 0x296   :  { %4741 = vrot.lane.b32.xlu0 %v4717_v49, %s8201_s8  ;;  %v9707_v44 = vpack.c.b16 %v4698_v17, %v4697_v26  ;;  %v4792_v5 = vunpack.c.l.b16 %v3958_v18  ;;  %v3960_v30 = vpack.c.bf16 %v3928_v38, %v3928_v38  ;;  %v2750_v11 = vsel %vm2736_vm8, %v2717_v46, %v9571_v53  ;;  %v3944_v38 = vld [vmem:[#allocation3 + $0x142] sm:$0xff] }
 0x297   :  { %4743 = vrot.lane.b32.xlu1 %v9700_v58, %s8201_s8  ;;  %v4789_v29 = vunpack.c.l.b16 %v3955_v20  ;;  %v4790_v26 = vunpack.c.l.b16 %v3956_v51  ;;  %v4793_v49 = vunpack.c.l.b16 %v3959_v13  ;;  %v3148_v16 = vadd.f32 %v9489_v3, %v3147_v48  ;;  %v3941_v46 = vld [vmem:[#allocation3 + $0x122] sm:$0xff]  ;;  %v3939_v48 = vld [vmem:[#allocation3 + $0x10a] sm:$0xff] }
 0x298   :  { %4745 = vrot.lane.b32.xlu2 %v9707_v44, %s8201_s8  ;;  %v4794_v17 = vunpack.c.l.b16 %v3960_v30  ;;  %v9717_v21 = vpack.c.b16 %v4792_v5, %v4791_v12  ;;  %v2783_v32 = vsel %vm2769_vm9, %v2750_v11, %v9579_v61  ;;  %v3975_v13 = vpack.c.bf16 %v3943_v55, %v3943_v55  ;;  %v3942_v5 = vld [vmem:[#allocation3 + $0x12a] sm:$0xff] }
 0x299   :  { %v2816_v18 = vsel %vm2802_vm10, %v2783_v32, %v2075_v19  ;;  %v3236_v43 = vpop.f32.mrf.mxu3  ;;  %v4821_v53 = vpack.c.b16 %v4790_v26, %v4789_v29  ;;  %v3976_v12 = vpack.c.bf16 %v3944_v38, %v3944_v38  ;;  %v3973_v30 = vpack.c.bf16 %v3941_v46, %v3941_v46  ;;  %v9732_v26 = vpop.permute.xlu2 %2600  ;;  %v1097_v38 = vld [vmem:[#allocation2 + $0xb2] sm:$0xff] }
 0x29a   :  { %v9722_v41 = vpack.c.b16 %v4794_v17, %v4793_v49  ;;  %v9725_v20 = vadd.f32 %v3236_v43, %v3148_v16  ;;  %v2187_v51 = vpop.permute.xlu0 %2186  ;;  %v3974_v19 = vpack.c.bf16 %v3942_v5, %v3942_v5  ;;  %v3971_v11 = vpack.c.bf16 %v3939_v48, %v3939_v48  ;;  %v3149_v17 = vpop.f32.mrf.mxu2  ;;  %v1096_v16 = vld [vmem:[#allocation2 + $0xaa] sm:$0xff] }
 0x29b   :  { %v9727_v37 = vpop.permute.xlu1 %2390  ;;  %v2855_v61 = vsel %vm2835_vm11, %v2816_v18, %v2187_v51  ;;  %v3972_v29 = vpack.c.bf16 %v3940_v4, %v3940_v4  ;;  %v4809_v32 = vunpack.c.l.b16 %v3975_v13  ;;  %v4810_v18 = vunpack.c.l.b16 %v3976_v12  ;;  %v4004_v13 = vld [vmem:[#allocation3 + $0x120] sm:$0xff] }
 0x29c   :  { %12573 = vst [vmem:[#allocation89_spill] sm:$0xff] %v9727_v37  ;;  %v3342_v49 = vmin.f32 %v9725_v20, 0.0  ;;  %3166 = vmatmul.bf16.gmra.mxu2 %v2855_v61  ;;  %v4807_v43 = vunpack.c.l.b16 %v3973_v30  ;;  %v4808_v55 = vunpack.c.l.b16 %v3974_v19  ;;  %v4805_v46 = vunpack.c.l.b16 %v3971_v11  ;;  %v4005_v11 = vld [vmem:[#allocation3 + $0x128] sm:$0xff] }
 0x29d   :  { %v4806_v51 = vunpack.c.l.b16 %v3972_v29  ;;  %v9738_v4 = vpack.c.b16 %v4810_v18, %v4809_v32  ;;  %v3150_v5 = vadd.f32 %v9489_v3, %v3149_v17  ;;  %v1128_v61 = vpack.c.bf16 %v1096_v16, %v1096_v16  ;;  %v3990_v32 = vld [vmem:[#allocation3 + $0x30] sm:$0xff]  ;;  %v3991_v18 = vld [vmem:[#allocation3 + $0x38] sm:$0xff] }
 0x29e   :  { %4839 = vrot.lane.b32.xlu0 %v9717_v21, %s8194_s4  ;;  %v3378_v48 = vmul.f32 1.442695, %v3342_v49  ;;  %v1129_v47 = vpack.c.bf16 %v1097_v38, %v1097_v38  ;;  %v9741_v22 = vpack.c.b16 %v4808_v55, %v4807_v43  ;;  %v4020_v19 = vpack.c.bf16 %v3988_v15, %v3988_v15 }
 0x29f   :  { %4841 = vrot.lane.b32.xlu1 %v9722_v41, %s8194_s4  ;;  %v4829_v14 = vpack.c.b16 %v4806_v51, %v4805_v46  ;;  %v4036_v29 = vpack.c.bf16 %v4004_v13, %v4004_v13  ;;  %v4037_v49 = vpack.c.bf16 %v4005_v11, %v4005_v11  ;;  %v4022_v17 = vpack.c.bf16 %v3990_v32, %v3990_v32 }
 0x2a0   :  { %4837 = vrot.lane.b32.xlu2 %v4821_v53, %s8194_s4  ;;  %v3989_v53 = vld [vmem:[#allocation3 + $0x20] sm:$0xff]  ;;  %v4023_v16 = vpack.c.bf16 %v3991_v18, %v3991_v18  ;;  %8073 = vpow2.f32 %v3378_v48  ;;  %v2248_v55 = vunpack.c.l.b16 %v1128_v61  ;;  %v2249_v15 = vunpack.c.l.b16 %v1129_v47  ;;  %v4006_v47 = vld [vmem:[#allocation3 + $0x138] sm:$0xff] }
 0x2a1   :  { %v3238_v37 = vpop.f32.mrf.mxu3  ;;  %v4021_v62 = vpack.c.bf16 %v3989_v53, %v3989_v53  ;;  %v4917_v46 = vunpack.c.l.b16 %v4036_v29  ;;  %v4918_v51 = vunpack.c.l.b16 %v4037_v49  ;;  %v4903_v13 = vunpack.c.l.b16 %v4022_v17 }
 0x2a2   :  { %v3239_v12 = vadd.f32 %v3238_v37, %v3150_v5  ;;  %v2377_v30 = vpop.permute.xlu0 %2376  ;;  %v4901_v37 = vunpack.c.l.b16 %v4020_v19  ;;  %v9750_v5 = vpop.permute.xlu2 %1756  ;;  %v4904_v11 = vunpack.c.l.b16 %v4023_v16  ;;  %v2275_v61 = vpack.c.b16 %v2249_v15, %v2248_v55  ;;  %v4007_v19 = vld [vmem:[#allocation3 + $0x140] sm:$0xff] }
 0x2a3   :  { %v9743_v27 = vpop.permute.xlu1 %1852  ;;  %v4902_v38 = vunpack.c.l.b16 %v4021_v62  ;;  %v4038_v62 = vpack.c.bf16 %v4006_v47, %v4006_v47  ;;  %v4039_v29 = vpack.c.bf16 %v4007_v19, %v4007_v19  ;;  %vm3310_vm1 = vcmp.gt.f32.partialorder %v9725_v20, 0.0  ;;  %v588_v47 = vld [vmem:[#allocation2 + $0x108] sm:$0xff] }
 0x2a4   :  { %v3343_v43 = vmin.f32 %v3239_v12, 0.0  ;;  %v9754_v48 = vpack.c.b16 %v4904_v11, %v4903_v13  ;;  %v2901_v49 = vsel %vm471_vm2, %v2275_v61, %v2377_v30  ;;  %vm3311_vm3 = vcmp.gt.f32.partialorder %v3239_v12, 0.0  ;;  %v589_v61 = vld [vmem:[#allocation2 + $0x110] sm:$0xff] }
 0x2a5   :  { %v9752_v32 = vpack.c.b16 %v4902_v38, %v4901_v37  ;;  %v4919_v16 = vunpack.c.l.b16 %v4038_v62  ;;  %v4920_v55 = vunpack.c.l.b16 %v4039_v29  ;;  %v2645_v29 = vsel %vm471_vm2, %v9371_v59, %v9560_v36 }
 0x2a6   :  { %4857 = vrot.lane.b32.xlu0 %v9738_v4, %s8194_s4  ;;  %v3380_v53 = vmul.f32 1.442695, %v3343_v43  ;;  %v8074_v18 = vpop.eup %8073 }
 0x2a7   :  { %4853 = vrot.lane.b32.xlu1 %v4829_v14, %s8194_s4  ;;  %v9756_v14 = vpack.c.b16 %v4918_v51, %v4917_v46  ;;  %v7918_v37 = vadd.f32 -1.0, %v8074_v18  ;;  %v9771_v46 = vpack.c.b16 %v4920_v55, %v4919_v16  ;;  %v1098_v55 = vld [vmem:[#allocation2 + $0xc2] sm:$0xff] }
 0x2a8   :  { %4855 = vrot.lane.b32.xlu2 %v9741_v22, %s8194_s4  ;;  %8075 = vpow2.f32 %v3380_v53 }
 0x2a9   :  { %12574 = vst [vmem:[#allocation90_spill] sm:$0xff] %v9771_v46  ;;  %v3470_v53 = vsel %vm3310_vm1, %v9725_v20, %v7918_v37  ;;  %v621_v20 = vpack.c.bf16 %v589_v61, %v589_v61  ;;  %v1099_v37 = vld [vmem:[#allocation2 + $0xca] sm:$0xff] }
 0x2aa   :  { %v9758_v39 = vpop.permute.xlu0 %1868  ;;  %v9774_v51 = vpop.permute.xlu2 %2202 }
 0x2ab   :  { %v2489_v43 = vpop.permute.xlu1 %2488  ;;  %v1391_v18 = vunpack.c.l.b16 %v621_v20 }
 0x2ac   :  { %v2943_v17 = vsel %vm2670_vm6, %v2901_v49, %v2489_v43 }
 0x2ad   :  { %v2975_v15 = vsel %vm2703_vm7, %v2943_v17, %v9732_v26 }
 0x2ae   :  { %4949 = vrot.lane.b32.xlu0 %v9752_v32, %s8202_s30  ;;  %v8076_v30 = vpop.eup %8075  ;;  %7903 = vmatmul.msk.bf16.gmra.mxu3 %vm2736_vm8, %v2975_v15 }
 0x2af   :  { %4951 = vrot.lane.b32.xlu1 %v9754_v48, %s8202_s30  ;;  %v7919_v38 = vadd.f32 -1.0, %v8076_v30  ;;  %v1130_v30 = vpack.c.bf16 %v1098_v55, %v1098_v55 }
 0x2b0   :  { %4965 = vrot.lane.b32.xlu2 %v9756_v14, %s8202_s30 }
 0x2b1   :  { %v3471_v13 = vsel %vm3311_vm3, %v3239_v12, %v7919_v38  ;;  %v620_v12 = vpack.c.bf16 %v588_v47, %v588_v47  ;;  %v1131_v38 = vpack.c.bf16 %v1099_v37, %v1099_v37 }
 0x2b2   :  { %v9777_v11 = vpop.permute.xlu0 %2504  ;;  %v3500_v26 = vpack.c.bf16 %v3471_v13, %v3470_v53  ;;  %v9791_v49 = vpop.permute.xlu2 %2392 }
 0x2b3   :  { %v9779_v19 = vpop.permute.xlu1 %1980  ;;  %v1390_v62 = vunpack.c.l.b16 %v620_v12  ;;  %v2251_v13 = vunpack.c.l.b16 %v1131_v38 }
 0x2b4   :  { %7952 = vmatmul.msk.bf16.gmra.mxu0 %vm471_vm2, %v3500_v26 }
 0x2b5   :  { %v1414_v16 = vpack.c.b16 %v1391_v18, %v1390_v62 }
 0x2b6   :  { %4967 = vrot.lane.b32.xlu0 %v9771_v46, %s8202_s30 }
 0x2b7   :  { %5061 = vrot.lane.b32.xlu1 %v9672_v50, %s8195_s15  ;;  %v2686_v50 = vsel %vm2670_vm6, %v2645_v29, %v9537_v57 }
 0x2b8   :  { %5063 = vrot.lane.b32.xlu2 %v9660_v1, %s8195_s15  ;;  %v2719_v59 = vsel %vm2703_vm7, %v2686_v50, %v9698_v42 }
 0x2b9   :  { %v2752_v36 = vsel %vm2736_vm8, %v2719_v59, %v9743_v27 }
 0x2ba   :  { %v2077_v43 = vpop.permute.xlu0 %2076  ;;  %v2785_v15 = vsel %vm2769_vm9, %v2752_v36, %v9666_v2  ;;  %v2491_v42 = vpop.permute.xlu2 %2490  ;;  %v2250_v2 = vunpack.c.l.b16 %v1130_v30 }
 0x2bb   :  { %v9793_v17 = vpop.permute.xlu1 %2090 }
 0x2bc   :  { %v2276_v61 = vpack.c.b16 %v2251_v13, %v2250_v2 }
 0x2be   :  { %5077 = vrot.lane.b32.xlu0 %v9700_v58, %s8195_s15  ;;  %v2648_v58 = vsel %vm471_vm2, %v1414_v16, %v8832_v23 }
 0x2bf   :  { %5079 = vrot.lane.b32.xlu1 %v9707_v44, %s8195_s15  ;;  %v2688_v23 = vsel %vm2670_vm6, %v2648_v58, %v8923_v40 }
 0x2c0   :  { %5173 = vrot.lane.b32.xlu2 %v9717_v21, %s8203_s1  ;;  %v2818_v21 = vsel %vm2802_vm10, %v2785_v15, %v2077_v43  ;;  %v2721_v26 = vsel %vm2703_vm7, %v2688_v23, %v8968_v35  ;;  %v1103_v23 = vld [vmem:[#allocation2 + $0x142] sm:$0xff] }
 0x2c1   :  { %v2754_v47 = vsel %vm2736_vm8, %v2721_v26, %v8977_v8 }
 0x2c2   :  { %v2603_v57 = vpop.permute.xlu0 %2602  ;;  %v2787_v35 = vsel %vm2769_vm9, %v2754_v47, %v9013_v24  ;;  %v9837_v8 = vpop.permute.xlu2 %2092 }
 0x2c3   :  { %v2189_v53 = vpop.permute.xlu1 %2188  ;;  %v2820_v29 = vsel %vm2802_vm10, %v2787_v35, %v9158_v45  ;;  %v2651_v45 = vsel %vm471_vm2, %v8638_v10, %v8873_v54 }
 0x2c4   :  { %v2858_v27 = vsel %vm2835_vm11, %v2818_v21, %v2189_v53  ;;  %v2861_v24 = vsel %vm2835_vm11, %v2820_v29, %v9096_v34 }
 0x2c5   :  { %3171 = vmatmul.bf16.gmra.mxu2 %v2858_v27  ;;  %v1102_v27 = vld [vmem:[#allocation2 + $0x13a] sm:$0xff] }
 0x2c6   :  { %5175 = vrot.lane.b32.xlu0 %v9722_v41, %s8203_s1 }
 0x2c7   :  { %5189 = vrot.lane.b32.xlu1 %v9741_v22, %s8203_s1  ;;  %v3152_v22 = vpop.f32.mrf.mxu2 }
 0x2c8   :  { %5191 = vrot.lane.b32.xlu2 %v9738_v4, %s8203_s1  ;;  %v3153_v43 = vadd.f32 %v9489_v3, %v3152_v22  ;;  %v1134_v22 = vpack.c.bf16 %v1102_v27, %v1102_v27 }
 0x2ca   :  { %v9827_v12 = vpop.permute.xlu0 %2204  ;;  %v2381_v34 = vpop.permute.xlu2 %2380 }
 0x2cb   :  { %v2379_v20 = vpop.permute.xlu1 %2378 }
 0x2cc   :  { %v2904_v40 = vsel %vm471_vm2, %v2276_v61, %v2379_v20 }
 0x2cd   :  { %v2945_v18 = vsel %vm2670_vm6, %v2904_v40, %v2491_v42  ;;  %v1135_v40 = vpack.c.bf16 %v1103_v23, %v1103_v23 }
 0x2ce   :  { %5285 = vrot.lane.b32.xlu0 %v9754_v48, %s8196_s20  ;;  %v2977_v62 = vsel %vm2703_vm7, %v2945_v18, %v2603_v57 }
 0x2cf   :  { %5397 = vrot.lane.b32.xlu1 %v9660_v1, %s8204_s16  ;;  %7904 = vmatmul.msk.bf16.gmra.mxu3 %vm2736_vm8, %v2977_v62  ;;  %v3154_v3 = vpop.f32.mrf.mxu2  ;;  %v2255_v29 = vunpack.c.l.b16 %v1135_v40 }
 0x2d0   :  { %5301 = vrot.lane.b32.xlu2 %v9771_v46, %s8196_s20 }
 0x2d2   :  { %v3241_v1 = vpop.f32.mrf.mxu3  ;;  %v9857_v36 = vpop.permute.xlu0 %2394 }
 0x2d3   :  { %v3242_v50 = vadd.f32 %v3241_v1, %v3153_v43  ;;  %v9844_v16 = vpop.permute.xlu1 %2506  ;;  %v9885_v13 = vpop.permute.xlu2 %2612  ;;  %v2654_v1 = vsel %vm471_vm2, %v8675_v31, %v8880_v60 }
 0x2d5   :  { %v3344_v59 = vmin.f32 %v3242_v50, 0.0  ;;  %3176 = vmatmul.bf16.gmra.mxu2 %v2861_v24  ;;  %vm3312_vm4 = vcmp.gt.f32.partialorder %v3242_v50, 0.0 }
 0x2d6   :  { %5413 = vrot.lane.b32.xlu0 %v9707_v44, %s8204_s16  ;;  %v9862_v44 = vld [vmem:[%s12436_s9] ss:$0 sm:$0xff] }
 0x2d7   :  { %5525 = vrot.lane.b32.xlu1 %v9738_v4, %s8197_s28  ;;  %v2690_v4 = vsel %vm2670_vm6, %v2651_v45, %v8929_v63  ;;  %v3382_v10 = vmul.f32 1.442695, %v3344_v59 }
 0x2d8   :  { %5509 = vrot.lane.b32.xlu2 %v9722_v41, %s8197_s28  ;;  %v9869_v41 = vld [vmem:[%s12434_s7] ss:$0 sm:$0xff]  ;;  %v2723_v30 = vsel %vm2703_vm7, %v2690_v4, %v8935_v28  ;;  %v2907_v28 = vsel %vm471_vm2, %v9527_v25, %v2381_v34  ;;  %v12575_v4 = vld [vmem:[#allocation27_spill] sm:$0xff] }
 0x2d9   :  { %v3155_v55 = vadd.f32 %v9869_v41, %v3154_v3  ;;  %8077 = vpow2.f32 %v3382_v10  ;;  %v2756_v21 = vsel %vm2736_vm8, %v2723_v30, %v8997_v56 }
 0x2da   :  { %v3243_v54 = vpop.f32.mrf.mxu3  ;;  %v3583_v37 = vpop.f32.mrf.mxu0  ;;  %v2789_v2 = vsel %vm2769_vm9, %v2756_v21, %v9134_v52  ;;  %v12578_v21 = vld [vmem:[#allocation47_spill] sm:$0xff] }
 0x2db   :  { %v3244_v58 = vadd.f32 %v3243_v54, %v3155_v55  ;;  %v3584_v15 = vadd.f32 %v9862_v44, %v3583_v37  ;;  %v9873_v57 = vpop.permute.xlu1 %2610  ;;  %v2493_v42 = vpop.permute.xlu0 %2492  ;;  %v2822_v56 = vsel %vm2802_vm10, %v2789_v2, %v9191_v33  ;;  %v2254_v33 = vunpack.c.l.b16 %v1134_v22  ;;  %v12576_v54 = vld [vmem:[#allocation45_spill] sm:$0xff] }
 0x2dc   :  { %v2947_v61 = vsel %vm2670_vm6, %v2907_v28, %v2493_v42  ;;  %v2864_v52 = vsel %vm2835_vm11, %v2822_v56, %v9274_v9  ;;  %v9902_v34 = vpop.permute.xlu2 %2618  ;;  %v2692_v55 = vsel %vm2670_vm6, %v2654_v1, %v12575_v4 }
 0x2dd   :  { %v3345_v63 = vmin.f32 %v3244_v58, 0.0  ;;  %v3663_v38 = vadd.f32 %v3584_v15, %v8475_v6  ;;  %vm3313_vm12 = vcmp.gt.f32.partialorder %v3244_v58, 0.0  ;;  %v2278_v3 = vpack.c.b16 %v2255_v29, %v2254_v33  ;;  %v1105_v33 = vld [vmem:[#allocation2 + $0x15a] sm:$0xff] }
 0x2de   :  { %v2725_v37 = vsel %vm2703_vm7, %v2692_v55, %v12576_v54  ;;  %v1137_v4 = vpack.c.bf16 %v1105_v33, %v1105_v33  ;;  %v12584_v55 = vld [vmem:[#allocation38_spill] sm:$0xff] }
 0x2df   :  { %v3384_v53 = vmul.f32 1.442695, %v3345_v63  ;;  %3763 = vst.msk [vmem:[#allocation3 + $0x49] sm:$0xff] %vm329_vm5, %v3663_v38  ;;  %v8078_v6 = vpop.eup %8077 }
 0x2e0   :  { %v7920_v35 = vadd.f32 -1.0, %v8078_v6 }
 0x2e1   :  { %8079 = vpow2.f32 %v3384_v53  ;;  %v2910_v53 = vsel %vm471_vm2, %v2278_v3, %v12578_v21 }
 0x2e2   :  { %v3585_v26 = vpop.f32.mrf.mxu0  ;;  %v3472_v24 = vsel %vm3312_vm4, %v3242_v50, %v7920_v35  ;;  %v12577_v50 = vld [vmem:[#allocation46_spill] sm:$0xff]  ;;  %vm5957_vm4 = vcmask 195584  }
 0x2e3   :  { %v3586_v47 = vadd.f32 %v9862_v44, %v3585_v26  ;;  %v2605_v20 = vpop.permute.xlu1 %2604  ;;  %v12579_v26 = vld [vmem:[#allocation39_spill] sm:$0xff] }
 0x2e4   :  { %v2979_v18 = vsel %vm2703_vm7, %v2947_v61, %v2605_v20  ;;  %v9925_v35 = vpop.permute.xlu2 %2508 }
 0x2e5   :  { %v3664_v25 = vadd.f32 %v3586_v47, %v8477_v7  ;;  %3181 = vmatmul.bf16.gmra.mxu2 %v2864_v52  ;;  %7905 = vmatmul.msk.bf16.gmra.mxu3 %vm2736_vm8, %v2979_v18  ;;  %v9900_v7 = vpop.permute.xlu0 %2608  ;;  %v12580_v47 = vld [vmem:[#allocation48_spill] sm:$0xff]  ;;  %v12581_v52 = vld [vmem:[#allocation55_spill] sm:$0xff] }
 0x2e6   :  { %v4056_v59 = vld [vmem:[#allocation3 + $0x49] sm:$0xff]  ;;  %v2949_v20 = vsel %vm2670_vm6, %v2910_v53, %v12580_v47 }
 0x2e7   :  { %v8080_v62 = vpop.eup %8079  ;;  %3764 = vst.msk [vmem:[#allocation3 + $0x51] sm:$0xff] %vm329_vm5, %v3664_v25  ;;  %v4088_v10 = vpack.c.bf16 %v4056_v59, %v4056_v59  ;;  %v3992_v61 = vld [vmem:[#allocation3 + $0x48] sm:$0xff] }
 0x2e8   :  { %v7921_v43 = vadd.f32 -1.0, %v8080_v62  ;;  %v1104_v62 = vld [vmem:[#allocation2 + $0x152] sm:$0xff] }
 0x2e9   :  { %v5017_v27 = vunpack.c.l.b16 %v4088_v10  ;;  %v1136_v3 = vpack.c.bf16 %v1104_v62, %v1104_v62  ;;  %v12585_v10 = vld [vmem:[#allocation32_spill] sm:$0xff] }
 0x2ea   :  { %v3473_v9 = vsel %vm3313_vm12, %v3244_v58, %v7921_v43  ;;  %v2758_v58 = vsel %vm2736_vm8, %v2725_v37, %v12577_v50  ;;  %v12582_v43 = vld [vmem:[#allocation57_spill] sm:$0xff]  ;;  %v2657_v54 = vsel %vm471_vm2, %v12585_v10, %v12584_v55  ;;  %v12587_v50 = vld [vmem:[#allocation56_spill] sm:$0xff]  ;;  %vm6022_vm12 = vcmask 326656  }
 0x2eb   :  { %v3501_v45 = vpack.c.bf16 %v3473_v9, %v3472_v24  ;;  %v2791_v6 = vsel %vm2769_vm9, %v2758_v58, %v12579_v26  ;;  %v9915_v56 = vpop.permute.xlu1 %2616  ;;  %v4024_v24 = vpack.c.bf16 %v3992_v61, %v3992_v61  ;;  %v12583_v9 = vld [vmem:[#allocation42_spill] sm:$0xff]  ;;  %v12589_v61 = vld [vmem:[#allocation53_spill] sm:$0xff]  ;;  %v12591_v62 = vld [vmem:[#allocation68_spill] sm:$0xff] }
 0x2ec   :  { %v2824_v25 = vsel %vm2802_vm10, %v2791_v6, %v12581_v52  ;;  %v2981_v59 = vsel %vm2703_vm7, %v2949_v20, %v12583_v9  ;;  %v9951_v53 = vpop.permute.xlu2 %4727  ;;  %v12590_v52 = vld [vmem:[#allocation58_spill] sm:$0xff] }
 0x2ed   :  { %7953 = vmatmul.msk.bf16.gmra.mxu0 %vm471_vm2, %v3501_v45  ;;  %v9927_v29 = vpop.permute.xlu0 %2614  ;;  %v2867_v1 = vsel %vm2835_vm11, %v2824_v25, %v12582_v43  ;;  %v4905_v37 = vunpack.c.l.b16 %v4024_v24 }
 0x2ee   :  { %v4057_v15 = vld [vmem:[#allocation3 + $0x51] sm:$0xff] }
 0x2ef   :  { %v3929_v31 = vld [vmem:[#allocation3 + $0x4a] sm:$0xff]  ;;  %v3930_v60 = vld [vmem:[#allocation3 + $0x52] sm:$0xff]  ;;  %v4089_v30 = vpack.c.bf16 %v4057_v15, %v4057_v15  ;;  %v12586_v15 = vld [vmem:[#allocation43_spill] sm:$0xff] }
 0x2f0   :  { %v3961_v63 = vpack.c.bf16 %v3929_v31, %v3929_v31  ;;  %v3962_v38 = vpack.c.bf16 %v3930_v60, %v3930_v60  ;;  %v3993_v42 = vld [vmem:[#allocation3 + $0x50] sm:$0xff]  ;;  %v2694_v31 = vsel %vm2670_vm6, %v2657_v54, %v12586_v15  ;;  %v3157_v60 = vpop.f32.mrf.mxu2 }
 0x2f1   :  { %v5018_v23 = vunpack.c.l.b16 %v4089_v30  ;;  %v4025_v18 = vpack.c.bf16 %v3993_v42, %v3993_v42  ;;  %v2727_v58 = vsel %vm2703_vm7, %v2694_v31, %v12587_v50 }
 0x2f2   :  { %v4795_v2 = vunpack.c.l.b16 %v3961_v63  ;;  %v4796_v28 = vunpack.c.l.b16 %v3962_v38  ;;  %v2256_v63 = vunpack.c.l.b16 %v1136_v3  ;;  %v2257_v38 = vunpack.c.l.b16 %v1137_v4  ;;  %v12594_v4 = vld [vmem:[#allocation63_spill] sm:$0xff] }
 0x2f3   :  { %v9919_v22 = vpack.c.b16 %v5018_v23, %v5017_v27  ;;  %v4906_v45 = vunpack.c.l.b16 %v4025_v18  ;;  %v9949_v21 = vpop.permute.xlu1 %2396  ;;  %v12588_v27 = vld [vmem:[#allocation49_spill] sm:$0xff] }
 0x2f4   :  { %v9921_v40 = vpack.c.b16 %v4796_v28, %v4795_v2  ;;  %v2760_v23 = vsel %vm2736_vm8, %v2727_v58, %v12588_v27  ;;  %v3158_v2 = vadd.f32 %v9869_v41, %v3157_v60  ;;  %v2279_v28 = vpack.c.b16 %v2257_v38, %v2256_v63  ;;  %v12596_v27 = vld [vmem:[#allocation10_spill] sm:$0xff] }
 0x2f5   :  { %5065 = vrot.lane.b32.xlu0 %v9919_v22, %s8195_s15  ;;  %4731 = vrot.lane.b32.xlu1 %v9919_v22, %s8201_s8  ;;  %v9947_v30 = vpack.c.b16 %v4906_v45, %v4905_v37  ;;  %v9953_v42 = vpop.permute.xlu0 %2620  ;;  %v2793_v47 = vsel %vm2769_vm9, %v2760_v23, %v12589_v61  ;;  %v12593_v45 = vld [vmem:[#allocation52_spill] sm:$0xff]  ;;  %v9992_v37 = vpop.permute.xlu2 %4745 }
 0x2f6   :  { %4843 = vrot.lane.b32.xlu2 %v9921_v40, %s8194_s4  ;;  %3186 = vmatmul.bf16.gmra.mxu2 %v2867_v1  ;;  %v2913_v25 = vsel %vm471_vm2, %v2279_v28, %v12590_v52  ;;  %v2826_v33 = vsel %vm2802_vm10, %v2793_v47, %v12591_v62  ;;  %v12592_v1 = vld [vmem:[#allocation9_spill] sm:$0xff]  ;;  %12595 = vst [vmem:[#allocation27_spill] sm:$0xff] %v9992_v37  ;;  %v12597_v28 = vld [vmem:[#allocation51_spill] sm:$0xff]  ;;  %v12599_v47 = vld [vmem:[#allocation54_spill] sm:$0xff] }
 0x2f7   :  { %7906 = vmatmul.msk.bf16.gmra.mxu3 %vm2736_vm8, %v2981_v59  ;;  %v2951_v3 = vsel %vm2670_vm6, %v2913_v25, %v12593_v45  ;;  %v2870_v55 = vsel %vm2835_vm11, %v2826_v33, %v12594_v4  ;;  %v12604_v4 = vld [vmem:[#allocation72_spill] sm:$0xff] }
 0x2f8   :  { %v3159_v9 = vpop.f32.mrf.mxu2  ;;  %v2983_v54 = vsel %vm2703_vm7, %v2951_v3, %v9900_v7 }
 0x2f9   :  { %v3160_v15 = vadd.f32 %v9869_v41, %v3159_v9  ;;  %v12603_v9 = vld [vmem:[#allocation67_spill] sm:$0xff] }
 0x2fb   :  { %v9975_v59 = vpop.permute.xlu1 %4725 }
 0x2fd   :  { %5511 = vrot.lane.b32.xlu0 %v9921_v40, %s8197_s28  ;;  %5177 = vrot.lane.b32.xlu1 %v9921_v40, %s8203_s1  ;;  %v9986_v10 = vpop.permute.xlu0 %4729  ;;  %v10012_v52 = vpop.permute.xlu2 %4837 }
 0x2fe   :  { %4953 = vrot.lane.b32.xlu2 %v9947_v30, %s8202_s30 }
 0x300   :  { %v3246_v26 = vpop.f32.mrf.mxu3  ;;  %v3588_v6 = vpop.f32.mrf.mxu0 }
 0x301   :  { %v9966_v20 = vadd.f32 %v3246_v26, %v3158_v2  ;;  %v3589_v18 = vadd.f32 %v9862_v44, %v3588_v6  ;;  %v12598_v26 = vld [vmem:[#allocation35_spill] sm:$0xff] }
 0x302   :  { %v2660_v6 = vsel %vm471_vm2, %v12598_v26, %v12597_v28 }
 0x303   :  { %v3346_v43 = vmin.f32 %v9966_v20, 0.0  ;;  %v3665_v24 = vadd.f32 %v3589_v18, %v12592_v1  ;;  %v2696_v18 = vsel %vm2670_vm6, %v2660_v6, %v12599_v47  ;;  %v12602_v1 = vld [vmem:[#allocation62_spill] sm:$0xff]  ;;  %vm3314_vm13 = vcmp.gt.f32.partialorder %v9966_v20, 0.0 }
 0x305   :  { %3765 = vst.msk [vmem:[#allocation3 + $0x61] sm:$0xff] %vm329_vm5, %v3665_v24  ;;  %5621 = vrot.lane.b32.xlu0 %v9947_v30, %s8205_s22  ;;  %5287 = vrot.lane.b32.xlu1 %v9947_v30, %s8196_s20  ;;  %v3386_v31 = vmul.f32 1.442695, %v3346_v43 }
 0x306   :  { %5399 = vrot.lane.b32.xlu2 %v9919_v22, %s8204_s16  ;;  %3191 = vmatmul.bf16.gmra.mxu2 %v2870_v55 }
 0x307   :  { %7907 = vmatmul.msk.bf16.gmra.mxu3 %vm2736_vm8, %v2983_v54  ;;  %8081 = vpow2.f32 %v3386_v31  ;;  %v12605_v54 = vld [vmem:[#allocation65_spill] sm:$0xff] }
 0x308   :  { %v3248_v60 = vpop.f32.mrf.mxu3  ;;  %v3590_v50 = vpop.f32.mrf.mxu0 }
 0x309   :  { %v3249_v58 = vadd.f32 %v3248_v60, %v3160_v15  ;;  %v3591_v63 = vadd.f32 %v9862_v44, %v3590_v50  ;;  %v10003_v2 = vpop.permute.xlu1 %4743  ;;  %v10008_v61 = vpop.permute.xlu0 %4741 }
 0x30b   :  { %v3347_v38 = vmin.f32 %v3249_v58, 0.0  ;;  %v3666_v7 = vadd.f32 %v3591_v63, %v12596_v27  ;;  %v12606_v27 = vld [vmem:[#allocation75_spill] sm:$0xff]  ;;  %vm3315_vm14 = vcmp.gt.f32.partialorder %v3249_v58, 0.0 }
 0x30c   :  { %v4058_v25 = vld [vmem:[#allocation3 + $0x61] sm:$0xff] }
 0x30d   :  { %v3388_v23 = vmul.f32 1.442695, %v3347_v38  ;;  %3766 = vst.msk [vmem:[#allocation3 + $0x69] sm:$0xff] %vm329_vm5, %v3666_v7  ;;  %5733 = vrot.lane.b32.xlu1 %v9919_v22, %s8198_s18  ;;  %v8082_v62 = vpop.eup %8081  ;;  %v12601_v22 = vld [vmem:[#allocation66_spill] sm:$0xff]  ;;  %v4090_v3 = vpack.c.bf16 %v4058_v25, %v4058_v25 }
 0x30e   :  { %5845 = vrot.lane.b32.xlu2 %v9921_v40, %s8206_s3  ;;  %v12600_v40 = vld [vmem:[#allocation60_spill] sm:$0xff]  ;;  %v2916_v43 = vsel %vm471_vm2, %v9583_v0, %v12601_v22  ;;  %v7922_v31 = vadd.f32 -1.0, %v8082_v62 }
 0x30f   :  { %8083 = vpow2.f32 %v3388_v23  ;;  %v2729_v33 = vsel %vm2703_vm7, %v2696_v18, %v12600_v40  ;;  %v2953_v15 = vsel %vm2670_vm6, %v2916_v43, %v12605_v54  ;;  %v5019_v18 = vunpack.c.l.b16 %v4090_v3  ;;  %v12608_v22 = vld [vmem:[#allocation44_spill] sm:$0xff]  ;;  %v10041_v3 = vpop.permute.xlu2 %4855 }
 0x310   :  { %v2762_v24 = vsel %vm2736_vm8, %v2729_v33, %v12602_v1  ;;  %v2985_v26 = vsel %vm2703_vm7, %v2953_v15, %v9873_v57  ;;  %v12607_v33 = vld [vmem:[#allocation64_spill] sm:$0xff]  ;;  %v3474_v1 = vsel %vm3314_vm13, %v9966_v20, %v7922_v31  ;;  %v3994_v57 = vld [vmem:[#allocation3 + $0x60] sm:$0xff]  ;;  %vm6087_vm13 = vcmask 457728  }
 0x311   :  { %v2795_v45 = vsel %vm2769_vm9, %v2762_v24, %v12603_v9  ;;  %v2663_v43 = vsel %vm471_vm2, %v12608_v22, %v12607_v33  ;;  %v10037_v9 = vpop.permute.xlu1 %4841  ;;  %v10039_v15 = vpop.permute.xlu0 %4839 }
 0x312   :  { %v2828_v55 = vsel %vm2802_vm10, %v2795_v45, %v12604_v4  ;;  %v3162_v33 = vpop.f32.mrf.mxu2 }
 0x313   :  { %v2873_v0 = vsel %vm2835_vm11, %v2828_v55, %v12606_v27  ;;  %v12611_v27 = vld [vmem:[#allocation74_spill] sm:$0xff] }
 0x314   :  { %v4059_v60 = vld [vmem:[#allocation3 + $0x69] sm:$0xff] }
 0x315   :  { %v3931_v50 = vld [vmem:[#allocation3 + $0x62] sm:$0xff]  ;;  %v3932_v63 = vld [vmem:[#allocation3 + $0x6a] sm:$0xff]  ;;  %v8084_v38 = vpop.eup %8083  ;;  %v4091_v7 = vpack.c.bf16 %v4059_v60, %v4059_v60  ;;  %v4026_v60 = vpack.c.bf16 %v3994_v57, %v3994_v57 }
 0x316   :  { %v3963_v23 = vpack.c.bf16 %v3931_v50, %v3931_v50  ;;  %v3964_v28 = vpack.c.bf16 %v3932_v63, %v3932_v63  ;;  %v7923_v6 = vadd.f32 -1.0, %v8084_v38  ;;  %3196 = vmatmul.bf16.gmra.mxu2 %v2873_v0  ;;  %v3995_v47 = vld [vmem:[#allocation3 + $0x68] sm:$0xff]  ;;  %v12609_v50 = vld [vmem:[#allocation59_spill] sm:$0xff] }
 0x317   :  { %7908 = vmatmul.msk.bf16.gmra.mxu3 %vm2736_vm8, %v2985_v26  ;;  %v5020_v25 = vunpack.c.l.b16 %v4091_v7  ;;  %v4027_v54 = vpack.c.bf16 %v3995_v47, %v3995_v47  ;;  %v2698_v20 = vsel %vm2670_vm6, %v2663_v43, %v12609_v50  ;;  %v4907_v38 = vunpack.c.l.b16 %v4026_v60  ;;  %v12614_v47 = vld [vmem:[#allocation70_spill] sm:$0xff]  ;;  %v10069_v22 = vpop.permute.xlu2 %4965  ;;  %v12617_v43 = vld [vmem:[#allocation76_spill] sm:$0xff] }
 0x318   :  { %v4797_v62 = vunpack.c.l.b16 %v3963_v23  ;;  %v4798_v40 = vunpack.c.l.b16 %v3964_v28  ;;  %v3475_v24 = vsel %vm3315_vm14, %v3249_v58, %v7923_v6  ;;  %v12610_v58 = vld [vmem:[#allocation73_spill] sm:$0xff]  ;;  %v12613_v28 = vld [vmem:[#allocation78_spill] sm:$0xff]  ;;  %vm6152_vm14 = vcmask 588800  }
 0x319   :  { %v3502_v45 = vpack.c.bf16 %v3475_v24, %v3474_v1  ;;  %v5048_v4 = vpack.c.b16 %v5020_v25, %v5019_v18  ;;  %v2731_v31 = vsel %vm2703_vm7, %v2698_v20, %v12610_v58  ;;  %v4908_v63 = vunpack.c.l.b16 %v4027_v54  ;;  %v12612_v23 = vld [vmem:[#allocation77_spill] sm:$0xff]  ;;  %v10058_v6 = vpop.permute.xlu1 %4853  ;;  %v10065_v25 = vpop.permute.xlu0 %4857  ;;  %v12618_v24 = vld [vmem:[#allocation88_spill] sm:$0xff]  ;;  %v12620_v60 = vld [vmem:[#allocation50_spill] sm:$0xff] }
 0x31a   :  { %v4825_v55 = vpack.c.b16 %v4798_v40, %v4797_v62  ;;  %v2764_v0 = vsel %vm2736_vm8, %v2731_v31, %v12611_v27  ;;  %v2919_v26 = vsel %vm471_vm2, %v12613_v28, %v12612_v23  ;;  %12615 = vst [vmem:[#allocation45_spill] sm:$0xff] %v10065_v25  ;;  %v12616_v62 = vld [vmem:[#allocation86_spill] sm:$0xff]  ;;  %v12619_v54 = vld [vmem:[#allocation69_spill] sm:$0xff]  ;;  %v12621_v20 = vld [vmem:[#allocation71_spill] sm:$0xff]  ;;  %v3164_v23 = vpop.f32.mrf.mxu2 }
 0x31b   :  { %5067 = vrot.lane.b32.xlu1 %v5048_v4, %s8195_s15  ;;  %4733 = vrot.lane.b32.xlu2 %v5048_v4, %s8201_s8  ;;  %v10053_v7 = vpack.c.b16 %v4908_v63, %v4907_v38  ;;  %v2797_v18 = vsel %vm2769_vm9, %v2764_v0, %v12614_v47  ;;  %v2955_v1 = vsel %vm2670_vm6, %v2919_v26, %v12617_v43  ;;  %v12622_v31 = vld [vmem:[#allocation87_spill] sm:$0xff]  ;;  %v12623_v27 = vld [vmem:[#allocation80_spill] sm:$0xff]  ;;  %v12625_v43 = vld [vmem:[#allocation89_spill] sm:$0xff] }
 0x31c   :  { %4845 = vrot.lane.b32.xlu0 %v4825_v55, %s8194_s4  ;;  %7954 = vmatmul.msk.bf16.gmra.mxu0 %vm471_vm2, %v3502_v45  ;;  %v2830_v40 = vsel %vm2802_vm10, %v2797_v18, %v12616_v62  ;;  %v2987_v45 = vsel %vm2703_vm7, %v2955_v1, %v9885_v13  ;;  %v2666_v50 = vsel %vm471_vm2, %v12620_v60, %v12619_v54  ;;  %v12624_v47 = vld [vmem:[#allocation84_spill] sm:$0xff]  ;;  %v12626_v1 = vld [vmem:[#allocation79_spill] sm:$0xff]  ;;  %v12627_v60 = vld [vmem:[#allocation13_spill] sm:$0xff] }
 0x31d   :  { %v2876_v57 = vsel %vm2835_vm11, %v2830_v40, %v12618_v24  ;;  %v2700_v58 = vsel %vm2670_vm6, %v2666_v50, %v12621_v20  ;;  %v3163_v26 = vadd.f32 %v9869_v41, %v3162_v33  ;;  %v2922_v24 = vsel %vm471_vm2, %v12626_v1, %v12625_v43  ;;  %v12628_v20 = vld [vmem:[#allocation83_spill] sm:$0xff] }
 0x31e   :  { %v2733_v63 = vsel %vm2703_vm7, %v2700_v58, %v12622_v31  ;;  %v2957_v58 = vsel %vm2670_vm6, %v2922_v24, %v12628_v20 }
 0x31f   :  { %v2766_v0 = vsel %vm2736_vm8, %v2733_v63, %v12623_v27  ;;  %v10097_v28 = vpop.permute.xlu2 %5063  ;;  %v1112_v27 = vld [vmem:[#allocation2 + $0x1b2] sm:$0xff] }
 0x320   :  { %v2799_v18 = vsel %vm2769_vm9, %v2766_v0, %v12624_v47  ;;  %v1113_v0 = vld [vmem:[#allocation2 + $0x1ba] sm:$0xff] }
 0x321   :  { %v10091_v13 = vpop.permute.xlu1 %4951  ;;  %v10093_v38 = vpop.permute.xlu0 %4949 }
 0x322   :  { %v10120_v63 = vpop.f32.mrf.mxu2 }
 0x323   :  { %5513 = vrot.lane.b32.xlu1 %v4825_v55, %s8197_s28  ;;  %5179 = vrot.lane.b32.xlu2 %v4825_v55, %s8203_s1 }
 0x324   :  { %4955 = vrot.lane.b32.xlu0 %v10053_v7, %s8202_s30 }
 0x326   :  { %3201 = vmatmul.bf16.gmra.mxu2 %v2876_v57  ;;  %v2832_v57 = vsel %vm2802_vm10, %v2799_v18, %v9793_v17  ;;  %v2989_v17 = vsel %vm2703_vm7, %v2957_v58, %v9927_v29  ;;  %v12632_v58 = vld [vmem:[#allocation61_spill] sm:$0xff] }
 0x327   :  { %7909 = vmatmul.msk.bf16.gmra.mxu3 %vm2736_vm8, %v2987_v45  ;;  %v2879_v31 = vsel %vm2835_vm11, %v2832_v57, %v9774_v51  ;;  %v10129_v47 = vpop.permute.xlu2 %5173  ;;  %v12630_v57 = vld [vmem:[#allocation15_spill] sm:$0xff] }
 0x32b   :  { %5623 = vrot.lane.b32.xlu1 %v10053_v7, %s8205_s22  ;;  %5289 = vrot.lane.b32.xlu2 %v10053_v7, %s8196_s20 }
 0x32c   :  { %5401 = vrot.lane.b32.xlu0 %v5048_v4, %s8204_s16 }
 0x331   :  { %v3251_v62 = vpop.f32.mrf.mxu3  ;;  %v3593_v40 = vpop.f32.mrf.mxu0 }
 0x332   :  { %v10107_v45 = vadd.f32 %v3251_v62, %v3163_v26  ;;  %v3594_v54 = vadd.f32 %v9862_v44, %v3593_v40  ;;  %v3165_v26 = vadd.f32 %v9869_v41, %v3164_v23  ;;  %v1144_v62 = vpack.c.bf16 %v1112_v27, %v1112_v27  ;;  %v12631_v23 = vld [vmem:[#allocation82_spill] sm:$0xff]  ;;  %v10139_v27 = vpop.f32.mrf.mxu2 }
 0x333   :  { %5735 = vrot.lane.b32.xlu2 %v5048_v4, %s8198_s18  ;;  %v10126_v4 = vpop.permute.xlu0 %4967  ;;  %v1145_v40 = vpack.c.bf16 %v1113_v0, %v1113_v0 }
 0x334   :  { %5847 = vrot.lane.b32.xlu0 %v4825_v55, %s8206_s3  ;;  %v3348_v33 = vmin.f32 %v10107_v45, 0.0  ;;  %v3667_v50 = vadd.f32 %v3594_v54, %v12627_v60  ;;  %v10123_v55 = vpop.permute.xlu1 %5061  ;;  %12629 = vst [vmem:[#allocation46_spill] sm:$0xff] %v10126_v4  ;;  %v2264_v60 = vunpack.c.l.b16 %v1144_v62  ;;  %vm3316_vm15 = vcmp.gt.f32.partialorder %v10107_v45, 0.0 }
 0x336   :  { %3767 = vst.msk [vmem:[#allocation3 + $0x79] sm:$0xff] %vm329_vm5, %v3667_v50  ;;  %3206 = vmatmul.bf16.gmra.mxu2 %v2879_v31  ;;  %v3390_v51 = vmul.f32 1.442695, %v3348_v33  ;;  %v2265_v50 = vunpack.c.l.b16 %v1145_v40  ;;  %v2669_v33 = vsel %vm471_vm2, %v12632_v58, %v12631_v23  ;;  %v12633_v31 = vld [vmem:[#allocation85_spill] sm:$0xff] }
 0x337   :  { %7910 = vmatmul.msk.bf16.gmra.mxu3 %vm2736_vm8, %v2989_v17  ;;  %v2702_v17 = vsel %vm2670_vm6, %v2669_v33, %v12633_v31 }
 0x338   :  { %8085 = vpow2.f32 %v3390_v51  ;;  %v1114_v51 = vld [vmem:[#allocation2 + $0x1ca] sm:$0xff] }
 0x339   :  { %v3253_v18 = vpop.f32.mrf.mxu3  ;;  %v3595_v29 = vpop.f32.mrf.mxu0  ;;  %v1146_v23 = vpack.c.bf16 %v1114_v51, %v1114_v51 }
 0x33a   :  { %v3254_v43 = vadd.f32 %v3253_v18, %v3165_v26  ;;  %v3596_v1 = vadd.f32 %v9862_v44, %v3595_v29  ;;  %v2735_v26 = vsel %vm2703_vm7, %v2702_v17, %v9750_v5 }
 0x33b   :  { %v10145_v18 = vpop.permute.xlu0 %5077  ;;  %v2768_v40 = vsel %vm2736_vm8, %v2735_v26, %v9758_v39 }
 0x33c   :  { %v3349_v24 = vmin.f32 %v3254_v43, 0.0  ;;  %v3668_v54 = vadd.f32 %v3596_v1, %v12630_v57  ;;  %v10141_v0 = vpop.permute.xlu1 %5079  ;;  %v2283_v1 = vpack.c.b16 %v2265_v50, %v2264_v60  ;;  %v10149_v57 = vpop.permute.xlu2 %5191  ;;  %vm3317_vm0 = vcmp.gt.f32.partialorder %v3254_v43, 0.0 }
 0x33d   :  { %12634 = vst [vmem:[#allocation47_spill] sm:$0xff] %v10141_v0  ;;  %v4060_v29 = vld [vmem:[#allocation3 + $0x79] sm:$0xff] }
 0x33e   :  { %v3392_v20 = vmul.f32 1.442695, %v3349_v24  ;;  %3768 = vst.msk [vmem:[#allocation3 + $0x81] sm:$0xff] %vm329_vm5, %v3668_v54  ;;  %v8086_v62 = vpop.eup %8085  ;;  %v1115_v24 = vld [vmem:[#allocation2 + $0x1d2] sm:$0xff]  ;;  %v2801_v54 = vsel %vm2769_vm9, %v2768_v40, %v9779_v19  ;;  %v4092_v58 = vpack.c.bf16 %v4060_v29, %v4060_v29 }
 0x33f   :  { %12635 = vst [vmem:[#allocation39_spill] sm:$0xff] %v10149_v57  ;;  %v2834_v5 = vsel %vm2802_vm10, %v2801_v54, %v9837_v8  ;;  %v1147_v31 = vpack.c.bf16 %v1115_v24, %v1115_v24  ;;  %v7924_v39 = vadd.f32 -1.0, %v8086_v62 }
 0x340   :  { %8087 = vpow2.f32 %v3392_v20  ;;  %v2925_v20 = vsel %vm471_vm2, %v2283_v1, %v9791_v49  ;;  %v2882_v60 = vsel %vm2835_vm11, %v2834_v5, %v9827_v12  ;;  %v5021_v12 = vunpack.c.l.b16 %v4092_v58 }
 0x341   :  { %v2959_v33 = vsel %vm2670_vm6, %v2925_v20, %v9777_v11  ;;  %v2266_v20 = vunpack.c.l.b16 %v1146_v23 }
 0x342   :  { %v2991_v49 = vsel %vm2703_vm7, %v2959_v33, %v9915_v56  ;;  %v3476_v56 = vsel %vm3316_vm15, %v10107_v45, %v7924_v39  ;;  %v2267_v33 = vunpack.c.l.b16 %v1147_v31  ;;  %v8040_v45 = vld [vmem:[%s12437_s10 + $0x28] sm:$0xff] }
 0x343   :  { %6332 = vmatpush.bf16.msrb.mxu1 %v8040_v45  ;;  %v3170_v45 = vadd.f32 %v9869_v41, %v10139_v27 }
 0x344   :  { %v2284_v23 = vpack.c.b16 %v2267_v33, %v2266_v20  ;;  %v8038_v20 = vld [vmem:[%s12437_s10 + $0x18] sm:$0xff] }
 0x345   :  { %v4061_v50 = vld [vmem:[#allocation3 + $0x81] sm:$0xff] }
 0x346   :  { %v3933_v17 = vld [vmem:[#allocation3 + $0x7a] sm:$0xff]  ;;  %v3934_v26 = vld [vmem:[#allocation3 + $0x82] sm:$0xff]  ;;  %v8088_v19 = vpop.eup %8087  ;;  %3211 = vmatmul.bf16.gmra.mxu2 %v2882_v60  ;;  %v4093_v40 = vpack.c.bf16 %v4061_v50, %v4061_v50  ;;  %v2928_v39 = vsel %vm471_vm2, %v2284_v23, %v9857_v36 }
 0x347   :  { %v3965_v8 = vpack.c.bf16 %v3933_v17, %v3933_v17  ;;  %v3966_v51 = vpack.c.bf16 %v3934_v26, %v3934_v26  ;;  %v7925_v11 = vadd.f32 -1.0, %v8088_v19  ;;  %7911 = vmatmul.msk.bf16.gmra.mxu3 %vm2736_vm8, %v2991_v49  ;;  %v3997_v54 = vld [vmem:[#allocation3 + $0x80] sm:$0xff]  ;;  %v10172_v26 = vpop.permute.xlu1 %5189  ;;  %v3996_v19 = vld [vmem:[#allocation3 + $0x78] sm:$0xff]  ;;  %v10174_v49 = vpop.permute.xlu0 %5175 }
 0x348   :  { %v10165_v29 = vpop.f32.mrf.mxu2  ;;  %v5022_v62 = vunpack.c.l.b16 %v4093_v40  ;;  %v4029_v58 = vpack.c.bf16 %v3997_v54, %v3997_v54  ;;  %v10176_v40 = vpop.permute.xlu2 %5301 }
 0x349   :  { %v4799_v1 = vunpack.c.l.b16 %v3965_v8  ;;  %v4800_v24 = vunpack.c.l.b16 %v3966_v51  ;;  %v3477_v5 = vsel %vm3317_vm0, %v3254_v43, %v7925_v11  ;;  %v4028_v43 = vpack.c.bf16 %v3996_v19, %v3996_v19  ;;  %v8039_v51 = vld [vmem:[%s12437_s10 + $0x20] sm:$0xff]  ;;  %v3795_v19 = vld [vmem:[#allocation3] sm:$0xff] }
 0x34a   :  { %v3503_v60 = vpack.c.bf16 %v3477_v5, %v3476_v56  ;;  %v10168_v50 = vpack.c.b16 %v5022_v62, %v5021_v12  ;;  %v4910_v31 = vunpack.c.l.b16 %v4029_v58  ;;  %v3168_v11 = vadd.f32 %v9869_v41, %v10120_v63  ;;  %6333 = vmatpush.bf16.msrb.mxu1 %v8039_v51  ;;  %v3796_v58 = vld [vmem:[#allocation3 + $0x8] sm:$0xff]  ;;  %v8036_v51 = vld [vmem:[%s12437_s10 + $0x8] sm:$0xff] }
 0x34b   :  { %v10170_v17 = vpack.c.b16 %v4800_v24, %v4799_v1  ;;  %v4909_v12 = vunpack.c.l.b16 %v4028_v43  ;;  %v2961_v1 = vsel %vm2670_vm6, %v2928_v39, %v9844_v16  ;;  %v3827_v39 = vpack.c.bf16 %v3795_v19, %v3795_v19  ;;  %v8035_v19 = vld [vmem:[%s12437_s10] sm:$0xff] }
 0x34c   :  { %7955 = vmatmul.msk.bf16.gmra.mxu0 %vm471_vm2, %v3503_v60  ;;  %5069 = vrot.lane.b32.xlu2 %v10168_v50, %s8195_s15  ;;  %v2993_v5 = vsel %vm2703_vm7, %v2961_v1, %v9902_v34  ;;  %v8037_v60 = vld [vmem:[%s12437_s10 + $0x10] sm:$0xff]  ;;  %v3828_v34 = vpack.c.bf16 %v3796_v58, %v3796_v58  ;;  %v12636_v1 = vld [vmem:[#allocation81_spill] sm:$0xff]  ;;  %vm6217_vm0 = vcmask 719872  }
 0x34d   :  { %4847 = vrot.lane.b32.xlu1 %v10170_v17, %s8194_s4  ;;  %4735 = vrot.lane.b32.xlu0 %v10168_v50, %s8201_s8  ;;  %v10199_v54 = vpack.c.b16 %v4910_v31, %v4909_v12 }
 0x34e   :  { %6334 = vmatpush.bf16.msrb.mxu1 %v8038_v20  ;;  %v2931_v20 = vsel %vm471_vm2, %v12636_v1, %v9949_v21 }
 0x34f   :  { %v10203_v36 = vpop.permute.xlu1 %5397  ;;  %v10212_v16 = vpop.permute.xlu0 %5285 }
 0x350   :  { %v10190_v8 = vpop.f32.mrf.mxu2  ;;  %v10214_v63 = vpop.permute.xlu2 %5509 }
 0x352   :  { %v3256_v62 = vpop.f32.mrf.mxu3  ;;  %6335 = vmatpush.bf16.msrb.mxu1 %v8037_v60 }
 0x353   :  { %v3257_v24 = vadd.f32 %v3256_v62, %v3168_v11 }
 0x354   :  { %5515 = vrot.lane.b32.xlu2 %v10170_v17, %s8197_s28 }
 0x355   :  { %v3350_v56 = vmin.f32 %v3257_v24, 0.0  ;;  %4957 = vrot.lane.b32.xlu1 %v10199_v54, %s8202_s30  ;;  %5181 = vrot.lane.b32.xlu0 %v10170_v17, %s8203_s1  ;;  %vm3318_vm1 = vcmp.gt.f32.partialorder %v3257_v24, 0.0 }
 0x356   :  { %6336 = vmatpush.bf16.msrb.mxu1 %v8036_v51 }
 0x357   :  { %7912 = vmatmul.msk.bf16.gmra.mxu3 %vm2736_vm8, %v2993_v5  ;;  %v3394_v43 = vmul.f32 1.442695, %v3350_v56  ;;  %v10235_v27 = vpop.permute.xlu1 %5525  ;;  %v10237_v62 = vpop.permute.xlu0 %5413  ;;  %v4597_v56 = vunpack.c.l.b16 %v3827_v39  ;;  %v4598_v5 = vunpack.c.l.b16 %v3828_v34 }
 0x358   :  { %v10219_v33 = vpop.f32.mrf.mxu2  ;;  %v10242_v60 = vpop.permute.xlu2 %4843 }
 0x359   :  { %8089 = vpow2.f32 %v3394_v43  ;;  %v2963_v43 = vsel %vm2670_vm6, %v2931_v20, %v9925_v35  ;;  %v3173_v35 = vadd.f32 %v9869_v41, %v10165_v29 }
 0x35a   :  { %v3258_v23 = vpop.f32.mrf.mxu3  ;;  %6337 = vmatpush.bf16.msrb.mxu1 %v8035_v19  ;;  %v2995_v21 = vsel %vm2703_vm7, %v2963_v43, %v9953_v42 }
 0x35b   :  { %v3259_v31 = vadd.f32 %v3258_v23, %v3170_v45  ;;  %v4629_v23 = vpack.c.b16 %v4598_v5, %v4597_v56 }
 0x35c   :  { %5625 = vrot.lane.b32.xlu2 %v10199_v54, %s8205_s22 }
 0x35d   :  { %v3351_v11 = vmin.f32 %v3259_v31, 0.0  ;;  %5403 = vrot.lane.b32.xlu1 %v10168_v50, %s8204_s16  ;;  %5291 = vrot.lane.b32.xlu0 %v10199_v54, %s8196_s20  ;;  %v5879_v51 = vsel %vm329_vm5, %v4629_v23, %v9975_v59  ;;  %vm3319_vm3 = vcmp.gt.f32.partialorder %v3259_v31, 0.0  ;;  %v12637_v23 = vld [vmem:[#allocation21_spill] sm:$0xff] }
 0x35e   :  { %v5926_v59 = vsel %vm471_vm2, %v5879_v51, %v10012_v52  ;;  %v3175_v52 = vadd.f32 %v9869_v41, %v10190_v8 }
 0x35f   :  { %v3396_v12 = vmul.f32 1.442695, %v3351_v11  ;;  %v8090_v45 = vpop.eup %8089 }
 0x360   :  { %v10247_v58 = vpop.f32.mrf.mxu2  ;;  %v7926_v39 = vadd.f32 -1.0, %v8090_v45  ;;  %v10266_v42 = vpop.permute.xlu2 %4953 }
 0x361   :  { %8091 = vpow2.f32 %v3396_v12 }
 0x362   :  { %v3478_v1 = vsel %vm3318_vm1, %v3257_v24, %v7926_v39  ;;  %v5959_v24 = vsel %vm5957_vm4, %v5926_v59, %v10093_v38 }
 0x365   :  { %5849 = vrot.lane.b32.xlu1 %v10170_v17, %s8206_s3  ;;  %5737 = vrot.lane.b32.xlu0 %v10168_v50, %s8198_s18 }
 0x367   :  { %v8092_v34 = vpop.eup %8091  ;;  %7913 = vmatmul.msk.bf16.gmra.mxu3 %vm2736_vm8, %v2995_v21  ;;  %v10262_v12 = vpop.permute.xlu1 %4731 }
 0x368   :  { %v7927_v11 = vadd.f32 -1.0, %v8092_v34  ;;  %v10264_v17 = vpop.permute.xlu0 %5065  ;;  %v3261_v50 = vpop.f32.mrf.mxu3  ;;  %v5991_v34 = vsel %vm2670_vm6, %v5959_v24, %v10123_v55 }
 0x369   :  { %v3262_v56 = vadd.f32 %v3261_v50, %v3173_v35  ;;  %v10271_v45 = vpop.f32.mrf.mxu2 }
 0x36a   :  { %v3479_v20 = vsel %vm3319_vm3, %v3259_v31, %v7927_v11  ;;  %v3598_v5 = vpop.f32.mrf.mxu0 }
 0x36b   :  { %v3504_v19 = vpack.c.bf16 %v3479_v20, %v3478_v1  ;;  %v3599_v29 = vadd.f32 %v9862_v44, %v3598_v5  ;;  %v3352_v43 = vmin.f32 %v3262_v56, 0.0  ;;  %v6024_v1 = vsel %vm6022_vm12, %v5991_v34, %v10129_v47  ;;  %v10289_v20 = vpop.permute.xlu2 %5399  ;;  %v12638_v5 = vld [vmem:[#allocation22_spill] sm:$0xff] }
 0x36c   :  { %v3178_v47 = vadd.f32 %v9869_v41, %v10219_v33  ;;  %v3180_v33 = vadd.f32 %v9869_v41, %v10247_v58  ;;  %vm3320_vm15 = vcmp.gt.f32.partialorder %v3262_v56, 0.0 }
 0x36d   :  { %v3669_v21 = vadd.f32 %v3599_v29, %v12637_v23  ;;  %7956 = vmatmul.msk.bf16.gmra.mxu0 %vm471_vm2, %v3504_v19  ;;  %v3398_v31 = vmul.f32 1.442695, %v3352_v43  ;;  %v6056_v29 = vsel %vm2703_vm7, %v6024_v1, %v10212_v16 }
 0x36f   :  { %3769 = vst.msk [vmem:[#allocation3 + $0x91] sm:$0xff] %vm329_vm5, %v3669_v21  ;;  %v10280_v39 = vpop.permute.xlu1 %5177  ;;  %8093 = vpow2.f32 %v3398_v31  ;;  %v6089_v21 = vsel %vm6087_vm13, %v6056_v29, %v10203_v36 }
 0x370   :  { %v3263_v51 = vpop.f32.mrf.mxu3  ;;  %v10284_v50 = vpop.permute.xlu0 %5511 }
 0x371   :  { %v3264_v35 = vadd.f32 %v3263_v51, %v3175_v52  ;;  %v10292_v19 = vpop.f32.mrf.mxu2  ;;  %v6121_v51 = vsel %vm2736_vm8, %v6089_v21, %v10214_v63 }
 0x372   :  { %v3600_v11 = vpop.f32.mrf.mxu0 }
 0x373   :  { %v3601_v38 = vadd.f32 %v9862_v44, %v3600_v11  ;;  %v3353_v8 = vmin.f32 %v3264_v35, 0.0  ;;  %v5846_v1 = vpop.permute.xlu2 %5845  ;;  %vm3321_vm1 = vcmp.gt.f32.partialorder %v3264_v35, 0.0 }
 0x375   :  { %v3670_v59 = vadd.f32 %v3601_v38, %v12638_v5  ;;  %v3400_v55 = vmul.f32 1.442695, %v3353_v8  ;;  %v8094_v44 = vpop.eup %8093 }
 0x376   :  { %v4062_v23 = vld [vmem:[#allocation3 + $0x91] sm:$0xff]  ;;  %v7928_v52 = vadd.f32 -1.0, %v8094_v44 }
 0x377   :  { %3770 = vst.msk [vmem:[#allocation3 + $0x99] sm:$0xff] %vm329_vm5, %v3670_v59  ;;  %8095 = vpow2.f32 %v3400_v55  ;;  %v10297_v43 = vpop.permute.xlu1 %5287  ;;  %v4094_v34 = vpack.c.bf16 %v4062_v23, %v4062_v23 }
 0x378   :  { %v5622_v16 = vpop.permute.xlu0 %5621  ;;  %v3480_v44 = vsel %vm3320_vm15, %v3262_v56, %v7928_v52 }
 0x379   :  { %v10311_v63 = vpop.f32.mrf.mxu2  ;;  %v5023_v21 = vunpack.c.l.b16 %v4094_v34  ;;  %v3998_v34 = vld [vmem:[#allocation3 + $0x90] sm:$0xff] }
 0x37a   :  { %v3266_v24 = vpop.f32.mrf.mxu3 }
 0x37b   :  { %v10303_v31 = vadd.f32 %v3266_v24, %v3178_v47  ;;  %v6154_v47 = vsel %vm6152_vm14, %v6121_v51, %v5622_v16 }
 0x37d   :  { %v3354_v11 = vmin.f32 %v10303_v31, 0.0  ;;  %v8096_v38 = vpop.eup %8095  ;;  %vm3322_vm3 = vcmp.gt.f32.partialorder %v10303_v31, 0.0 }
 0x37e   :  { %v4063_v36 = vld [vmem:[#allocation3 + $0x99] sm:$0xff]  ;;  %v7929_v59 = vadd.f32 -1.0, %v8096_v38 }
 0x37f   :  { %v3935_v8 = vld [vmem:[#allocation3 + $0x92] sm:$0xff]  ;;  %v3936_v5 = vld [vmem:[#allocation3 + $0x9a] sm:$0xff]  ;;  %v4095_v55 = vpack.c.bf16 %v4063_v36, %v4063_v36  ;;  %v5734_v23 = vpop.permute.xlu1 %5733  ;;  %v3402_v58 = vmul.f32 1.442695, %v3354_v11 }
 0x380   :  { %v3967_v29 = vpack.c.bf16 %v3935_v8, %v3935_v8  ;;  %v3968_v24 = vpack.c.bf16 %v3936_v5, %v3936_v5  ;;  %v3481_v25 = vsel %vm3321_vm1, %v3264_v35, %v7929_v59  ;;  %v6186_v46 = vsel %vm2769_vm9, %v6154_v47, %v5734_v23  ;;  %v3999_v36 = vld [vmem:[#allocation3 + $0x98] sm:$0xff] }
 0x381   :  { %v5024_v37 = vunpack.c.l.b16 %v4095_v55  ;;  %v3505_v57 = vpack.c.bf16 %v3481_v25, %v3480_v44  ;;  %v6219_v4 = vsel %vm6217_vm0, %v6186_v46, %v5846_v1  ;;  %8097 = vpow2.f32 %v3402_v58  ;;  %v10331_v51 = vpop.f32.mrf.mxu2 }
 0x382   :  { %v3268_v0 = vpop.f32.mrf.mxu3  ;;  %v4801_v38 = vunpack.c.l.b16 %v3967_v29  ;;  %7990 = vmatmul.msk.bf16.vlgmr.msrb.gmra.mxu1 %vm2802_vm10, %v6219_v4  ;;  %v4802_v52 = vunpack.c.l.b16 %v3968_v24  ;;  %v4031_v46 = vpack.c.bf16 %v3999_v36, %v3999_v36  ;;  %v5882_v59 = vsel %vm329_vm5, %v9752_v32, %v9951_v53 }
 0x383   :  { %v3269_v8 = vadd.f32 %v3268_v0, %v3180_v33  ;;  %v10316_v56 = vpack.c.b16 %v5024_v37, %v5023_v21  ;;  %7957 = vmatmul.msk.bf16.gmra.mxu0 %vm471_vm2, %v3505_v57  ;;  %v10325_v0 = vpop.permute.xlu2 %4733  ;;  %v4030_v37 = vpack.c.bf16 %v3998_v34, %v3998_v34  ;;  %v3183_v57 = vadd.f32 %v9869_v41, %v10271_v45 }
 0x384   :  { %v10321_v25 = vpack.c.b16 %v4802_v52, %v4801_v38  ;;  %v4912_v16 = vunpack.c.l.b16 %v4031_v46  ;;  %v5928_v21 = vsel %vm471_vm2, %v5882_v59, %v10039_v15  ;;  %v3185_v24 = vadd.f32 %v9869_v41, %v10292_v19 }
 0x385   :  { %v3355_v35 = vmin.f32 %v3269_v8, 0.0  ;;  %5071 = vrot.lane.b32.xlu0 %v10316_v56, %s8195_s15  ;;  %4737 = vrot.lane.b32.xlu1 %v10316_v56, %s8201_s8  ;;  %v4911_v5 = vunpack.c.l.b16 %v4030_v37  ;;  %vm3323_vm15 = vcmp.gt.f32.partialorder %v3269_v8, 0.0  ;;  %v5961_v38 = vsel %vm5957_vm4, %v5928_v21, %v10091_v13 }
 0x386   :  { %4849 = vrot.lane.b32.xlu2 %v10321_v25, %s8194_s4 }
 0x387   :  { %v3404_v4 = vmul.f32 1.442695, %v3355_v35  ;;  %v8098_v33 = vpop.eup %8097  ;;  %v10345_v45 = vpack.c.b16 %v4912_v16, %v4911_v5 }
 0x388   :  { %v7930_v47 = vadd.f32 -1.0, %v8098_v33  ;;  %v10388_v33 = vld [vmem:[%s12436_s9] ss:$0 sm:$0xff] }
 0x389   :  { %8099 = vpow2.f32 %v3404_v4  ;;  %v3192_v46 = vpop.f32.mrf.mxu2  ;;  %v5993_v4 = vsel %vm2670_vm6, %v5961_v38, %v10097_v28 }
 0x38a   :  { %v3271_v11 = vpop.f32.mrf.mxu3  ;;  %v3482_v36 = vsel %vm3322_vm3, %v10303_v31, %v7930_v47  ;;  %v6026_v28 = vsel %vm6022_vm12, %v5993_v4, %v10174_v49  ;;  %v10379_v31 = vld [vmem:[%s12434_s7] ss:$0 sm:$0xff]  ;;  %v12639_v47 = vld [vmem:[#allocation30_spill] sm:$0xff] }
 0x38b   :  { %v10333_v1 = vadd.f32 %v3271_v11, %v3183_v57  ;;  %v10353_v32 = vpop.permute.xlu2 %5179  ;;  %v6058_v59 = vsel %vm2703_vm7, %v6026_v28, %v10297_v43 }
 0x38d   :  { %v3356_v55 = vmin.f32 %v10333_v1, 0.0  ;;  %v10341_v44 = vpop.permute.xlu1 %5067  ;;  %5517 = vrot.lane.b32.xlu0 %v10321_v25, %s8197_s28  ;;  %5183 = vrot.lane.b32.xlu1 %v10321_v25, %s8203_s1  ;;  %vm3324_vm1 = vcmp.gt.f32.partialorder %v10333_v1, 0.0 }
 0x38e   :  { %v10339_v29 = vpop.permute.xlu0 %4845  ;;  %4959 = vrot.lane.b32.xlu2 %v10345_v45, %s8202_s30 }
 0x38f   :  { %v8100_v23 = vpop.eup %8099  ;;  %v3406_v58 = vmul.f32 1.442695, %v3356_v55 }
 0x390   :  { %v7931_v53 = vadd.f32 -1.0, %v8100_v23 }
 0x391   :  { %8101 = vpow2.f32 %v3406_v58  ;;  %v3194_v58 = vpop.f32.mrf.mxu2 }
 0x392   :  { %v3483_v52 = vsel %vm3323_vm15, %v3269_v8, %v7931_v53  ;;  %v3273_v15 = vpop.f32.mrf.mxu3  ;;  %v3188_v8 = vadd.f32 %v10379_v31, %v10311_v63  ;;  %v6091_v53 = vsel %vm6087_vm13, %v6058_v59, %v10289_v20 }
 0x393   :  { %v3506_v34 = vpack.c.bf16 %v3483_v52, %v3482_v36  ;;  %v3274_v35 = vadd.f32 %v3273_v15, %v3185_v24  ;;  %v10383_v16 = vpop.permute.xlu2 %5289  ;;  %v3190_v15 = vadd.f32 %v10379_v31, %v10331_v51  ;;  %v6123_v20 = vsel %vm2736_vm8, %v6091_v53, %v10284_v50  ;;  %v12640_v51 = vld [vmem:[#allocation31_spill] sm:$0xff] }
 0x395   :  { %v3357_v37 = vmin.f32 %v3274_v35, 0.0  ;;  %7958 = vmatmul.msk.bf16.gmra.mxu0 %vm471_vm2, %v3506_v34  ;;  %v10366_v19 = vpop.permute.xlu1 %5513  ;;  %5627 = vrot.lane.b32.xlu0 %v10345_v45, %s8205_s22  ;;  %vm3325_vm3 = vcmp.gt.f32.partialorder %v3274_v35, 0.0 }
 0x396   :  { %v10364_v41 = vpop.permute.xlu0 %4955  ;;  %5293 = vrot.lane.b32.xlu1 %v10345_v45, %s8196_s20  ;;  %5405 = vrot.lane.b32.xlu2 %v10316_v56, %s8204_s16 }
 0x397   :  { %v3408_v13 = vmul.f32 1.442695, %v3357_v37  ;;  %v8102_v5 = vpop.eup %8101 }
 0x398   :  { %v7932_v24 = vadd.f32 -1.0, %v8102_v5 }
 0x399   :  { %8103 = vpow2.f32 %v3408_v13  ;;  %v3603_v57 = vpop.f32.mrf.mxu0  ;;  %v3197_v59 = vpop.f32.mrf.mxu2 }
 0x39a   :  { %v3276_v11 = vpop.f32.mrf.mxu3  ;;  %v3604_v49 = vadd.f32 %v10388_v33, %v3603_v57  ;;  %v3484_v4 = vsel %vm3324_vm1, %v10333_v1, %v7932_v24 }
 0x39b   :  { %v10393_v55 = vadd.f32 %v3276_v11, %v3188_v8  ;;  %v5736_v57 = vpop.permute.xlu2 %5735 }
 0x39c   :  { %v3671_v63 = vadd.f32 %v3604_v49, %v12639_v47 }
 0x39d   :  { %v3358_v23 = vmin.f32 %v10393_v55, 0.0  ;;  %v5624_v43 = vpop.permute.xlu1 %5623  ;;  %vm3326_vm15 = vcmp.gt.f32.partialorder %v10393_v55, 0.0 }
 0x39e   :  { %v10397_v21 = vpop.permute.xlu0 %5401  ;;  %3771 = vst.msk [vmem:[#allocation3 + $0xa9] sm:$0xff] %vm329_vm5, %v3671_v63  ;;  %5739 = vrot.lane.b32.xlu1 %v10316_v56, %s8198_s18  ;;  %5851 = vrot.lane.b32.xlu2 %v10321_v25, %s8206_s3  ;;  %v6156_v37 = vsel %vm6152_vm14, %v6123_v20, %v5624_v43  ;;  %v3193_v63 = vadd.f32 %v10379_v31, %v3192_v46 }
 0x39f   :  { %v8104_v38 = vpop.eup %8103  ;;  %v3410_v52 = vmul.f32 1.442695, %v3358_v23  ;;  %v6188_v50 = vsel %vm2769_vm9, %v6156_v37, %v5736_v57 }
 0x3a0   :  { %v7933_v36 = vadd.f32 -1.0, %v8104_v38 }
 0x3a1   :  { %v3605_v34 = vpop.f32.mrf.mxu0  ;;  %8105 = vpow2.f32 %v3410_v52 }
 0x3a2   :  { %v3485_v56 = vsel %vm3325_vm3, %v3274_v35, %v7933_v36  ;;  %v3278_v13 = vpop.f32.mrf.mxu3  ;;  %v3606_v25 = vadd.f32 %v10388_v33, %v3605_v34 }
 0x3a3   :  { %v3507_v28 = vpack.c.bf16 %v3485_v56, %v3484_v4  ;;  %v3279_v8 = vadd.f32 %v3278_v13, %v3190_v15 }
 0x3a4   :  { %v3672_v11 = vadd.f32 %v3606_v25, %v12640_v51 }
 0x3a5   :  { %v3359_v49 = vmin.f32 %v3279_v8, 0.0  ;;  %7959 = vmatmul.msk.bf16.gmra.mxu0 %vm471_vm2, %v3507_v28  ;;  %v3873_v47 = vld [vmem:[#allocation3 + $0xa9] sm:$0xff]  ;;  %vm3327_vm1 = vcmp.gt.f32.partialorder %v3279_v8, 0.0 }
 0x3a6   :  { %v5848_v5 = vpop.permute.xlu0 %5847  ;;  %3772 = vst.msk [vmem:[#allocation3 + $0xb1] sm:$0xff] %vm329_vm5, %v3672_v11  ;;  %v3905_v38 = vpack.c.bf16 %v3873_v47, %v3873_v47  ;;  %v3195_v11 = vadd.f32 %v10379_v31, %v3194_v58 }
 0x3a7   :  { %v6221_v1 = vsel %vm6217_vm0, %v6188_v50, %v5848_v5  ;;  %v3412_v35 = vmul.f32 1.442695, %v3359_v49  ;;  %v8106_v23 = vpop.eup %8105  ;;  %v4000_v50 = vld [vmem:[#allocation3 + $0xa8] sm:$0xff] }
 0x3a8   :  { %7991 = vmatmul.msk.bf16.gmra.mxu1 %vm2802_vm10, %v6221_v1  ;;  %v7934_v43 = vadd.f32 -1.0, %v8106_v23  ;;  %v4691_v13 = vunpack.c.l.b16 %v3905_v38  ;;  %v3199_v1 = vpop.f32.mrf.mxu2 }
 0x3a9   :  { %8107 = vpow2.f32 %v3412_v35 }
 0x3aa   :  { %v3281_v53 = vpop.f32.mrf.mxu3  ;;  %v3486_v49 = vsel %vm3326_vm15, %v10393_v55, %v7934_v43 }
 0x3ab   :  { %v10421_v24 = vadd.f32 %v3281_v53, %v3193_v63 }
 0x3ad   :  { %v3360_v36 = vmin.f32 %v10421_v24, 0.0  ;;  %v3937_v52 = vld [vmem:[#allocation3 + $0xaa] sm:$0xff]  ;;  %v3938_v15 = vld [vmem:[#allocation3 + $0xb2] sm:$0xff]  ;;  %vm3328_vm3 = vcmp.gt.f32.partialorder %v10421_v24, 0.0 }
 0x3ae   :  { %v3874_v20 = vld [vmem:[#allocation3 + $0xb1] sm:$0xff]  ;;  %v3969_v34 = vpack.c.bf16 %v3937_v52, %v3937_v52  ;;  %v3970_v4 = vpack.c.bf16 %v3938_v15, %v3938_v15  ;;  %v4032_v15 = vpack.c.bf16 %v4000_v50, %v4000_v50 }
 0x3af   :  { %v3906_v56 = vpack.c.bf16 %v3874_v20, %v3874_v20  ;;  %v8108_v37 = vpop.eup %8107  ;;  %v4001_v46 = vld [vmem:[#allocation3 + $0xb0] sm:$0xff]  ;;  %v3414_v5 = vmul.f32 1.442695, %v3360_v36  ;;  %v3198_v36 = vadd.f32 %v10379_v31, %v3197_v59 }
 0x3b0   :  { %v7935_v25 = vadd.f32 -1.0, %v8108_v37  ;;  %v4803_v28 = vunpack.c.l.b16 %v3969_v34  ;;  %v4804_v57 = vunpack.c.l.b16 %v3970_v4  ;;  %v4033_v53 = vpack.c.bf16 %v4001_v46, %v4001_v46  ;;  %v3202_v37 = vpop.f32.mrf.mxu2 }
 0x3b1   :  { %v4692_v51 = vunpack.c.l.b16 %v3906_v56  ;;  %8109 = vpow2.f32 %v3414_v5 }
 0x3b2   :  { %v3487_v35 = vsel %vm3327_vm1, %v3279_v8, %v7935_v25  ;;  %v3283_v47 = vpop.f32.mrf.mxu3  ;;  %v4828_v63 = vpack.c.b16 %v4804_v57, %v4803_v28  ;;  %v4914_v55 = vunpack.c.l.b16 %v4033_v53  ;;  %v4913_v8 = vunpack.c.l.b16 %v4032_v15  ;;  %v10442_v57 = vpop.permute.xlu2 %5069 }
 0x3b3   :  { %v4716_v23 = vpack.c.b16 %v4692_v51, %v4691_v13  ;;  %v3508_v52 = vpack.c.bf16 %v3487_v35, %v3486_v49  ;;  %v3284_v38 = vadd.f32 %v3283_v47, %v3195_v11  ;;  %v3200_v11 = vadd.f32 %v10379_v31, %v3199_v1 }
 0x3b4   :  { %4851 = vrot.lane.b32.xlu0 %v4828_v63, %s8194_s4  ;;  %v10432_v34 = vpack.c.b16 %v4914_v55, %v4913_v8  ;;  %v3203_v55 = vadd.f32 %v10379_v31, %v3202_v37 }
 0x3b5   :  { %4739 = vrot.lane.b32.xlu2 %v4716_v23, %s8201_s8  ;;  %v3361_v58 = vmin.f32 %v3284_v38, 0.0  ;;  %7960 = vmatmul.msk.bf16.gmra.mxu0 %vm471_vm2, %v3508_v52  ;;  %vm3329_vm15 = vcmp.gt.f32.partialorder %v3284_v38, 0.0 }
 0x3b6   :  { %5073 = vrot.lane.b32.xlu1 %v4716_v23, %s8195_s15 }
 0x3b7   :  { %v3416_v43 = vmul.f32 1.442695, %v3361_v58  ;;  %v8110_v4 = vpop.eup %8109 }
 0x3b8   :  { %v7936_v46 = vadd.f32 -1.0, %v8110_v4  ;;  %v3204_v1 = vpop.f32.mrf.mxu2 }
 0x3b9   :  { %8111 = vpow2.f32 %v3416_v43 }
 0x3ba   :  { %v3286_v20 = vpop.f32.mrf.mxu3  ;;  %v3488_v5 = vsel %vm3328_vm3, %v10421_v24, %v7936_v46  ;;  %v10461_v8 = vpop.permute.xlu2 %5515 }
 0x3bb   :  { %v3287_v56 = vadd.f32 %v3286_v20, %v3198_v36 }
 0x3bc   :  { %4961 = vrot.lane.b32.xlu0 %v10432_v34, %s8202_s30 }
 0x3bd   :  { %5185 = vrot.lane.b32.xlu2 %v4828_v63, %s8203_s1  ;;  %v3362_v13 = vmin.f32 %v3287_v56, 0.0  ;;  %vm3330_vm1 = vcmp.gt.f32.partialorder %v3287_v56, 0.0 }
 0x3be   :  { %5519 = vrot.lane.b32.xlu1 %v4828_v63, %s8197_s28 }
 0x3bf   :  { %v8112_v25 = vpop.eup %8111  ;;  %v10438_v28 = vpop.permute.xlu0 %4735  ;;  %v3418_v49 = vmul.f32 1.442695, %v3362_v13 }
 0x3c0   :  { %v10440_v59 = vpop.permute.xlu1 %4847  ;;  %v7937_v51 = vadd.f32 -1.0, %v8112_v25  ;;  %v12641_v25 = vld [vmem:[#allocation33_spill] sm:$0xff] }
 0x3c1   :  { %8113 = vpow2.f32 %v3418_v49 }
 0x3c2   :  { %v3489_v50 = vsel %vm3329_vm15, %v3284_v38, %v7937_v51  ;;  %v3288_v35 = vpop.f32.mrf.mxu3  ;;  %v5885_v38 = vsel %vm329_vm5, %v9754_v48, %v9986_v10 }
 0x3c3   :  { %v3509_v47 = vpack.c.bf16 %v3489_v50, %v3488_v5  ;;  %v3289_v53 = vadd.f32 %v3288_v35, %v3200_v11  ;;  %v5930_v13 = vsel %vm471_vm2, %v5885_v38, %v10037_v9  ;;  %v3205_v35 = vadd.f32 %v10379_v31, %v3204_v1 }
 0x3c4   :  { %5407 = vrot.lane.b32.xlu0 %v4716_v23, %s8204_s16  ;;  %v5963_v10 = vsel %vm5957_vm4, %v5930_v13, %v10266_v42 }
 0x3c5   :  { %5295 = vrot.lane.b32.xlu2 %v10432_v34, %s8196_s20  ;;  %v3363_v52 = vmin.f32 %v3289_v53, 0.0  ;;  %7961 = vmatmul.msk.bf16.gmra.mxu0 %vm471_vm2, %v3509_v47  ;;  %v5995_v9 = vsel %vm2670_vm6, %v5963_v10, %v10264_v17  ;;  %vm3331_vm3 = vcmp.gt.f32.partialorder %v3289_v53, 0.0 }
 0x3c6   :  { %5629 = vrot.lane.b32.xlu1 %v10432_v34, %s8205_s22 }
 0x3c7   :  { %v3420_v15 = vmul.f32 1.442695, %v3363_v52  ;;  %v10453_v58 = vpop.permute.xlu0 %5181  ;;  %v8114_v4 = vpop.eup %8113 }
 0x3c8   :  { %v10455_v24 = vpop.permute.xlu1 %4957  ;;  %v7938_v37 = vadd.f32 -1.0, %v8114_v4  ;;  %v12642_v4 = vld [vmem:[#allocation34_spill] sm:$0xff] }
 0x3c9   :  { %8115 = vpow2.f32 %v3420_v15  ;;  %v3608_v43 = vpop.f32.mrf.mxu0 }
 0x3ca   :  { %v3291_v36 = vpop.f32.mrf.mxu3  ;;  %v3609_v20 = vadd.f32 %v10388_v33, %v3608_v43  ;;  %v3490_v15 = vsel %vm3330_vm1, %v3287_v56, %v7938_v37 }
 0x3cb   :  { %v10466_v46 = vadd.f32 %v3291_v36, %v3203_v55 }
 0x3cc   :  { %v3673_v51 = vadd.f32 %v3609_v20, %v12641_v25  ;;  %5853 = vrot.lane.b32.xlu0 %v4828_v63, %s8206_s3  ;;  %v6028_v63 = vsel %vm6022_vm12, %v5995_v9, %v10280_v39  ;;  %v5626_v20 = vpop.permute.xlu2 %5625 }
 0x3cd   :  { %5741 = vrot.lane.b32.xlu2 %v4716_v23, %s8198_s18  ;;  %v3364_v48 = vmin.f32 %v10466_v46, 0.0  ;;  %v3207_v23 = vpop.f32.mrf.mxu2  ;;  %v6060_v52 = vsel %vm2703_vm7, %v6028_v63, %v10383_v16  ;;  %vm3332_vm15 = vcmp.gt.f32.partialorder %v10466_v46, 0.0 }
 0x3ce   :  { %3773 = vst.msk [vmem:[#allocation3 + $0xc1] sm:$0xff] %vm329_vm5, %v3673_v51  ;;  %v6093_v43 = vsel %vm6087_vm13, %v6060_v52, %v10397_v21  ;;  %v3208_v10 = vadd.f32 %v10379_v31, %v3207_v23 }
 0x3cf   :  { %v8116_v11 = vpop.eup %8115  ;;  %v10477_v49 = vpop.permute.xlu0 %5291  ;;  %v3422_v42 = vmul.f32 1.442695, %v3364_v48  ;;  %v6125_v16 = vsel %vm2736_vm8, %v6093_v43, %v10366_v19 }
 0x3d0   :  { %v10479_v5 = vpop.permute.xlu1 %5403  ;;  %v7939_v50 = vadd.f32 -1.0, %v8116_v11  ;;  %v6158_v56 = vsel %vm6152_vm14, %v6125_v16, %v5626_v20 }
 0x3d1   :  { %v3610_v47 = vpop.f32.mrf.mxu0  ;;  %8117 = vpow2.f32 %v3422_v42 }
 0x3d2   :  { %v3491_v17 = vsel %vm3331_vm3, %v3289_v53, %v7939_v50  ;;  %v3293_v38 = vpop.f32.mrf.mxu3  ;;  %v3611_v55 = vadd.f32 %v10388_v33, %v3610_v47 }
 0x3d3   :  { %v3510_v39 = vpack.c.bf16 %v3491_v17, %v3490_v15  ;;  %v3294_v36 = vadd.f32 %v3293_v38, %v3205_v35 }
 0x3d4   :  { %v3674_v1 = vadd.f32 %v3611_v55, %v12642_v4 }
 0x3d5   :  { %v3365_v13 = vmin.f32 %v3294_v36, 0.0  ;;  %7962 = vmatmul.msk.bf16.gmra.mxu0 %vm471_vm2, %v3510_v39  ;;  %v4066_v48 = vld [vmem:[#allocation3 + $0xc1] sm:$0xff]  ;;  %v3209_v11 = vpop.f32.mrf.mxu2  ;;  %vm3333_vm1 = vcmp.gt.f32.partialorder %v3294_v36, 0.0 }
 0x3d6   :  { %3774 = vst.msk [vmem:[#allocation3 + $0xc9] sm:$0xff] %vm329_vm5, %v3674_v1  ;;  %v4002_v19 = vld [vmem:[#allocation3 + $0xc0] sm:$0xff]  ;;  %v4098_v35 = vpack.c.bf16 %v4066_v48, %v4066_v48  ;;  %v3210_v4 = vadd.f32 %v10379_v31, %v3209_v11 }
 0x3d7   :  { %v3424_v53 = vmul.f32 1.442695, %v3365_v13  ;;  %v5738_v25 = vpop.permute.xlu0 %5737  ;;  %v8118_v63 = vpop.eup %8117  ;;  %v4034_v17 = vpack.c.bf16 %v4002_v19, %v4002_v19 }
 0x3d8   :  { %v5850_v51 = vpop.permute.xlu1 %5849  ;;  %v6190_v21 = vsel %vm2769_vm9, %v6158_v56, %v5738_v25  ;;  %v7940_v38 = vadd.f32 -1.0, %v8118_v63  ;;  %v5027_v1 = vunpack.c.l.b16 %v4098_v35 }
 0x3d9   :  { %8119 = vpow2.f32 %v3424_v53  ;;  %v6223_v37 = vsel %vm6217_vm0, %v6190_v21, %v5850_v51  ;;  %v4915_v21 = vunpack.c.l.b16 %v4034_v17 }
 0x3da   :  { %v3296_v9 = vpop.f32.mrf.mxu3  ;;  %7992 = vmatmul.msk.bf16.gmra.mxu1 %vm2802_vm10, %v6223_v37 }
 0x3db   :  { %v10499_v50 = vadd.f32 %v3296_v9, %v3208_v10  ;;  %v3492_v10 = vsel %vm3332_vm15, %v10466_v46, %v7940_v38 }
 0x3dd   :  { %v3366_v42 = vmin.f32 %v10499_v50, 0.0  ;;  %v4130_v47 = vld [vmem:[#allocation3 + $0xc2] sm:$0xff]  ;;  %v4131_v52 = vld [vmem:[#allocation3 + $0xca] sm:$0xff]  ;;  %vm3334_vm3 = vcmp.gt.f32.partialorder %v10499_v50, 0.0 }
 0x3de   :  { %v4067_v15 = vld [vmem:[#allocation3 + $0xc9] sm:$0xff]  ;;  %v4162_v23 = vpack.c.bf16 %v4130_v47, %v4130_v47  ;;  %v4163_v55 = vpack.c.bf16 %v4131_v52, %v4131_v52 }
 0x3df   :  { %v4099_v43 = vpack.c.bf16 %v4067_v15, %v4067_v15  ;;  %v4003_v39 = vld [vmem:[#allocation3 + $0xc8] sm:$0xff]  ;;  %v8120_v20 = vpop.eup %8119  ;;  %v3426_v51 = vmul.f32 1.442695, %v3366_v42  ;;  %v3212_v15 = vpop.f32.mrf.mxu2 }
 0x3e0   :  { %v4035_v13 = vpack.c.bf16 %v4003_v39, %v4003_v39  ;;  %v7941_v16 = vadd.f32 -1.0, %v8120_v20  ;;  %v5139_v56 = vunpack.c.l.b16 %v4162_v23  ;;  %v5140_v53 = vunpack.c.l.b16 %v4163_v55  ;;  %v12643_v39 = vld [vmem:[#allocation36_spill] sm:$0xff] }
 0x3e1   :  { %v5028_v25 = vunpack.c.l.b16 %v4099_v43  ;;  %8121 = vpow2.f32 %v3426_v51  ;;  %v3213_v46 = vadd.f32 %v10379_v31, %v3212_v15  ;;  %v12644_v15 = vld [vmem:[#allocation37_spill] sm:$0xff] }
 0x3e2   :  { %v4916_v48 = vunpack.c.l.b16 %v4035_v13  ;;  %v3493_v37 = vsel %vm3333_vm1, %v3294_v36, %v7941_v16  ;;  %v3298_v9 = vpop.f32.mrf.mxu3  ;;  %v5164_v19 = vpack.c.b16 %v5140_v53, %v5139_v56 }
 0x3e3   :  { %v5052_v63 = vpack.c.b16 %v5028_v25, %v5027_v1  ;;  %v3511_v47 = vpack.c.bf16 %v3493_v37, %v3492_v10  ;;  %v3299_v11 = vadd.f32 %v3298_v9, %v3210_v4  ;;  %v10522_v10 = vpop.permute.xlu2 %4849 }
 0x3e4   :  { %v4940_v52 = vpack.c.b16 %v4916_v48, %v4915_v21  ;;  %5187 = vrot.lane.b32.xlu0 %v5164_v19, %s8203_s1 }
 0x3e5   :  { %5075 = vrot.lane.b32.xlu2 %v5052_v63, %s8195_s15  ;;  %v3367_v35 = vmin.f32 %v3299_v11, 0.0  ;;  %7963 = vmatmul.msk.bf16.gmra.mxu0 %vm471_vm2, %v3511_v47  ;;  %vm3335_vm15 = vcmp.gt.f32.partialorder %v3299_v11, 0.0 }
 0x3e6   :  { %4963 = vrot.lane.b32.xlu1 %v4940_v52, %s8202_s30 }
 0x3e7   :  { %v3428_v42 = vmul.f32 1.442695, %v3367_v35  ;;  %v8122_v38 = vpop.eup %8121  ;;  %v3214_v4 = vpop.f32.mrf.mxu2 }
 0x3e8   :  { %v7942_v1 = vadd.f32 -1.0, %v8122_v38  ;;  %v3215_v56 = vadd.f32 %v10379_v31, %v3214_v4 }
 0x3e9   :  { %8123 = vpow2.f32 %v3428_v42 }
 0x3ea   :  { %v3301_v36 = vpop.f32.mrf.mxu3  ;;  %v3613_v17 = vpop.f32.mrf.mxu0  ;;  %v3494_v25 = vsel %vm3334_vm3, %v10499_v50, %v7942_v1 }
 0x3eb   :  { %v10510_v23 = vadd.f32 %v3301_v36, %v3213_v46  ;;  %v3614_v55 = vadd.f32 %v10388_v33, %v3613_v17 }
 0x3ec   :  { %5297 = vrot.lane.b32.xlu0 %v4940_v52, %s8196_s20 }
 0x3ed   :  { %5521 = vrot.lane.b32.xlu2 %v5164_v19, %s8197_s28  ;;  %v3368_v43 = vmin.f32 %v10510_v23, 0.0  ;;  %v3675_v20 = vadd.f32 %v3614_v55, %v12643_v39  ;;  %vm3336_vm1 = vcmp.gt.f32.partialorder %v10510_v23, 0.0 }
 0x3ee   :  { %5409 = vrot.lane.b32.xlu1 %v5052_v63, %s8204_s16 }
 0x3ef   :  { %v8124_v13 = vpop.eup %8123  ;;  %3775 = vst.msk [vmem:[#allocation3 + $0xd9] sm:$0xff] %vm329_vm5, %v3675_v20  ;;  %v3430_v53 = vmul.f32 1.442695, %v3368_v43 }
 0x3f0   :  { %v7943_v16 = vadd.f32 -1.0, %v8124_v13 }
 0x3f1   :  { %8125 = vpow2.f32 %v3430_v53 }
 0x3f2   :  { %v3495_v51 = vsel %vm3335_vm15, %v3299_v11, %v7943_v16  ;;  %v3303_v21 = vpop.f32.mrf.mxu3  ;;  %v3615_v48 = vpop.f32.mrf.mxu0 }
 0x3f3   :  { %v3512_v37 = vpack.c.bf16 %v3495_v51, %v3494_v25  ;;  %v3304_v9 = vadd.f32 %v3303_v21, %v3215_v56  ;;  %v3616_v47 = vadd.f32 %v10388_v33, %v3615_v48 }
 0x3f4   :  { %5743 = vrot.lane.b32.xlu0 %v5052_v63, %s8198_s18  ;;  %v5888_v63 = vsel %vm329_vm5, %v9947_v30, %v10262_v12 }
 0x3f5   :  { %5631 = vrot.lane.b32.xlu2 %v4940_v52, %s8205_s22  ;;  %v3369_v31 = vmin.f32 %v3304_v9, 0.0  ;;  %v3676_v35 = vadd.f32 %v3616_v47, %v12644_v15  ;;  %7964 = vmatmul.msk.bf16.gmra.mxu0 %vm471_vm2, %v3512_v37  ;;  %v5932_v38 = vsel %vm471_vm2, %v5888_v63, %v10242_v60  ;;  %vm3337_vm3 = vcmp.gt.f32.partialorder %v3304_v9, 0.0 }
 0x3f6   :  { %5855 = vrot.lane.b32.xlu1 %v5164_v19, %s8206_s3  ;;  %v4259_v46 = vld [vmem:[#allocation3 + $0xd9] sm:$0xff]  ;;  %v10540_v19 = vpop.permute.xlu2 %4959  ;;  %v5965_v43 = vsel %vm5957_vm4, %v5932_v38, %v10364_v41  ;;  %v12645_v38 = vld [vmem:[#allocation40_spill] sm:$0xff] }
 0x3f7   :  { %v3432_v50 = vmul.f32 1.442695, %v3369_v31  ;;  %3776 = vst.msk [vmem:[#allocation3 + $0xe1] sm:$0xff] %vm329_vm5, %v3676_v35  ;;  %v10531_v11 = vpop.permute.xlu1 %4737  ;;  %v10533_v42 = vpop.permute.xlu0 %5071  ;;  %v4195_v52 = vld [vmem:[#allocation3 + $0xd8] sm:$0xff]  ;;  %v4291_v17 = vpack.c.bf16 %v4259_v46, %v4259_v46 }
 0x3f8   :  { %v8126_v36 = vpop.eup %8125  ;;  %v4227_v55 = vpack.c.bf16 %v4195_v52, %v4195_v52 }
 0x3f9   :  { %8127 = vpow2.f32 %v3432_v50  ;;  %v7944_v39 = vadd.f32 -1.0, %v8126_v36  ;;  %v5363_v25 = vunpack.c.l.b16 %v4291_v17 }
 0x3fa   :  { %v5251_v47 = vunpack.c.l.b16 %v4227_v55 }
 0x3fb   :  { %v3496_v31 = vsel %vm3336_vm1, %v10510_v23, %v7944_v39 }
 0x3fe   :  { %v4323_v20 = vld [vmem:[#allocation3 + $0xda] sm:$0xff]  ;;  %v4324_v4 = vld [vmem:[#allocation3 + $0xe2] sm:$0xff]  ;;  %v10559_v23 = vpop.permute.xlu2 %5405 }
 0x3ff   :  { %v4260_v1 = vld [vmem:[#allocation3 + $0xe1] sm:$0xff]  ;;  %v8128_v13 = vpop.eup %8127  ;;  %v10545_v30 = vpop.permute.xlu1 %5183  ;;  %v4355_v12 = vpack.c.bf16 %v4323_v20, %v4323_v20  ;;  %v4356_v16 = vpack.c.bf16 %v4324_v4, %v4324_v4  ;;  %v5997_v4 = vsel %vm2670_vm6, %v5965_v43, %v10341_v44 }
 0x400   :  { %v4292_v56 = vpack.c.bf16 %v4260_v1, %v4260_v1  ;;  %v4196_v53 = vld [vmem:[#allocation3 + $0xe0] sm:$0xff]  ;;  %v7945_v60 = vadd.f32 -1.0, %v8128_v13  ;;  %v3618_v21 = vpop.f32.mrf.mxu0  ;;  %v10549_v63 = vpop.permute.xlu0 %5517  ;;  %v12646_v13 = vld [vmem:[#allocation41_spill] sm:$0xff] }
 0x401   :  { %v4228_v51 = vpack.c.bf16 %v4196_v53, %v4196_v53  ;;  %v5475_v48 = vunpack.c.l.b16 %v4355_v12  ;;  %v5476_v41 = vunpack.c.l.b16 %v4356_v16  ;;  %v3619_v35 = vadd.f32 %v10388_v33, %v3618_v21 }
 0x402   :  { %v5364_v37 = vunpack.c.l.b16 %v4292_v56  ;;  %v3497_v15 = vsel %vm3337_vm3, %v3304_v9, %v7945_v60  ;;  %v6030_v9 = vsel %vm6022_vm12, %v5997_v4, %v10353_v32 }
 0x403   :  { %v5252_v50 = vunpack.c.l.b16 %v4228_v51  ;;  %v3513_v46 = vpack.c.bf16 %v3497_v15, %v3496_v31  ;;  %v5500_v52 = vpack.c.b16 %v5476_v41, %v5475_v48  ;;  %v3677_v20 = vadd.f32 %v3619_v35, %v12645_v38 }
 0x404   :  { %v5388_v36 = vpack.c.b16 %v5364_v37, %v5363_v25  ;;  %v6062_v44 = vsel %vm2703_vm7, %v6030_v9, %v10477_v49  ;;  %v12647_v37 = vld [vmem:[#allocation7_spill] sm:$0xff] }
 0x405   :  { %v5276_v17 = vpack.c.b16 %v5252_v50, %v5251_v47  ;;  %7965 = vmatmul.msk.bf16.gmra.mxu0 %vm471_vm2, %v3513_v46  ;;  %5523 = vrot.lane.b32.xlu0 %v5500_v52, %s8197_s28  ;;  %3777 = vst.msk [vmem:[#allocation3 + $0xf1] sm:$0xff] %vm329_vm5, %v3677_v20  ;;  %v6095_v1 = vsel %vm6087_vm13, %v6062_v44, %v10479_v5 }
 0x406   :  { %5411 = vrot.lane.b32.xlu2 %v5388_v36, %s8204_s16  ;;  %v6127_v32 = vsel %vm2736_vm8, %v6095_v1, %v10461_v8  ;;  %v5852_v53 = vpop.permute.xlu2 %5851 }
 0x407   :  { %5299 = vrot.lane.b32.xlu1 %v5276_v17, %s8196_s20 }
 0x408   :  { %v10563_v55 = vpop.permute.xlu1 %5293  ;;  %v3620_v43 = vpop.f32.mrf.mxu0 }
 0x409   :  { %v3621_v39 = vadd.f32 %v10388_v33, %v3620_v43  ;;  %v5628_v16 = vpop.permute.xlu0 %5627 }
 0x40a   :  { %v6160_v49 = vsel %vm6152_vm14, %v6127_v32, %v5628_v16  ;;  %v12648_v32 = vld [vmem:[#allocation8_spill] sm:$0xff] }
 0x40b   :  { %v3678_v12 = vadd.f32 %v3621_v39, %v12646_v13 }
 0x40c   :  { %v4451_v60 = vld [vmem:[#allocation3 + $0xf1] sm:$0xff] }
 0x40d   :  { %5633 = vrot.lane.b32.xlu0 %v5276_v17, %s8205_s22  ;;  %3778 = vst.msk [vmem:[#allocation3 + $0xf9] sm:$0xff] %vm329_vm5, %v3678_v12  ;;  %v4387_v21 = vld [vmem:[#allocation3 + $0xf0] sm:$0xff]  ;;  %v4483_v41 = vpack.c.bf16 %v4451_v60, %v4451_v60 }
 0x40e   :  { %5857 = vrot.lane.b32.xlu2 %v5500_v52, %s8206_s3  ;;  %v4419_v35 = vpack.c.bf16 %v4387_v21, %v4387_v21 }
 0x40f   :  { %5745 = vrot.lane.b32.xlu1 %v5388_v36, %s8198_s18  ;;  %v5699_v4 = vunpack.c.l.b16 %v4483_v41 }
 0x410   :  { %v5740_v56 = vpop.permute.xlu1 %5739  ;;  %v5587_v44 = vunpack.c.l.b16 %v4419_v35 }
 0x411   :  { %v6192_v5 = vsel %vm2769_vm9, %v6160_v49, %v5740_v56  ;;  %v10589_v56 = vpop.permute.xlu2 %4739 }
 0x412   :  { %v3623_v25 = vpop.f32.mrf.mxu0  ;;  %v6225_v51 = vsel %vm6217_vm0, %v6192_v5, %v5852_v53 }
 0x413   :  { %v3624_v48 = vadd.f32 %v10388_v33, %v3623_v25  ;;  %7993 = vmatmul.msk.bf16.gmra.mxu1 %vm2802_vm10, %v6225_v51  ;;  %v12649_v25 = vld [vmem:[#allocation11_spill] sm:$0xff] }
 0x414   :  { %v4515_v31 = vld [vmem:[#allocation3 + $0xf2] sm:$0xff]  ;;  %v4516_v8 = vld [vmem:[#allocation3 + $0xfa] sm:$0xff] }
 0x415   :  { %v3679_v47 = vadd.f32 %v3624_v48, %v12647_v37  ;;  %v4452_v15 = vld [vmem:[#allocation3 + $0xf9] sm:$0xff]  ;;  %v4547_v50 = vpack.c.bf16 %v4515_v31, %v4515_v31  ;;  %v4548_v46 = vpack.c.bf16 %v4516_v8, %v4516_v8 }
 0x416   :  { %v4484_v52 = vpack.c.bf16 %v4452_v15, %v4452_v15  ;;  %v4388_v36 = vld [vmem:[#allocation3 + $0xf8] sm:$0xff] }
 0x417   :  { %3779 = vst.msk [vmem:[#allocation3 + $0x151] sm:$0xff] %vm329_vm5, %v3679_v47  ;;  %v4420_v38 = vpack.c.bf16 %v4388_v36, %v4388_v36  ;;  %v5811_v20 = vunpack.c.l.b16 %v4547_v50  ;;  %v5812_v17 = vunpack.c.l.b16 %v4548_v46 }
 0x418   :  { %v5700_v9 = vunpack.c.l.b16 %v4484_v52 }
 0x419   :  { %v5588_v43 = vunpack.c.l.b16 %v4420_v38  ;;  %v5836_v1 = vpack.c.b16 %v5812_v17, %v5811_v20  ;;  %v10599_v50 = vpop.permute.xlu2 %5185 }
 0x41a   :  { %v3625_v39 = vpop.f32.mrf.mxu0  ;;  %v5724_v13 = vpack.c.b16 %v5700_v9, %v5699_v4  ;;  %v5891_v4 = vsel %vm329_vm5, %v10053_v7, %v10325_v0 }
 0x41b   :  { %v3626_v12 = vadd.f32 %v10388_v33, %v3625_v39  ;;  %v5612_v16 = vpack.c.b16 %v5588_v43, %v5587_v44  ;;  %5859 = vrot.lane.b32.xlu0 %v5836_v1, %s8206_s3  ;;  %v5934_v1 = vsel %vm471_vm2, %v5891_v4, %v10339_v29  ;;  %v12652_v4 = vld [vmem:[#allocation16_spill] sm:$0xff] }
 0x41c   :  { %5747 = vrot.lane.b32.xlu2 %v5724_v13, %s8198_s18 }
 0x41d   :  { %v3680_v49 = vadd.f32 %v3626_v12, %v12648_v32  ;;  %5635 = vrot.lane.b32.xlu1 %v5612_v16, %s8205_s22  ;;  %v5967_v12 = vsel %vm5957_vm4, %v5934_v1, %v10455_v24  ;;  %v12650_v16 = vld [vmem:[#allocation12_spill] sm:$0xff] }
 0x41e   :  { %v3881_v5 = vld [vmem:[#allocation3 + $0x151] sm:$0xff]  ;;  %v5999_v29 = vsel %vm2670_vm6, %v5967_v12, %v10442_v57 }
 0x41f   :  { %3780 = vst.msk [vmem:[#allocation3 + $0x159] sm:$0xff] %vm329_vm5, %v3680_v49  ;;  %v3913_v21 = vpack.c.bf16 %v3881_v5, %v3881_v5  ;;  %v4008_v39 = vld [vmem:[#allocation3 + $0x150] sm:$0xff] }
 0x420   :  { %v4040_v0 = vpack.c.bf16 %v4008_v39, %v4008_v39 }
 0x421   :  { %v4699_v46 = vunpack.c.l.b16 %v3913_v21 }
 0x422   :  { %v3628_v53 = vpop.f32.mrf.mxu0  ;;  %v4921_v5 = vunpack.c.l.b16 %v4040_v0 }
 0x423   :  { %v3629_v60 = vadd.f32 %v10388_v33, %v3628_v53 }
 0x425   :  { %v3681_v51 = vadd.f32 %v3629_v60, %v12649_v25  ;;  %v6032_v60 = vsel %vm6022_vm12, %v5999_v29, %v10453_v58  ;;  %v10625_v25 = vpop.permute.xlu2 %5295 }
 0x426   :  { %v10594_v48 = vpop.permute.xlu0 %4851  ;;  %v3882_v41 = vld [vmem:[#allocation3 + $0x159] sm:$0xff]  ;;  %v6064_v21 = vsel %vm2703_vm7, %v6032_v60, %v10563_v55 }
 0x427   :  { %v3945_v37 = vld [vmem:[#allocation3 + $0x152] sm:$0xff]  ;;  %v3946_v47 = vld [vmem:[#allocation3 + $0x15a] sm:$0xff]  ;;  %3781 = vst.msk [vmem:[#allocation3 + $0x169] sm:$0xff] %vm329_vm5, %v3681_v51  ;;  %v3914_v8 = vpack.c.bf16 %v3882_v41, %v3882_v41  ;;  %v6097_v58 = vsel %vm6087_vm13, %v6064_v21, %v10559_v23 }
 0x428   :  { %v10597_v31 = vpop.permute.xlu1 %5073  ;;  %v3977_v15 = vpack.c.bf16 %v3945_v37, %v3945_v37  ;;  %v3978_v35 = vpack.c.bf16 %v3946_v47, %v3946_v47  ;;  %v4009_v20 = vld [vmem:[#allocation3 + $0x158] sm:$0xff] }
 0x429   :  { %v4700_v52 = vunpack.c.l.b16 %v3914_v8  ;;  %v4041_v13 = vpack.c.bf16 %v4009_v20, %v4009_v20  ;;  %v12651_v37 = vld [vmem:[#allocation14_spill] sm:$0xff] }
 0x42a   :  { %v4811_v36 = vunpack.c.l.b16 %v3977_v15  ;;  %v4812_v38 = vunpack.c.l.b16 %v3978_v35  ;;  %v3630_v17 = vpop.f32.mrf.mxu0  ;;  %v6129_v35 = vsel %vm2736_vm8, %v6097_v58, %v10549_v63 }
 0x42b   :  { %v3631_v9 = vadd.f32 %v10388_v33, %v3630_v17  ;;  %v4720_v44 = vpack.c.b16 %v4700_v52, %v4699_v46  ;;  %v4922_v24 = vunpack.c.l.b16 %v4041_v13 }
 0x42c   :  { %v10605_v43 = vpack.c.b16 %v4812_v38, %v4811_v36 }
 0x42d   :  { %v3682_v32 = vadd.f32 %v3631_v9, %v12650_v16  ;;  %4747 = vrot.lane.b32.xlu0 %v4720_v44, %s8201_s8  ;;  %5081 = vrot.lane.b32.xlu2 %v4720_v44, %s8195_s15  ;;  %v10630_v41 = vpack.c.b16 %v4922_v24, %v4921_v5  ;;  %v5742_v17 = vpop.permute.xlu2 %5741 }
 0x42e   :  { %4859 = vrot.lane.b32.xlu1 %v10605_v43, %s8194_s4  ;;  %v10616_v7 = vpop.permute.xlu0 %4961  ;;  %v4074_v0 = vld [vmem:[#allocation3 + $0x169] sm:$0xff] }
 0x42f   :  { %3782 = vst.msk [vmem:[#allocation3 + $0x171] sm:$0xff] %vm329_vm5, %v3682_v32  ;;  %v4010_v29 = vld [vmem:[#allocation3 + $0x168] sm:$0xff] }
 0x430   :  { %v10619_v49 = vpop.permute.xlu1 %5519 }
 0x432   :  { %v3633_v53 = vpop.f32.mrf.mxu0 }
 0x433   :  { %v3634_v51 = vadd.f32 %v10388_v33, %v3633_v53 }
 0x435   :  { %v3683_v47 = vadd.f32 %v3634_v51, %v12651_v37  ;;  %5193 = vrot.lane.b32.xlu0 %v10605_v43, %s8203_s1  ;;  %5527 = vrot.lane.b32.xlu2 %v10605_v43, %s8197_s28  ;;  %v12653_v51 = vld [vmem:[#allocation17_spill] sm:$0xff]  ;;  %v4106_v37 = vpack.c.bf16 %v4074_v0, %v4074_v0 }
 0x436   :  { %4969 = vrot.lane.b32.xlu1 %v10630_v41, %s8202_s30  ;;  %v10639_v57 = vpop.permute.xlu0 %5407  ;;  %v3947_v8 = vld [vmem:[#allocation3 + $0x16a] sm:$0xff]  ;;  %v3948_v15 = vld [vmem:[#allocation3 + $0x172] sm:$0xff] }
 0x437   :  { %3783 = vst.msk [vmem:[#allocation3 + $0x181] sm:$0xff] %vm329_vm5, %v3683_v47  ;;  %v3979_v38 = vpack.c.bf16 %v3947_v8, %v3947_v8  ;;  %v3980_v20 = vpack.c.bf16 %v3948_v15, %v3948_v15  ;;  %v4075_v12 = vld [vmem:[#allocation3 + $0x171] sm:$0xff]  ;;  %v4042_v47 = vpack.c.bf16 %v4010_v29, %v4010_v29  ;;  %v5035_v8 = vunpack.c.l.b16 %v4106_v37 }
 0x438   :  { %v5630_v55 = vpop.permute.xlu1 %5629  ;;  %v4011_v16 = vld [vmem:[#allocation3 + $0x170] sm:$0xff]  ;;  %v4107_v5 = vpack.c.bf16 %v4075_v12, %v4075_v12 }
 0x439   :  { %v6162_v52 = vsel %vm6152_vm14, %v6129_v35, %v5630_v55  ;;  %v4813_v1 = vunpack.c.l.b16 %v3979_v38  ;;  %v4814_v13 = vunpack.c.l.b16 %v3980_v20  ;;  %v4043_v60 = vpack.c.bf16 %v4011_v16, %v4011_v16 }
 0x43a   :  { %v3635_v46 = vpop.f32.mrf.mxu0  ;;  %v6194_v63 = vsel %vm2769_vm9, %v6162_v52, %v5742_v17  ;;  %v5036_v58 = vunpack.c.l.b16 %v4107_v5  ;;  %v4923_v15 = vunpack.c.l.b16 %v4042_v47  ;;  %v5894_v16 = vsel %vm329_vm5, %v10199_v54, %v10438_v28 }
 0x43b   :  { %v3636_v36 = vadd.f32 %v10388_v33, %v3635_v46  ;;  %v4833_v53 = vpack.c.b16 %v4814_v13, %v4813_v1  ;;  %v4924_v55 = vunpack.c.l.b16 %v4043_v60 }
 0x43c   :  { %v5056_v52 = vpack.c.b16 %v5036_v58, %v5035_v8 }
 0x43d   :  { %v3684_v9 = vadd.f32 %v3636_v36, %v12652_v4  ;;  %5303 = vrot.lane.b32.xlu0 %v10630_v41, %s8196_s20  ;;  %5637 = vrot.lane.b32.xlu2 %v10630_v41, %s8205_s22  ;;  %v10666_v36 = vpack.c.b16 %v4924_v55, %v4923_v15  ;;  %v12655_v4 = vld [vmem:[#allocation19_spill] sm:$0xff] }
 0x43e   :  { %5415 = vrot.lane.b32.xlu1 %v4720_v44, %s8204_s16  ;;  %v5854_v23 = vpop.permute.xlu0 %5853  ;;  %v3885_v0 = vld [vmem:[#allocation3 + $0x181] sm:$0xff] }
 0x43f   :  { %3784 = vst.msk [vmem:[#allocation3 + $0x189] sm:$0xff] %vm329_vm5, %v3684_v9  ;;  %v6227_v39 = vsel %vm6217_vm0, %v6194_v63, %v5854_v23  ;;  %v3917_v47 = vpack.c.bf16 %v3885_v0, %v3885_v0 }
 0x440   :  { %7994 = vmatmul.msk.bf16.gmra.mxu1 %vm2802_vm10, %v6227_v39 }
 0x442   :  { %v3638_v32 = vpop.f32.mrf.mxu0 }
 0x443   :  { %v3639_v24 = vadd.f32 %v10388_v33, %v3638_v32 }
 0x445   :  { %v3685_v21 = vadd.f32 %v3639_v24, %v12653_v51  ;;  %5749 = vrot.lane.b32.xlu0 %v4720_v44, %s8198_s18  ;;  %4861 = vrot.lane.b32.xlu2 %v4833_v53, %s8194_s4  ;;  %v12654_v44 = vld [vmem:[#allocation18_spill] sm:$0xff]  ;;  %v5936_v51 = vsel %vm471_vm2, %v5894_v16, %v10440_v59 }
 0x446   :  { %5861 = vrot.lane.b32.xlu1 %v10605_v43, %s8206_s3  ;;  %v10673_v43 = vpop.permute.xlu2 %5075  ;;  %v3949_v39 = vld [vmem:[#allocation3 + $0x182] sm:$0xff]  ;;  %v3950_v1 = vld [vmem:[#allocation3 + $0x18a] sm:$0xff]  ;;  %v5969_v54 = vsel %vm5957_vm4, %v5936_v51, %v10540_v19 }
 0x447   :  { %3785 = vst.msk [vmem:[#allocation3 + $0x199] sm:$0xff] %vm329_vm5, %v3685_v21  ;;  %v3886_v13 = vld [vmem:[#allocation3 + $0x189] sm:$0xff]  ;;  %v3981_v24 = vpack.c.bf16 %v3949_v39, %v3949_v39  ;;  %v3982_v5 = vpack.c.bf16 %v3950_v1, %v3950_v1  ;;  %v6001_v58 = vsel %vm2670_vm6, %v5969_v54, %v10533_v42  ;;  %v4012_v42 = vld [vmem:[#allocation3 + $0x180] sm:$0xff] }
 0x448   :  { %v3918_v60 = vpack.c.bf16 %v3886_v13, %v3886_v13  ;;  %v12656_v21 = vld [vmem:[#allocation20_spill] sm:$0xff] }
 0x449   :  { %v4815_v55 = vunpack.c.l.b16 %v3981_v24  ;;  %v4816_v8 = vunpack.c.l.b16 %v3982_v5  ;;  %v10728_v5 = vld [vmem:[%s12436_s9] ss:$0 sm:$0xff]  ;;  %s8207_s9 = smov 104  }
 0x44a   :  { %v3640_v35 = vpop.f32.mrf.mxu0  ;;  %v4704_v15 = vunpack.c.l.b16 %v3918_v60 }
 0x44b   :  { %v3641_v46 = vadd.f32 %v10388_v33, %v3640_v35  ;;  %v4013_v35 = vld [vmem:[#allocation3 + $0x188] sm:$0xff] }
 0x44c   :  { %v4045_v39 = vpack.c.bf16 %v4013_v35, %v4013_v35 }
 0x44d   :  { %v3686_v38 = vadd.f32 %v3641_v46, %v12654_v44  ;;  %5083 = vrot.lane.b32.xlu0 %v5056_v52, %s8195_s15  ;;  %4971 = vrot.lane.b32.xlu2 %v10666_v36, %s8202_s30  ;;  %v4703_v46 = vunpack.c.l.b16 %v3917_v47  ;;  %v5897_v47 = vsel %vm329_vm5, %v10345_v45, %v10531_v11 }
 0x44e   :  { %4749 = vrot.lane.b32.xlu1 %v5056_v52, %s8201_s8  ;;  %v10686_v12 = vpop.permute.xlu2 %5521  ;;  %v4926_v0 = vunpack.c.l.b16 %v4045_v39  ;;  %v5938_v54 = vsel %vm471_vm2, %v5897_v47, %v10522_v10  ;;  %v4014_v47 = vld [vmem:[#allocation3 + $0x198] sm:$0xff] }
 0x44f   :  { %3786 = vst.msk [vmem:[#allocation3 + $0x1a1] sm:$0xff] %vm329_vm5, %v3686_v38 }
 0x452   :  { %v3643_v20 = vpop.f32.mrf.mxu0 }
 0x453   :  { %v3644_v17 = vadd.f32 %v10388_v33, %v3643_v20 }
 0x455   :  { %v3687_v9 = vadd.f32 %v3644_v17, %v12655_v4  ;;  %5529 = vrot.lane.b32.xlu0 %v4833_v53, %s8197_s28  ;;  %5417 = vrot.lane.b32.xlu2 %v5056_v52, %s8204_s16  ;;  %v4834_v4 = vpack.c.b16 %v4816_v8, %v4815_v55 }
 0x456   :  { %5195 = vrot.lane.b32.xlu1 %v4833_v53, %s8203_s1  ;;  %v10681_v23 = vpop.permute.xlu0 %5187  ;;  %v5632_v20 = vpop.permute.xlu2 %5631 }
 0x457   :  { %3787 = vst.msk [vmem:[#allocation3 + $0x1b1] sm:$0xff] %vm329_vm5, %v3687_v9  ;;  %v4722_v9 = vpack.c.b16 %v4704_v15, %v4703_v46  ;;  %v3951_v46 = vld [vmem:[#allocation3 + $0x19a] sm:$0xff] }
 0x458   :  { %v10684_v63 = vpop.permute.xlu1 %4963 }
 0x45a   :  { %v3645_v32 = vpop.f32.mrf.mxu0 }
 0x45b   :  { %v3646_v29 = vadd.f32 %v10388_v33, %v3645_v32 }
 0x45d   :  { %v3688_v37 = vadd.f32 %v3646_v29, %v12656_v21  ;;  %5639 = vrot.lane.b32.xlu0 %v10666_v36, %s8205_s22  ;;  %5863 = vrot.lane.b32.xlu2 %v4833_v53, %s8206_s3  ;;  %v6034_v53 = vsel %vm6022_vm12, %v6001_v58, %v10545_v30  ;;  %v12657_v30 = vld [vmem:[#allocation23_spill] sm:$0xff]  ;;  %v12658_v21 = vld [vmem:[#allocation24_spill] sm:$0xff]  ;;  %v5971_v58 = vsel %vm5957_vm4, %v5938_v54, %v10616_v7 }
 0x45e   :  { %5305 = vrot.lane.b32.xlu1 %v10666_v36, %s8196_s20  ;;  %v5298_v28 = vpop.permute.xlu0 %5297  ;;  %v6066_v19 = vsel %vm2703_vm7, %v6034_v53, %v10625_v25  ;;  %v4044_v25 = vpack.c.bf16 %v4012_v42, %v4012_v42  ;;  %v6003_v15 = vsel %vm2670_vm6, %v5971_v58, %v10597_v31  ;;  %v12659_v53 = vld [vmem:[#allocation25_spill] sm:$0xff]  ;;  %v3887_v42 = vld [vmem:[#allocation3 + $0x199] sm:$0xff] }
 0x45f   :  { %3788 = vst.msk [vmem:[#allocation3 + $0x1b9] sm:$0xff] %vm329_vm5, %v3688_v37  ;;  %v6099_v44 = vsel %vm6087_vm13, %v6066_v19, %v10639_v57  ;;  %v6036_v11 = vsel %vm6022_vm12, %v6003_v15, %v10599_v50  ;;  %v3888_v19 = vld [vmem:[#allocation3 + $0x1a1] sm:$0xff]  ;;  %v3919_v50 = vpack.c.bf16 %v3887_v42, %v3887_v42 }
 0x460   :  { %v10705_v59 = vpop.permute.xlu1 %5409  ;;  %v6131_v1 = vsel %vm2736_vm8, %v6099_v44, %v10619_v49  ;;  %v4925_v29 = vunpack.c.l.b16 %v4044_v25  ;;  %v10733_v51 = vpop.permute.xlu2 %5411  ;;  %v6068_v31 = vsel %vm2703_vm7, %v6036_v11, %v5298_v28  ;;  %v3952_v44 = vld [vmem:[#allocation3 + $0x1a2] sm:$0xff] }
 0x461   :  { %v6164_v57 = vsel %vm6152_vm14, %v6131_v1, %v5632_v20  ;;  %v6101_v39 = vsel %vm6087_vm13, %v6068_v31, %v10705_v59  ;;  %v3983_v1 = vpack.c.bf16 %v3951_v46, %v3951_v46 }
 0x462   :  { %v3648_v38 = vpop.f32.mrf.mxu0  ;;  %v10731_v60 = vpack.c.b16 %v4926_v0, %v4925_v29 }
 0x463   :  { %v3649_v17 = vadd.f32 %v10388_v33, %v3648_v38 }
 0x465   :  { %v3689_v13 = vadd.f32 %v3649_v17, %v12657_v30  ;;  %4863 = vrot.lane.b32.xlu0 %v4834_v4, %s8194_s4  ;;  %4751 = vrot.lane.b32.xlu2 %v4722_v9, %s8201_s8  ;;  %v3920_v17 = vpack.c.bf16 %v3888_v19, %v3888_v19  ;;  %v3984_v30 = vpack.c.bf16 %v3952_v44, %v3952_v44  ;;  %v12662_v44 = vld [vmem:[#allocation29_spill] sm:$0xff] }
 0x466   :  { %5751 = vrot.lane.b32.xlu1 %v5056_v52, %s8198_s18  ;;  %v5744_v16 = vpop.permute.xlu0 %5743  ;;  %v3953_v42 = vld [vmem:[#allocation3 + $0x1b2] sm:$0xff] }
 0x467   :  { %3789 = vst.msk [vmem:[#allocation3 + $0x1c9] sm:$0xff] %vm329_vm5, %v3689_v13  ;;  %v6196_v33 = vsel %vm2769_vm9, %v6164_v57, %v5744_v16  ;;  %v12660_v13 = vld [vmem:[#allocation26_spill] sm:$0xff]  ;;  %v6133_v16 = vsel %vm2736_vm8, %v6101_v39, %v10686_v12  ;;  %v4706_v59 = vunpack.c.l.b16 %v3920_v17  ;;  %v4818_v0 = vunpack.c.l.b16 %v3984_v30  ;;  %v3812_v30 = vld [vmem:[#allocation3 + $0x110] sm:$0xff] }
 0x468   :  { %v5856_v32 = vpop.permute.xlu1 %5855  ;;  %v5858_v45 = vpop.permute.xlu2 %5857 }
 0x469   :  { %v6229_v49 = vsel %vm6217_vm0, %v6196_v33, %v5856_v32  ;;  %v5900_v33 = vsel %vm329_vm5, %v10432_v34, %v10589_v56 }
 0x46a   :  { %7995 = vmatmul.msk.bf16.gmra.mxu1 %vm2802_vm10, %v6229_v49  ;;  %v3650_v24 = vpop.f32.mrf.mxu0  ;;  %v5940_v49 = vsel %vm471_vm2, %v5900_v33, %v10594_v48  ;;  %v4081_v33 = vld [vmem:[#allocation3 + $0x1b9] sm:$0xff] }
 0x46b   :  { %v3651_v52 = vadd.f32 %v10728_v5, %v3650_v24  ;;  %v4705_v24 = vunpack.c.l.b16 %v3919_v50  ;;  %v5973_v12 = vsel %vm5957_vm4, %v5940_v49, %v10684_v63  ;;  %v4046_v63 = vpack.c.bf16 %v4014_v47, %v4014_v47  ;;  %v4016_v49 = vld [vmem:[#allocation3 + $0x1b0] sm:$0xff] }
 0x46c   :  { %v6005_v48 = vsel %vm2670_vm6, %v5973_v12, %v10673_v43 }
 0x46d   :  { %v3690_v37 = vadd.f32 %v3651_v52, %v12658_v21  ;;  %4973 = vrot.lane.b32.xlu0 %v10731_v60, %s8202_s30  ;;  %5197 = vrot.lane.b32.xlu2 %v4834_v4, %s8203_s1  ;;  %v4015_v52 = vld [vmem:[#allocation3 + $0x1a0] sm:$0xff]  ;;  %v4723_v56 = vpack.c.b16 %v4706_v59, %v4705_v24  ;;  %v4927_v11 = vunpack.c.l.b16 %v4046_v63  ;;  %v4113_v24 = vpack.c.bf16 %v4081_v33, %v4081_v33 }
 0x46e   :  { %5085 = vrot.lane.b32.xlu1 %v4722_v9, %s8195_s15  ;;  %v4047_v58 = vpack.c.bf16 %v4015_v52, %v4015_v52 }
 0x46f   :  { %3790 = vst.msk [vmem:[#allocation3 + $0x1d1] sm:$0xff] %vm329_vm5, %v3690_v37 }
 0x472   :  { %v3653_v55 = vpop.f32.mrf.mxu0 }
 0x473   :  { %v3654_v8 = vadd.f32 %v10728_v5, %v3653_v55  ;;  %v12661_v55 = vld [vmem:[#allocation28_spill] sm:$0xff] }
 0x475   :  { %v3691_v35 = vadd.f32 %v3654_v8, %v12659_v53  ;;  %5419 = vrot.lane.b32.xlu0 %v4722_v9, %s8204_s16  ;;  %5307 = vrot.lane.b32.xlu2 %v10731_v60, %s8196_s20  ;;  %v6038_v53 = vsel %vm6022_vm12, %v6005_v48, %v10681_v23 }
 0x476   :  { %5531 = vrot.lane.b32.xlu1 %v4834_v4, %s8197_s28  ;;  %v5748_v28 = vpop.permute.xlu2 %5747 }
 0x477   :  { %3791 = vst.msk [vmem:[#allocation3 + $0x1e1] sm:$0xff] %vm329_vm5, %v3691_v35  ;;  %v10757_v10 = vpop.permute.xlu0 %5523  ;;  %v4928_v35 = vunpack.c.l.b16 %v4047_v58  ;;  %v5042_v58 = vunpack.c.l.b16 %v4113_v24 }
 0x479   :  { %v5300_v7 = vpop.permute.xlu1 %5299  ;;  %v10800_v46 = vpack.c.b16 %v4928_v35, %v4927_v11 }
 0x47a   :  { %v3655_v38 = vpop.f32.mrf.mxu0 }
 0x47b   :  { %v3656_v20 = vadd.f32 %v10728_v5, %v3655_v38 }
 0x47d   :  { %v3692_v25 = vadd.f32 %v3656_v20, %v12660_v13  ;;  %5865 = vrot.lane.b32.xlu0 %v4834_v4, %s8206_s3  ;;  %5753 = vrot.lane.b32.xlu2 %v4722_v9, %s8198_s18  ;;  %v4817_v9 = vunpack.c.l.b16 %v3983_v1  ;;  %v3954_v20 = vld [vmem:[#allocation3 + $0x1ba] sm:$0xff]  ;;  %v3811_v1 = vld [vmem:[#allocation3 + $0x108] sm:$0xff] }
 0x47e   :  { %5641 = vrot.lane.b32.xlu1 %v10731_v60, %s8205_s22  ;;  %v3986_v50 = vpack.c.bf16 %v3954_v20, %v3954_v20 }
 0x47f   :  { %3792 = vst.msk [vmem:[#allocation3 + $0x1e9] sm:$0xff] %vm329_vm5, %v3692_v25  ;;  %v5634_v57 = vpop.permute.xlu0 %5633  ;;  %v4835_v54 = vpack.c.b16 %v4818_v0, %v4817_v9  ;;  %v3985_v25 = vpack.c.bf16 %v3953_v42, %v3953_v42  ;;  %v4080_v0 = vld [vmem:[#allocation3 + $0x1b1] sm:$0xff] }
 0x480   :  { %v6166_v4 = vsel %vm6152_vm14, %v6133_v16, %v5634_v57  ;;  %v3843_v57 = vpack.c.bf16 %v3811_v1, %v3811_v1  ;;  %v3844_v16 = vpack.c.bf16 %v3812_v30, %v3812_v30  ;;  %v4820_v59 = vunpack.c.l.b16 %v3986_v50 }
 0x481   :  { %v5746_v32 = vpop.permute.xlu1 %5745 }
 0x482   :  { %v6198_v29 = vsel %vm2769_vm9, %v6166_v4, %v5746_v32  ;;  %v3658_v21 = vpop.f32.mrf.mxu0  ;;  %v4017_v4 = vld [vmem:[#allocation3 + $0x1b8] sm:$0xff]  ;;  %v4613_v32 = vunpack.c.l.b16 %v3843_v57  ;;  %v4614_v9 = vunpack.c.l.b16 %v3844_v16 }
 0x483   :  { %v6231_v37 = vsel %vm6217_vm0, %v6198_v29, %v5858_v45  ;;  %v3659_v34 = vadd.f32 %v10728_v5, %v3658_v21  ;;  %v6070_v45 = vsel %vm2703_vm7, %v6038_v53, %v5300_v7  ;;  %v4049_v52 = vpack.c.bf16 %v4017_v4, %v4017_v4 }
 0x484   :  { %7996 = vmatmul.msk.bf16.gmra.mxu1 %vm2802_vm10, %v6231_v37  ;;  %v6103_v31 = vsel %vm6087_vm13, %v6070_v45, %v10733_v51  ;;  %v4637_v12 = vpack.c.b16 %v4614_v9, %v4613_v32  ;;  %v4112_v21 = vpack.c.bf16 %v4080_v0, %v4080_v0  ;;  %v4048_v37 = vpack.c.bf16 %v4016_v49, %v4016_v49 }
 0x485   :  { %v3693_v8 = vadd.f32 %v3659_v34, %v12661_v55  ;;  %4753 = vrot.lane.b32.xlu0 %v4723_v56, %s8201_s8  ;;  %5087 = vrot.lane.b32.xlu2 %v4723_v56, %s8195_s15  ;;  %v4930_v48 = vunpack.c.l.b16 %v4049_v52 }
 0x486   :  { %4865 = vrot.lane.b32.xlu1 %v4835_v54, %s8194_s4  ;;  %v5041_v63 = vunpack.c.l.b16 %v4112_v21  ;;  %v4929_v53 = vunpack.c.l.b16 %v4048_v37  ;;  %v5906_v21 = vsel %vm329_vm5, %v9756_v14, %v10003_v2  ;;  %v4211_v2 = vld [vmem:[#allocation3 + $0x1e0] sm:$0xff] }
 0x487   :  { %3793 = vst.msk [vmem:[#allocation3 + $0x1f9] sm:$0xff] %vm329_vm5, %v3693_v8  ;;  %v10792_v15 = vpop.permute.xlu2 %5081  ;;  %v5903_v8 = vsel %vm329_vm5, %v4637_v12, %v10008_v61  ;;  %v5944_v37 = vsel %vm471_vm2, %v5906_v21, %v10041_v3  ;;  %v4243_v3 = vpack.c.bf16 %v4211_v2, %v4211_v2 }
 0x488   :  { %v10832_v35 = vpack.c.b16 %v4930_v48, %v4929_v53  ;;  %v5942_v45 = vsel %vm471_vm2, %v5903_v8, %v10058_v6  ;;  %v4339_v53 = vld [vmem:[#allocation3 + $0x1e2] sm:$0xff] }
 0x48a   :  { %v3660_v43 = vpop.f32.mrf.mxu0 }
 0x48b   :  { %v3661_v19 = vadd.f32 %v10728_v5, %v3660_v43  ;;  %v6135_v5 = vsel %vm2736_vm8, %v6103_v31, %v10757_v10 }
 0x48d   :  { %v3694_v38 = vadd.f32 %v3661_v19, %v12662_v44  ;;  %5199 = vrot.lane.b32.xlu0 %v4835_v54, %s8203_s1  ;;  %5533 = vrot.lane.b32.xlu2 %v4835_v54, %s8197_s28  ;;  %v5860_v17 = vpop.permute.xlu0 %5859 }
 0x48e   :  { %4975 = vrot.lane.b32.xlu1 %v10800_v46, %s8202_s30 }
 0x48f   :  { %3794 = vst.msk [vmem:[#allocation3 + $0x201] sm:$0xff] %vm329_vm5, %v3694_v38  ;;  %v10808_v23 = vpop.permute.xlu2 %5527  ;;  %v5636_v7 = vpop.permute.xlu1 %5635 }
 0x490   :  { %v6168_v51 = vsel %vm6152_vm14, %v6135_v5, %v5636_v7  ;;  %v4019_v5 = vld [vmem:[#allocation3 + $0x1d0] sm:$0xff] }
 0x491   :  { %v6200_v39 = vsel %vm2769_vm9, %v6168_v51, %v5748_v28  ;;  %v4819_v28 = vunpack.c.l.b16 %v3985_v25  ;;  %v4147_v7 = vld [vmem:[#allocation3 + $0x1d2] sm:$0xff]  ;;  %v4018_v51 = vld [vmem:[#allocation3 + $0x1c8] sm:$0xff]  ;;  %v4051_v42 = vpack.c.bf16 %v4019_v5, %v4019_v5 }
 0x492   :  { %v6233_v13 = vsel %vm6217_vm0, %v6200_v39, %v5860_v17  ;;  %v4179_v17 = vpack.c.bf16 %v4147_v7, %v4147_v7  ;;  %v4050_v39 = vpack.c.bf16 %v4018_v51, %v4018_v51 }
 0x493   :  { %v4836_v29 = vpack.c.b16 %v4820_v59, %v4819_v28  ;;  %v4274_v28 = vld [vmem:[#allocation3 + $0x1d1] sm:$0xff] }
 0x494   :  { %7997 = vmatmul.msk.bf16.gmra.mxu1 %vm2802_vm10, %v6233_v13  ;;  %v5156_v50 = vunpack.c.l.b16 %v4179_v17  ;;  %v4931_v33 = vunpack.c.l.b16 %v4050_v39  ;;  %v4306_v9 = vpack.c.bf16 %v4274_v28, %v4274_v28 }
 0x495   :  { %5309 = vrot.lane.b32.xlu0 %v10800_v46, %s8196_s20  ;;  %5643 = vrot.lane.b32.xlu2 %v10800_v46, %s8205_s22 }
 0x496   :  { %5421 = vrot.lane.b32.xlu1 %v4723_v56, %s8204_s16 }
 0x497   :  { %v5638_v10 = vpop.permute.xlu2 %5637 }
 0x49d   :  { %5755 = vrot.lane.b32.xlu0 %v4723_v56, %s8198_s18  ;;  %4867 = vrot.lane.b32.xlu2 %v4836_v29, %s8194_s4  ;;  %v5059_v56 = vpack.c.b16 %v5042_v58, %v5041_v63  ;;  %v4212_v63 = vld [vmem:[#allocation3 + $0x1e8] sm:$0xff] }
 0x49e   :  { %5867 = vrot.lane.b32.xlu1 %v4835_v54, %s8206_s3  ;;  %v5975_v54 = vsel %vm5957_vm4, %v5942_v45, %v10069_v22  ;;  %v12663_v45 = vld [vmem:[#allocation46_spill] sm:$0xff] }
 0x49f   :  { %v10824_v34 = vpop.permute.xlu0 %4747  ;;  %v10826_v47 = vpop.permute.xlu2 %4861  ;;  %v6007_v19 = vsel %vm2670_vm6, %v5975_v54, %v10145_v18  ;;  %v4146_v18 = vld [vmem:[#allocation3 + $0x1ca] sm:$0xff]  ;;  %v5977_v14 = vsel %vm5957_vm4, %v5944_v37, %v12663_v45  ;;  %v4244_v54 = vpack.c.bf16 %v4212_v63, %v4212_v63  ;;  %v12666_v45 = vld [vmem:[#allocation27_spill] sm:$0xff] }
 0x4a0   :  { %v10828_v55 = vpop.permute.xlu1 %4859  ;;  %v6040_v6 = vsel %vm6022_vm12, %v6007_v19, %v10172_v26  ;;  %v4178_v20 = vpack.c.bf16 %v4146_v18, %v4146_v18  ;;  %v4371_v19 = vpack.c.bf16 %v4339_v53, %v4339_v53 }
 0x4a1   :  { %v6072_v44 = vsel %vm2703_vm7, %v6040_v6, %v10176_v40  ;;  %v5268_v51 = vunpack.c.l.b16 %v4244_v54 }
 0x4a2   :  { %v6105_v26 = vsel %vm6087_vm13, %v6072_v44, %v10237_v62  ;;  %v4932_v62 = vunpack.c.l.b16 %v4051_v42  ;;  %v5155_v25 = vunpack.c.l.b16 %v4178_v20  ;;  %v12664_v44 = vld [vmem:[#allocation47_spill] sm:$0xff] }
 0x4a3   :  { %v6137_v40 = vsel %vm2736_vm8, %v6105_v26, %v10235_v27  ;;  %v4273_v27 = vld [vmem:[#allocation3 + $0x1c9] sm:$0xff]  ;;  %v6009_v5 = vsel %vm2670_vm6, %v5977_v14, %v12664_v44  ;;  %v5491_v26 = vunpack.c.l.b16 %v4371_v19  ;;  %v12665_v20 = vld [vmem:[#allocation39_spill] sm:$0xff]  ;;  %v12667_v14 = vld [vmem:[#allocation90_spill] sm:$0xff] }
 0x4a4   :  { %v6170_v1 = vsel %vm6152_vm14, %v6137_v40, %v5638_v10  ;;  %v4948_v4 = vpack.c.b16 %v4932_v62, %v4931_v33  ;;  %v5172_v32 = vpack.c.b16 %v5156_v50, %v5155_v25  ;;  %v4305_v10 = vpack.c.bf16 %v4273_v27, %v4273_v27  ;;  %v4466_v40 = vld [vmem:[#allocation3 + $0x1e9] sm:$0xff]  ;;  %v4465_v62 = vld [vmem:[#allocation3 + $0x1e1] sm:$0xff] }
 0x4a5   :  { %5089 = vrot.lane.b32.xlu0 %v5059_v56, %s8195_s15  ;;  %4977 = vrot.lane.b32.xlu2 %v10832_v35, %s8202_s30  ;;  %v6042_v17 = vsel %vm6022_vm12, %v6009_v5, %v12665_v20  ;;  %v4497_v28 = vpack.c.bf16 %v4465_v62, %v4465_v62  ;;  %v5909_v2 = vsel %vm329_vm5, %v12667_v14, %v12666_v45 }
 0x4a6   :  { %4755 = vrot.lane.b32.xlu1 %v5059_v56, %s8201_s8  ;;  %v5377_v52 = vunpack.c.l.b16 %v4305_v10  ;;  %v4404_v10 = vld [vmem:[#allocation3 + $0x200] sm:$0xff] }
 0x4a7   :  { %v10842_v43 = vpop.permute.xlu0 %5193  ;;  %v10844_v61 = vpop.permute.xlu2 %4971  ;;  %v4436_v37 = vpack.c.bf16 %v4404_v10, %v4404_v10 }
 0x4a8   :  { %v10846_v11 = vpop.permute.xlu1 %4969 }
 0x4a9   :  { %v5604_v19 = vunpack.c.l.b16 %v4436_v37 }
 0x4ad   :  { %5535 = vrot.lane.b32.xlu0 %v4836_v29, %s8197_s28  ;;  %5423 = vrot.lane.b32.xlu2 %v5059_v56, %s8204_s16 }
 0x4ae   :  { %5201 = vrot.lane.b32.xlu1 %v4836_v29, %s8203_s1 }
 0x4af   :  { %v10855_v31 = vpop.permute.xlu0 %5303  ;;  %v10857_v22 = vpop.permute.xlu2 %5417 }
 0x4b0   :  { %v10861_v38 = vpop.permute.xlu1 %5415 }
 0x4b5   :  { %5645 = vrot.lane.b32.xlu0 %v10832_v35, %s8205_s22  ;;  %5869 = vrot.lane.b32.xlu2 %v4836_v29, %s8206_s3  ;;  %v5378_v29 = vunpack.c.l.b16 %v4306_v9 }
 0x4b6   :  { %5311 = vrot.lane.b32.xlu1 %v10832_v35, %s8196_s20 }
 0x4b7   :  { %v5750_v30 = vpop.permute.xlu0 %5749  ;;  %v10873_v13 = vpop.permute.xlu2 %5863  ;;  %v5395_v12 = vpack.c.b16 %v5378_v29, %v5377_v52  ;;  %v4531_v29 = vld [vmem:[#allocation3 + $0x1fa] sm:$0xff] }
 0x4b8   :  { %v6202_v57 = vsel %vm2769_vm9, %v6170_v1, %v5750_v30  ;;  %v5862_v16 = vpop.permute.xlu1 %5861  ;;  %v6074_v1 = vsel %vm2703_vm7, %v6042_v17, %v10855_v31  ;;  %v5267_v30 = vunpack.c.l.b16 %v4243_v3  ;;  %v4563_v63 = vpack.c.bf16 %v4531_v29, %v4531_v29 }
 0x4b9   :  { %v6235_v59 = vsel %vm6217_vm0, %v6202_v57, %v5862_v16  ;;  %v4498_v57 = vpack.c.bf16 %v4466_v40, %v4466_v40  ;;  %v6107_v16 = vsel %vm6087_vm13, %v6074_v1, %v10861_v38  ;;  %v4532_v38 = vld [vmem:[#allocation3 + $0x202] sm:$0xff]  ;;  %v4467_v40 = vld [vmem:[#allocation3 + $0x1f9] sm:$0xff] }
 0x4ba   :  { %7998 = vmatmul.msk.bf16.gmra.mxu1 %vm2802_vm10, %v6235_v59  ;;  %v5284_v25 = vpack.c.b16 %v5268_v51, %v5267_v30  ;;  %v6139_v59 = vsel %vm2736_vm8, %v6107_v16, %v10808_v23  ;;  %v4564_v53 = vpack.c.bf16 %v4532_v38, %v4532_v38  ;;  %v12668_v51 = vld [vmem:[#allocation45_spill] sm:$0xff]  ;;  %v10946_v30 = vpop.f32.mrf.mxu1 }
 0x4bb   :  { %v5714_v27 = vunpack.c.l.b16 %v4498_v57  ;;  %12669 = vst [vmem:[#allocation48_spill] sm:$0xff] %v10946_v30  ;;  %v6563_v10 = vrot.slane %v10946_v30, 3  ;;  %v6499_v37 = vrot.slane %v10946_v30, 2  ;;  %v6691_v14 = vrot.slane %v10946_v30, 5 }
 0x4bc   :  { %v5828_v44 = vunpack.c.l.b16 %v4564_v53 }
 0x4bd   :  { %4979 = vrot.lane.b32.xlu0 %v4948_v4, %s8202_s30  ;;  %5203 = vrot.lane.b32.xlu2 %v5172_v32, %s8203_s1 }
 0x4be   :  { %5757 = vrot.lane.b32.xlu1 %v5059_v56, %s8198_s18  ;;  %v4340_v56 = vld [vmem:[#allocation3 + $0x1ea] sm:$0xff] }
 0x4bf   :  { %v10881_v0 = vpop.permute.xlu0 %5083  ;;  %v10883_v49 = vpop.permute.xlu2 %4751  ;;  %v4372_v6 = vpack.c.bf16 %v4340_v56, %v4340_v56 }
 0x4c0   :  { %v10885_v24 = vpop.permute.xlu1 %4749 }
 0x4c1   :  { %v5492_v42 = vunpack.c.l.b16 %v4372_v6  ;;  %v5827_v6 = vunpack.c.l.b16 %v4563_v63 }
 0x4c3   :  { %v5508_v50 = vpack.c.b16 %v5492_v42, %v5491_v26  ;;  %v5946_v26 = vsel %vm471_vm2, %v5909_v2, %v12668_v51  ;;  %v5844_v17 = vpack.c.b16 %v5828_v44, %v5827_v6  ;;  %v5912_v44 = vsel %vm329_vm5, %v10630_v41, %v10824_v34 }
 0x4c4   :  { %v5979_v42 = vsel %vm5957_vm4, %v5946_v26, %v10846_v11  ;;  %v5948_v51 = vsel %vm471_vm2, %v5912_v44, %v10828_v55 }
 0x4c5   :  { %5425 = vrot.lane.b32.xlu0 %v5395_v12, %s8204_s16  ;;  %5313 = vrot.lane.b32.xlu2 %v4948_v4, %s8196_s20  ;;  %v6011_v62 = vsel %vm2670_vm6, %v5979_v42, %v10792_v15  ;;  %v5981_v26 = vsel %vm5957_vm4, %v5948_v51, %v10844_v61 }
 0x4c6   :  { %5091 = vrot.lane.b32.xlu1 %v5395_v12, %s8195_s15  ;;  %v6013_v34 = vsel %vm2670_vm6, %v5981_v26, %v10881_v0 }
 0x4c7   :  { %v10895_v58 = vpop.permute.xlu0 %5529  ;;  %v10897_v48 = vpop.permute.xlu2 %5197 }
 0x4c8   :  { %v10899_v8 = vpop.permute.xlu1 %5195 }
 0x4cd   :  { %5871 = vrot.lane.b32.xlu0 %v5172_v32, %s8206_s3  ;;  %5759 = vrot.lane.b32.xlu2 %v5395_v12, %s8198_s18  ;;  %v5713_v12 = vunpack.c.l.b16 %v4497_v28 }
 0x4ce   :  { %5537 = vrot.lane.b32.xlu1 %v5172_v32, %s8197_s28 }
 0x4cf   :  { %v5640_v18 = vpop.permute.xlu0 %5639  ;;  %v10908_v7 = vpop.permute.xlu2 %5307  ;;  %v5731_v23 = vpack.c.b16 %v5714_v27, %v5713_v12 }
 0x4d0   :  { %v5306_v39 = vpop.permute.xlu1 %5305  ;;  %v6172_v32 = vsel %vm6152_vm14, %v6139_v59, %v5640_v18  ;;  %v4468_v18 = vld [vmem:[#allocation3 + $0x201] sm:$0xff]  ;;  %v6044_v59 = vsel %vm6022_vm12, %v6011_v62, %v10842_v43  ;;  %v10963_v43 = vpop.f32.mrf.mxu1 }
 0x4d1   :  { %v4500_v1 = vpack.c.bf16 %v4468_v18, %v4468_v18  ;;  %v6076_v27 = vsel %vm2703_vm7, %v6044_v59, %v5306_v39 }
 0x4d2   :  { %v6109_v15 = vsel %vm6087_vm13, %v6076_v27, %v10857_v22 }
 0x4d3   :  { %v5716_v28 = vunpack.c.l.b16 %v4500_v1  ;;  %v6141_v39 = vsel %vm2736_vm8, %v6109_v15, %v10895_v58 }
 0x4d5   :  { %5315 = vrot.lane.b32.xlu0 %v5284_v25, %s8196_s20  ;;  %5539 = vrot.lane.b32.xlu2 %v5508_v50, %s8197_s28 }
 0x4d6   :  { %5647 = vrot.lane.b32.xlu1 %v4948_v4, %s8205_s22  ;;  %v4403_v4 = vld [vmem:[#allocation3 + $0x1f8] sm:$0xff] }
 0x4d7   :  { %v10921_v33 = vpop.permute.xlu0 %4863  ;;  %v5754_v31 = vpop.permute.xlu2 %5753  ;;  %v4435_v56 = vpack.c.bf16 %v4403_v4, %v4403_v4  ;;  %v6627_v4 = vrot.slane %v10946_v30, 4 }
 0x4d8   :  { %v5752_v9 = vpop.permute.xlu1 %5751 }
 0x4d9   :  { %v6204_v52 = vsel %vm2769_vm9, %v6172_v32, %v5752_v9  ;;  %v5603_v3 = vunpack.c.l.b16 %v4435_v56  ;;  %v6435_v9 = vrot.slane %v10946_v30, 1  ;;  %v6819_v56 = vrot.slane %v10946_v30, 7 }
 0x4da   :  { %v6237_v21 = vsel %vm6217_vm0, %v6204_v52, %v10873_v13 }
 0x4db   :  { %7999 = vmatmul.msk.bf16.gmra.mxu1 %vm2802_vm10, %v6237_v21  ;;  %v5620_v20 = vpack.c.b16 %v5604_v19, %v5603_v3 }
 0x4dd   :  { %5761 = vrot.lane.b32.xlu0 %v5731_v23, %s8198_s18  ;;  %5649 = vrot.lane.b32.xlu2 %v5284_v25, %s8205_s22  ;;  %v4499_v25 = vpack.c.bf16 %v4467_v40, %v4467_v40  ;;  %v6046_v40 = vsel %vm6022_vm12, %v6013_v34, %v10899_v8 }
 0x4de   :  { %5427 = vrot.lane.b32.xlu1 %v5731_v23, %s8204_s16  ;;  %v6755_v23 = vrot.slane %v10946_v30, 6  ;;  %v6078_v55 = vsel %vm2703_vm7, %v6046_v40, %v10908_v7 }
 0x4df   :  { %v10934_v54 = vpop.permute.xlu0 %4973  ;;  %v10936_v13 = vpop.permute.xlu2 %5087  ;;  %v5715_v32 = vunpack.c.l.b16 %v4499_v25 }
 0x4e0   :  { %v10938_v5 = vpop.permute.xlu1 %5085 }
 0x4e1   :  { %v5732_v29 = vpack.c.b16 %v5716_v28, %v5715_v32 }
 0x4e5   :  { %5651 = vrot.lane.b32.xlu0 %v5620_v20, %s8205_s22  ;;  %5875 = vrot.lane.b32.xlu2 %v5844_v17, %s8206_s3 }
 0x4e6   :  { %5873 = vrot.lane.b32.xlu1 %v5508_v50, %s8206_s3 }
 0x4e7   :  { %v5420_v57 = vpop.permute.xlu0 %5419  ;;  %v10951_v16 = vpop.permute.xlu2 %5533 }
 0x4e8   :  { %v5532_v11 = vpop.permute.xlu1 %5531  ;;  %v6111_v1 = vsel %vm6087_vm13, %v6078_v55, %v5420_v57 }
 0x4e9   :  { %v6143_v0 = vsel %vm2736_vm8, %v6111_v1, %v5532_v11 }
 0x4ed   :  { %6451 = vrot.lane.b32.xlu0 %v6435_v9, %s8201_s8  ;;  %6579 = vrot.lane.b32.xlu2 %v6563_v10, %s8202_s30 }
 0x4ee   :  { %5763 = vrot.lane.b32.xlu1 %v5732_v29, %s8198_s18 }
 0x4ef   :  { %v5866_v50 = vpop.permute.xlu0 %5865  ;;  %v5644_v38 = vpop.permute.xlu2 %5643 }
 0x4f0   :  { %v5642_v52 = vpop.permute.xlu1 %5641  ;;  %v6176_v8 = vsel %vm6152_vm14, %v6143_v0, %v5644_v38 }
 0x4f1   :  { %v6174_v12 = vsel %vm6152_vm14, %v6141_v39, %v5642_v52 }
 0x4f2   :  { %v6206_v21 = vsel %vm2769_vm9, %v6174_v12, %v5754_v31  ;;  %v10981_v31 = vpop.f32.mrf.mxu1  ;;  %v5915_v12 = vsel %vm329_vm5, %v10666_v36, %v10885_v24 }
 0x4f3   :  { %v6239_v22 = vsel %vm6217_vm0, %v6206_v21, %v5866_v50  ;;  %12670 = vst [vmem:[#allocation55_spill] sm:$0xff] %v10981_v31  ;;  %v6500_v45 = vrot.slane %v10981_v31, 2  ;;  %v6564_v3 = vrot.slane %v10981_v31, 3  ;;  %v6692_v18 = vrot.slane %v10981_v31, 5 }
 0x4f4   :  { %8000 = vmatmul.msk.bf16.gmra.mxu1 %vm2802_vm10, %v6239_v22  ;;  %v6756_v62 = vrot.slane %v10981_v31, 6  ;;  %v6436_v61 = vrot.slane %v10981_v31, 1  ;;  %v6628_v11 = vrot.slane %v10981_v31, 4  ;;  %v6820_v39 = vrot.slane %v10981_v31, 7 }
 0x4f5   :  { %6643 = vrot.lane.b32.xlu0 %v6627_v4, %s8195_s15  ;;  %6771 = vrot.lane.b32.xlu2 %v6755_v23, %s8196_s20  ;;  %v5950_v23 = vsel %vm471_vm2, %v5915_v12, %v10826_v47 }
 0x4f6   :  { %6515 = vrot.lane.b32.xlu1 %v6499_v37, %s8194_s4  ;;  %v5983_v37 = vsel %vm5957_vm4, %v5950_v23, %v10934_v54 }
 0x4f7   :  { %v10977_v58 = vpop.permute.xlu0 %4753  ;;  %v10979_v63 = vpop.permute.xlu2 %4867  ;;  %v6015_v36 = vsel %vm2670_vm6, %v5983_v37, %v10938_v5 }
 0x4f8   :  { %v10983_v53 = vpop.permute.xlu1 %4865  ;;  %v6048_v54 = vsel %vm6022_vm12, %v6015_v36, %v10897_v48 }
 0x4fa   :  { %v11012_v41 = vpop.f32.mrf.mxu1 }
 0x4fd   :  { %6835 = vrot.lane.b32.xlu0 %v6819_v56, %s8204_s16  ;;  %6517 = vrot.lane.b32.xlu2 %v6500_v45, %s8194_s4 }
 0x4fe   :  { %6707 = vrot.lane.b32.xlu1 %v6691_v14, %s8203_s1 }
 0x4ff   :  { %v10991_v2 = vpop.permute.xlu0 %5199  ;;  %v10993_v19 = vpop.permute.xlu2 %4977 }
 0x500   :  { %v10995_v6 = vpop.permute.xlu1 %4975 }
 0x502   :  { %v11029_v7 = vpop.f32.mrf.mxu1 }
 0x503   :  { %v6501_v32 = vrot.slane %v11029_v7, 2  ;;  %v6437_v9 = vrot.slane %v11029_v7, 1  ;;  %v6693_v50 = vrot.slane %v11029_v7, 5  ;;  %v6629_v38 = vrot.slane %v11029_v7, 4 }
 0x504   :  { %v6821_v56 = vrot.slane %v11029_v7, 7  ;;  %v6565_v45 = vrot.slane %v11029_v7, 3  ;;  %v6757_v26 = vrot.slane %v11029_v7, 6 }
 0x505   :  { %6581 = vrot.lane.b32.xlu0 %v6564_v3, %s8202_s30  ;;  %6709 = vrot.lane.b32.xlu2 %v6692_v18, %s8203_s1 }
 0x506   :  { %6899 = vrot.lane.b32.xlu1 %v10963_v43, %s8197_s28 }
 0x507   :  { %v5310_v42 = vpop.permute.xlu0 %5309  ;;  %v11010_v20 = vpop.permute.xlu2 %5423 }
 0x508   :  { %v5422_v17 = vpop.permute.xlu1 %5421  ;;  %v6080_v3 = vsel %vm2703_vm7, %v6048_v54, %v5310_v42  ;;  %v5921_v54 = vsel %vm329_vm5, %v10800_v46, %v10977_v58 }
 0x509   :  { %v6113_v51 = vsel %vm6087_vm13, %v6080_v3, %v5422_v17 }
 0x50a   :  { %v11051_v52 = vpop.f32.mrf.mxu1  ;;  %v6145_v48 = vsel %vm2736_vm8, %v6113_v51, %v10951_v16 }
 0x50d   :  { %6773 = vrot.lane.b32.xlu0 %v6756_v62, %s8196_s20  ;;  %6901 = vrot.lane.b32.xlu2 %v11012_v41, %s8197_s28 }
 0x50e   :  { %6453 = vrot.lane.b32.xlu1 %v6436_v61, %s8201_s8 }
 0x50f   :  { %v5756_v25 = vpop.permute.xlu0 %5755  ;;  %v5870_v28 = vpop.permute.xlu2 %5869 }
 0x510   :  { %v6208_v57 = vsel %vm2769_vm9, %v6176_v8, %v5756_v25  ;;  %v5868_v59 = vpop.permute.xlu1 %5867 }
 0x511   :  { %v6241_v27 = vsel %vm6217_vm0, %v6208_v57, %v5868_v59 }
 0x512   :  { %8001 = vmatmul.msk.bf16.gmra.mxu1 %vm2802_vm10, %v6241_v27  ;;  %v11074_v24 = vpop.f32.mrf.mxu1 }
 0x513   :  { %12671 = vst [vmem:[#allocation57_spill] sm:$0xff] %v11074_v24  ;;  %v6566_v18 = vrot.slane %v11074_v24, 3  ;;  %v6438_v5 = vrot.slane %v11074_v24, 1  ;;  %v6758_v61 = vrot.slane %v11074_v24, 6  ;;  %v6630_v0 = vrot.slane %v11074_v24, 4 }
 0x514   :  { %v6502_v16 = vrot.slane %v11074_v24, 2 }
 0x515   :  { %6519 = vrot.lane.b32.xlu0 %v6501_v32, %s8194_s4  ;;  %6455 = vrot.lane.b32.xlu2 %v6437_v9, %s8201_s8  ;;  %v6822_v9 = vrot.slane %v11074_v24, 7 }
 0x516   :  { %6645 = vrot.lane.b32.xlu1 %v6628_v11, %s8195_s15 }
 0x517   :  { %v11040_v10 = vpop.permute.xlu0 %5089  ;;  %v11042_v29 = vpop.permute.xlu2 %5203 }
 0x518   :  { %v11044_v15 = vpop.permute.xlu1 %4755 }
 0x51a   :  { %v11093_v40 = vpop.f32.mrf.mxu1 }
 0x51d   :  { %6711 = vrot.lane.b32.xlu0 %v6693_v50, %s8203_s1  ;;  %6647 = vrot.lane.b32.xlu2 %v6629_v38, %s8195_s15  ;;  %v6694_v50 = vrot.slane %v11074_v24, 5 }
 0x51e   :  { %6837 = vrot.lane.b32.xlu1 %v6820_v39, %s8204_s16 }
 0x51f   :  { %v11057_v21 = vpop.permute.xlu0 %5535  ;;  %v11059_v22 = vpop.permute.xlu2 %5313 }
 0x520   :  { %v11061_v4 = vpop.permute.xlu1 %5201 }
 0x522   :  { %v11105_v57 = vpop.f32.mrf.mxu1 }
 0x523   :  { %12672 = vst [vmem:[#allocation42_spill] sm:$0xff] %v11105_v57  ;;  %v6503_v11 = vrot.slane %v11105_v57, 2  ;;  %v6567_v12 = vrot.slane %v11105_v57, 3  ;;  %v6695_v23 = vrot.slane %v11105_v57, 5  ;;  %v6759_v3 = vrot.slane %v11105_v57, 6 }
 0x525   :  { %6903 = vrot.lane.b32.xlu0 %v11051_v52, %s8197_s28  ;;  %6839 = vrot.lane.b32.xlu2 %v6821_v56, %s8204_s16 }
 0x526   :  { %6583 = vrot.lane.b32.xlu1 %v6565_v45, %s8202_s30 }
 0x527   :  { %v5646_v47 = vpop.permute.xlu0 %5645  ;;  %v5760_v14 = vpop.permute.xlu2 %5759 }
 0x528   :  { %v5312_v44 = vpop.permute.xlu1 %5311  ;;  %v6178_v55 = vsel %vm6152_vm14, %v6145_v48, %v5646_v47 }
 0x52d   :  { %6585 = vrot.lane.b32.xlu2 %v6566_v18, %s8202_s30  ;;  %6457 = vrot.lane.b32.xlu0 %v6438_v5, %s8201_s8  ;;  %v6439_v18 = vrot.slane %v11105_v57, 1 }
 0x52e   :  { %6775 = vrot.lane.b32.xlu1 %v6757_v26, %s8196_s20 }
 0x52f   :  { %v11089_v34 = vpop.permute.xlu0 %4979  ;;  %v11091_v42 = vpop.permute.xlu2 %5539 }
 0x530   :  { %v5758_v17 = vpop.permute.xlu1 %5757 }
 0x531   :  { %v6210_v1 = vsel %vm2769_vm9, %v6178_v55, %v5758_v17 }
 0x532   :  { %v6243_v62 = vsel %vm6217_vm0, %v6210_v1, %v5870_v28  ;;  %v5918_v28 = vsel %vm329_vm5, %v10731_v60, %v10883_v49 }
 0x533   :  { %8002 = vmatmul.msk.bf16.gmra.mxu1 %vm2802_vm10, %v6243_v62  ;;  %v5952_v27 = vsel %vm471_vm2, %v5918_v28, %v10921_v33 }
 0x534   :  { %v5985_v32 = vsel %vm5957_vm4, %v5952_v27, %v10995_v6 }
 0x535   :  { %6777 = vrot.lane.b32.xlu2 %v6758_v61, %s8196_s20  ;;  %6649 = vrot.lane.b32.xlu0 %v6630_v0, %s8195_s15  ;;  %v6017_v38 = vsel %vm2670_vm6, %v5985_v32, %v10936_v13 }
 0x536   :  { %6521 = vrot.lane.b32.xlu1 %v6502_v16, %s8194_s4  ;;  %v6050_v6 = vsel %vm6022_vm12, %v6017_v38, %v10991_v2  ;;  %v11139_v2 = vpop.f32.mrf.mxu1 }
 0x537   :  { %v5426_v8 = vpop.permute.xlu0 %5425  ;;  %v5650_v25 = vpop.permute.xlu2 %5649  ;;  %v6082_v39 = vsel %vm2703_vm7, %v6050_v6, %v5312_v44 }
 0x538   :  { %v11107_v59 = vpop.permute.xlu1 %5091  ;;  %v6115_v37 = vsel %vm6087_vm13, %v6082_v39, %v11010_v20 }
 0x539   :  { %v6147_v45 = vsel %vm2736_vm8, %v6115_v37, %v11057_v21  ;;  %v5954_v21 = vsel %vm471_vm2, %v5921_v54, %v10983_v53 }
 0x53a   :  { %v5987_v46 = vsel %vm5957_vm4, %v5954_v21, %v10993_v19  ;;  %v6631_v19 = vrot.slane %v11105_v57, 4 }
 0x53b   :  { %v6019_v51 = vsel %vm2670_vm6, %v5987_v46, %v11040_v10 }
 0x53c   :  { %v6052_v48 = vsel %vm6022_vm12, %v6019_v51, %v11061_v4 }
 0x53d   :  { %6841 = vrot.lane.b32.xlu0 %v6822_v9, %s8204_s16  ;;  %6523 = vrot.lane.b32.xlu2 %v6503_v11, %s8194_s4  ;;  %v6084_v17 = vsel %vm2703_vm7, %v6052_v48, %v11059_v22  ;;  %v5924_v22 = vsel %vm329_vm5, %v10832_v35, %v11044_v15  ;;  %v6823_v11 = vrot.slane %v11105_v57, 7 }
 0x53e   :  { %6713 = vrot.lane.b32.xlu1 %v6694_v50, %s8203_s1  ;;  %v11162_v5 = vpop.f32.mrf.mxu1  ;;  %v6117_v1 = vsel %vm6087_vm13, %v6084_v17, %v5426_v8  ;;  %v5956_v9 = vsel %vm471_vm2, %v5924_v22, %v10979_v63 }
 0x53f   :  { %v5872_v60 = vpop.permute.xlu0 %5871  ;;  %v11124_v49 = vpop.permute.xlu2 %5875  ;;  %v6504_v55 = vrot.slane %v11162_v5, 2  ;;  %v6440_v53 = vrot.slane %v11162_v5, 1  ;;  %v6696_v28 = vrot.slane %v11162_v5, 5  ;;  %v6632_v27 = vrot.slane %v11162_v5, 4 }
 0x540   :  { %v5538_v33 = vpop.permute.xlu1 %5537  ;;  %v5989_v35 = vsel %vm5957_vm4, %v5956_v9, %v11089_v34 }
 0x541   :  { %v6149_v10 = vsel %vm2736_vm8, %v6117_v1, %v5538_v33  ;;  %v6021_v15 = vsel %vm2670_vm6, %v5989_v35, %v11107_v59  ;;  %v6824_v33 = vrot.slane %v11162_v5, 7  ;;  %v6568_v59 = vrot.slane %v11162_v5, 3 }
 0x542   :  { %v6182_v0 = vsel %vm6152_vm14, %v6149_v10, %v5650_v25  ;;  %v6054_v38 = vsel %vm6022_vm12, %v6021_v15, %v11042_v29 }
 0x545   :  { %6587 = vrot.lane.b32.xlu0 %v6567_v12, %s8202_s30  ;;  %6715 = vrot.lane.b32.xlu2 %v6695_v23, %s8203_s1 }
 0x546   :  { %6905 = vrot.lane.b32.xlu1 %v11093_v40, %s8197_s28  ;;  %v11188_v32 = vpop.f32.mrf.mxu1 }
 0x547   :  { %v5316_v13 = vpop.permute.xlu0 %5315  ;;  %v11137_v56 = vpop.permute.xlu2 %6579 }
 0x548   :  { %12673 = vst [vmem:[#allocation38_spill] sm:$0xff] %v11137_v56  ;;  %v5648_v36 = vpop.permute.xlu1 %5647 }
 0x549   :  { %v6180_v47 = vsel %vm6152_vm14, %v6147_v45, %v5648_v36 }
 0x54a   :  { %v6212_v20 = vsel %vm2769_vm9, %v6180_v47, %v5760_v14 }
 0x54b   :  { %v6245_v44 = vsel %vm6217_vm0, %v6212_v20, %v5872_v60  ;;  %v6086_v60 = vsel %vm2703_vm7, %v6054_v38, %v5316_v13 }
 0x54c   :  { %8003 = vmatmul.msk.bf16.gmra.mxu1 %vm2802_vm10, %v6245_v44 }
 0x54d   :  { %6779 = vrot.lane.b32.xlu0 %v6759_v3, %s8196_s20  ;;  %6907 = vrot.lane.b32.xlu2 %v11139_v2, %s8197_s28 }
 0x54e   :  { %6459 = vrot.lane.b32.xlu1 %v6439_v18, %s8201_s8  ;;  %v11210_v6 = vpop.f32.mrf.mxu1 }
 0x54f   :  { %v5762_v58 = vpop.permute.xlu0 %5761  ;;  %v11160_v14 = vpop.permute.xlu2 %6771  ;;  %12678 = vst [vmem:[#allocation53_spill] sm:$0xff] %v11210_v6  ;;  %v6569_v36 = vrot.slane %v11210_v6, 3  ;;  %v6441_v47 = vrot.slane %v11210_v6, 1  ;;  %v6761_v3 = vrot.slane %v11210_v6, 6  ;;  %v6633_v18 = vrot.slane %v11210_v6, 4 }
 0x550   :  { %12674 = vst [vmem:[#allocation32_spill] sm:$0xff] %v11160_v14  ;;  %v5428_v26 = vpop.permute.xlu1 %5427  ;;  %v6214_v16 = vsel %vm2769_vm9, %v6182_v0, %v5762_v58  ;;  %v6505_v21 = vrot.slane %v11210_v6, 2  ;;  %v6825_v48 = vrot.slane %v11210_v6, 7 }
 0x551   :  { %v6119_v34 = vsel %vm6087_vm13, %v6086_v60, %v5428_v26 }
 0x552   :  { %v6151_v39 = vsel %vm2736_vm8, %v6119_v34, %v11091_v42  ;;  %v6760_v42 = vrot.slane %v11162_v5, 6 }
 0x555   :  { %6525 = vrot.lane.b32.xlu0 %v6504_v55, %s8194_s4  ;;  %6461 = vrot.lane.b32.xlu2 %v6440_v53, %s8201_s8  ;;  %v6697_v53 = vrot.slane %v11210_v6, 5 }
 0x556   :  { %6651 = vrot.lane.b32.xlu1 %v6631_v19, %s8195_s15  ;;  %v11235_v20 = vpop.f32.mrf.mxu1 }
 0x557   :  { %v5652_v4 = vpop.permute.xlu0 %5651  ;;  %v11178_v62 = vpop.permute.xlu2 %6517 }
 0x558   :  { %12675 = vst [vmem:[#allocation43_spill] sm:$0xff] %v11178_v62  ;;  %v5874_v61 = vpop.permute.xlu1 %5873  ;;  %v6184_v29 = vsel %vm6152_vm14, %v6151_v39, %v5652_v4 }
 0x559   :  { %v6247_v8 = vsel %vm6217_vm0, %v6214_v16, %v5874_v61 }
 0x55c   :  { %8004 = vmatmul.msk.bf16.gmra.mxu1 %vm2802_vm10, %v6247_v8 }
 0x55d   :  { %6717 = vrot.lane.b32.xlu0 %v6696_v28, %s8203_s1  ;;  %6653 = vrot.lane.b32.xlu2 %v6632_v27, %s8195_s15 }
 0x55e   :  { %6843 = vrot.lane.b32.xlu1 %v6823_v11, %s8204_s16  ;;  %v11254_v51 = vpop.f32.mrf.mxu1 }
 0x55f   :  { %v11201_v25 = vpop.permute.xlu0 %6451  ;;  %v11203_v50 = vpop.permute.xlu2 %6709  ;;  %12685 = vst [vmem:[#allocation51_spill] sm:$0xff] %v11254_v51  ;;  %v6506_v55 = vrot.slane %v11254_v51, 2  ;;  %v6570_v10 = vrot.slane %v11254_v51, 3  ;;  %v6698_v4 = vrot.slane %v11254_v51, 5  ;;  %v6762_v8 = vrot.slane %v11254_v51, 6 }
 0x560   :  { %12676 = vst [vmem:[#allocation56_spill] sm:$0xff] %v11201_v25  ;;  %v5764_v63 = vpop.permute.xlu1 %5763  ;;  %v6442_v28 = vrot.slane %v11254_v51, 1  ;;  %v6634_v38 = vrot.slane %v11254_v51, 4 }
 0x561   :  { %12677 = vst [vmem:[#allocation49_spill] sm:$0xff] %v11203_v50  ;;  %v6216_v37 = vsel %vm2769_vm9, %v6184_v29, %v5764_v63 }
 0x562   :  { %v6249_v45 = vsel %vm6217_vm0, %v6216_v37, %v11124_v49  ;;  %v6826_v37 = vrot.slane %v11254_v51, 7 }
 0x565   :  { %6845 = vrot.lane.b32.xlu2 %v6824_v33, %s8204_s16  ;;  %6909 = vrot.lane.b32.xlu0 %v11188_v32, %s8197_s28 }
 0x566   :  { %6589 = vrot.lane.b32.xlu1 %v6568_v59, %s8202_s30  ;;  %v11274_v61 = vpop.f32.mrf.mxu1 }
 0x567   :  { %v11220_v12 = vpop.permute.xlu0 %6643  ;;  %v11222_v23 = vpop.permute.xlu2 %6901 }
 0x568   :  { %12679 = vst [vmem:[#allocation58_spill] sm:$0xff] %v11220_v12  ;;  %v11225_v13 = vpop.permute.xlu1 %6515 }
 0x569   :  { %12680 = vst [vmem:[#allocation68_spill] sm:$0xff] %v11222_v23 }
 0x56a   :  { %12681 = vst [vmem:[#allocation9_spill] sm:$0xff] %v11225_v13 }
 0x56c   :  { %8005 = vmatmul.msk.bf16.gmra.mxu1 %vm2802_vm10, %v6249_v45 }
 0x56d   :  { %6591 = vrot.lane.b32.xlu2 %v6569_v36, %s8202_s30  ;;  %6463 = vrot.lane.b32.xlu0 %v6441_v47, %s8201_s8 }
 0x56e   :  { %6781 = vrot.lane.b32.xlu1 %v6760_v42, %s8196_s20  ;;  %v11289_v27 = vpop.f32.mrf.mxu1 }
 0x56f   :  { %v11238_v54 = vpop.permute.xlu0 %6835  ;;  %v11240_v44 = vpop.permute.xlu2 %6455  ;;  %v6507_v15 = vrot.slane %v11289_v27, 2  ;;  %v6443_v63 = vrot.slane %v11289_v27, 1  ;;  %v6699_v39 = vrot.slane %v11289_v27, 5  ;;  %v6635_v29 = vrot.slane %v11289_v27, 4 }
 0x570   :  { %12682 = vst [vmem:[#allocation52_spill] sm:$0xff] %v11238_v54  ;;  %v11242_v49 = vpop.permute.xlu1 %6707 }
 0x571   :  { %12683 = vst [vmem:[#allocation63_spill] sm:$0xff] %v11242_v49 }
 0x575   :  { %6783 = vrot.lane.b32.xlu2 %v6761_v3, %s8196_s20  ;;  %6655 = vrot.lane.b32.xlu0 %v6633_v18, %s8195_s15  ;;  %v6827_v3 = vrot.slane %v11289_v27, 7 }
 0x576   :  { %6527 = vrot.lane.b32.xlu1 %v6505_v21, %s8194_s4  ;;  %v11308_v33 = vpop.f32.mrf.mxu1  ;;  %v6571_v21 = vrot.slane %v11289_v27, 3 }
 0x577   :  { %v11250_v46 = vpop.permute.xlu0 %6581  ;;  %v11252_v58 = vpop.permute.xlu2 %6647 }
 0x578   :  { %12684 = vst [vmem:[#allocation10_spill] sm:$0xff] %v11250_v46  ;;  %v11256_v26 = vpop.permute.xlu1 %6899 }
 0x579   :  { %12686 = vst [vmem:[#allocation35_spill] sm:$0xff] %v11256_v26 }
 0x57d   :  { %6847 = vrot.lane.b32.xlu0 %v6825_v48, %s8204_s16  ;;  %6529 = vrot.lane.b32.xlu2 %v6506_v55, %s8194_s4 }
 0x57e   :  { %6719 = vrot.lane.b32.xlu1 %v6697_v53, %s8203_s1  ;;  %v11322_v47 = vpop.f32.mrf.mxu1 }
 0x57f   :  { %v11264_v17 = vpop.permute.xlu0 %6773  ;;  %v11266_v19 = vpop.permute.xlu2 %6839  ;;  %v6444_v18 = vrot.slane %v11322_v47, 1 }
 0x580   :  { %12687 = vst [vmem:[#allocation54_spill] sm:$0xff] %v11264_v17  ;;  %v11268_v1 = vpop.permute.xlu1 %6453 }
 0x581   :  { %12688 = vst [vmem:[#allocation60_spill] sm:$0xff] %v11268_v1 }
 0x585   :  { %6593 = vrot.lane.b32.xlu0 %v6570_v10, %s8202_s30  ;;  %6721 = vrot.lane.b32.xlu2 %v6698_v4, %s8203_s1  ;;  %v6572_v4 = vrot.slane %v11322_v47, 3 }
 0x586   :  { %6911 = vrot.lane.b32.xlu1 %v11235_v20, %s8197_s28  ;;  %v11338_v10 = vpop.f32.mrf.mxu1 }
 0x587   :  { %v11278_v22 = vpop.permute.xlu0 %6519  ;;  %v11280_v0 = vpop.permute.xlu2 %6585 }
 0x588   :  { %12689 = vst [vmem:[#allocation66_spill] sm:$0xff] %v11280_v0  ;;  %v11282_v16 = vpop.permute.xlu1 %6645 }
 0x589   :  { %12690 = vst [vmem:[#allocation62_spill] sm:$0xff] %v11282_v16 }
 0x58d   :  { %6785 = vrot.lane.b32.xlu0 %v6762_v8, %s8196_s20  ;;  %6913 = vrot.lane.b32.xlu2 %v11274_v61, %s8197_s28  ;;  %v6636_v8 = vrot.slane %v11322_v47, 4 }
 0x58e   :  { %6465 = vrot.lane.b32.xlu1 %v6442_v28, %s8201_s8  ;;  %v6763_v28 = vrot.slane %v11289_v27, 6 }
 0x58f   :  { %v11292_v9 = vpop.permute.xlu0 %6711  ;;  %v11294_v11 = vpop.permute.xlu2 %6777 }
 0x590   :  { %12691 = vst [vmem:[#allocation67_spill] sm:$0xff] %v11294_v11  ;;  %v11296_v35 = vpop.permute.xlu1 %6837 }
 0x591   :  { %12692 = vst [vmem:[#allocation72_spill] sm:$0xff] %v11296_v35 }
 0x595   :  { %6531 = vrot.lane.b32.xlu0 %v6507_v15, %s8194_s4  ;;  %6467 = vrot.lane.b32.xlu2 %v6443_v63, %s8201_s8 }
 0x596   :  { %6657 = vrot.lane.b32.xlu1 %v6634_v38, %s8195_s15 }
 0x597   :  { %v11304_v60 = vpop.permute.xlu0 %6903  ;;  %v11306_v34 = vpop.permute.xlu2 %6523 }
 0x598   :  { %12693 = vst [vmem:[#allocation65_spill] sm:$0xff] %v11304_v60  ;;  %v11310_v59 = vpop.permute.xlu1 %6583 }
 0x599   :  { %12694 = vst [vmem:[#allocation75_spill] sm:$0xff] %v11306_v34 }
 0x59d   :  { %6723 = vrot.lane.b32.xlu0 %v6699_v39, %s8203_s1  ;;  %6659 = vrot.lane.b32.xlu2 %v6635_v29, %s8195_s15  ;;  %v11352_v39 = vpop.f32.mrf.mxu1  ;;  %v6764_v29 = vrot.slane %v11322_v47, 6 }
 0x59e   :  { %6849 = vrot.lane.b32.xlu1 %v6826_v37, %s8204_s16  ;;  %v6828_v37 = vrot.slane %v11322_v47, 7  ;;  %v6765_v23 = vrot.slane %v11352_v39, 6  ;;  %v6701_v51 = vrot.slane %v11352_v39, 5  ;;  %v6637_v35 = vrot.slane %v11352_v39, 4 }
 0x59f   :  { %v11318_v45 = vpop.permute.xlu0 %6457  ;;  %v11320_v36 = vpop.permute.xlu2 %6715  ;;  %v6829_v11 = vrot.slane %v11352_v39, 7 }
 0x5a0   :  { %12695 = vst [vmem:[#allocation64_spill] sm:$0xff] %v11318_v45  ;;  %v11324_v42 = vpop.permute.xlu1 %6775 }
 0x5a1   :  { %12696 = vst [vmem:[#allocation44_spill] sm:$0xff] %v11320_v36  ;;  %v6700_v36 = vrot.slane %v11322_v47, 5 }
 0x5a5   :  { %6851 = vrot.lane.b32.xlu2 %v6827_v3, %s8204_s16  ;;  %6469 = vrot.lane.b32.xlu0 %v6444_v18, %s8201_s8  ;;  %v6508_v3 = vrot.slane %v11322_v47, 2 }
 0x5a6   :  { %6595 = vrot.lane.b32.xlu1 %v6571_v21, %s8202_s30 }
 0x5a7   :  { %v11332_v48 = vpop.permute.xlu0 %6649  ;;  %v11334_v55 = vpop.permute.xlu2 %6907 }
 0x5a8   :  { %12697 = vst [vmem:[#allocation59_spill] sm:$0xff] %v11332_v48  ;;  %v11336_v53 = vpop.permute.xlu1 %6521 }
 0x5a9   :  { %12698 = vst [vmem:[#allocation73_spill] sm:$0xff] %v11334_v55  ;;  %v11368_v55 = vpop.f32.mrf.mxu1 }
 0x5aa   :  { %12699 = vst [vmem:[#allocation74_spill] sm:$0xff] %v11336_v53 }
 0x5ad   :  { %6597 = vrot.lane.b32.xlu2 %v6572_v4, %s8202_s30  ;;  %6661 = vrot.lane.b32.xlu0 %v6636_v8, %s8195_s15  ;;  %v6573_v8 = vrot.slane %v11352_v39, 3 }
 0x5ae   :  { %6787 = vrot.lane.b32.xlu1 %v6763_v28, %s8196_s20  ;;  %v6509_v28 = vrot.slane %v11352_v39, 2 }
 0x5af   :  { %v11346_v15 = vpop.permute.xlu0 %6841  ;;  %v11348_v63 = vpop.permute.xlu2 %6461 }
 0x5b0   :  { %12700 = vst [vmem:[#allocation77_spill] sm:$0xff] %v11346_v15  ;;  %v11350_v38 = vpop.permute.xlu1 %6713  ;;  %v6445_v15 = vrot.slane %v11352_v39, 1 }
 0x5b1   :  { %12701 = vst [vmem:[#allocation78_spill] sm:$0xff] %v11350_v38 }
 0x5b5   :  { %6789 = vrot.lane.b32.xlu2 %v6764_v29, %s8196_s20  ;;  %6853 = vrot.lane.b32.xlu0 %v6828_v37, %s8204_s16 }
 0x5b6   :  { %6533 = vrot.lane.b32.xlu1 %v6508_v3, %s8194_s4 }
 0x5b7   :  { %v11360_v18 = vpop.permute.xlu0 %6587  ;;  %v11362_v21 = vpop.permute.xlu2 %6653 }
 0x5b8   :  { %12702 = vst [vmem:[#allocation70_spill] sm:$0xff] %v11360_v18  ;;  %v11364_v4 = vpop.permute.xlu1 %6905 }
 0x5b9   :  { %12703 = vst [vmem:[#allocation86_spill] sm:$0xff] %v11364_v4  ;;  %v11382_v4 = vpop.f32.mrf.mxu1 }
 0x5ba   :  { %12707 = vst [vmem:[#allocation50_spill] sm:$0xff] %v11382_v4  ;;  %v6446_v18 = vrot.slane %v11382_v4, 1  ;;  %v6638_v17 = vrot.slane %v11382_v4, 4  ;;  %v6574_v50 = vrot.slane %v11382_v4, 3  ;;  %v6766_v57 = vrot.slane %v11382_v4, 6 }
 0x5bd   :  { %6599 = vrot.lane.b32.xlu0 %v6573_v8, %s8202_s30  ;;  %6535 = vrot.lane.b32.xlu2 %v6509_v28, %s8194_s4 }
 0x5be   :  { %6725 = vrot.lane.b32.xlu1 %v6700_v36, %s8203_s1 }
 0x5bf   :  { %v11374_v29 = vpop.permute.xlu0 %6779  ;;  %v11376_v37 = vpop.permute.xlu2 %6845 }
 0x5c0   :  { %12704 = vst [vmem:[#allocation76_spill] sm:$0xff] %v11374_v29  ;;  %v11378_v3 = vpop.permute.xlu1 %6459  ;;  %v6510_v29 = vrot.slane %v11382_v4, 2 }
 0x5c1   :  { %12705 = vst [vmem:[#allocation88_spill] sm:$0xff] %v11376_v37  ;;  %v6949_v37 = vrot.slane %v11051_v52, 1 }
 0x5c2   :  { %12706 = vst [vmem:[#allocation69_spill] sm:$0xff] %v11378_v3 }
 0x5c5   :  { %6791 = vrot.lane.b32.xlu0 %v6765_v23, %s8196_s20  ;;  %6727 = vrot.lane.b32.xlu2 %v6701_v51, %s8203_s1  ;;  %v11399_v23 = vpop.f32.mrf.mxu1 }
 0x5c6   :  { %6471 = vrot.lane.b32.xlu1 %v6445_v15, %s8201_s8 }
 0x5c7   :  { %v11388_v36 = vpop.permute.xlu0 %6525  ;;  %v11390_v8 = vpop.permute.xlu2 %6591 }
 0x5c8   :  { %12708 = vst [vmem:[#allocation71_spill] sm:$0xff] %v11390_v8  ;;  %v11392_v28 = vpop.permute.xlu1 %6651 }
 0x5c9   :  { %12709 = vst [vmem:[#allocation87_spill] sm:$0xff] %v11392_v28  ;;  %v6702_v28 = vrot.slane %v11382_v4, 5 }
 0x5cd   :  { %6537 = vrot.lane.b32.xlu0 %v6510_v29, %s8194_s4  ;;  %6473 = vrot.lane.b32.xlu2 %v6446_v18, %s8201_s8  ;;  %v11413_v18 = vpop.f32.mrf.mxu1 }
 0x5ce   :  { %6663 = vrot.lane.b32.xlu1 %v6637_v35, %s8195_s15  ;;  %v6447_v34 = vrot.slane %v11413_v18, 1  ;;  %v6575_v6 = vrot.slane %v11413_v18, 3  ;;  %v6639_v38 = vrot.slane %v11413_v18, 4  ;;  %v6831_v3 = vrot.slane %v11413_v18, 7 }
 0x5cf   :  { %v11402_v51 = vpop.permute.xlu0 %6717  ;;  %v11404_v15 = vpop.permute.xlu2 %6783  ;;  %v6511_v48 = vrot.slane %v11413_v18, 2  ;;  %v6703_v26 = vrot.slane %v11413_v18, 5 }
 0x5d0   :  { %12710 = vst [vmem:[#allocation80_spill] sm:$0xff] %v11402_v51  ;;  %v11406_v8 = vpop.permute.xlu1 %6843 }
 0x5d1   :  { %12711 = vst [vmem:[#allocation84_spill] sm:$0xff] %v11404_v15 }
 0x5d2   :  { %12712 = vst [vmem:[#allocation89_spill] sm:$0xff] %v11406_v8  ;;  %v6830_v8 = vrot.slane %v11382_v4, 7 }
 0x5d5   :  { %6729 = vrot.lane.b32.xlu0 %v6702_v28, %s8203_s1  ;;  %6665 = vrot.lane.b32.xlu2 %v6638_v17, %s8195_s15  ;;  %v11432_v28 = vpop.f32.mrf.mxu1 }
 0x5d6   :  { %6855 = vrot.lane.b32.xlu1 %v6829_v11, %s8204_s16 }
 0x5d7   :  { %v11416_v35 = vpop.permute.xlu0 %6909  ;;  %v11418_v29 = vpop.permute.xlu2 %6529 }
 0x5d8   :  { %12713 = vst [vmem:[#allocation79_spill] sm:$0xff] %v11416_v35  ;;  %v11420_v15 = vpop.permute.xlu1 %6589  ;;  %v6947_v35 = vrot.slane %v10963_v43, 1 }
 0x5d9   :  { %12714 = vst [vmem:[#allocation13_spill] sm:$0xff] %v11418_v29 }
 0x5dd   :  { %6857 = vrot.lane.b32.xlu2 %v6830_v8, %s8204_s16  ;;  %6475 = vrot.lane.b32.xlu0 %v6447_v34, %s8201_s8  ;;  %v11446_v8 = vpop.f32.mrf.mxu1 }
 0x5de   :  { %6601 = vrot.lane.b32.xlu1 %v6574_v50, %s8202_s30  ;;  %v6448_v54 = vrot.slane %v11446_v8, 1  ;;  %v6640_v46 = vrot.slane %v11446_v8, 4  ;;  %v6832_v14 = vrot.slane %v11446_v8, 7 }
 0x5df   :  { %v11428_v17 = vpop.permute.xlu0 %6463  ;;  %v11430_v11 = vpop.permute.xlu2 %6721 }
 0x5e0   :  { %12715 = vst [vmem:[#allocation83_spill] sm:$0xff] %v11428_v17  ;;  %v11434_v29 = vpop.permute.xlu1 %6781  ;;  %v6767_v17 = vrot.slane %v11413_v18, 6 }
 0x5e1   :  { %12716 = vst [vmem:[#allocation15_spill] sm:$0xff] %v11430_v11 }
 0x5e2   :  { %12717 = vst [vmem:[#allocation82_spill] sm:$0xff] %v11434_v29 }
 0x5e5   :  { %6603 = vrot.lane.b32.xlu2 %v6575_v6, %s8202_s30  ;;  %6667 = vrot.lane.b32.xlu0 %v6639_v38, %s8195_s15 }
 0x5e6   :  { %6793 = vrot.lane.b32.xlu1 %v6766_v57, %s8196_s20 }
 0x5e7   :  { %v11442_v50 = vpop.permute.xlu0 %6655  ;;  %v11444_v34 = vpop.permute.xlu2 %6913 }
 0x5e8   :  { %12718 = vst [vmem:[#allocation61_spill] sm:$0xff] %v11442_v50  ;;  %v11448_v11 = vpop.permute.xlu1 %6527  ;;  %v6576_v50 = vrot.slane %v11446_v8, 3 }
 0x5e9   :  { %12719 = vst [vmem:[#allocation85_spill] sm:$0xff] %v11444_v34  ;;  %v11462_v34 = vpop.f32.mrf.mxu1 }
 0x5ea   :  { %12720 = vst [vmem:[#allocation81_spill] sm:$0xff] %v11448_v11  ;;  %v6512_v11 = vrot.slane %v11446_v8, 2 }
 0x5ed   :  { %6795 = vrot.lane.b32.xlu2 %v6767_v17, %s8196_s20  ;;  %6859 = vrot.lane.b32.xlu0 %v6831_v3, %s8204_s16 }
 0x5ee   :  { %6539 = vrot.lane.b32.xlu1 %v6511_v48, %s8194_s4 }
 0x5ef   :  { %v11456_v57 = vpop.permute.xlu0 %6847  ;;  %v11458_v6 = vpop.permute.xlu2 %6467 }
 0x5f0   :  { %12721 = vst [vmem:[#allocation21_spill] sm:$0xff] %v11456_v57  ;;  %v11460_v38 = vpop.permute.xlu1 %6719  ;;  %v6768_v57 = vrot.slane %v11446_v8, 6 }
 0x5f1   :  { %12722 = vst [vmem:[#allocation22_spill] sm:$0xff] %v11460_v38  ;;  %v6704_v38 = vrot.slane %v11446_v8, 5  ;;  %v11478_v16 = vpop.f32.mrf.mxu1 }
 0x5f2   :  { %v6641_v0 = vrot.slane %v11478_v16, 4  ;;  %v6577_v24 = vrot.slane %v11478_v16, 3  ;;  %v6769_v49 = vrot.slane %v11478_v16, 6 }
 0x5f5   :  { %6605 = vrot.lane.b32.xlu0 %v6576_v50, %s8202_s30  ;;  %6541 = vrot.lane.b32.xlu2 %v6512_v11, %s8194_s4 }
 0x5f6   :  { %6731 = vrot.lane.b32.xlu1 %v6703_v26, %s8203_s1 }
 0x5f7   :  { %v11470_v48 = vpop.permute.xlu0 %6593  ;;  %v11472_v3 = vpop.permute.xlu2 %6659 }
 0x5f8   :  { %12723 = vst [vmem:[#allocation30_spill] sm:$0xff] %v11470_v48  ;;  %v11474_v17 = vpop.permute.xlu1 %6911  ;;  %v6449_v48 = vrot.slane %v11478_v16, 1 }
 0x5f9   :  { %12724 = vst [vmem:[#allocation31_spill] sm:$0xff] %v11472_v3  ;;  %v6952_v3 = vrot.slane %v11188_v32, 1 }
 0x5fa   :  { %12725 = vst [vmem:[#allocation33_spill] sm:$0xff] %v11474_v17  ;;  %v6513_v17 = vrot.slane %v11478_v16, 2 }
 0x5fd   :  { %6797 = vrot.lane.b32.xlu0 %v6768_v57, %s8196_s20  ;;  %6733 = vrot.lane.b32.xlu2 %v6704_v38, %s8203_s1  ;;  %v11495_v57 = vpop.f32.mrf.mxu1 }
 0x5fe   :  { %6477 = vrot.lane.b32.xlu1 %v6448_v54, %s8201_s8 }
 0x5ff   :  { %v11484_v26 = vpop.permute.xlu0 %6785  ;;  %v11486_v11 = vpop.permute.xlu2 %6851 }
 0x600   :  { %12726 = vst [vmem:[#allocation34_spill] sm:$0xff] %v11484_v26  ;;  %v11488_v50 = vpop.permute.xlu1 %6465 }
 0x601   :  { %12727 = vst [vmem:[#allocation36_spill] sm:$0xff] %v11486_v11 }
 0x602   :  { %12728 = vst [vmem:[#allocation37_spill] sm:$0xff] %v11488_v50  ;;  %v6705_v50 = vrot.slane %v11478_v16, 5 }
 0x605   :  { %6543 = vrot.lane.b32.xlu0 %v6513_v17, %s8194_s4  ;;  %6479 = vrot.lane.b32.xlu2 %v6449_v48, %s8201_s8  ;;  %v11514_v17 = vpop.f32.mrf.mxu1 }
 0x606   :  { %6669 = vrot.lane.b32.xlu1 %v6640_v46, %s8195_s15  ;;  %v6450_v53 = vrot.slane %v11514_v17, 1  ;;  %v6642_v45 = vrot.slane %v11514_v17, 4  ;;  %v6770_v31 = vrot.slane %v11514_v17, 6  ;;  %v6834_v1 = vrot.slane %v11514_v17, 7 }
 0x607   :  { %v11498_v54 = vpop.permute.xlu0 %6531  ;;  %v11500_v38 = vpop.permute.xlu2 %6597  ;;  %v6514_v12 = vrot.slane %v11514_v17, 2  ;;  %v6706_v56 = vrot.slane %v11514_v17, 5 }
 0x608   :  { %v11502_v26 = vpop.permute.xlu1 %6657 }
 0x609   :  { %12729 = vst [vmem:[#allocation40_spill] sm:$0xff] %v11502_v26  ;;  %v6833_v26 = vrot.slane %v11478_v16, 7 }
 0x60d   :  { %6735 = vrot.lane.b32.xlu0 %v6705_v50, %s8203_s1  ;;  %6671 = vrot.lane.b32.xlu2 %v6641_v0, %s8195_s15 }
 0x60e   :  { %6861 = vrot.lane.b32.xlu1 %v6832_v14, %s8204_s16 }
 0x60f   :  { %v11510_v48 = vpop.permute.xlu0 %6723  ;;  %v11512_v46 = vpop.permute.xlu2 %6789 }
 0x610   :  { %12730 = vst [vmem:[#allocation41_spill] sm:$0xff] %v11510_v48  ;;  %v11516_v62 = vpop.permute.xlu1 %6849  ;;  %v6951_v48 = vrot.slane %v11139_v2, 1 }
 0x611   :  { %12731 = vst [vmem:[#allocation7_spill] sm:$0xff] %v11516_v62  ;;  %v6578_v62 = vrot.slane %v11514_v17, 3 }
 0x615   :  { %6863 = vrot.lane.b32.xlu2 %v6833_v26, %s8204_s16  ;;  %6481 = vrot.lane.b32.xlu0 %v6450_v53, %s8201_s8 }
 0x616   :  { %6607 = vrot.lane.b32.xlu1 %v6577_v24, %s8202_s30 }
 0x617   :  { %v11524_v14 = vpop.permute.xlu0 %6469  ;;  %v11526_v0 = vpop.permute.xlu2 %6535 }
 0x618   :  { %v11528_v50 = vpop.permute.xlu1 %6595 }
 0x619   :  { %12732 = vst [vmem:[#allocation8_spill] sm:$0xff] %v11528_v50 }
 0x61d   :  { %6609 = vrot.lane.b32.xlu2 %v6578_v62, %s8202_s30  ;;  %6673 = vrot.lane.b32.xlu0 %v6642_v45, %s8195_s15  ;;  %s8208_s15 = smov 120   ;;  %s8209_s30 = smov [#allocation4]  }
 0x61e   :  { %6799 = vrot.lane.b32.xlu1 %v6769_v49, %s8196_s20 }
 0x61f   :  { %v11536_v53 = vpop.permute.xlu0 %6661  ;;  %v11538_v24 = vpop.permute.xlu2 %6727 }
 0x620   :  { %12733 = vst [vmem:[#allocation11_spill] sm:$0xff] %v11538_v24  ;;  %v11540_v26 = vpop.permute.xlu1 %6787 }
 0x621   :  { %12734 = vst [vmem:[#allocation12_spill] sm:$0xff] %v11540_v26  ;;  %v11590_v26 = vpop.f32.mrf.mxu1 }
 0x622   :  { %v6962_v50 = vrot.slane %v11590_v26, 1 }
 0x625   :  { %6801 = vrot.lane.b32.xlu2 %v6770_v31, %s8196_s20  ;;  %6865 = vrot.lane.b32.xlu0 %v6834_v1, %s8204_s16  ;;  %s8210_s16 = smov 1  }
 0x626   :  { %6545 = vrot.lane.b32.xlu1 %v6514_v12, %s8194_s4 }
 0x627   :  { %v11548_v62 = vpop.permute.xlu0 %6853  ;;  %v11550_v49 = vpop.permute.xlu2 %6473 }
 0x628   :  { %12735 = vst [vmem:[#allocation14_spill] sm:$0xff] %v11550_v49  ;;  %v11552_v45 = vpop.permute.xlu1 %6533  ;;  %v6953_v49 = vrot.slane %v11235_v20, 1 }
 0x62d   :  { %6919 = vrot.lane.b32.xlu2 %v11368_v55, %s8197_s28  ;;  %6915 = vrot.lane.b32.xlu0 %v11308_v33, %s8197_s28 }
 0x62e   :  { %6737 = vrot.lane.b32.xlu1 %v6706_v56, %s8203_s1  ;;  %s7804_s1 = sshll.u32 %s8209_s30, 4  ;;  %s7805_s1 = int_to_ptr.vmem [resolvable:$true] %s7804_s1 }
 0x62f   :  { %v11560_v31 = vpop.permute.xlu0 %6599  ;;  %v11562_v1 = vpop.permute.xlu2 %6665 }
 0x630   :  { %12736 = vst [vmem:[#allocation16_spill] sm:$0xff] %v11560_v31  ;;  %v11564_v12 = vpop.permute.xlu1 %6725  ;;  %v6960_v31 = vrot.slane %v11462_v34, 1 }
 0x631   :  { %12737 = vst [vmem:[#allocation17_spill] sm:$0xff] %v11562_v1 }
 0x635   :  { %6925 = vrot.lane.b32.xlu2 %v11462_v34, %s8197_s28  ;;  %6921 = vrot.lane.b32.xlu0 %v11399_v23, %s8197_s28 }
 0x636   :  { %6917 = vrot.lane.b32.xlu1 %v11338_v10, %s8197_s28 }
 0x637   :  { %v11572_v11 = vpop.permute.xlu0 %6791  ;;  %v11574_v13 = vpop.permute.xlu2 %6857 }
 0x638   :  { %12738 = vst [vmem:[#allocation18_spill] sm:$0xff] %v11572_v11  ;;  %v11576_v56 = vpop.permute.xlu1 %6471  ;;  %v6950_v11 = vrot.slane %v11093_v40, 1 }
 0x639   :  { %12739 = vst [vmem:[#allocation19_spill] sm:$0xff] %v11574_v13  ;;  %v6948_v13 = vrot.slane %v11012_v41, 1 }
 0x63d   :  { %6963 = vrot.lane.b32.xlu2 %v6947_v35, %s8205_s22  ;;  %6927 = vrot.lane.b32.xlu0 %v11495_v57, %s8197_s28 }
 0x63e   :  { %6923 = vrot.lane.b32.xlu1 %v11432_v28, %s8197_s28 }
 0x63f   :  { %v11584_v1 = vpop.permute.xlu0 %6537  ;;  %v6604_v30 = vpop.permute.xlu2 %6603 }
 0x640   :  { %12740 = vst [vmem:[#allocation20_spill] sm:$0xff] %v11584_v1  ;;  %v11586_v25 = vpop.permute.xlu1 %6663 }
 0x641   :  { %12741 = vst [vmem:[#allocation23_spill] sm:$0xff] %v11586_v25  ;;  %v6955_v25 = vrot.slane %v11308_v33, 1 }
 0x645   :  { %6969 = vrot.lane.b32.xlu2 %v6950_v11, %s8205_s22  ;;  %6965 = vrot.lane.b32.xlu0 %v6948_v13, %s8205_s22 }
 0x646   :  { %6929 = vrot.lane.b32.xlu1 %v11590_v26, %s8197_s28 }
 0x647   :  { %v11596_v35 = vpop.permute.xlu0 %6729  ;;  %v6796_v4 = vpop.permute.xlu2 %6795 }
 0x648   :  { %12742 = vst [vmem:[#allocation24_spill] sm:$0xff] %v11596_v35  ;;  %v11598_v1 = vpop.permute.xlu1 %6855  ;;  %v6956_v35 = vrot.slane %v11338_v10, 1 }
 0x649   :  { %12743 = vst [vmem:[#allocation25_spill] sm:$0xff] %v11598_v1  ;;  %v6954_v1 = vrot.slane %v11274_v61, 1 }
 0x64d   :  { %6975 = vrot.lane.b32.xlu2 %v6953_v49, %s8205_s22  ;;  %6971 = vrot.lane.b32.xlu0 %v6951_v48, %s8205_s22 }
 0x64e   :  { %6967 = vrot.lane.b32.xlu1 %v6949_v37, %s8205_s22  ;;  %v6959_v37 = vrot.slane %v11432_v28, 1 }
 0x64f   :  { %v6476_v13 = vpop.permute.xlu0 %6475  ;;  %v6542_v11 = vpop.permute.xlu2 %6541 }
 0x650   :  { %v11606_v24 = vpop.permute.xlu1 %6601 }
 0x651   :  { %12744 = vst [vmem:[#allocation26_spill] sm:$0xff] %v11606_v24  ;;  %v6957_v24 = vrot.slane %v11368_v55, 1 }
 0x655   :  { %6981 = vrot.lane.b32.xlu2 %v6956_v35, %s8205_s22  ;;  %6977 = vrot.lane.b32.xlu0 %v6954_v1, %s8205_s22 }
 0x656   :  { %6973 = vrot.lane.b32.xlu1 %v6952_v3, %s8205_s22  ;;  %v7407_v3 = vsel %vm329_vm5, %v11413_v18, %v6476_v13 }
 0x657   :  { %v6668_v49 = vpop.permute.xlu0 %6667  ;;  %v6734_v48 = vpop.permute.xlu2 %6733 }
 0x658   :  { %v11614_v29 = vpop.permute.xlu1 %6793 }
 0x659   :  { %12745 = vst [vmem:[#allocation28_spill] sm:$0xff] %v11614_v29 }
 0x65d   :  { %6987 = vrot.lane.b32.xlu2 %v6959_v37, %s8205_s22  ;;  %6983 = vrot.lane.b32.xlu0 %v6957_v24, %s8205_s22  ;;  %v6958_v24 = vrot.slane %v11399_v23, 1 }
 0x65e   :  { %6979 = vrot.lane.b32.xlu1 %v6955_v25, %s8205_s22 }
 0x65f   :  { %v6860_v35 = vpop.permute.xlu0 %6859  ;;  %v6480_v1 = vpop.permute.xlu2 %6479 }
 0x660   :  { %v6540_v51 = vpop.permute.xlu1 %6539 }
 0x661   :  { %v7423_v29 = vsel %vm471_vm2, %v7407_v3, %v6540_v51  ;;  %v7013_v3 = vrot.slane %v11051_v52, 2 }
 0x662   :  { %v7439_v60 = vsel %vm5957_vm4, %v7423_v29, %v6604_v30  ;;  %v7011_v29 = vrot.slane %v10963_v43, 2 }
 0x663   :  { %v7455_v37 = vsel %vm2670_vm6, %v7439_v60, %v6668_v49 }
 0x665   :  { %6989 = vrot.lane.b32.xlu0 %v6960_v31, %s8205_s22  ;;  %6993 = vrot.lane.b32.xlu2 %v6962_v50, %s8205_s22  ;;  %v6961_v31 = vrot.slane %v11495_v57, 1 }
 0x666   :  { %6985 = vrot.lane.b32.xlu1 %v6958_v24, %s8205_s22 }
 0x667   :  { %v6606_v25 = vpop.permute.xlu0 %6605  ;;  %v6672_v18 = vpop.permute.xlu2 %6671 }
 0x668   :  { %v6732_v13 = vpop.permute.xlu1 %6731 }
 0x669   :  { %v7471_v51 = vsel %vm6022_vm12, %v7455_v37, %v6732_v13  ;;  %v7014_v13 = vrot.slane %v11093_v40, 2 }
 0x66a   :  { %v7487_v30 = vsel %vm2703_vm7, %v7471_v51, %v6796_v4 }
 0x66b   :  { %v11638_v60 = vsel %vm6087_vm13, %v7487_v30, %v6860_v35  ;;  %v7016_v35 = vrot.slane %v11188_v32, 2  ;;  %v7012_v30 = vrot.slane %v11012_v41, 2 }
 0x66d   :  { %7027 = vrot.lane.b32.xlu0 %v7011_v29, %s8198_s18  ;;  %7031 = vrot.lane.b32.xlu2 %v7013_v3, %s8198_s18  ;;  %v7409_v29 = vsel %vm329_vm5, %v11478_v16, %v6480_v1 }
 0x66e   :  { %6991 = vrot.lane.b32.xlu1 %v6961_v31, %s8205_s22 }
 0x66f   :  { %v6798_v50 = vpop.permute.xlu0 %6797  ;;  %v6864_v49 = vpop.permute.xlu2 %6863 }
 0x670   :  { %v6478_v37 = vpop.permute.xlu1 %6477 }
 0x671   :  { %v7408_v4 = vsel %vm329_vm5, %v11446_v8, %v6478_v37 }
 0x672   :  { %v7424_v24 = vsel %vm471_vm2, %v7408_v4, %v6542_v11  ;;  %v7017_v4 = vrot.slane %v11235_v20, 2 }
 0x673   :  { %v7440_v51 = vsel %vm5957_vm4, %v7424_v24, %v6606_v25  ;;  %v7019_v24 = vrot.slane %v11308_v33, 2 }
 0x675   :  { %7033 = vrot.lane.b32.xlu0 %v7014_v13, %s8198_s18  ;;  %7037 = vrot.lane.b32.xlu2 %v7016_v35, %s8198_s18  ;;  %v7015_v35 = vrot.slane %v11139_v2, 2 }
 0x676   :  { %7029 = vrot.lane.b32.xlu1 %v7012_v30, %s8198_s18 }
 0x677   :  { %v6544_v8 = vpop.permute.xlu0 %6543  ;;  %v6610_v3 = vpop.permute.xlu2 %6609 }
 0x678   :  { %v6670_v11 = vpop.permute.xlu1 %6669  ;;  %v7425_v31 = vsel %vm471_vm2, %v7409_v29, %v6544_v8  ;;  %v7022_v29 = vrot.slane %v11399_v23, 2  ;;  %v7018_v8 = vrot.slane %v11274_v61, 2 }
 0x679   :  { %v7456_v37 = vsel %vm2670_vm6, %v7440_v51, %v6670_v11 }
 0x67a   :  { %v7472_v25 = vsel %vm6022_vm12, %v7456_v37, %v6734_v48  ;;  %v7020_v48 = vrot.slane %v11338_v10, 2 }
 0x67b   :  { %v7488_v13 = vsel %vm2703_vm7, %v7472_v25, %v6798_v50 }
 0x67d   :  { %7039 = vrot.lane.b32.xlu0 %v7017_v4, %s8198_s18  ;;  %7043 = vrot.lane.b32.xlu2 %v7019_v24, %s8198_s18  ;;  %v7023_v24 = vrot.slane %v11432_v28, 2 }
 0x67e   :  { %7035 = vrot.lane.b32.xlu1 %v7015_v35, %s8198_s18 }
 0x67f   :  { %v6736_v16 = vpop.permute.xlu0 %6735  ;;  %v6802_v1 = vpop.permute.xlu2 %6801 }
 0x680   :  { %v6862_v30 = vpop.permute.xlu1 %6861 }
 0x681   :  { %v7504_v51 = vsel %vm6087_vm13, %v7488_v13, %v6862_v30  ;;  %v7025_v13 = vrot.slane %v11495_v57, 2  ;;  %v7021_v30 = vrot.slane %v11368_v55, 2 }
 0x685   :  { %7045 = vrot.lane.b32.xlu0 %v7020_v48, %s8198_s18  ;;  %7049 = vrot.lane.b32.xlu2 %v7022_v29, %s8198_s18 }
 0x686   :  { %7041 = vrot.lane.b32.xlu1 %v7018_v8, %s8198_s18 }
 0x687   :  { %v11673_v50 = vpop.permute.xlu2 %6919  ;;  %v6482_v11 = vpop.permute.xlu0 %6481 }
 0x688   :  { %v6608_v37 = vpop.permute.xlu1 %6607 }
 0x689   :  { %v7441_v25 = vsel %vm5957_vm4, %v7425_v31, %v6608_v37 }
 0x68a   :  { %v7457_v4 = vsel %vm2670_vm6, %v7441_v25, %v6672_v18  ;;  %v7076_v25 = vrot.slane %v11012_v41, 3 }
 0x68b   :  { %v7473_v35 = vsel %vm6022_vm12, %v7457_v4, %v6736_v16  ;;  %v7026_v16 = vrot.slane %v11590_v26, 2  ;;  %v7024_v4 = vrot.slane %v11462_v34, 2 }
 0x68d   :  { %7051 = vrot.lane.b32.xlu0 %v7023_v24, %s8198_s18  ;;  %7055 = vrot.lane.b32.xlu2 %v7025_v13, %s8198_s18  ;;  %v7410_v13 = vsel %vm329_vm5, %v11514_v17, %v6482_v11 }
 0x68e   :  { %7047 = vrot.lane.b32.xlu1 %v7021_v30, %s8198_s18 }
 0x68f   :  { %v6926_v48 = vpop.permute.xlu2 %6925  ;;  %v6674_v29 = vpop.permute.xlu0 %6673 }
 0x690   :  { %v6800_v8 = vpop.permute.xlu1 %6799  ;;  %v11685_v31 = vsel %vm2736_vm8, %v7504_v51, %v6926_v48  ;;  %v7077_v48 = vrot.slane %v11051_v52, 3 }
 0x691   :  { %v7489_v18 = vsel %vm2703_vm7, %v7473_v35, %v6800_v8  ;;  %v7079_v8 = vrot.slane %v11139_v2, 3 }
 0x692   :  { %v7505_v37 = vsel %vm6087_vm13, %v7489_v18, %v6864_v49 }
 0x695   :  { %7057 = vrot.lane.b32.xlu0 %v7026_v16, %s8198_s18  ;;  %7093 = vrot.lane.b32.xlu2 %v7076_v25, %s8206_s3  ;;  %v7075_v16 = vrot.slane %v10963_v43, 3 }
 0x696   :  { %7053 = vrot.lane.b32.xlu1 %v7024_v4, %s8198_s18 }
 0x697   :  { %v11695_v24 = vpop.permute.xlu2 %6963  ;;  %v6866_v51 = vpop.permute.xlu0 %6865 }
 0x698   :  { %v6546_v35 = vpop.permute.xlu1 %6545 }
 0x699   :  { %v7426_v49 = vsel %vm471_vm2, %v7410_v13, %v6546_v35  ;;  %v7080_v35 = vrot.slane %v11188_v32, 3 }
 0x69a   :  { %v7442_v30 = vsel %vm5957_vm4, %v7426_v49, %v6610_v3  ;;  %v7404_v3 = vsel %vm329_vm5, %v11322_v47, %v11524_v14  ;;  %v7082_v49 = vrot.slane %v11274_v61, 3 }
 0x69b   :  { %v7458_v18 = vsel %vm2670_vm6, %v7442_v30, %v6674_v29  ;;  %v7420_v29 = vsel %vm471_vm2, %v7404_v3, %v11552_v45  ;;  %v7081_v3 = vrot.slane %v11235_v20, 3 }
 0x69d   :  { %7095 = vrot.lane.b32.xlu0 %v7077_v48, %s8206_s3  ;;  %7099 = vrot.lane.b32.xlu2 %v7079_v8, %s8206_s3  ;;  %v7436_v48 = vsel %vm5957_vm4, %v7420_v29, %v11500_v38  ;;  %v7078_v8 = vrot.slane %v11093_v40, 3 }
 0x69e   :  { %7091 = vrot.lane.b32.xlu1 %v7075_v16, %s8206_s3  ;;  %v7452_v47 = vsel %vm2670_vm6, %v7436_v48, %v11536_v53  ;;  %v7085_v16 = vrot.slane %v11368_v55, 3  ;;  %v7084_v48 = vrot.slane %v11338_v10, 3 }
 0x69f   :  { %v11708_v17 = vpop.permute.xlu2 %6969  ;;  %v11710_v11 = vpop.permute.xlu0 %6915 }
 0x6a0   :  { %v6738_v25 = vpop.permute.xlu1 %6737 }
 0x6a1   :  { %v7474_v4 = vsel %vm6022_vm12, %v7458_v18, %v6738_v25  ;;  %v7083_v18 = vrot.slane %v11308_v33, 3 }
 0x6a2   :  { %v7490_v13 = vsel %vm2703_vm7, %v7474_v4, %v6802_v1  ;;  %v7468_v1 = vsel %vm6022_vm12, %v7452_v47, %v11564_v12 }
 0x6a3   :  { %v7506_v30 = vsel %vm6087_vm13, %v7490_v13, %v6866_v51  ;;  %v7484_v38 = vsel %vm2703_vm7, %v7468_v1, %v11512_v46 }
 0x6a4   :  { %v7500_v53 = vsel %vm6087_vm13, %v7484_v38, %v11548_v62  ;;  %v7088_v62 = vrot.slane %v11462_v34, 3 }
 0x6a5   :  { %7101 = vrot.lane.b32.xlu0 %v7080_v35, %s8206_s3  ;;  %7105 = vrot.lane.b32.xlu2 %v7082_v49, %s8206_s3  ;;  %v7086_v49 = vrot.slane %v11399_v23, 3 }
 0x6a6   :  { %7097 = vrot.lane.b32.xlu1 %v7078_v8, %s8206_s3 }
 0x6a7   :  { %v11730_v14 = vpop.permute.xlu2 %6975  ;;  %v11732_v45 = vpop.permute.xlu0 %6921 }
 0x6a8   :  { %v6918_v51 = vpop.permute.xlu1 %6917 }
 0x6a9   :  { %v7516_v12 = vsel %vm2736_vm8, %v7500_v53, %v6918_v51 }
 0x6ad   :  { %7107 = vrot.lane.b32.xlu0 %v7083_v18, %s8206_s3  ;;  %7111 = vrot.lane.b32.xlu2 %v7085_v16, %s8206_s3  ;;  %v7089_v16 = vrot.slane %v11495_v57, 3 }
 0x6ae   :  { %7103 = vrot.lane.b32.xlu1 %v7081_v3, %s8206_s3  ;;  %v7139_v3 = vrot.slane %v10963_v43, 4 }
 0x6af   :  { %v6982_v25 = vpop.permute.xlu2 %6981  ;;  %v6928_v29 = vpop.permute.xlu0 %6927 }
 0x6b0   :  { %v11748_v46 = vsel %vm6152_vm14, %v7516_v12, %v6982_v25  ;;  %v6924_v4 = vpop.permute.xlu1 %6923  ;;  %v11751_v13 = vsel %vm2736_vm8, %v7505_v37, %v6928_v29  ;;  %v7397_v37 = vsel %vm329_vm5, %v11029_v7, %v11240_v44  ;;  %v7087_v44 = vrot.slane %v11432_v28, 3 }
 0x6b1   :  { %v7519_v35 = vsel %vm2736_vm8, %v11638_v60, %v6924_v4  ;;  %v7413_v60 = vsel %vm471_vm2, %v7397_v37, %v11278_v22  ;;  %v7405_v25 = vsel %vm329_vm5, %v11352_v39, %v11576_v56  ;;  %v7142_v39 = vrot.slane %v11093_v40, 4 }
 0x6b2   :  { %v7429_v38 = vsel %vm5957_vm4, %v7413_v60, %v11310_v59  ;;  %v7400_v59 = vsel %vm329_vm5, %v11162_v5, %v11348_v63  ;;  %v7140_v63 = vrot.slane %v11012_v41, 4 }
 0x6b3   :  { %v7445_v7 = vsel %vm2670_vm6, %v7429_v38, %v11252_v58  ;;  %v7416_v12 = vsel %vm471_vm2, %v7400_v59, %v11388_v36  ;;  %v7421_v36 = vsel %vm471_vm2, %v7405_v25, %v11526_v0  ;;  %v12748_v0 = vld [vmem:[#allocation65_spill] sm:$0xff]  ;;  %v12751_v38 = vld [vmem:[#allocation82_spill] sm:$0xff] }
 0x6b4   :  { %v7461_v22 = vsel %vm6022_vm12, %v7445_v7, %v11292_v9  ;;  %v7432_v5 = vsel %vm5957_vm4, %v7416_v12, %v11420_v15  ;;  %v12755_v25 = vld [vmem:[#allocation41_spill] sm:$0xff] }
 0x6b5   :  { %7113 = vrot.lane.b32.xlu0 %v7086_v49, %s8206_s3  ;;  %7117 = vrot.lane.b32.xlu2 %v7088_v62, %s8206_s3  ;;  %v7477_v58 = vsel %vm2703_vm7, %v7461_v22, %v11324_v42  ;;  %v7403_v42 = vsel %vm329_vm5, %v11289_v27, %v11458_v6  ;;  %v7448_v56 = vsel %vm2670_vm6, %v7432_v5, %v11362_v21  ;;  %v12746_v49 = vld [vmem:[#allocation8_spill] sm:$0xff]  ;;  %v12753_v22 = vld [vmem:[#allocation11_spill] sm:$0xff]  ;;  %v12756_v5 = vld [vmem:[#allocation14_spill] sm:$0xff] }
 0x6b6   :  { %7109 = vrot.lane.b32.xlu1 %v7084_v48, %s8206_s3  ;;  %v7493_v4 = vsel %vm6087_vm13, %v7477_v58, %v11266_v19  ;;  %v7419_v15 = vsel %vm471_vm2, %v7403_v42, %v11498_v54  ;;  %v12747_v27 = vld [vmem:[#allocation16_spill] sm:$0xff]  ;;  %v12750_v48 = vld [vmem:[#allocation23_spill] sm:$0xff]  ;;  %v7145_v42 = vrot.slane %v11235_v20, 4 }
 0x6b7   :  { %v6988_v8 = vpop.permute.xlu2 %6987  ;;  %v11764_v47 = vpop.permute.xlu0 %6965  ;;  %v7435_v19 = vsel %vm5957_vm4, %v7419_v15, %v12746_v49  ;;  %v7437_v6 = vsel %vm5957_vm4, %v7421_v36, %v12747_v27  ;;  %v7509_v62 = vsel %vm2736_vm8, %v7493_v4, %v12748_v0  ;;  %v12749_v21 = vld [vmem:[#allocation80_spill] sm:$0xff]  ;;  %v12760_v49 = vld [vmem:[#allocation18_spill] sm:$0xff] }
 0x6b8   :  { %v11769_v1 = vsel %vm6152_vm14, %v7519_v35, %v6988_v8  ;;  %v6930_v51 = vpop.permute.xlu1 %6929  ;;  %v7090_v35 = vrot.slane %v11590_v26, 3  ;;  %v7464_v54 = vsel %vm6022_vm12, %v7448_v56, %v12749_v21  ;;  %v7453_v37 = vsel %vm2670_vm6, %v7437_v6, %v12750_v48  ;;  %v12754_v58 = vld [vmem:[#allocation88_spill] sm:$0xff]  ;;  %v12761_v27 = vld [vmem:[#allocation26_spill] sm:$0xff] }
 0x6b9   :  { %v7522_v18 = vsel %vm2736_vm8, %v7506_v30, %v6930_v51  ;;  %v7469_v59 = vsel %vm6022_vm12, %v7453_v37, %v12753_v22  ;;  %v12758_v36 = vld [vmem:[#allocation12_spill] sm:$0xff]  ;;  %v12765_v37 = vld [vmem:[#allocation79_spill] sm:$0xff] }
 0x6ba   :  { %v12759_v56 = vld [vmem:[#allocation20_spill] sm:$0xff] }
 0x6bb   :  { %v12762_v0 = vld [vmem:[#allocation56_spill] sm:$0xff] }
 0x6bd   :  { %7119 = vrot.lane.b32.xlu0 %v7089_v16, %s8206_s3  ;;  %7155 = vrot.lane.b32.xlu2 %v7139_v3, %s8200_s24  ;;  %v12752_v16 = vld [vmem:[#allocation31_spill] sm:$0xff] }
 0x6be   :  { %7115 = vrot.lane.b32.xlu1 %v7087_v44, %s8206_s3  ;;  %v7451_v3 = vsel %vm2670_vm6, %v7435_v19, %v12752_v16  ;;  %v7485_v19 = vsel %vm2703_vm7, %v7469_v59, %v12760_v49  ;;  %v12767_v16 = vld [vmem:[#allocation36_spill] sm:$0xff]  ;;  %v12772_v49 = vld [vmem:[#allocation58_spill] sm:$0xff] }
 0x6bf   :  { %v11787_v30 = vpop.permute.xlu0 %6971  ;;  %v6994_v53 = vpop.permute.xlu2 %6993 }
 0x6c0   :  { %v6968_v29 = vpop.permute.xlu1 %6967  ;;  %v11797_v9 = vsel %vm6152_vm14, %v7522_v18, %v6994_v53  ;;  %v7480_v18 = vsel %vm2703_vm7, %v7464_v54, %v12751_v38  ;;  %v7143_v53 = vrot.slane %v11139_v2, 4  ;;  %v12764_v54 = vld [vmem:[#allocation25_spill] sm:$0xff] }
 0x6c1   :  { %v7525_v8 = vsel %vm6152_vm14, %v7509_v62, %v6968_v29  ;;  %v7496_v12 = vsel %vm6087_vm13, %v7480_v18, %v12754_v58  ;;  %v7467_v29 = vsel %vm6022_vm12, %v7451_v3, %v12755_v25  ;;  %v12763_v62 = vld [vmem:[#allocation48_spill] sm:$0xff]  ;;  %v7501_v48 = vsel %vm6087_vm13, %v7485_v19, %v12764_v54  ;;  %v12768_v58 = vld [vmem:[#allocation17_spill] sm:$0xff] }
 0x6c2   :  { %v7395_v21 = vsel %vm329_vm5, %v12763_v62, %v12762_v0  ;;  %v7517_v18 = vsel %vm2736_vm8, %v7501_v48, %v11673_v50  ;;  %v12775_v62 = vld [vmem:[#allocation63_spill] sm:$0xff]  ;;  %v12776_v54 = vld [vmem:[#allocation64_spill] sm:$0xff]  ;;  %v12777_v48 = vld [vmem:[#allocation57_spill] sm:$0xff] }
 0x6c5   :  { %7157 = vrot.lane.b32.xlu0 %v7140_v63, %s8200_s24  ;;  %7161 = vrot.lane.b32.xlu2 %v7142_v39, %s8200_s24  ;;  %v12757_v63 = vld [vmem:[#allocation50_spill] sm:$0xff]  ;;  %v7483_v39 = vsel %vm2703_vm7, %v7467_v29, %v12758_v36 }
 0x6c6   :  { %7121 = vrot.lane.b32.xlu1 %v7090_v35, %s8206_s3  ;;  %v7406_v4 = vsel %vm329_vm5, %v12757_v63, %v12756_v5  ;;  %v7141_v35 = vrot.slane %v11051_v52, 4  ;;  %v7499_v3 = vsel %vm6087_vm13, %v7483_v39, %v12767_v16  ;;  %v7146_v39 = vrot.slane %v11274_v61, 4  ;;  %v12779_v16 = vld [vmem:[#allocation74_spill] sm:$0xff] }
 0x6c7   :  { %v11829_v60 = vpop.permute.xlu0 %6977  ;;  %v7032_v51 = vpop.permute.xlu2 %7031  ;;  %v7422_v15 = vsel %vm471_vm2, %v7406_v4, %v12759_v56  ;;  %v12769_v4 = vld [vmem:[#allocation38_spill] sm:$0xff]  ;;  %v7148_v56 = vrot.slane %v11338_v10, 4 }
 0x6c8   :  { %v6974_v7 = vpop.permute.xlu1 %6973  ;;  %v11836_v44 = vsel %vm2769_vm9, %v7525_v8, %v7032_v51  ;;  %v7438_v6 = vsel %vm5957_vm4, %v7422_v15, %v12761_v27  ;;  %v7512_v8 = vsel %vm2736_vm8, %v7496_v12, %v12765_v37  ;;  %v12766_v51 = vld [vmem:[#allocation9_spill] sm:$0xff]  ;;  %v7515_v12 = vsel %vm2736_vm8, %v7499_v3, %v11710_v11  ;;  %v12771_v11 = vld [vmem:[#allocation28_spill] sm:$0xff] }
 0x6c9   :  { %v7411_v38 = vsel %vm471_vm2, %v7395_v21, %v12766_v51  ;;  %v7528_v22 = vsel %vm6152_vm14, %v7512_v8, %v6974_v7  ;;  %v7454_v25 = vsel %vm2670_vm6, %v7438_v6, %v12768_v58  ;;  %v12773_v27 = vld [vmem:[#allocation60_spill] sm:$0xff]  ;;  %v12774_v6 = vld [vmem:[#allocation55_spill] sm:$0xff]  ;;  %v7398_v37 = vsel %vm329_vm5, %v12777_v48, %v12776_v54  ;;  %v12790_v48 = vld [vmem:[#allocation78_spill] sm:$0xff] }
 0x6ca   :  { %v7427_v7 = vsel %vm5957_vm4, %v7411_v38, %v12769_v4  ;;  %v7396_v0 = vsel %vm329_vm5, %v12774_v6, %v12773_v27  ;;  %v12778_v8 = vld [vmem:[#allocation19_spill] sm:$0xff]  ;;  %v7414_v3 = vsel %vm471_vm2, %v7398_v37, %v12779_v16  ;;  %v12781_v4 = vld [vmem:[#allocation32_spill] sm:$0xff] }
 0x6cb   :  { %v7443_v19 = vsel %vm2670_vm6, %v7427_v7, %v12772_v49  ;;  %v12787_v6 = vld [vmem:[#allocation59_spill] sm:$0xff] }
 0x6cc   :  { %v7459_v21 = vsel %vm6022_vm12, %v7443_v19, %v12775_v62  ;;  %v12786_v19 = vld [vmem:[#allocation35_spill] sm:$0xff]  ;;  %v12788_v62 = vld [vmem:[#allocation69_spill] sm:$0xff] }
 0x6cd   :  { %7163 = vrot.lane.b32.xlu0 %v7143_v53, %s8200_s24  ;;  %7167 = vrot.lane.b32.xlu2 %v7145_v42, %s8200_s24  ;;  %v12770_v42 = vld [vmem:[#allocation24_spill] sm:$0xff]  ;;  %v7475_v7 = vsel %vm2703_vm7, %v7459_v21, %v12781_v4  ;;  %v12789_v21 = vld [vmem:[#allocation42_spill] sm:$0xff] }
 0x6ce   :  { %7159 = vrot.lane.b32.xlu1 %v7141_v35, %s8200_s24  ;;  %v7470_v36 = vsel %vm6022_vm12, %v7454_v25, %v12770_v42  ;;  %v7144_v35 = vrot.slane %v11188_v32, 4  ;;  %v12780_v25 = vld [vmem:[#allocation43_spill] sm:$0xff]  ;;  %v12782_v42 = vld [vmem:[#allocation66_spill] sm:$0xff]  ;;  %v7399_v54 = vsel %vm329_vm5, %v12789_v21, %v12788_v62 }
 0x6cf   :  { %v6984_v59 = vpop.permute.xlu0 %6983  ;;  %v7038_v53 = vpop.permute.xlu2 %7037  ;;  %v7486_v15 = vsel %vm2703_vm7, %v7470_v36, %v12771_v11  ;;  %v7430_v36 = vsel %vm5957_vm4, %v7414_v3, %v12782_v42  ;;  %v12784_v11 = vld [vmem:[#allocation52_spill] sm:$0xff]  ;;  %v12802_v21 = vld [vmem:[#allocation87_spill] sm:$0xff] }
 0x6d0   :  { %v11880_v29 = vsel %vm6152_vm14, %v7517_v18, %v6984_v59  ;;  %v6980_v5 = vpop.permute.xlu1 %6979  ;;  %v11883_v63 = vsel %vm2769_vm9, %v7528_v22, %v7038_v53  ;;  %v7502_v51 = vsel %vm6087_vm13, %v7486_v15, %v12778_v8  ;;  %v7491_v15 = vsel %vm6087_vm13, %v7475_v7, %v12784_v11  ;;  %v12791_v8 = vld [vmem:[#allocation83_spill] sm:$0xff] }
 0x6d1   :  { %v7531_v50 = vsel %vm6152_vm14, %v7515_v12, %v6980_v5  ;;  %v7518_v22 = vsel %vm2736_vm8, %v7502_v51, %v11732_v45  ;;  %v7412_v12 = vsel %vm471_vm2, %v7396_v0, %v12780_v25  ;;  %v7149_v45 = vrot.slane %v11368_v55, 4  ;;  %v12792_v51 = vld [vmem:[#allocation53_spill] sm:$0xff]  ;;  %v12798_v11 = vld [vmem:[#allocation71_spill] sm:$0xff] }
 0x6d2   :  { %v7507_v27 = vsel %vm2736_vm8, %v7491_v15, %v12786_v19  ;;  %v7446_v0 = vsel %vm2670_vm6, %v7430_v36, %v12787_v6  ;;  %v12794_v25 = vld [vmem:[#allocation81_spill] sm:$0xff]  ;;  %v12795_v36 = vld [vmem:[#allocation75_spill] sm:$0xff] }
 0x6d3   :  { %v7462_v37 = vsel %vm6022_vm12, %v7446_v0, %v12790_v48  ;;  %v12801_v0 = vld [vmem:[#allocation77_spill] sm:$0xff]  ;;  %v12803_v48 = vld [vmem:[#allocation86_spill] sm:$0xff] }
 0x6d5   :  { %7169 = vrot.lane.b32.xlu0 %v7146_v39, %s8200_s24  ;;  %7173 = vrot.lane.b32.xlu2 %v7148_v56, %s8200_s24  ;;  %v12783_v39 = vld [vmem:[#allocation10_spill] sm:$0xff] }
 0x6d6   :  { %7165 = vrot.lane.b32.xlu1 %v7144_v35, %s8200_s24  ;;  %v7428_v56 = vsel %vm5957_vm4, %v7412_v12, %v12783_v39  ;;  %v12785_v35 = vld [vmem:[#allocation62_spill] sm:$0xff] }
 0x6d7   :  { %v6990_v38 = vpop.permute.xlu0 %6989  ;;  %v7044_v18 = vpop.permute.xlu2 %7043  ;;  %v7444_v49 = vsel %vm2670_vm6, %v7428_v56, %v12785_v35  ;;  %v12797_v56 = vld [vmem:[#allocation54_spill] sm:$0xff]  ;;  %v7152_v35 = vrot.slane %v11462_v34, 4 }
 0x6d8   :  { %v11916_v59 = vsel %vm6152_vm14, %v11685_v31, %v6990_v38  ;;  %v6986_v53 = vpop.permute.xlu1 %6985  ;;  %v11919_v58 = vsel %vm2769_vm9, %v7531_v50, %v7044_v18  ;;  %v7151_v31 = vrot.slane %v11432_v28, 4  ;;  %v7147_v50 = vrot.slane %v11308_v33, 4 }
 0x6d9   :  { %v7534_v5 = vsel %vm6152_vm14, %v7518_v22, %v6986_v53  ;;  %v7401_v38 = vsel %vm329_vm5, %v12792_v51, %v12791_v8  ;;  %v7523_v18 = vsel %vm6152_vm14, %v7507_v27, %v11695_v24  ;;  %v12793_v22 = vld [vmem:[#allocation49_spill] sm:$0xff]  ;;  %v12800_v27 = vld [vmem:[#allocation70_spill] sm:$0xff] }
 0x6da   :  { %v7460_v53 = vsel %vm6022_vm12, %v7444_v49, %v12793_v22  ;;  %v7417_v12 = vsel %vm471_vm2, %v7401_v38, %v12794_v25  ;;  %v12799_v49 = vld [vmem:[#allocation72_spill] sm:$0xff]  ;;  %v12804_v8 = vld [vmem:[#allocation61_spill] sm:$0xff] }
 0x6db   :  { %v7433_v15 = vsel %vm5957_vm4, %v7417_v12, %v12798_v11  ;;  %v12805_v38 = vld [vmem:[#allocation37_spill] sm:$0xff]  ;;  %v12808_v25 = vld [vmem:[#allocation68_spill] sm:$0xff] }
 0x6dc   :  { %v7449_v51 = vsel %vm2670_vm6, %v7433_v15, %v12804_v8  ;;  %v12810_v15 = vld [vmem:[#allocation13_spill] sm:$0xff] }
 0x6dd   :  { %7175 = vrot.lane.b32.xlu0 %v7149_v45, %s8200_s24  ;;  %7179 = vrot.lane.b32.xlu2 %v7151_v31, %s8200_s24  ;;  %v7415_v45 = vsel %vm471_vm2, %v7399_v54, %v12795_v36  ;;  %v12796_v31 = vld [vmem:[#allocation67_spill] sm:$0xff] }
 0x6de   :  { %7171 = vrot.lane.b32.xlu1 %v7147_v50, %s8200_s24  ;;  %v7478_v39 = vsel %vm2703_vm7, %v7462_v37, %v12796_v31  ;;  %v7476_v50 = vsel %vm2703_vm7, %v7460_v53, %v12797_v56  ;;  %v7431_v6 = vsel %vm5957_vm4, %v7415_v45, %v12800_v27  ;;  %v12809_v45 = vld [vmem:[#allocation44_spill] sm:$0xff] }
 0x6df   :  { %v7028_v16 = vpop.permute.xlu0 %7027  ;;  %v7050_v3 = vpop.permute.xlu2 %7049  ;;  %v7492_v19 = vsel %vm6087_vm13, %v7476_v50, %v12799_v49  ;;  %v7494_v62 = vsel %vm6087_vm13, %v7478_v39, %v12801_v0  ;;  %v7447_v54 = vsel %vm2670_vm6, %v7431_v6, %v12802_v21  ;;  %v7205_v6 = vrot.slane %v11051_v52, 5 }
 0x6e0   :  { %v11959_v4 = vsel %vm2769_vm9, %v7523_v18, %v7028_v16  ;;  %v6992_v7 = vpop.permute.xlu1 %6991  ;;  %v11962_v42 = vsel %vm2769_vm9, %v7534_v5, %v7050_v3  ;;  %v7154_v5 = vrot.slane %v11590_v26, 4  ;;  %v7510_v37 = vsel %vm2736_vm8, %v7494_v62, %v12803_v48  ;;  %v12806_v18 = vld [vmem:[#allocation51_spill] sm:$0xff]  ;;  %v12807_v3 = vld [vmem:[#allocation22_spill] sm:$0xff] }
 0x6e1   :  { %v7537_v24 = vsel %vm6152_vm14, %v11751_v13, %v6992_v7  ;;  %v7150_v13 = vrot.slane %v11399_v23, 4  ;;  %v7402_v16 = vsel %vm329_vm5, %v12806_v18, %v12805_v38  ;;  %v7465_v22 = vsel %vm6022_vm12, %v7449_v51, %v12807_v3  ;;  %v12817_v51 = vld [vmem:[#allocation33_spill] sm:$0xff] }
 0x6e2   :  { %v7526_v53 = vsel %vm6152_vm14, %v7510_v37, %v11708_v17  ;;  %v7508_v12 = vsel %vm2736_vm8, %v7492_v19, %v12808_v25  ;;  %v7463_v31 = vsel %vm6022_vm12, %v7447_v54, %v12809_v45  ;;  %v7418_v17 = vsel %vm471_vm2, %v7402_v16, %v12810_v15  ;;  %v12812_v19 = vld [vmem:[#allocation76_spill] sm:$0xff]  ;;  %v12815_v54 = vld [vmem:[#allocation21_spill] sm:$0xff]  ;;  %v12819_v25 = vld [vmem:[#allocation15_spill] sm:$0xff] }
 0x6e3   :  { %v7524_v39 = vsel %vm6152_vm14, %v7508_v12, %v11764_v47  ;;  %v7479_v27 = vsel %vm2703_vm7, %v7463_v31, %v12812_v19  ;;  %v7203_v47 = vrot.slane %v10963_v43, 5  ;;  %v7153_v21 = vrot.slane %v11495_v57, 4  ;;  %v12816_v37 = vld [vmem:[#allocation40_spill] sm:$0xff]  ;;  %v12818_v16 = vld [vmem:[#allocation73_spill] sm:$0xff] }
 0x6e4   :  { %v7206_v15 = vrot.slane %v11093_v40, 5  ;;  %vm7587_vm2 = vcmask 850944   ;;  %vm7620_vm5 = vcmask 982016  }
 0x6e5   :  { %7181 = vrot.lane.b32.xlu0 %v7152_v35, %s8200_s24  ;;  %7185 = vrot.lane.b32.xlu2 %v7154_v5, %s8200_s24  ;;  %v12811_v5 = vld [vmem:[#allocation84_spill] sm:$0xff] }
 0x6e6   :  { %7177 = vrot.lane.b32.xlu1 %v7150_v13, %s8200_s24  ;;  %v7481_v49 = vsel %vm2703_vm7, %v7465_v22, %v12811_v5  ;;  %v12813_v13 = vld [vmem:[#allocation89_spill] sm:$0xff]  ;;  %v12821_v5 = vld [vmem:[#allocation7_spill] sm:$0xff] }
 0x6e7   :  { %v7034_v7 = vpop.permute.xlu0 %7033  ;;  %v7056_v36 = vpop.permute.xlu2 %7055  ;;  %v7495_v0 = vsel %vm6087_vm13, %v7479_v27, %v12813_v13  ;;  %v7497_v48 = vsel %vm6087_vm13, %v7481_v49, %v12815_v54  ;;  %v7211_v54 = vrot.slane %v11308_v33, 5 }
 0x6e8   :  { %v12006_v56 = vsel %vm2769_vm9, %v7526_v53, %v7034_v7  ;;  %v7030_v50 = vpop.permute.xlu1 %7029  ;;  %v12009_v11 = vsel %vm2769_vm9, %v7537_v24, %v7056_v36  ;;  %v12814_v24 = vld [vmem:[#allocation30_spill] sm:$0xff]  ;;  %v7513_v38 = vsel %vm2736_vm8, %v7497_v48, %v12817_v51  ;;  %v7511_v3 = vsel %vm2736_vm8, %v7495_v0, %v12818_v16 }
 0x6e9   :  { %v7540_v35 = vsel %vm2769_vm9, %v7524_v39, %v7030_v50  ;;  %v7434_v62 = vsel %vm5957_vm4, %v7418_v17, %v12814_v24  ;;  %v7529_v18 = vsel %vm6152_vm14, %v7513_v38, %v11730_v14  ;;  %v7527_v7 = vsel %vm6152_vm14, %v7511_v3, %v11787_v30  ;;  %v12820_v39 = vld [vmem:[#allocation34_spill] sm:$0xff] }
 0x6ea   :  { %v7450_v8 = vsel %vm2670_vm6, %v7434_v62, %v12816_v37  ;;  %v7208_v17 = vrot.slane %v11188_v32, 5  ;;  %v7204_v30 = vrot.slane %v11012_v41, 5  ;;  %v7207_v48 = vrot.slane %v11139_v2, 5 }
 0x6eb   :  { %v7466_v12 = vsel %vm6022_vm12, %v7450_v8, %v12819_v25  ;;  %v7214_v16 = vrot.slane %v11399_v23, 5  ;;  %v7210_v3 = vrot.slane %v11274_v61, 5 }
 0x6ec   :  { %v7482_v50 = vsel %vm2703_vm7, %v7466_v12, %v12820_v39 }
 0x6ed   :  { %7219 = vrot.lane.b32.xlu0 %v7203_v47, %s8207_s9  ;;  %7223 = vrot.lane.b32.xlu2 %v7205_v6, %s8207_s9  ;;  %v7498_v49 = vsel %vm6087_vm13, %v7482_v50, %v12821_v5  ;;  %v7218_v5 = vrot.slane %v11590_v26, 5 }
 0x6ee   :  { %7183 = vrot.lane.b32.xlu1 %v7153_v21, %s8200_s24  ;;  %v7209_v21 = vrot.slane %v11235_v20, 5 }
 0x6ef   :  { %v7040_v22 = vpop.permute.xlu0 %7039  ;;  %v7094_v53 = vpop.permute.xlu2 %7093 }
 0x6f0   :  { %v12043_v36 = vsel %vm2769_vm9, %v7529_v18, %v7040_v22  ;;  %v7036_v45 = vpop.permute.xlu1 %7035  ;;  %v12046_v31 = vsel %vm6217_vm0, %v7540_v35, %v7094_v53  ;;  %v12822_v35 = vld [vmem:[#allocation85_spill] sm:$0xff]  ;;  %v7212_v18 = vrot.slane %v11338_v10, 5 }
 0x6f1   :  { %v7543_v14 = vsel %vm2769_vm9, %v7527_v7, %v7036_v45  ;;  %v7514_v19 = vsel %vm2736_vm8, %v7498_v49, %v12822_v35  ;;  %v7215_v7 = vrot.slane %v11432_v28, 5  ;;  %v7217_v45 = vrot.slane %v11495_v57, 5 }
 0x6f2   :  { %v7530_v6 = vsel %vm6152_vm14, %v7514_v19, %v11829_v60  ;;  %v7268_v49 = vrot.slane %v11012_v41, 6 }
 0x6f5   :  { %7225 = vrot.lane.b32.xlu0 %v7206_v15, %s8207_s9  ;;  %7229 = vrot.lane.b32.xlu2 %v7208_v17, %s8207_s9 }
 0x6f6   :  { %7221 = vrot.lane.b32.xlu1 %v7204_v30, %s8207_s9  ;;  %v7216_v30 = vrot.slane %v11462_v34, 5 }
 0x6f7   :  { %v7046_v27 = vpop.permute.xlu0 %7045  ;;  %v7100_v47 = vpop.permute.xlu2 %7099 }
 0x6f8   :  { %v12065_v13 = vsel %vm2769_vm9, %v11748_v46, %v7046_v27  ;;  %v7042_v0 = vpop.permute.xlu1 %7041  ;;  %v12068_v24 = vsel %vm6217_vm0, %v7543_v14, %v7100_v47  ;;  %v7213_v14 = vrot.slane %v11368_v55, 5 }
 0x6f9   :  { %v7546_v62 = vsel %vm2769_vm9, %v7530_v6, %v7042_v0  ;;  %v7269_v6 = vrot.slane %v11051_v52, 6  ;;  %v7271_v0 = vrot.slane %v11139_v2, 6 }
 0x6fd   :  { %7231 = vrot.lane.b32.xlu0 %v7209_v21, %s8207_s9  ;;  %7235 = vrot.lane.b32.xlu2 %v7211_v54, %s8207_s9 }
 0x6fe   :  { %7227 = vrot.lane.b32.xlu1 %v7207_v48, %s8207_s9 }
 0x6ff   :  { %v7052_v46 = vpop.permute.xlu0 %7051  ;;  %v7106_v60 = vpop.permute.xlu2 %7105 }
 0x700   :  { %v12079_v37 = vsel %vm2769_vm9, %v11769_v1, %v7052_v46  ;;  %v7048_v8 = vpop.permute.xlu1 %7047  ;;  %v12082_v51 = vsel %vm6217_vm0, %v7546_v62, %v7106_v60  ;;  %v7267_v62 = vrot.slane %v10963_v43, 6  ;;  %v7272_v60 = vrot.slane %v11188_v32, 6 }
 0x701   :  { %v7549_v38 = vsel %vm2769_vm9, %v11880_v29, %v7048_v8  ;;  %v7274_v8 = vrot.slane %v11274_v61, 6 }
 0x705   :  { %7237 = vrot.lane.b32.xlu0 %v7212_v18, %s8207_s9  ;;  %7241 = vrot.lane.b32.xlu2 %v7214_v16, %s8207_s9 }
 0x706   :  { %7233 = vrot.lane.b32.xlu1 %v7210_v3, %s8207_s9 }
 0x707   :  { %v7058_v1 = vpop.permute.xlu0 %7057  ;;  %v7112_v22 = vpop.permute.xlu2 %7111 }
 0x708   :  { %v7054_v53 = vpop.permute.xlu1 %7053  ;;  %v12094_v25 = vsel %vm2769_vm9, %v11797_v9, %v7058_v1  ;;  %v12097_v29 = vsel %vm6217_vm0, %v7549_v38, %v7112_v22  ;;  %v7270_v38 = vrot.slane %v11093_v40, 6  ;;  %v7275_v22 = vrot.slane %v11308_v33, 6 }
 0x709   :  { %v7552_v12 = vsel %vm2769_vm9, %v11916_v59, %v7054_v53  ;;  %v7277_v53 = vrot.slane %v11368_v55, 6 }
 0x70d   :  { %7243 = vrot.lane.b32.xlu0 %v7215_v7, %s8207_s9  ;;  %7247 = vrot.lane.b32.xlu2 %v7217_v45, %s8207_s9 }
 0x70e   :  { %7239 = vrot.lane.b32.xlu1 %v7213_v14, %s8207_s9 }
 0x70f   :  { %v7096_v9 = vpop.permute.xlu0 %7095  ;;  %v7118_v39 = vpop.permute.xlu2 %7117 }
 0x710   :  { %v7092_v50 = vpop.permute.xlu1 %7091  ;;  %v12109_v15 = vsel %vm6217_vm0, %v11836_v44, %v7096_v9  ;;  %v12112_v59 = vsel %vm6217_vm0, %v7552_v12, %v7118_v39  ;;  %v7273_v12 = vrot.slane %v11235_v20, 6  ;;  %v7278_v39 = vrot.slane %v11399_v23, 6 }
 0x711   :  { %v7555_v17 = vsel %vm6217_vm0, %v11959_v4, %v7092_v50  ;;  %v7280_v50 = vrot.slane %v11462_v34, 6 }
 0x715   :  { %7249 = vrot.lane.b32.xlu0 %v7218_v5, %s8207_s9  ;;  %7285 = vrot.lane.b32.xlu2 %v7268_v49, %s8199_s23 }
 0x716   :  { %7245 = vrot.lane.b32.xlu1 %v7216_v30, %s8207_s9 }
 0x717   :  { %v7102_v44 = vpop.permute.xlu0 %7101  ;;  %v7156_v35 = vpop.permute.xlu2 %7155 }
 0x718   :  { %v7098_v19 = vpop.permute.xlu1 %7097  ;;  %v12124_v27 = vsel %vm6217_vm0, %v11883_v63, %v7102_v44  ;;  %v12127_v4 = vsel %vm2802_vm10, %v7555_v17, %v7156_v35  ;;  %v7276_v17 = vrot.slane %v11338_v10, 6  ;;  %v7281_v35 = vrot.slane %v11495_v57, 6 }
 0x719   :  { %v7558_v47 = vsel %vm6217_vm0, %v12006_v56, %v7098_v19  ;;  %v7331_v19 = vrot.slane %v10963_v43, 7 }
 0x71d   :  { %7287 = vrot.lane.b32.xlu0 %v7269_v6, %s8199_s23  ;;  %7291 = vrot.lane.b32.xlu2 %v7271_v0, %s8199_s23 }
 0x71e   :  { %7283 = vrot.lane.b32.xlu1 %v7267_v62, %s8199_s23 }
 0x71f   :  { %v7108_v63 = vpop.permute.xlu0 %7107  ;;  %v7162_v21 = vpop.permute.xlu2 %7161 }
 0x720   :  { %v7104_v54 = vpop.permute.xlu1 %7103  ;;  %v12139_v48 = vsel %vm6217_vm0, %v11919_v58, %v7108_v63  ;;  %v12142_v56 = vsel %vm2802_vm10, %v7558_v47, %v7162_v21  ;;  %v7279_v47 = vrot.slane %v11432_v28, 6  ;;  %v7332_v63 = vrot.slane %v11012_v41, 7 }
 0x721   :  { %v7561_v46 = vsel %vm6217_vm0, %v12043_v36, %v7104_v54  ;;  %v7334_v21 = vrot.slane %v11093_v40, 7  ;;  %v7282_v54 = vrot.slane %v11590_v26, 6  ;;  %v7335_v40 = vrot.slane %v11139_v2, 7 }
 0x725   :  { %7293 = vrot.lane.b32.xlu0 %v7272_v60, %s8199_s23  ;;  %7297 = vrot.lane.b32.xlu2 %v7274_v8, %s8199_s23 }
 0x726   :  { %7289 = vrot.lane.b32.xlu1 %v7270_v38, %s8199_s23  ;;  %v7337_v38 = vrot.slane %v11235_v20, 7  ;;  %v7340_v20 = vrot.slane %v11338_v10, 7  ;;  %v7343_v10 = vrot.slane %v11432_v28, 7  ;;  %v7346_v28 = vrot.slane %v11590_v26, 7 }
 0x727   :  { %v7114_v58 = vpop.permute.xlu0 %7113  ;;  %v7168_v18 = vpop.permute.xlu2 %7167 }
 0x728   :  { %v7110_v16 = vpop.permute.xlu1 %7109  ;;  %v12154_v3 = vsel %vm6217_vm0, %v11962_v42, %v7114_v58  ;;  %v12157_v36 = vsel %vm2802_vm10, %v7561_v46, %v7168_v18  ;;  %v7333_v58 = vrot.slane %v11051_v52, 7  ;;  %v7338_v52 = vrot.slane %v11274_v61, 7 }
 0x729   :  { %v7564_v1 = vsel %vm6217_vm0, %v12065_v13, %v7110_v16 }
 0x72d   :  { %7299 = vrot.lane.b32.xlu0 %v7275_v22, %s8199_s23  ;;  %7303 = vrot.lane.b32.xlu2 %v7277_v53, %s8199_s23  ;;  %v7336_v22 = vrot.slane %v11188_v32, 7  ;;  %v7341_v32 = vrot.slane %v11368_v55, 7  ;;  %v7344_v55 = vrot.slane %v11462_v34, 7  ;;  %v7345_v34 = vrot.slane %v11495_v57, 7 }
 0x72e   :  { %7295 = vrot.lane.b32.xlu1 %v7273_v12, %s8199_s23 }
 0x72f   :  { %v7120_v42 = vpop.permute.xlu0 %7119  ;;  %v7174_v7 = vpop.permute.xlu2 %7173 }
 0x730   :  { %v7116_v45 = vpop.permute.xlu1 %7115  ;;  %v12169_v14 = vsel %vm6217_vm0, %v12009_v11, %v7120_v42  ;;  %v12172_v13 = vsel %vm2802_vm10, %v7564_v1, %v7174_v7  ;;  %v7339_v7 = vrot.slane %v11308_v33, 7  ;;  %v7342_v33 = vrot.slane %v11399_v23, 7 }
 0x731   :  { %v7567_v9 = vsel %vm6217_vm0, %v12079_v37, %v7116_v45 }
 0x735   :  { %7305 = vrot.lane.b32.xlu0 %v7278_v39, %s8199_s23  ;;  %7309 = vrot.lane.b32.xlu2 %v7280_v50, %s8199_s23 }
 0x736   :  { %7301 = vrot.lane.b32.xlu1 %v7276_v17, %s8199_s23 }
 0x737   :  { %v7158_v11 = vpop.permute.xlu0 %7157  ;;  %v7180_v5 = vpop.permute.xlu2 %7179 }
 0x738   :  { %v7122_v49 = vpop.permute.xlu1 %7121  ;;  %v12184_v30 = vsel %vm2802_vm10, %v12046_v31, %v7158_v11  ;;  %v12187_v37 = vsel %vm2802_vm10, %v7567_v9, %v7180_v5 }
 0x739   :  { %v7570_v44 = vsel %vm6217_vm0, %v12094_v25, %v7122_v49 }
 0x73d   :  { %7311 = vrot.lane.b32.xlu0 %v7281_v35, %s8199_s23  ;;  %7347 = vrot.lane.b32.xlu2 %v7331_v19, %s8208_s15 }
 0x73e   :  { %7307 = vrot.lane.b32.xlu1 %v7279_v47, %s8199_s23 }
 0x73f   :  { %v7164_v31 = vpop.permute.xlu0 %7163  ;;  %v7186_v6 = vpop.permute.xlu2 %7185 }
 0x740   :  { %v7160_v0 = vpop.permute.xlu1 %7159  ;;  %v12199_v62 = vsel %vm2802_vm10, %v12068_v24, %v7164_v31  ;;  %v12202_v25 = vsel %vm2802_vm10, %v7570_v44, %v7186_v6 }
 0x741   :  { %v7573_v43 = vsel %vm2802_vm10, %v12109_v15, %v7160_v0 }
 0x745   :  { %7349 = vrot.lane.b32.xlu0 %v7332_v63, %s8208_s15  ;;  %7353 = vrot.lane.b32.xlu2 %v7334_v21, %s8208_s15 }
 0x746   :  { %7313 = vrot.lane.b32.xlu1 %v7282_v54, %s8199_s23 }
 0x747   :  { %v7170_v24 = vpop.permute.xlu0 %7169  ;;  %v7224_v46 = vpop.permute.xlu2 %7223 }
 0x748   :  { %v7166_v60 = vpop.permute.xlu1 %7165  ;;  %v7578_v8 = vsel %vm2802_vm10, %v12082_v51, %v7170_v24  ;;  %v12215_v15 = vsel %vm7587_vm2, %v7573_v43, %v7224_v46 }
 0x749   :  { %v7576_v41 = vsel %vm2802_vm10, %v12124_v27, %v7166_v60 }
 0x74d   :  { %7355 = vrot.lane.b32.xlu0 %v7335_v40, %s8208_s15  ;;  %7359 = vrot.lane.b32.xlu2 %v7337_v38, %s8208_s15 }
 0x74e   :  { %7351 = vrot.lane.b32.xlu1 %v7333_v58, %s8208_s15 }
 0x74f   :  { %v7176_v18 = vpop.permute.xlu0 %7175  ;;  %v7230_v51 = vpop.permute.xlu2 %7229 }
 0x750   :  { %v7172_v16 = vpop.permute.xlu1 %7171  ;;  %v7581_v1 = vsel %vm2802_vm10, %v12097_v29, %v7176_v18  ;;  %v12228_v27 = vsel %vm7587_vm2, %v7576_v41, %v7230_v51  ;;  %v12300_v18 = vld [vmem:[%s12438_s11] sm:$0x1] }
 0x751   :  { %v7579_v2 = vsel %vm2802_vm10, %v12139_v48, %v7172_v16 }
 0x755   :  { %7361 = vrot.lane.b32.xlu0 %v7338_v52, %s8208_s15  ;;  %7365 = vrot.lane.b32.xlu2 %v7340_v20, %s8208_s15  ;;  %v12308_v52 = vld [vmem:[%s12439_s12] sm:$0x1] }
 0x756   :  { %7357 = vrot.lane.b32.xlu1 %v7336_v22, %s8208_s15  ;;  %v12315_v22 = vld [vmem:[%s12440_s13] sm:$0x1]  ;;  %s7806_s13 = sshll.u32 %s12441_s14, 4  ;;  %s7807_s13 = int_to_ptr.hbm [resolvable:$true] %s7806_s13 }
 0x757   :  { %v7182_v53 = vpop.permute.xlu0 %7181  ;;  %v7236_v29 = vpop.permute.xlu2 %7235 }
 0x758   :  { %v7178_v12 = vpop.permute.xlu1 %7177  ;;  %v7584_v42 = vsel %vm2802_vm10, %v12112_v59, %v7182_v53  ;;  %v12241_v48 = vsel %vm7587_vm2, %v7579_v2, %v7236_v29 }
 0x759   :  { %v7582_v61 = vsel %vm2802_vm10, %v12154_v3, %v7178_v12 }
 0x75d   :  { %7367 = vrot.lane.b32.xlu0 %v7341_v32, %s8208_s15  ;;  %7371 = vrot.lane.b32.xlu2 %v7343_v10, %s8208_s15 }
 0x75e   :  { %7363 = vrot.lane.b32.xlu1 %v7339_v7, %s8208_s15 }
 0x75f   :  { %v7220_v45 = vpop.permute.xlu0 %7219  ;;  %v7242_v59 = vpop.permute.xlu2 %7241 }
 0x760   :  { %v7184_v9 = vpop.permute.xlu1 %7183  ;;  %v12252_v39 = vsel %vm7587_vm2, %v7582_v61, %v7242_v59  ;;  %v7588_v58 = vsel %vm7587_vm2, %v12127_v4, %v7220_v45 }
 0x761   :  { %v7585_v3 = vsel %vm2802_vm10, %v12169_v14, %v7184_v9 }
 0x765   :  { %7373 = vrot.lane.b32.xlu0 %v7344_v55, %s8208_s15  ;;  %7377 = vrot.lane.b32.xlu2 %v7346_v28, %s8208_s15 }
 0x766   :  { %7369 = vrot.lane.b32.xlu1 %v7342_v33, %s8208_s15 }
 0x767   :  { %v7226_v50 = vpop.permute.xlu0 %7225  ;;  %v7248_v17 = vpop.permute.xlu2 %7247 }
 0x768   :  { %v7222_v11 = vpop.permute.xlu1 %7221  ;;  %v12263_v5 = vsel %vm7587_vm2, %v7585_v3, %v7248_v17  ;;  %v7591_v12 = vsel %vm7587_vm2, %v12142_v56, %v7226_v50 }
 0x769   :  { %v7589_v14 = vsel %vm7587_vm2, %v12184_v30, %v7222_v11 }
 0x76e   :  { %7375 = vrot.lane.b32.xlu1 %v7345_v34, %s8208_s15 }
 0x76f   :  { %v7232_v23 = vpop.permute.xlu0 %7231  ;;  %v7286_v26 = vpop.permute.xlu2 %7285 }
 0x770   :  { %v7228_v49 = vpop.permute.xlu1 %7227  ;;  %v12270_v44 = vsel %vm2835_vm11, %v7589_v14, %v7286_v26  ;;  %v7594_v56 = vsel %vm7587_vm2, %v12157_v36, %v7232_v23 }
 0x771   :  { %v7592_v35 = vsel %vm7587_vm2, %v12199_v62, %v7228_v49 }
 0x777   :  { %v7238_v19 = vpop.permute.xlu0 %7237  ;;  %v7292_v47 = vpop.permute.xlu2 %7291 }
 0x778   :  { %v7234_v31 = vpop.permute.xlu1 %7233  ;;  %v12275_v6 = vsel %vm2835_vm11, %v7592_v35, %v7292_v47  ;;  %v7597_v23 = vsel %vm7587_vm2, %v12172_v13, %v7238_v19 }
 0x779   :  { %v7595_v30 = vsel %vm7587_vm2, %v7578_v8, %v7234_v31 }
 0x77f   :  { %v12278_v57 = vpop.permute.xlu0 %7243  ;;  %v7298_v0 = vpop.permute.xlu2 %7297 }
 0x780   :  { %v7240_v43 = vpop.permute.xlu1 %7239  ;;  %v12281_v63 = vsel %vm2835_vm11, %v7595_v30, %v7298_v0  ;;  %v7600_v19 = vsel %vm7587_vm2, %v12187_v37, %v12278_v57 }
 0x781   :  { %v7598_v21 = vsel %vm7587_vm2, %v7581_v1, %v7240_v43 }
 0x787   :  { %v12284_v54 = vpop.permute.xlu0 %7249  ;;  %v7304_v62 = vpop.permute.xlu2 %7303 }
 0x788   :  { %v7246_v24 = vpop.permute.xlu1 %7245  ;;  %v12287_v46 = vsel %vm2835_vm11, %v7598_v21, %v7304_v62 }
 0x789   :  { %v7601_v60 = vsel %vm7587_vm2, %v7584_v42, %v7246_v24 }
 0x78f   :  { %v12290_v41 = vpop.permute.xlu0 %7287  ;;  %v7310_v8 = vpop.permute.xlu2 %7309 }
 0x790   :  { %v7284_v40 = vpop.permute.xlu1 %7283  ;;  %v12293_v38 = vsel %vm2835_vm11, %v7601_v60, %v7310_v8 }
 0x791   :  { %v7604_v51 = vsel %vm2835_vm11, %v7588_v58, %v7284_v40 }
 0x797   :  { %v12303_v16 = vpop.permute.xlu0 %7293  ;;  %v7348_v1 = vpop.permute.xlu2 %7347 }
 0x798   :  { %v7290_v2 = vpop.permute.xlu1 %7289  ;;  %v7621_v20 = vsel %vm7620_vm5, %v7604_v51, %v7348_v1 }
 0x799   :  { %v7638_v4 = vadd.f32 %v12300_v18, %v7621_v20  ;;  %v7607_v42 = vsel %vm2835_vm11, %v7591_v12, %v7290_v2 }
 0x79b   :  { %v7655_v53 = vmul.f32 %v12308_v52, %v7638_v4 }
 0x79d   :  { %v7672_v29 = vadd.f32 %v12315_v22, %v7655_v53 }
 0x79f   :  { %v7704_v61 = vmin.f32 %v7672_v29, 0.0  ;;  %v12322_v32 = vpop.permute.xlu0 %7299  ;;  %v7354_v10 = vpop.permute.xlu2 %7353  ;;  %vm7688_vm6 = vcmp.gt.f32.partialorder %v7672_v29, 0.0 }
 0x7a0   :  { %v7296_v7 = vpop.permute.xlu1 %7295  ;;  %v7624_v45 = vsel %vm7620_vm5, %v7607_v42, %v7354_v10 }
 0x7a1   :  { %v7720_v59 = vmul.f32 1.442695, %v7704_v61  ;;  %v7641_v9 = vadd.f32 %v12300_v18, %v7624_v45  ;;  %v7610_v28 = vsel %vm2835_vm11, %v7594_v56, %v7296_v7 }
 0x7a3   :  { %8129 = vpow2.f32 %v7720_v59  ;;  %v7658_v3 = vmul.f32 %v12308_v52, %v7641_v9 }
 0x7a5   :  { %v7675_v55 = vadd.f32 %v12315_v22, %v7658_v3 }
 0x7a7   :  { %v7707_v33 = vmin.f32 %v7675_v55, 0.0  ;;  %v12331_v50 = vpop.permute.xlu0 %7305  ;;  %v7360_v17 = vpop.permute.xlu2 %7359  ;;  %vm7691_vm7 = vcmp.gt.f32.partialorder %v7675_v55, 0.0 }
 0x7a8   :  { %v7302_v11 = vpop.permute.xlu1 %7301  ;;  %v7627_v14 = vsel %vm7620_vm5, %v7610_v28, %v7360_v17 }
 0x7a9   :  { %v8130_v34 = vpop.eup %8129  ;;  %v7726_v26 = vmul.f32 1.442695, %v7707_v33  ;;  %v7644_v49 = vadd.f32 %v12300_v18, %v7627_v14  ;;  %v7613_v30 = vsel %vm2835_vm11, %v7597_v23, %v7302_v11  ;;  %v7606_v14 = vsel %vm2835_vm11, %v12215_v15, %v12290_v41 }
 0x7aa   :  { %v8006_v35 = vadd.f32 -1.0, %v8130_v34 }
 0x7ab   :  { %8131 = vpow2.f32 %v7726_v26  ;;  %v7661_v47 = vmul.f32 %v12308_v52, %v7644_v49 }
 0x7ac   :  { %v7768_v31 = vsel %vm7688_vm6, %v7672_v29, %v8006_v35 }
 0x7ad   :  { %7784 = vst [vmem:[#allocation4] sm:$0x1] %v7768_v31  ;;  %v7678_v36 = vadd.f32 %v12315_v22, %v7661_v47 }
 0x7af   :  { %v7710_v0 = vmin.f32 %v7678_v36, 0.0  ;;  %v12340_v43 = vpop.permute.xlu0 %7311  ;;  %v7366_v21 = vpop.permute.xlu2 %7365  ;;  %vm7694_vm8 = vcmp.gt.f32.partialorder %v7678_v36, 0.0 }
 0x7b0   :  { %v7308_v62 = vpop.permute.xlu1 %7307  ;;  %v7630_v24 = vsel %vm7620_vm5, %v7613_v30, %v7366_v21 }
 0x7b1   :  { %v8132_v60 = vpop.eup %8131  ;;  %v7732_v8 = vmul.f32 1.442695, %v7710_v0  ;;  %v7647_v40 = vadd.f32 %v12300_v18, %v7630_v24  ;;  %v7616_v2 = vsel %vm2835_vm11, %v7600_v19, %v7308_v62 }
 0x7b2   :  { %v8009_v58 = vadd.f32 -1.0, %v8132_v60 }
 0x7b3   :  { %8133 = vpow2.f32 %v7732_v8  ;;  %v7664_v51 = vmul.f32 %v12308_v52, %v7647_v40  ;;  %v7609_v40 = vsel %vm2835_vm11, %v12228_v27, %v12303_v16 }
 0x7b4   :  { %v7771_v1 = vsel %vm7691_vm7, %v7675_v55, %v8009_v58  ;;  %v7603_v55 = vsel %vm7587_vm2, %v12202_v25, %v12284_v54 }
 0x7b5   :  { %7787 = vst [vmem:[#allocation4 + $0x3] sm:$0x1] %v7771_v1  ;;  %v7681_v13 = vadd.f32 %v12315_v22, %v7664_v51 }
 0x7b7   :  { %v7713_v20 = vmin.f32 %v7681_v13, 0.0  ;;  %v7350_v4 = vpop.permute.xlu0 %7349  ;;  %v7372_v53 = vpop.permute.xlu2 %7371  ;;  %vm7697_vm9 = vcmp.gt.f32.partialorder %v7681_v13, 0.0 }
 0x7b8   :  { %v7314_v29 = vpop.permute.xlu1 %7313  ;;  %v7622_v12 = vsel %vm7620_vm5, %v12270_v44, %v7350_v4  ;;  %v7633_v42 = vsel %vm7620_vm5, %v7616_v2, %v7372_v53 }
 0x7b9   :  { %v8134_v61 = vpop.eup %8133  ;;  %v7738_v10 = vmul.f32 1.442695, %v7713_v20  ;;  %v7639_v7 = vadd.f32 %v12300_v18, %v7622_v12  ;;  %v7650_v45 = vadd.f32 %v12300_v18, %v7633_v42  ;;  %v7619_v56 = vsel %vm2835_vm11, %v7603_v55, %v7314_v29 }
 0x7ba   :  { %v8012_v59 = vadd.f32 -1.0, %v8134_v61 }
 0x7bb   :  { %8135 = vpow2.f32 %v7738_v10  ;;  %v7656_v37 = vmul.f32 %v12308_v52, %v7639_v7  ;;  %v7667_v57 = vmul.f32 %v12308_v52, %v7650_v45 }
 0x7bc   :  { %v7774_v9 = vsel %vm7694_vm8, %v7678_v36, %v8012_v59 }
 0x7bd   :  { %7790 = vst [vmem:[#allocation4 + $0x6] sm:$0x1] %v7774_v9  ;;  %v7673_v3 = vadd.f32 %v12315_v22, %v7656_v37  ;;  %v7684_v44 = vadd.f32 %v12315_v22, %v7667_v57  ;;  %v7612_v57 = vsel %vm2835_vm11, %v12241_v48, %v12322_v32 }
 0x7bf   :  { %v7705_v28 = vmin.f32 %v7673_v3, 0.0  ;;  %v7716_v33 = vmin.f32 %v7684_v44, 0.0  ;;  %v7356_v17 = vpop.permute.xlu0 %7355  ;;  %v7378_v11 = vpop.permute.xlu2 %7377  ;;  %vm7689_vm10 = vcmp.gt.f32.partialorder %v7673_v3, 0.0  ;;  %vm7700_vm4 = vcmp.gt.f32.partialorder %v7684_v44, 0.0 }
 0x7c0   :  { %v7352_v34 = vpop.permute.xlu1 %7351  ;;  %v7625_v26 = vsel %vm7620_vm5, %v12275_v6, %v7356_v17  ;;  %v7636_v49 = vsel %vm7620_vm5, %v7619_v56, %v7378_v11 }
 0x7c1   :  { %v8136_v35 = vpop.eup %8135  ;;  %v7722_v47 = vmul.f32 1.442695, %v7705_v28  ;;  %v7744_v31 = vmul.f32 1.442695, %v7716_v33  ;;  %v7623_v25 = vsel %vm7620_vm5, %v7606_v14, %v7352_v34  ;;  %v7642_v54 = vadd.f32 %v12300_v18, %v7625_v26 }
 0x7c2   :  { %v8015_v36 = vadd.f32 -1.0, %v8136_v35  ;;  %v7640_v23 = vadd.f32 %v12300_v18, %v7623_v25  ;;  %v7653_v30 = vadd.f32 %v12300_v18, %v7636_v49 }
 0x7c3   :  { %8137 = vpow2.f32 %v7722_v47  ;;  %v7659_v15 = vmul.f32 %v12308_v52, %v7642_v54 }
 0x7c4   :  { %v7777_v41 = vsel %vm7697_vm9, %v7681_v13, %v8015_v36  ;;  %8139 = vpow2.f32 %v7744_v31  ;;  %v7657_v6 = vmul.f32 %v12308_v52, %v7640_v23  ;;  %v7670_v0 = vmul.f32 %v12308_v52, %v7653_v30 }
 0x7c5   :  { %7793 = vst [vmem:[#allocation4 + $0x9] sm:$0x1] %v7777_v41  ;;  %v7676_v21 = vadd.f32 %v12315_v22, %v7659_v15  ;;  %v7615_v15 = vsel %vm2835_vm11, %v12252_v39, %v12331_v50 }
 0x7c6   :  { %v7674_v62 = vadd.f32 %v12315_v22, %v7657_v6  ;;  %v7687_v24 = vadd.f32 %v12315_v22, %v7670_v0 }
 0x7c7   :  { %v7708_v60 = vmin.f32 %v7676_v21, 0.0  ;;  %v7362_v8 = vpop.permute.xlu0 %7361  ;;  %vm7692_vm12 = vcmp.gt.f32.partialorder %v7676_v21, 0.0 }
 0x7c8   :  { %v7706_v58 = vmin.f32 %v7674_v62, 0.0  ;;  %v7719_v51 = vmin.f32 %v7687_v24, 0.0  ;;  %v7358_v1 = vpop.permute.xlu1 %7357  ;;  %v7628_v20 = vsel %vm7620_vm5, %v12281_v63, %v7362_v8  ;;  %vm7690_vm13 = vcmp.gt.f32.partialorder %v7674_v62, 0.0 }
 0x7c9   :  { %v8138_v13 = vpop.eup %8137  ;;  %v7728_v19 = vmul.f32 1.442695, %v7708_v60  ;;  %v7626_v2 = vsel %vm7620_vm5, %v7609_v40, %v7358_v1  ;;  %v7645_v27 = vadd.f32 %v12300_v18, %v7628_v20  ;;  %vm7703_vm14 = vcmp.gt.f32.partialorder %v7687_v24, 0.0 }
 0x7ca   :  { %v8140_v4 = vpop.eup %8139  ;;  %v8007_v53 = vadd.f32 -1.0, %v8138_v13  ;;  %v7724_v29 = vmul.f32 1.442695, %v7706_v58  ;;  %v7750_v12 = vmul.f32 1.442695, %v7719_v51  ;;  %v7643_v42 = vadd.f32 %v12300_v18, %v7626_v2 }
 0x7cb   :  { %v8018_v61 = vadd.f32 -1.0, %v8140_v4  ;;  %8141 = vpow2.f32 %v7728_v19  ;;  %v7662_v63 = vmul.f32 %v12308_v52, %v7645_v27  ;;  %v7618_v4 = vsel %vm2835_vm11, %v12263_v5, %v12340_v43 }
 0x7cc   :  { %v7769_v16 = vsel %vm7689_vm10, %v7673_v3, %v8007_v53  ;;  %8143 = vpow2.f32 %v7724_v29  ;;  %v7660_v10 = vmul.f32 %v12308_v52, %v7643_v42 }
 0x7cd   :  { %7785 = vst [vmem:[#allocation4 + $0x1] sm:$0x1] %v7769_v16  ;;  %v7780_v7 = vsel %vm7700_vm4, %v7684_v44, %v8018_v61  ;;  %8145 = vpow2.f32 %v7750_v12  ;;  %v7679_v59 = vadd.f32 %v12315_v22, %v7662_v63 }
 0x7ce   :  { %7796 = vst [vmem:[#allocation4 + $0xc] sm:$0x1] %v7780_v7  ;;  %v7677_v45 = vadd.f32 %v12315_v22, %v7660_v10 }
 0x7cf   :  { %v7368_v37 = vpop.permute.xlu0 %7367  ;;  %v7711_v44 = vmin.f32 %v7679_v59, 0.0  ;;  %vm7695_vm15 = vcmp.gt.f32.partialorder %v7679_v59, 0.0 }
 0x7d0   :  { %v7709_v9 = vmin.f32 %v7677_v45, 0.0  ;;  %v7364_v3 = vpop.permute.xlu1 %7363  ;;  %v7631_v55 = vsel %vm7620_vm5, %v12287_v46, %v7368_v37  ;;  %vm7693_vm0 = vcmp.gt.f32.partialorder %v7677_v45, 0.0 }
 0x7d1   :  { %v8142_v56 = vpop.eup %8141  ;;  %v7629_v28 = vsel %vm7620_vm5, %v7612_v57, %v7364_v3  ;;  %v7648_v33 = vadd.f32 %v12300_v18, %v7631_v55  ;;  %v7734_v32 = vmul.f32 1.442695, %v7711_v44 }
 0x7d2   :  { %v8144_v17 = vpop.eup %8143  ;;  %v8010_v11 = vadd.f32 -1.0, %v8142_v56  ;;  %v7730_v14 = vmul.f32 1.442695, %v7709_v9  ;;  %v7646_v34 = vadd.f32 %v12300_v18, %v7629_v28 }
 0x7d3   :  { %v8146_v26 = vpop.eup %8145  ;;  %v8008_v48 = vadd.f32 -1.0, %v8144_v17  ;;  %v7665_v49 = vmul.f32 %v12308_v52, %v7648_v33 }
 0x7d4   :  { %v7772_v35 = vsel %vm7692_vm12, %v7676_v21, %v8010_v11  ;;  %v8021_v46 = vadd.f32 -1.0, %v8146_v26  ;;  %8147 = vpow2.f32 %v7730_v14  ;;  %v7663_v47 = vmul.f32 %v12308_v52, %v7646_v34 }
 0x7d5   :  { %v7770_v31 = vsel %vm7690_vm13, %v7674_v62, %v8008_v48  ;;  %7788 = vst [vmem:[#allocation4 + $0x4] sm:$0x1] %v7772_v35  ;;  %8149 = vpow2.f32 %v7734_v32  ;;  %v7682_v25 = vadd.f32 %v12315_v22, %v7665_v49 }
 0x7d6   :  { %7786 = vst [vmem:[#allocation4 + $0x2] sm:$0x1] %v7770_v31  ;;  %v7783_v54 = vsel %vm7703_vm14, %v7687_v24, %v8021_v46  ;;  %v7680_v36 = vadd.f32 %v12315_v22, %v7663_v47 }
 0x7d7   :  { %7799 = vst [vmem:[#allocation4 + $0xf] sm:$0x1] %v7783_v54  ;;  %v7714_v23 = vmin.f32 %v7682_v25, 0.0  ;;  %v7374_v30 = vpop.permute.xlu0 %7373  ;;  %vm7698_vm1 = vcmp.gt.f32.partialorder %v7682_v25, 0.0 }
 0x7d8   :  { %v7712_v41 = vmin.f32 %v7680_v36, 0.0  ;;  %v7370_v6 = vpop.permute.xlu1 %7369  ;;  %v7634_v0 = vsel %vm7620_vm5, %v12293_v38, %v7374_v30  ;;  %vm7696_vm3 = vcmp.gt.f32.partialorder %v7680_v36, 0.0 }
 0x7d9   :  { %v7740_v21 = vmul.f32 1.442695, %v7714_v23  ;;  %v7632_v62 = vsel %vm7620_vm5, %v7615_v15, %v7370_v6  ;;  %v7651_v60 = vadd.f32 %v12300_v18, %v7634_v0 }
 0x7da   :  { %v8148_v24 = vpop.eup %8147  ;;  %v7736_v8 = vmul.f32 1.442695, %v7712_v41  ;;  %v7649_v40 = vadd.f32 %v12300_v18, %v7632_v62 }
 0x7db   :  { %v8150_v58 = vpop.eup %8149  ;;  %v8011_v51 = vadd.f32 -1.0, %v8148_v24  ;;  %8151 = vpow2.f32 %v7740_v21  ;;  %v7668_v1 = vmul.f32 %v12308_v52, %v7651_v60 }
 0x7dc   :  { %v8013_v39 = vadd.f32 -1.0, %v8150_v58  ;;  %8153 = vpow2.f32 %v7736_v8  ;;  %v7666_v50 = vmul.f32 %v12308_v52, %v7649_v40 }
 0x7dd   :  { %v7773_v38 = vsel %vm7693_vm0, %v7677_v45, %v8011_v51  ;;  %v7685_v13 = vadd.f32 %v12315_v22, %v7668_v1 }
 0x7de   :  { %7789 = vst [vmem:[#allocation4 + $0x5] sm:$0x1] %v7773_v38  ;;  %v7775_v19 = vsel %vm7695_vm15, %v7679_v59, %v8013_v39  ;;  %v7683_v2 = vadd.f32 %v12315_v22, %v7666_v50 }
 0x7df   :  { %7791 = vst [vmem:[#allocation4 + $0x7] sm:$0x1] %v7775_v19  ;;  %v7717_v20 = vmin.f32 %v7685_v13, 0.0  ;;  %vm7701_vm11 = vcmp.gt.f32.partialorder %v7685_v13, 0.0 }
 0x7e0   :  { %v7715_v53 = vmin.f32 %v7683_v2, 0.0  ;;  %v7376_v29 = vpop.permute.xlu1 %7375  ;;  %vm7699_vm2 = vcmp.gt.f32.partialorder %v7683_v2, 0.0 }
 0x7e1   :  { %v8152_v12 = vpop.eup %8151  ;;  %v7746_v42 = vmul.f32 1.442695, %v7717_v20  ;;  %v7635_v61 = vsel %vm7620_vm5, %v7618_v4, %v7376_v29 }
 0x7e2   :  { %v8154_v27 = vpop.eup %8153  ;;  %v8016_v16 = vadd.f32 -1.0, %v8152_v12  ;;  %v7742_v10 = vmul.f32 1.442695, %v7715_v53  ;;  %v7652_v7 = vadd.f32 %v12300_v18, %v7635_v61 }
 0x7e3   :  { %v8014_v63 = vadd.f32 -1.0, %v8154_v27  ;;  %8155 = vpow2.f32 %v7746_v42 }
 0x7e4   :  { %v7778_v45 = vsel %vm7698_vm1, %v7682_v25, %v8016_v16  ;;  %8157 = vpow2.f32 %v7742_v10  ;;  %v7669_v59 = vmul.f32 %v12308_v52, %v7652_v7 }
 0x7e5   :  { %v7776_v5 = vsel %vm7696_vm3, %v7680_v36, %v8014_v63  ;;  %7794 = vst [vmem:[#allocation4 + $0xa] sm:$0x1] %v7778_v45 }
 0x7e6   :  { %7792 = vst [vmem:[#allocation4 + $0x8] sm:$0x1] %v7776_v5  ;;  %v7686_v43 = vadd.f32 %v12315_v22, %v7669_v59 }
 0x7e8   :  { %v7718_v37 = vmin.f32 %v7686_v43, 0.0  ;;  %vm7702_vm5 = vcmp.gt.f32.partialorder %v7686_v43, 0.0 }
 0x7e9   :  { %v8156_v57 = vpop.eup %8155 }
 0x7ea   :  { %v8158_v9 = vpop.eup %8157  ;;  %v8019_v3 = vadd.f32 -1.0, %v8156_v57  ;;  %v7748_v55 = vmul.f32 1.442695, %v7718_v37 }
 0x7eb   :  { %v8017_v56 = vadd.f32 -1.0, %v8158_v9 }
 0x7ec   :  { %v7781_v18 = vsel %vm7701_vm11, %v7685_v13, %v8019_v3  ;;  %8159 = vpow2.f32 %v7748_v55 }
 0x7ed   :  { %v7779_v44 = vsel %vm7699_vm2, %v7683_v2, %v8017_v56  ;;  %7797 = vst [vmem:[#allocation4 + $0xd] sm:$0x1] %v7781_v18 }
 0x7ee   :  { %7795 = vst [vmem:[#allocation4 + $0xb] sm:$0x1] %v7779_v44 }
 0x7f2   :  { %v8160_v52 = vpop.eup %8159 }
 0x7f3   :  { %v8020_v22 = vadd.f32 -1.0, %v8160_v52 }
 0x7f5   :  { %v7782_v28 = vsel %vm7702_vm5, %v7686_v43, %v8020_v22 }
 0x7f6   :  { %7798 = vst [vmem:[#allocation4 + $0xe] sm:$0x1] %v7782_v28 }
 0x7f7   :  { %7812 = dma.vmem_to_hbm [thread:$0]  %s7805_s1, 256, %s7807_s13, [#allocation5], %s8194_s4, %s8194_s4, %s8210_s16  }
 0x7f8   :  { %8191 = dma.done.wait [#allocation5], 256  }
 0x7f9   :  { %8192 = vsyncadd [#allocation5], 4294967040 }
 0x7fa   :  { %7817 = vsyncpa [#allocation5], 1 }

</bundles_post_ra>
